<compile_context>
chip_gen: v7x
topology: tpu7x:2x2x1
jax: 0.10.0
libtpu: 0.0.40
codegen_flags: <defaults>
</compile_context>

<pallas_src>
import numpy as np

import jax
import jax.numpy as jnp
from jax.experimental import pallas as pl
from jax.experimental.pallas import tpu as pltpu


# ---------------------------------------------------------------------------
# LeNet geometry (fixed by the PyTorch module)
# ---------------------------------------------------------------------------
_C_IN, _H_IN, _W_IN = 3, 32, 32
_C1, _K = 6, 5
_H1, _W1 = 28, 28            # conv1 output
_HP1, _WP1 = 14, 14          # pool1 output
_C2 = 16
_H2, _W2 = 10, 10            # conv2 output
_HP2, _WP2 = 5, 5            # pool2 output
_F1, _F2 = 120, 84


# ---------------------------------------------------------------------------
# Constant 0/1 selection matrices (numpy, built once at import time)
# ---------------------------------------------------------------------------
def _pool_select(h, w):
    """[4, h*w, (h//2)*(w//2)]: right-multiplying a lane-dense [C, h*w]
    activation by matrix (2*a+b) extracts 2x2-pool phase (a, b)."""
    oh, ow = h // 2, w // 2
    s = np.zeros((2, 2, h * w, oh * ow), np.float32)
    for a in range(2):
        for b in range(2):
            for i in range(oh):
                for j in range(ow):
                    s[a, b, (2 * i + a) * w + (2 * j + b), i * ow + j] = 1.0
    return s.reshape(4, h * w, oh * ow)


def _shift_select(h, w, kh, kw):
    """[kh*kw, h*w, oh*ow]: right-multiplying a lane-dense [C, h*w] activation
    by matrix (ki*kw+kj) extracts the (ki, kj)-shifted valid conv window,
    flattened to oh*ow columns."""
    oh, ow = h - kh + 1, w - kw + 1
    t = np.zeros((kh, kw, h * w, oh * ow), np.float32)
    for ki in range(kh):
        for kj in range(kw):
            for m in range(oh):
                for n in range(ow):
                    t[ki, kj, (m + ki) * w + (n + kj), m * ow + n] = 1.0
    return t.reshape(kh * kw, h * w, oh * ow)


_POOL1_SEL = _pool_select(_H1, _W1)               # [4, 784, 196]
_SHIFT2_SEL = _shift_select(_HP1, _WP1, _K, _K)   # [25, 196, 100]
_POOL2_SEL = _pool_select(_H2, _W2)               # [4, 100, 25]


# ---------------------------------------------------------------------------
# Fused Pallas kernel: whole LeNet forward for one image per grid step
# ---------------------------------------------------------------------------
def _lenet_kernel(xp_ref, w1_ref, b1_ref, s1_ref, t2_ref, w2_ref, b2_ref,
                  s2_ref, wf1_ref, bf1_ref, wf2_ref, bf2_ref, wf3_ref,
                  bf3_ref, out_ref, p2_scr):
    f32 = jnp.float32

    # conv1 + bias + ReLU: one MXU matmul, lane-dense [6, 784] output.
    c1 = jnp.dot(w1_ref[...], xp_ref[0], preferred_element_type=f32)
    c1 = jnp.maximum(c1 + b1_ref[...], 0.0)

    # pool1 (2x2 max): max of 4 phase-selection matmuls -> [6, 196].
    p1 = jnp.dot(c1, s1_ref[0], preferred_element_type=f32)
    for a in range(1, 4):
        p1 = jnp.maximum(p1, jnp.dot(c1, s1_ref[a], preferred_element_type=f32))

    # conv2 + bias + ReLU: 25 taps; each tap = window-shift (selection matmul)
    # followed by a [16, 6] x [6, 100] channel matmul -> [16, 100].
    acc = jnp.zeros((_C2, _H2 * _W2), f32)
    for k in range(_K * _K):
        shifted = jnp.dot(p1, t2_ref[k], preferred_element_type=f32)       # [6, 100]
        acc = acc + jnp.dot(w2_ref[k], shifted, preferred_element_type=f32)
    c2 = jnp.maximum(acc + b2_ref[...], 0.0)

    # pool2 (2x2 max) -> [16, 25]; columns ordered r*5 + s (matches .view(-1, 400)).
    p2 = jnp.dot(c2, s2_ref[0], preferred_element_type=f32)
    for a in range(1, 4):
        p2 = jnp.maximum(p2, jnp.dot(c2, s2_ref[a], preferred_element_type=f32))
    p2_scr[...] = p2

    # fc1: contract over (channel, 5x5 spatial) without any reshape --
    # accumulate per-channel [1, 25] x [25, 120] matmuls.
    h = jnp.zeros((1, _F1), f32)
    for c in range(_C2):
        h = h + jnp.dot(p2_scr[c:c + 1, :], wf1_ref[c],
                        preferred_element_type=f32)
    h = jnp.maximum(h + bf1_ref[...], 0.0)

    # fc2 + ReLU, fc3.
    h = jnp.maximum(
        jnp.dot(h, wf2_ref[...], preferred_element_type=f32) + bf2_ref[...], 0.0)
    out = jnp.dot(h, wf3_ref[...], preferred_element_type=f32) + bf3_ref[...]
    out_ref[0] = out.astype(out_ref.dtype)


# ---------------------------------------------------------------------------
# Wrapper
# ---------------------------------------------------------------------------
def _conv1_patches(x):
    """x: [N, 3, 32, 32] -> [N, 75, 784].  Rows ordered (c, ki, kj) to match
    PyTorch's (OC, C, KH, KW) weight flattening; cols = y*28 + x."""
    n = x.shape[0]
    parts = [x[:, :, ki:ki + _H1, kj:kj + _W1]
             for ki in range(_K) for kj in range(_K)]            # each [N,3,28,28]
    p = jnp.stack(parts, axis=2)                                 # [N, 3, 25, 28, 28]
    return p.reshape(n, _C_IN * _K * _K, _H1 * _W1)


def lenet_forward(params, x):
    """x: [N, 3, 32, 32] float32 (NCHW) -> logits [N, num_classes]."""
    n = x.shape[0]
    num_classes = params["fc3_w"].shape[1]
    f32 = jnp.float32

    patches = _conv1_patches(x.astype(f32))                                 # [N, 75, 784]
    w1 = params["conv1_w"].reshape(_C1, _C_IN * _K * _K).astype(f32)        # [6, 75]
    b1 = params["conv1_b"].reshape(_C1, 1).astype(f32)
    w2 = jnp.transpose(params["conv2_w"], (2, 3, 0, 1)).reshape(
        _K * _K, _C2, _C1).astype(f32)                                      # [25, 16, 6]
    b2 = params["conv2_b"].reshape(_C2, 1).astype(f32)
    wf1 = params["fc1_w"].reshape(_C2, _HP2 * _WP2, _F1).astype(f32)        # [16, 25, 120]
    bf1 = params["fc1_b"].reshape(1, _F1).astype(f32)
    wf2 = params["fc2_w"].astype(f32)                                       # [120, 84]
    bf2 = params["fc2_b"].reshape(1, _F2).astype(f32)
    wf3 = params["fc3_w"].astype(f32)                                       # [84, nc]
    bf3 = params["fc3_b"].reshape(1, num_classes).astype(f32)

    s1 = jnp.asarray(_POOL1_SEL)
    t2 = jnp.asarray(_SHIFT2_SEL)
    s2 = jnp.asarray(_POOL2_SEL)

    def _fixed(shape):
        # whole array in one block; same block index for every grid step
        return pl.BlockSpec(shape, lambda i, r=len(shape): (0,) * r)

    out = pl.pallas_call(
        _lenet_kernel,
        out_shape=jax.ShapeDtypeStruct((n, 1, num_classes), f32),
        grid_spec=pltpu.PrefetchScalarGridSpec(
            num_scalar_prefetch=0,
            grid=(n,),
            in_specs=[
                pl.BlockSpec((1,) + patches.shape[1:], lambda i: (i, 0, 0)),
                _fixed(w1.shape), _fixed(b1.shape), _fixed(s1.shape),
                _fixed(t2.shape), _fixed(w2.shape), _fixed(b2.shape),
                _fixed(s2.shape), _fixed(wf1.shape), _fixed(bf1.shape),
                _fixed(wf2.shape), _fixed(bf2.shape), _fixed(wf3.shape),
                _fixed(bf3.shape),
            ],
            out_specs=pl.BlockSpec((1, 1, num_classes), lambda i: (i, 0, 0)),
            scratch_shapes=[pltpu.VMEM((_C2, _HP2 * _WP2), f32)],
        ),
        compiler_params=pltpu.CompilerParams(
            dimension_semantics=("parallel",),
            vmem_limit_bytes=32 * 1024 * 1024,
        ),
    )(patches, w1, b1, s1, t2, w2, b2, s2, wf1, bf1, wf2, bf2, wf3, bf3)
    return out.reshape(n, num_classes)


# ---------------------------------------------------------------------------
# Params + pure-JAX reference (for verification)
# ---------------------------------------------------------------------------
def init_lenet_params(key, num_classes=10):
    ks = jax.random.split(key, 10)
    s = 0.05
    return {
        "conv1_w": jax.random.normal(ks[0], (6, 3, 5, 5), jnp.float32) * s,
        "conv1_b": jax.random.normal(ks[1], (6,), jnp.float32) * s,
        "conv2_w": jax.random.normal(ks[2], (16, 6, 5, 5), jnp.float32) * s,
        "conv2_b": jax.random.normal(ks[3], (16,), jnp.float32) * s,
        "fc1_w": jax.random.normal(ks[4], (16 * 5 * 5, 120), jnp.float32) * s,
        "fc1_b": jax.random.normal(ks[5], (120,), jnp.float32) * s,
        "fc2_w": jax.random.normal(ks[6], (120, 84), jnp.float32) * s,
        "fc2_b": jax.random.normal(ks[7], (84,), jnp.float32) * s,
        "fc3_w": jax.random.normal(ks[8], (84, num_classes), jnp.float32) * s,
        "fc3_b": jax.random.normal(ks[9], (num_classes,), jnp.float32) * s,
    }


def lenet_reference(params, x):
    """Pure-JAX (XLA) reference with the same semantics as the PyTorch module."""
    dn = ("NCHW", "OIHW", "NCHW")
    y = jax.lax.conv_general_dilated(x, params["conv1_w"], (1, 1), "VALID",
                                     dimension_numbers=dn)
    y = jax.nn.relu(y + params["conv1_b"][None, :, None, None])
    y = jax.lax.reduce_window(y, -jnp.inf, jax.lax.max,
                              (1, 1, 2, 2), (1, 1, 2, 2), "VALID")
    y = jax.lax.conv_general_dilated(y, params["conv2_w"], (1, 1), "VALID",
                                     dimension_numbers=dn)
    y = jax.nn.relu(y + params["conv2_b"][None, :, None, None])
    y = jax.lax.reduce_window(y, -jnp.inf, jax.lax.max,
                              (1, 1, 2, 2), (1, 1, 2, 2), "VALID")
    y = y.reshape(y.shape[0], -1)
    y = jax.nn.relu(y @ params["fc1_w"] + params["fc1_b"])
    y = jax.nn.relu(y @ params["fc2_w"] + params["fc2_b"])
    return y @ params["fc3_w"] + params["fc3_b"]


if __name__ == "__main__":
    key = jax.random.PRNGKey(0)
    pkey, xkey = jax.random.split(key)
    params = init_lenet_params(pkey, num_classes=10)
    # LeNet's fc1 (16*5*5) implies a 32x32 spatial input; small batch.
    x = jax.random.normal(xkey, (2, 3, 32, 32), jnp.float32)

    out = jax.jit(lenet_forward)(params, x)
    out = jax.block_until_ready(out)
    assert out.shape == (2, 10) and out.dtype == jnp.float32

    ref = jax.block_until_ready(jax.jit(lenet_reference)(params, x))
    max_err = float(jnp.max(jnp.abs(out - ref)))
    assert max_err < 2e-2, f"mismatch vs reference: max abs err {max_err}"

    print("KERNEL_OK")
</pallas_src>

<mosaic_0001>
module attributes {stable_mosaic.version = 11 : i64} {
  func.func @_lenet_kernel(%arg0: i32, %arg1: memref<1x75x784xf32, #tpu.memory_space<vmem>>, %arg2: memref<6x75xf32, #tpu.memory_space<vmem>>, %arg3: memref<6x1xf32, #tpu.memory_space<vmem>>, %arg4: memref<4x784x196xf32, #tpu.memory_space<vmem>>, %arg5: memref<25x196x100xf32, #tpu.memory_space<vmem>>, %arg6: memref<25x16x6xf32, #tpu.memory_space<vmem>>, %arg7: memref<16x1xf32, #tpu.memory_space<vmem>>, %arg8: memref<4x100x25xf32, #tpu.memory_space<vmem>>, %arg9: memref<16x25x120xf32, #tpu.memory_space<vmem>>, %arg10: memref<1x120xf32, #tpu.memory_space<vmem>>, %arg11: memref<120x84xf32, #tpu.memory_space<vmem>>, %arg12: memref<1x84xf32, #tpu.memory_space<vmem>>, %arg13: memref<84x10xf32, #tpu.memory_space<vmem>>, %arg14: memref<1x10xf32, #tpu.memory_space<vmem>>, %arg15: memref<1x1x10xf32, #tpu.memory_space<vmem>>, %arg16: memref<16x25xf32, #tpu.memory_space<vmem>>) attributes {dimension_semantics = [#tpu.dimension_semantics<parallel>], iteration_bounds = array<i64: 2>, scalar_prefetch = 0 : i64, scratch_operands = 1 : i64, tpu.core_type = #tpu.core_type<tc>, window_params = [{transform_indices = @transform_0, window_bounds = array<i64: 1, 75, 784>}, {pipeline_mode = #tpu.pipeline_mode<synchronous>, transform_indices = @transform_1, window_bounds = array<i64: 6, 75>}, {pipeline_mode = #tpu.pipeline_mode<synchronous>, transform_indices = @transform_2, window_bounds = array<i64: 6, 1>}, {pipeline_mode = #tpu.pipeline_mode<synchronous>, transform_indices = @transform_3, window_bounds = array<i64: 4, 784, 196>}, {pipeline_mode = #tpu.pipeline_mode<synchronous>, transform_indices = @transform_4, window_bounds = array<i64: 25, 196, 100>}, {pipeline_mode = #tpu.pipeline_mode<synchronous>, transform_indices = @transform_5, window_bounds = array<i64: 25, 16, 6>}, {pipeline_mode = #tpu.pipeline_mode<synchronous>, transform_indices = @transform_6, window_bounds = array<i64: 16, 1>}, {pipeline_mode = #tpu.pipeline_mode<synchronous>, transform_indices = @transform_7, window_bounds = array<i64: 4, 100, 25>}, {pipeline_mode = #tpu.pipeline_mode<synchronous>, transform_indices = @transform_8, window_bounds = array<i64: 16, 25, 120>}, {pipeline_mode = #tpu.pipeline_mode<synchronous>, transform_indices = @transform_9, window_bounds = array<i64: 1, 120>}, {pipeline_mode = #tpu.pipeline_mode<synchronous>, transform_indices = @transform_10, window_bounds = array<i64: 120, 84>}, {pipeline_mode = #tpu.pipeline_mode<synchronous>, transform_indices = @transform_11, window_bounds = array<i64: 1, 84>}, {pipeline_mode = #tpu.pipeline_mode<synchronous>, transform_indices = @transform_12, window_bounds = array<i64: 84, 10>}, {pipeline_mode = #tpu.pipeline_mode<synchronous>, transform_indices = @transform_13, window_bounds = array<i64: 1, 10>}, {transform_indices = @transform_14, window_bounds = array<i64: 1, 1, 10>}]} {
    %c0 = arith.constant 0 : index
    %c0_0 = arith.constant 0 : index
    %0 = vector.load %arg2[%c0, %c0_0] : memref<6x75xf32, #tpu.memory_space<vmem>>, vector<6x75xf32>
    %c0_1 = arith.constant 0 : index
    %c0_2 = arith.constant 0 : index
    %c0_3 = arith.constant 0 : index
    %1 = vector.load %arg1[%c0_1, %c0_2, %c0_3] : memref<1x75x784xf32, #tpu.memory_space<vmem>>, vector<1x75x784xf32>
    %2 = vector.shape_cast %1 : vector<1x75x784xf32> to vector<75x784xf32>
    %cst = arith.constant dense<0.000000e+00> : vector<6x784xf32>
    %3 = tpu.matmul %0, %2, %cst {dimension_numbers = #tpu.dot_dimension_numbers<[1], [0], [0], [1], [0, 0, 1, 1], [], []>} : vector<6x75xf32>, vector<75x784xf32>, vector<6x784xf32> -> vector<6x784xf32>
    %c0_4 = arith.constant 0 : index
    %c0_5 = arith.constant 0 : index
    %4 = vector.load %arg3[%c0_4, %c0_5] : memref<6x1xf32, #tpu.memory_space<vmem>>, vector<6x1xf32>
    %5 = vector.broadcast %4 : vector<6x1xf32> to vector<6x784xf32>
    %6 = arith.addf %3, %5 : vector<6x784xf32>
    %cst_6 = arith.constant 0.000000e+00 : f32
    %7 = vector.broadcast %cst_6 : f32 to vector<6x784xf32>
    %8 = arith.maximumf %6, %7 : vector<6x784xf32>
    %c0_7 = arith.constant 0 : index
    %c0_8 = arith.constant 0 : index
    %c0_9 = arith.constant 0 : index
    %9 = vector.load %arg4[%c0_7, %c0_8, %c0_9] : memref<4x784x196xf32, #tpu.memory_space<vmem>>, vector<1x784x196xf32>
    %10 = vector.shape_cast %9 : vector<1x784x196xf32> to vector<784x196xf32>
    %cst_10 = arith.constant dense<0.000000e+00> : vector<6x196xf32>
    %11 = tpu.matmul %8, %10, %cst_10 {dimension_numbers = #tpu.dot_dimension_numbers<[1], [0], [0], [1], [0, 0, 1, 1], [], []>} : vector<6x784xf32>, vector<784x196xf32>, vector<6x196xf32> -> vector<6x196xf32>
    %c1 = arith.constant 1 : index
    %c0_11 = arith.constant 0 : index
    %c0_12 = arith.constant 0 : index
    %12 = vector.load %arg4[%c1, %c0_11, %c0_12] : memref<4x784x196xf32, #tpu.memory_space<vmem>>, vector<1x784x196xf32>
    %13 = vector.shape_cast %12 : vector<1x784x196xf32> to vector<784x196xf32>
    %cst_13 = arith.constant dense<0.000000e+00> : vector<6x196xf32>
    %14 = tpu.matmul %8, %13, %cst_13 {dimension_numbers = #tpu.dot_dimension_numbers<[1], [0], [0], [1], [0, 0, 1, 1], [], []>} : vector<6x784xf32>, vector<784x196xf32>, vector<6x196xf32> -> vector<6x196xf32>
    %15 = arith.maximumf %11, %14 : vector<6x196xf32>
    %c2 = arith.constant 2 : index
    %c0_14 = arith.constant 0 : index
    %c0_15 = arith.constant 0 : index
    %16 = vector.load %arg4[%c2, %c0_14, %c0_15] : memref<4x784x196xf32, #tpu.memory_space<vmem>>, vector<1x784x196xf32>
    %17 = vector.shape_cast %16 : vector<1x784x196xf32> to vector<784x196xf32>
    %cst_16 = arith.constant dense<0.000000e+00> : vector<6x196xf32>
    %18 = tpu.matmul %8, %17, %cst_16 {dimension_numbers = #tpu.dot_dimension_numbers<[1], [0], [0], [1], [0, 0, 1, 1], [], []>} : vector<6x784xf32>, vector<784x196xf32>, vector<6x196xf32> -> vector<6x196xf32>
    %19 = arith.maximumf %15, %18 : vector<6x196xf32>
    %c3 = arith.constant 3 : index
    %c0_17 = arith.constant 0 : index
    %c0_18 = arith.constant 0 : index
    %20 = vector.load %arg4[%c3, %c0_17, %c0_18] : memref<4x784x196xf32, #tpu.memory_space<vmem>>, vector<1x784x196xf32>
    %21 = vector.shape_cast %20 : vector<1x784x196xf32> to vector<784x196xf32>
    %cst_19 = arith.constant dense<0.000000e+00> : vector<6x196xf32>
    %22 = tpu.matmul %8, %21, %cst_19 {dimension_numbers = #tpu.dot_dimension_numbers<[1], [0], [0], [1], [0, 0, 1, 1], [], []>} : vector<6x784xf32>, vector<784x196xf32>, vector<6x196xf32> -> vector<6x196xf32>
    %23 = arith.maximumf %19, %22 : vector<6x196xf32>
    %cst_20 = arith.constant 0.000000e+00 : f32
    %24 = vector.broadcast %cst_20 : f32 to vector<16x100xf32>
    %c0_21 = arith.constant 0 : index
    %c0_22 = arith.constant 0 : index
    %c0_23 = arith.constant 0 : index
    %25 = vector.load %arg5[%c0_21, %c0_22, %c0_23] : memref<25x196x100xf32, #tpu.memory_space<vmem>>, vector<1x196x100xf32>
    %26 = vector.shape_cast %25 : vector<1x196x100xf32> to vector<196x100xf32>
    %cst_24 = arith.constant dense<0.000000e+00> : vector<6x100xf32>
    %27 = tpu.matmul %23, %26, %cst_24 {dimension_numbers = #tpu.dot_dimension_numbers<[1], [0], [0], [1], [0, 0, 1, 1], [], []>} : vector<6x196xf32>, vector<196x100xf32>, vector<6x100xf32> -> vector<6x100xf32>
    %c0_25 = arith.constant 0 : index
    %c0_26 = arith.constant 0 : index
    %c0_27 = arith.constant 0 : index
    %28 = vector.load %arg6[%c0_25, %c0_26, %c0_27] : memref<25x16x6xf32, #tpu.memory_space<vmem>>, vector<1x16x6xf32>
    %29 = vector.shape_cast %28 : vector<1x16x6xf32> to vector<16x6xf32>
    %cst_28 = arith.constant dense<0.000000e+00> : vector<16x100xf32>
    %30 = tpu.matmul %29, %27, %cst_28 {dimension_numbers = #tpu.dot_dimension_numbers<[1], [0], [0], [1], [0, 0, 1, 1], [], []>} : vector<16x6xf32>, vector<6x100xf32>, vector<16x100xf32> -> vector<16x100xf32>
    %31 = arith.addf %24, %30 : vector<16x100xf32>
    %c1_29 = arith.constant 1 : index
    %c0_30 = arith.constant 0 : index
    %c0_31 = arith.constant 0 : index
    %32 = vector.load %arg5[%c1_29, %c0_30, %c0_31] : memref<25x196x100xf32, #tpu.memory_space<vmem>>, vector<1x196x100xf32>
    %33 = vector.shape_cast %32 : vector<1x196x100xf32> to vector<196x100xf32>
    %cst_32 = arith.constant dense<0.000000e+00> : vector<6x100xf32>
    %34 = tpu.matmul %23, %33, %cst_32 {dimension_numbers = #tpu.dot_dimension_numbers<[1], [0], [0], [1], [0, 0, 1, 1], [], []>} : vector<6x196xf32>, vector<196x100xf32>, vector<6x100xf32> -> vector<6x100xf32>
    %c1_33 = arith.constant 1 : index
    %c0_34 = arith.constant 0 : index
    %c0_35 = arith.constant 0 : index
    %35 = vector.load %arg6[%c1_33, %c0_34, %c0_35] : memref<25x16x6xf32, #tpu.memory_space<vmem>>, vector<1x16x6xf32>
    %36 = vector.shape_cast %35 : vector<1x16x6xf32> to vector<16x6xf32>
    %cst_36 = arith.constant dense<0.000000e+00> : vector<16x100xf32>
    %37 = tpu.matmul %36, %34, %cst_36 {dimension_numbers = #tpu.dot_dimension_numbers<[1], [0], [0], [1], [0, 0, 1, 1], [], []>} : vector<16x6xf32>, vector<6x100xf32>, vector<16x100xf32> -> vector<16x100xf32>
    %38 = arith.addf %31, %37 : vector<16x100xf32>
    %c2_37 = arith.constant 2 : index
    %c0_38 = arith.constant 0 : index
    %c0_39 = arith.constant 0 : index
    %39 = vector.load %arg5[%c2_37, %c0_38, %c0_39] : memref<25x196x100xf32, #tpu.memory_space<vmem>>, vector<1x196x100xf32>
    %40 = vector.shape_cast %39 : vector<1x196x100xf32> to vector<196x100xf32>
    %cst_40 = arith.constant dense<0.000000e+00> : vector<6x100xf32>
    %41 = tpu.matmul %23, %40, %cst_40 {dimension_numbers = #tpu.dot_dimension_numbers<[1], [0], [0], [1], [0, 0, 1, 1], [], []>} : vector<6x196xf32>, vector<196x100xf32>, vector<6x100xf32> -> vector<6x100xf32>
    %c2_41 = arith.constant 2 : index
    %c0_42 = arith.constant 0 : index
    %c0_43 = arith.constant 0 : index
    %42 = vector.load %arg6[%c2_41, %c0_42, %c0_43] : memref<25x16x6xf32, #tpu.memory_space<vmem>>, vector<1x16x6xf32>
    %43 = vector.shape_cast %42 : vector<1x16x6xf32> to vector<16x6xf32>
    %cst_44 = arith.constant dense<0.000000e+00> : vector<16x100xf32>
    %44 = tpu.matmul %43, %41, %cst_44 {dimension_numbers = #tpu.dot_dimension_numbers<[1], [0], [0], [1], [0, 0, 1, 1], [], []>} : vector<16x6xf32>, vector<6x100xf32>, vector<16x100xf32> -> vector<16x100xf32>
    %45 = arith.addf %38, %44 : vector<16x100xf32>
    %c3_45 = arith.constant 3 : index
    %c0_46 = arith.constant 0 : index
    %c0_47 = arith.constant 0 : index
    %46 = vector.load %arg5[%c3_45, %c0_46, %c0_47] : memref<25x196x100xf32, #tpu.memory_space<vmem>>, vector<1x196x100xf32>
    %47 = vector.shape_cast %46 : vector<1x196x100xf32> to vector<196x100xf32>
    %cst_48 = arith.constant dense<0.000000e+00> : vector<6x100xf32>
    %48 = tpu.matmul %23, %47, %cst_48 {dimension_numbers = #tpu.dot_dimension_numbers<[1], [0], [0], [1], [0, 0, 1, 1], [], []>} : vector<6x196xf32>, vector<196x100xf32>, vector<6x100xf32> -> vector<6x100xf32>
    %c3_49 = arith.constant 3 : index
    %c0_50 = arith.constant 0 : index
    %c0_51 = arith.constant 0 : index
    %49 = vector.load %arg6[%c3_49, %c0_50, %c0_51] : memref<25x16x6xf32, #tpu.memory_space<vmem>>, vector<1x16x6xf32>
    %50 = vector.shape_cast %49 : vector<1x16x6xf32> to vector<16x6xf32>
    %cst_52 = arith.constant dense<0.000000e+00> : vector<16x100xf32>
    %51 = tpu.matmul %50, %48, %cst_52 {dimension_numbers = #tpu.dot_dimension_numbers<[1], [0], [0], [1], [0, 0, 1, 1], [], []>} : vector<16x6xf32>, vector<6x100xf32>, vector<16x100xf32> -> vector<16x100xf32>
    %52 = arith.addf %45, %51 : vector<16x100xf32>
    %c4 = arith.constant 4 : index
    %c0_53 = arith.constant 0 : index
    %c0_54 = arith.constant 0 : index
    %53 = vector.load %arg5[%c4, %c0_53, %c0_54] : memref<25x196x100xf32, #tpu.memory_space<vmem>>, vector<1x196x100xf32>
    %54 = vector.shape_cast %53 : vector<1x196x100xf32> to vector<196x100xf32>
    %cst_55 = arith.constant dense<0.000000e+00> : vector<6x100xf32>
    %55 = tpu.matmul %23, %54, %cst_55 {dimension_numbers = #tpu.dot_dimension_numbers<[1], [0], [0], [1], [0, 0, 1, 1], [], []>} : vector<6x196xf32>, vector<196x100xf32>, vector<6x100xf32> -> vector<6x100xf32>
    %c4_56 = arith.constant 4 : index
    %c0_57 = arith.constant 0 : index
    %c0_58 = arith.constant 0 : index
    %56 = vector.load %arg6[%c4_56, %c0_57, %c0_58] : memref<25x16x6xf32, #tpu.memory_space<vmem>>, vector<1x16x6xf32>
    %57 = vector.shape_cast %56 : vector<1x16x6xf32> to vector<16x6xf32>
    %cst_59 = arith.constant dense<0.000000e+00> : vector<16x100xf32>
    %58 = tpu.matmul %57, %55, %cst_59 {dimension_numbers = #tpu.dot_dimension_numbers<[1], [0], [0], [1], [0, 0, 1, 1], [], []>} : vector<16x6xf32>, vector<6x100xf32>, vector<16x100xf32> -> vector<16x100xf32>
    %59 = arith.addf %52, %58 : vector<16x100xf32>
    %c5 = arith.constant 5 : index
    %c0_60 = arith.constant 0 : index
    %c0_61 = arith.constant 0 : index
    %60 = vector.load %arg5[%c5, %c0_60, %c0_61] : memref<25x196x100xf32, #tpu.memory_space<vmem>>, vector<1x196x100xf32>
    %61 = vector.shape_cast %60 : vector<1x196x100xf32> to vector<196x100xf32>
    %cst_62 = arith.constant dense<0.000000e+00> : vector<6x100xf32>
    %62 = tpu.matmul %23, %61, %cst_62 {dimension_numbers = #tpu.dot_dimension_numbers<[1], [0], [0], [1], [0, 0, 1, 1], [], []>} : vector<6x196xf32>, vector<196x100xf32>, vector<6x100xf32> -> vector<6x100xf32>
    %c5_63 = arith.constant 5 : index
    %c0_64 = arith.constant 0 : index
    %c0_65 = arith.constant 0 : index
    %63 = vector.load %arg6[%c5_63, %c0_64, %c0_65] : memref<25x16x6xf32, #tpu.memory_space<vmem>>, vector<1x16x6xf32>
    %64 = vector.shape_cast %63 : vector<1x16x6xf32> to vector<16x6xf32>
    %cst_66 = arith.constant dense<0.000000e+00> : vector<16x100xf32>
    %65 = tpu.matmul %64, %62, %cst_66 {dimension_numbers = #tpu.dot_dimension_numbers<[1], [0], [0], [1], [0, 0, 1, 1], [], []>} : vector<16x6xf32>, vector<6x100xf32>, vector<16x100xf32> -> vector<16x100xf32>
    %66 = arith.addf %59, %65 : vector<16x100xf32>
    %c6 = arith.constant 6 : index
    %c0_67 = arith.constant 0 : index
    %c0_68 = arith.constant 0 : index
    %67 = vector.load %arg5[%c6, %c0_67, %c0_68] : memref<25x196x100xf32, #tpu.memory_space<vmem>>, vector<1x196x100xf32>
    %68 = vector.shape_cast %67 : vector<1x196x100xf32> to vector<196x100xf32>
    %cst_69 = arith.constant dense<0.000000e+00> : vector<6x100xf32>
    %69 = tpu.matmul %23, %68, %cst_69 {dimension_numbers = #tpu.dot_dimension_numbers<[1], [0], [0], [1], [0, 0, 1, 1], [], []>} : vector<6x196xf32>, vector<196x100xf32>, vector<6x100xf32> -> vector<6x100xf32>
    %c6_70 = arith.constant 6 : index
    %c0_71 = arith.constant 0 : index
    %c0_72 = arith.constant 0 : index
    %70 = vector.load %arg6[%c6_70, %c0_71, %c0_72] : memref<25x16x6xf32, #tpu.memory_space<vmem>>, vector<1x16x6xf32>
    %71 = vector.shape_cast %70 : vector<1x16x6xf32> to vector<16x6xf32>
    %cst_73 = arith.constant dense<0.000000e+00> : vector<16x100xf32>
    %72 = tpu.matmul %71, %69, %cst_73 {dimension_numbers = #tpu.dot_dimension_numbers<[1], [0], [0], [1], [0, 0, 1, 1], [], []>} : vector<16x6xf32>, vector<6x100xf32>, vector<16x100xf32> -> vector<16x100xf32>
    %73 = arith.addf %66, %72 : vector<16x100xf32>
    %c7 = arith.constant 7 : index
    %c0_74 = arith.constant 0 : index
    %c0_75 = arith.constant 0 : index
    %74 = vector.load %arg5[%c7, %c0_74, %c0_75] : memref<25x196x100xf32, #tpu.memory_space<vmem>>, vector<1x196x100xf32>
    %75 = vector.shape_cast %74 : vector<1x196x100xf32> to vector<196x100xf32>
    %cst_76 = arith.constant dense<0.000000e+00> : vector<6x100xf32>
    %76 = tpu.matmul %23, %75, %cst_76 {dimension_numbers = #tpu.dot_dimension_numbers<[1], [0], [0], [1], [0, 0, 1, 1], [], []>} : vector<6x196xf32>, vector<196x100xf32>, vector<6x100xf32> -> vector<6x100xf32>
    %c7_77 = arith.constant 7 : index
    %c0_78 = arith.constant 0 : index
    %c0_79 = arith.constant 0 : index
    %77 = vector.load %arg6[%c7_77, %c0_78, %c0_79] : memref<25x16x6xf32, #tpu.memory_space<vmem>>, vector<1x16x6xf32>
    %78 = vector.shape_cast %77 : vector<1x16x6xf32> to vector<16x6xf32>
    %cst_80 = arith.constant dense<0.000000e+00> : vector<16x100xf32>
    %79 = tpu.matmul %78, %76, %cst_80 {dimension_numbers = #tpu.dot_dimension_numbers<[1], [0], [0], [1], [0, 0, 1, 1], [], []>} : vector<16x6xf32>, vector<6x100xf32>, vector<16x100xf32> -> vector<16x100xf32>
    %80 = arith.addf %73, %79 : vector<16x100xf32>
    %c8 = arith.constant 8 : index
    %c0_81 = arith.constant 0 : index
    %c0_82 = arith.constant 0 : index
    %81 = vector.load %arg5[%c8, %c0_81, %c0_82] : memref<25x196x100xf32, #tpu.memory_space<vmem>>, vector<1x196x100xf32>
    %82 = vector.shape_cast %81 : vector<1x196x100xf32> to vector<196x100xf32>
    %cst_83 = arith.constant dense<0.000000e+00> : vector<6x100xf32>
    %83 = tpu.matmul %23, %82, %cst_83 {dimension_numbers = #tpu.dot_dimension_numbers<[1], [0], [0], [1], [0, 0, 1, 1], [], []>} : vector<6x196xf32>, vector<196x100xf32>, vector<6x100xf32> -> vector<6x100xf32>
    %c8_84 = arith.constant 8 : index
    %c0_85 = arith.constant 0 : index
    %c0_86 = arith.constant 0 : index
    %84 = vector.load %arg6[%c8_84, %c0_85, %c0_86] : memref<25x16x6xf32, #tpu.memory_space<vmem>>, vector<1x16x6xf32>
    %85 = vector.shape_cast %84 : vector<1x16x6xf32> to vector<16x6xf32>
    %cst_87 = arith.constant dense<0.000000e+00> : vector<16x100xf32>
    %86 = tpu.matmul %85, %83, %cst_87 {dimension_numbers = #tpu.dot_dimension_numbers<[1], [0], [0], [1], [0, 0, 1, 1], [], []>} : vector<16x6xf32>, vector<6x100xf32>, vector<16x100xf32> -> vector<16x100xf32>
    %87 = arith.addf %80, %86 : vector<16x100xf32>
    %c9 = arith.constant 9 : index
    %c0_88 = arith.constant 0 : index
    %c0_89 = arith.constant 0 : index
    %88 = vector.load %arg5[%c9, %c0_88, %c0_89] : memref<25x196x100xf32, #tpu.memory_space<vmem>>, vector<1x196x100xf32>
    %89 = vector.shape_cast %88 : vector<1x196x100xf32> to vector<196x100xf32>
    %cst_90 = arith.constant dense<0.000000e+00> : vector<6x100xf32>
    %90 = tpu.matmul %23, %89, %cst_90 {dimension_numbers = #tpu.dot_dimension_numbers<[1], [0], [0], [1], [0, 0, 1, 1], [], []>} : vector<6x196xf32>, vector<196x100xf32>, vector<6x100xf32> -> vector<6x100xf32>
    %c9_91 = arith.constant 9 : index
    %c0_92 = arith.constant 0 : index
    %c0_93 = arith.constant 0 : index
    %91 = vector.load %arg6[%c9_91, %c0_92, %c0_93] : memref<25x16x6xf32, #tpu.memory_space<vmem>>, vector<1x16x6xf32>
    %92 = vector.shape_cast %91 : vector<1x16x6xf32> to vector<16x6xf32>
    %cst_94 = arith.constant dense<0.000000e+00> : vector<16x100xf32>
    %93 = tpu.matmul %92, %90, %cst_94 {dimension_numbers = #tpu.dot_dimension_numbers<[1], [0], [0], [1], [0, 0, 1, 1], [], []>} : vector<16x6xf32>, vector<6x100xf32>, vector<16x100xf32> -> vector<16x100xf32>
    %94 = arith.addf %87, %93 : vector<16x100xf32>
    %c10 = arith.constant 10 : index
    %c0_95 = arith.constant 0 : index
    %c0_96 = arith.constant 0 : index
    %95 = vector.load %arg5[%c10, %c0_95, %c0_96] : memref<25x196x100xf32, #tpu.memory_space<vmem>>, vector<1x196x100xf32>
    %96 = vector.shape_cast %95 : vector<1x196x100xf32> to vector<196x100xf32>
    %cst_97 = arith.constant dense<0.000000e+00> : vector<6x100xf32>
    %97 = tpu.matmul %23, %96, %cst_97 {dimension_numbers = #tpu.dot_dimension_numbers<[1], [0], [0], [1], [0, 0, 1, 1], [], []>} : vector<6x196xf32>, vector<196x100xf32>, vector<6x100xf32> -> vector<6x100xf32>
    %c10_98 = arith.constant 10 : index
    %c0_99 = arith.constant 0 : index
    %c0_100 = arith.constant 0 : index
    %98 = vector.load %arg6[%c10_98, %c0_99, %c0_100] : memref<25x16x6xf32, #tpu.memory_space<vmem>>, vector<1x16x6xf32>
    %99 = vector.shape_cast %98 : vector<1x16x6xf32> to vector<16x6xf32>
    %cst_101 = arith.constant dense<0.000000e+00> : vector<16x100xf32>
    %100 = tpu.matmul %99, %97, %cst_101 {dimension_numbers = #tpu.dot_dimension_numbers<[1], [0], [0], [1], [0, 0, 1, 1], [], []>} : vector<16x6xf32>, vector<6x100xf32>, vector<16x100xf32> -> vector<16x100xf32>
    %101 = arith.addf %94, %100 : vector<16x100xf32>
    %c11 = arith.constant 11 : index
    %c0_102 = arith.constant 0 : index
    %c0_103 = arith.constant 0 : index
    %102 = vector.load %arg5[%c11, %c0_102, %c0_103] : memref<25x196x100xf32, #tpu.memory_space<vmem>>, vector<1x196x100xf32>
    %103 = vector.shape_cast %102 : vector<1x196x100xf32> to vector<196x100xf32>
    %cst_104 = arith.constant dense<0.000000e+00> : vector<6x100xf32>
    %104 = tpu.matmul %23, %103, %cst_104 {dimension_numbers = #tpu.dot_dimension_numbers<[1], [0], [0], [1], [0, 0, 1, 1], [], []>} : vector<6x196xf32>, vector<196x100xf32>, vector<6x100xf32> -> vector<6x100xf32>
    %c11_105 = arith.constant 11 : index
    %c0_106 = arith.constant 0 : index
    %c0_107 = arith.constant 0 : index
    %105 = vector.load %arg6[%c11_105, %c0_106, %c0_107] : memref<25x16x6xf32, #tpu.memory_space<vmem>>, vector<1x16x6xf32>
    %106 = vector.shape_cast %105 : vector<1x16x6xf32> to vector<16x6xf32>
    %cst_108 = arith.constant dense<0.000000e+00> : vector<16x100xf32>
    %107 = tpu.matmul %106, %104, %cst_108 {dimension_numbers = #tpu.dot_dimension_numbers<[1], [0], [0], [1], [0, 0, 1, 1], [], []>} : vector<16x6xf32>, vector<6x100xf32>, vector<16x100xf32> -> vector<16x100xf32>
    %108 = arith.addf %101, %107 : vector<16x100xf32>
    %c12 = arith.constant 12 : index
    %c0_109 = arith.constant 0 : index
    %c0_110 = arith.constant 0 : index
    %109 = vector.load %arg5[%c12, %c0_109, %c0_110] : memref<25x196x100xf32, #tpu.memory_space<vmem>>, vector<1x196x100xf32>
    %110 = vector.shape_cast %109 : vector<1x196x100xf32> to vector<196x100xf32>
    %cst_111 = arith.constant dense<0.000000e+00> : vector<6x100xf32>
    %111 = tpu.matmul %23, %110, %cst_111 {dimension_numbers = #tpu.dot_dimension_numbers<[1], [0], [0], [1], [0, 0, 1, 1], [], []>} : vector<6x196xf32>, vector<196x100xf32>, vector<6x100xf32> -> vector<6x100xf32>
    %c12_112 = arith.constant 12 : index
    %c0_113 = arith.constant 0 : index
    %c0_114 = arith.constant 0 : index
    %112 = vector.load %arg6[%c12_112, %c0_113, %c0_114] : memref<25x16x6xf32, #tpu.memory_space<vmem>>, vector<1x16x6xf32>
    %113 = vector.shape_cast %112 : vector<1x16x6xf32> to vector<16x6xf32>
    %cst_115 = arith.constant dense<0.000000e+00> : vector<16x100xf32>
    %114 = tpu.matmul %113, %111, %cst_115 {dimension_numbers = #tpu.dot_dimension_numbers<[1], [0], [0], [1], [0, 0, 1, 1], [], []>} : vector<16x6xf32>, vector<6x100xf32>, vector<16x100xf32> -> vector<16x100xf32>
    %115 = arith.addf %108, %114 : vector<16x100xf32>
    %c13 = arith.constant 13 : index
    %c0_116 = arith.constant 0 : index
    %c0_117 = arith.constant 0 : index
    %116 = vector.load %arg5[%c13, %c0_116, %c0_117] : memref<25x196x100xf32, #tpu.memory_space<vmem>>, vector<1x196x100xf32>
    %117 = vector.shape_cast %116 : vector<1x196x100xf32> to vector<196x100xf32>
    %cst_118 = arith.constant dense<0.000000e+00> : vector<6x100xf32>
    %118 = tpu.matmul %23, %117, %cst_118 {dimension_numbers = #tpu.dot_dimension_numbers<[1], [0], [0], [1], [0, 0, 1, 1], [], []>} : vector<6x196xf32>, vector<196x100xf32>, vector<6x100xf32> -> vector<6x100xf32>
    %c13_119 = arith.constant 13 : index
    %c0_120 = arith.constant 0 : index
    %c0_121 = arith.constant 0 : index
    %119 = vector.load %arg6[%c13_119, %c0_120, %c0_121] : memref<25x16x6xf32, #tpu.memory_space<vmem>>, vector<1x16x6xf32>
    %120 = vector.shape_cast %119 : vector<1x16x6xf32> to vector<16x6xf32>
    %cst_122 = arith.constant dense<0.000000e+00> : vector<16x100xf32>
    %121 = tpu.matmul %120, %118, %cst_122 {dimension_numbers = #tpu.dot_dimension_numbers<[1], [0], [0], [1], [0, 0, 1, 1], [], []>} : vector<16x6xf32>, vector<6x100xf32>, vector<16x100xf32> -> vector<16x100xf32>
    %122 = arith.addf %115, %121 : vector<16x100xf32>
    %c14 = arith.constant 14 : index
    %c0_123 = arith.constant 0 : index
    %c0_124 = arith.constant 0 : index
    %123 = vector.load %arg5[%c14, %c0_123, %c0_124] : memref<25x196x100xf32, #tpu.memory_space<vmem>>, vector<1x196x100xf32>
    %124 = vector.shape_cast %123 : vector<1x196x100xf32> to vector<196x100xf32>
    %cst_125 = arith.constant dense<0.000000e+00> : vector<6x100xf32>
    %125 = tpu.matmul %23, %124, %cst_125 {dimension_numbers = #tpu.dot_dimension_numbers<[1], [0], [0], [1], [0, 0, 1, 1], [], []>} : vector<6x196xf32>, vector<196x100xf32>, vector<6x100xf32> -> vector<6x100xf32>
    %c14_126 = arith.constant 14 : index
    %c0_127 = arith.constant 0 : index
    %c0_128 = arith.constant 0 : index
    %126 = vector.load %arg6[%c14_126, %c0_127, %c0_128] : memref<25x16x6xf32, #tpu.memory_space<vmem>>, vector<1x16x6xf32>
    %127 = vector.shape_cast %126 : vector<1x16x6xf32> to vector<16x6xf32>
    %cst_129 = arith.constant dense<0.000000e+00> : vector<16x100xf32>
    %128 = tpu.matmul %127, %125, %cst_129 {dimension_numbers = #tpu.dot_dimension_numbers<[1], [0], [0], [1], [0, 0, 1, 1], [], []>} : vector<16x6xf32>, vector<6x100xf32>, vector<16x100xf32> -> vector<16x100xf32>
    %129 = arith.addf %122, %128 : vector<16x100xf32>
    %c15 = arith.constant 15 : index
    %c0_130 = arith.constant 0 : index
    %c0_131 = arith.constant 0 : index
    %130 = vector.load %arg5[%c15, %c0_130, %c0_131] : memref<25x196x100xf32, #tpu.memory_space<vmem>>, vector<1x196x100xf32>
    %131 = vector.shape_cast %130 : vector<1x196x100xf32> to vector<196x100xf32>
    %cst_132 = arith.constant dense<0.000000e+00> : vector<6x100xf32>
    %132 = tpu.matmul %23, %131, %cst_132 {dimension_numbers = #tpu.dot_dimension_numbers<[1], [0], [0], [1], [0, 0, 1, 1], [], []>} : vector<6x196xf32>, vector<196x100xf32>, vector<6x100xf32> -> vector<6x100xf32>
    %c15_133 = arith.constant 15 : index
    %c0_134 = arith.constant 0 : index
    %c0_135 = arith.constant 0 : index
    %133 = vector.load %arg6[%c15_133, %c0_134, %c0_135] : memref<25x16x6xf32, #tpu.memory_space<vmem>>, vector<1x16x6xf32>
    %134 = vector.shape_cast %133 : vector<1x16x6xf32> to vector<16x6xf32>
    %cst_136 = arith.constant dense<0.000000e+00> : vector<16x100xf32>
    %135 = tpu.matmul %134, %132, %cst_136 {dimension_numbers = #tpu.dot_dimension_numbers<[1], [0], [0], [1], [0, 0, 1, 1], [], []>} : vector<16x6xf32>, vector<6x100xf32>, vector<16x100xf32> -> vector<16x100xf32>
    %136 = arith.addf %129, %135 : vector<16x100xf32>
    %c16 = arith.constant 16 : index
    %c0_137 = arith.constant 0 : index
    %c0_138 = arith.constant 0 : index
    %137 = vector.load %arg5[%c16, %c0_137, %c0_138] : memref<25x196x100xf32, #tpu.memory_space<vmem>>, vector<1x196x100xf32>
    %138 = vector.shape_cast %137 : vector<1x196x100xf32> to vector<196x100xf32>
    %cst_139 = arith.constant dense<0.000000e+00> : vector<6x100xf32>
    %139 = tpu.matmul %23, %138, %cst_139 {dimension_numbers = #tpu.dot_dimension_numbers<[1], [0], [0], [1], [0, 0, 1, 1], [], []>} : vector<6x196xf32>, vector<196x100xf32>, vector<6x100xf32> -> vector<6x100xf32>
    %c16_140 = arith.constant 16 : index
    %c0_141 = arith.constant 0 : index
    %c0_142 = arith.constant 0 : index
    %140 = vector.load %arg6[%c16_140, %c0_141, %c0_142] : memref<25x16x6xf32, #tpu.memory_space<vmem>>, vector<1x16x6xf32>
    %141 = vector.shape_cast %140 : vector<1x16x6xf32> to vector<16x6xf32>
    %cst_143 = arith.constant dense<0.000000e+00> : vector<16x100xf32>
    %142 = tpu.matmul %141, %139, %cst_143 {dimension_numbers = #tpu.dot_dimension_numbers<[1], [0], [0], [1], [0, 0, 1, 1], [], []>} : vector<16x6xf32>, vector<6x100xf32>, vector<16x100xf32> -> vector<16x100xf32>
    %143 = arith.addf %136, %142 : vector<16x100xf32>
    %c17 = arith.constant 17 : index
    %c0_144 = arith.constant 0 : index
    %c0_145 = arith.constant 0 : index
    %144 = vector.load %arg5[%c17, %c0_144, %c0_145] : memref<25x196x100xf32, #tpu.memory_space<vmem>>, vector<1x196x100xf32>
    %145 = vector.shape_cast %144 : vector<1x196x100xf32> to vector<196x100xf32>
    %cst_146 = arith.constant dense<0.000000e+00> : vector<6x100xf32>
    %146 = tpu.matmul %23, %145, %cst_146 {dimension_numbers = #tpu.dot_dimension_numbers<[1], [0], [0], [1], [0, 0, 1, 1], [], []>} : vector<6x196xf32>, vector<196x100xf32>, vector<6x100xf32> -> vector<6x100xf32>
    %c17_147 = arith.constant 17 : index
    %c0_148 = arith.constant 0 : index
    %c0_149 = arith.constant 0 : index
    %147 = vector.load %arg6[%c17_147, %c0_148, %c0_149] : memref<25x16x6xf32, #tpu.memory_space<vmem>>, vector<1x16x6xf32>
    %148 = vector.shape_cast %147 : vector<1x16x6xf32> to vector<16x6xf32>
    %cst_150 = arith.constant dense<0.000000e+00> : vector<16x100xf32>
    %149 = tpu.matmul %148, %146, %cst_150 {dimension_numbers = #tpu.dot_dimension_numbers<[1], [0], [0], [1], [0, 0, 1, 1], [], []>} : vector<16x6xf32>, vector<6x100xf32>, vector<16x100xf32> -> vector<16x100xf32>
    %150 = arith.addf %143, %149 : vector<16x100xf32>
    %c18 = arith.constant 18 : index
    %c0_151 = arith.constant 0 : index
    %c0_152 = arith.constant 0 : index
    %151 = vector.load %arg5[%c18, %c0_151, %c0_152] : memref<25x196x100xf32, #tpu.memory_space<vmem>>, vector<1x196x100xf32>
    %152 = vector.shape_cast %151 : vector<1x196x100xf32> to vector<196x100xf32>
    %cst_153 = arith.constant dense<0.000000e+00> : vector<6x100xf32>
    %153 = tpu.matmul %23, %152, %cst_153 {dimension_numbers = #tpu.dot_dimension_numbers<[1], [0], [0], [1], [0, 0, 1, 1], [], []>} : vector<6x196xf32>, vector<196x100xf32>, vector<6x100xf32> -> vector<6x100xf32>
    %c18_154 = arith.constant 18 : index
    %c0_155 = arith.constant 0 : index
    %c0_156 = arith.constant 0 : index
    %154 = vector.load %arg6[%c18_154, %c0_155, %c0_156] : memref<25x16x6xf32, #tpu.memory_space<vmem>>, vector<1x16x6xf32>
    %155 = vector.shape_cast %154 : vector<1x16x6xf32> to vector<16x6xf32>
    %cst_157 = arith.constant dense<0.000000e+00> : vector<16x100xf32>
    %156 = tpu.matmul %155, %153, %cst_157 {dimension_numbers = #tpu.dot_dimension_numbers<[1], [0], [0], [1], [0, 0, 1, 1], [], []>} : vector<16x6xf32>, vector<6x100xf32>, vector<16x100xf32> -> vector<16x100xf32>
    %157 = arith.addf %150, %156 : vector<16x100xf32>
    %c19 = arith.constant 19 : index
    %c0_158 = arith.constant 0 : index
    %c0_159 = arith.constant 0 : index
    %158 = vector.load %arg5[%c19, %c0_158, %c0_159] : memref<25x196x100xf32, #tpu.memory_space<vmem>>, vector<1x196x100xf32>
    %159 = vector.shape_cast %158 : vector<1x196x100xf32> to vector<196x100xf32>
    %cst_160 = arith.constant dense<0.000000e+00> : vector<6x100xf32>
    %160 = tpu.matmul %23, %159, %cst_160 {dimension_numbers = #tpu.dot_dimension_numbers<[1], [0], [0], [1], [0, 0, 1, 1], [], []>} : vector<6x196xf32>, vector<196x100xf32>, vector<6x100xf32> -> vector<6x100xf32>
    %c19_161 = arith.constant 19 : index
    %c0_162 = arith.constant 0 : index
    %c0_163 = arith.constant 0 : index
    %161 = vector.load %arg6[%c19_161, %c0_162, %c0_163] : memref<25x16x6xf32, #tpu.memory_space<vmem>>, vector<1x16x6xf32>
    %162 = vector.shape_cast %161 : vector<1x16x6xf32> to vector<16x6xf32>
    %cst_164 = arith.constant dense<0.000000e+00> : vector<16x100xf32>
    %163 = tpu.matmul %162, %160, %cst_164 {dimension_numbers = #tpu.dot_dimension_numbers<[1], [0], [0], [1], [0, 0, 1, 1], [], []>} : vector<16x6xf32>, vector<6x100xf32>, vector<16x100xf32> -> vector<16x100xf32>
    %164 = arith.addf %157, %163 : vector<16x100xf32>
    %c20 = arith.constant 20 : index
    %c0_165 = arith.constant 0 : index
    %c0_166 = arith.constant 0 : index
    %165 = vector.load %arg5[%c20, %c0_165, %c0_166] : memref<25x196x100xf32, #tpu.memory_space<vmem>>, vector<1x196x100xf32>
    %166 = vector.shape_cast %165 : vector<1x196x100xf32> to vector<196x100xf32>
    %cst_167 = arith.constant dense<0.000000e+00> : vector<6x100xf32>
    %167 = tpu.matmul %23, %166, %cst_167 {dimension_numbers = #tpu.dot_dimension_numbers<[1], [0], [0], [1], [0, 0, 1, 1], [], []>} : vector<6x196xf32>, vector<196x100xf32>, vector<6x100xf32> -> vector<6x100xf32>
    %c20_168 = arith.constant 20 : index
    %c0_169 = arith.constant 0 : index
    %c0_170 = arith.constant 0 : index
    %168 = vector.load %arg6[%c20_168, %c0_169, %c0_170] : memref<25x16x6xf32, #tpu.memory_space<vmem>>, vector<1x16x6xf32>
    %169 = vector.shape_cast %168 : vector<1x16x6xf32> to vector<16x6xf32>
    %cst_171 = arith.constant dense<0.000000e+00> : vector<16x100xf32>
    %170 = tpu.matmul %169, %167, %cst_171 {dimension_numbers = #tpu.dot_dimension_numbers<[1], [0], [0], [1], [0, 0, 1, 1], [], []>} : vector<16x6xf32>, vector<6x100xf32>, vector<16x100xf32> -> vector<16x100xf32>
    %171 = arith.addf %164, %170 : vector<16x100xf32>
    %c21 = arith.constant 21 : index
    %c0_172 = arith.constant 0 : index
    %c0_173 = arith.constant 0 : index
    %172 = vector.load %arg5[%c21, %c0_172, %c0_173] : memref<25x196x100xf32, #tpu.memory_space<vmem>>, vector<1x196x100xf32>
    %173 = vector.shape_cast %172 : vector<1x196x100xf32> to vector<196x100xf32>
    %cst_174 = arith.constant dense<0.000000e+00> : vector<6x100xf32>
    %174 = tpu.matmul %23, %173, %cst_174 {dimension_numbers = #tpu.dot_dimension_numbers<[1], [0], [0], [1], [0, 0, 1, 1], [], []>} : vector<6x196xf32>, vector<196x100xf32>, vector<6x100xf32> -> vector<6x100xf32>
    %c21_175 = arith.constant 21 : index
    %c0_176 = arith.constant 0 : index
    %c0_177 = arith.constant 0 : index
    %175 = vector.load %arg6[%c21_175, %c0_176, %c0_177] : memref<25x16x6xf32, #tpu.memory_space<vmem>>, vector<1x16x6xf32>
    %176 = vector.shape_cast %175 : vector<1x16x6xf32> to vector<16x6xf32>
    %cst_178 = arith.constant dense<0.000000e+00> : vector<16x100xf32>
    %177 = tpu.matmul %176, %174, %cst_178 {dimension_numbers = #tpu.dot_dimension_numbers<[1], [0], [0], [1], [0, 0, 1, 1], [], []>} : vector<16x6xf32>, vector<6x100xf32>, vector<16x100xf32> -> vector<16x100xf32>
    %178 = arith.addf %171, %177 : vector<16x100xf32>
    %c22 = arith.constant 22 : index
    %c0_179 = arith.constant 0 : index
    %c0_180 = arith.constant 0 : index
    %179 = vector.load %arg5[%c22, %c0_179, %c0_180] : memref<25x196x100xf32, #tpu.memory_space<vmem>>, vector<1x196x100xf32>
    %180 = vector.shape_cast %179 : vector<1x196x100xf32> to vector<196x100xf32>
    %cst_181 = arith.constant dense<0.000000e+00> : vector<6x100xf32>
    %181 = tpu.matmul %23, %180, %cst_181 {dimension_numbers = #tpu.dot_dimension_numbers<[1], [0], [0], [1], [0, 0, 1, 1], [], []>} : vector<6x196xf32>, vector<196x100xf32>, vector<6x100xf32> -> vector<6x100xf32>
    %c22_182 = arith.constant 22 : index
    %c0_183 = arith.constant 0 : index
    %c0_184 = arith.constant 0 : index
    %182 = vector.load %arg6[%c22_182, %c0_183, %c0_184] : memref<25x16x6xf32, #tpu.memory_space<vmem>>, vector<1x16x6xf32>
    %183 = vector.shape_cast %182 : vector<1x16x6xf32> to vector<16x6xf32>
    %cst_185 = arith.constant dense<0.000000e+00> : vector<16x100xf32>
    %184 = tpu.matmul %183, %181, %cst_185 {dimension_numbers = #tpu.dot_dimension_numbers<[1], [0], [0], [1], [0, 0, 1, 1], [], []>} : vector<16x6xf32>, vector<6x100xf32>, vector<16x100xf32> -> vector<16x100xf32>
    %185 = arith.addf %178, %184 : vector<16x100xf32>
    %c23 = arith.constant 23 : index
    %c0_186 = arith.constant 0 : index
    %c0_187 = arith.constant 0 : index
    %186 = vector.load %arg5[%c23, %c0_186, %c0_187] : memref<25x196x100xf32, #tpu.memory_space<vmem>>, vector<1x196x100xf32>
    %187 = vector.shape_cast %186 : vector<1x196x100xf32> to vector<196x100xf32>
    %cst_188 = arith.constant dense<0.000000e+00> : vector<6x100xf32>
    %188 = tpu.matmul %23, %187, %cst_188 {dimension_numbers = #tpu.dot_dimension_numbers<[1], [0], [0], [1], [0, 0, 1, 1], [], []>} : vector<6x196xf32>, vector<196x100xf32>, vector<6x100xf32> -> vector<6x100xf32>
    %c23_189 = arith.constant 23 : index
    %c0_190 = arith.constant 0 : index
    %c0_191 = arith.constant 0 : index
    %189 = vector.load %arg6[%c23_189, %c0_190, %c0_191] : memref<25x16x6xf32, #tpu.memory_space<vmem>>, vector<1x16x6xf32>
    %190 = vector.shape_cast %189 : vector<1x16x6xf32> to vector<16x6xf32>
    %cst_192 = arith.constant dense<0.000000e+00> : vector<16x100xf32>
    %191 = tpu.matmul %190, %188, %cst_192 {dimension_numbers = #tpu.dot_dimension_numbers<[1], [0], [0], [1], [0, 0, 1, 1], [], []>} : vector<16x6xf32>, vector<6x100xf32>, vector<16x100xf32> -> vector<16x100xf32>
    %192 = arith.addf %185, %191 : vector<16x100xf32>
    %c24 = arith.constant 24 : index
    %c0_193 = arith.constant 0 : index
    %c0_194 = arith.constant 0 : index
    %193 = vector.load %arg5[%c24, %c0_193, %c0_194] : memref<25x196x100xf32, #tpu.memory_space<vmem>>, vector<1x196x100xf32>
    %194 = vector.shape_cast %193 : vector<1x196x100xf32> to vector<196x100xf32>
    %cst_195 = arith.constant dense<0.000000e+00> : vector<6x100xf32>
    %195 = tpu.matmul %23, %194, %cst_195 {dimension_numbers = #tpu.dot_dimension_numbers<[1], [0], [0], [1], [0, 0, 1, 1], [], []>} : vector<6x196xf32>, vector<196x100xf32>, vector<6x100xf32> -> vector<6x100xf32>
    %c24_196 = arith.constant 24 : index
    %c0_197 = arith.constant 0 : index
    %c0_198 = arith.constant 0 : index
    %196 = vector.load %arg6[%c24_196, %c0_197, %c0_198] : memref<25x16x6xf32, #tpu.memory_space<vmem>>, vector<1x16x6xf32>
    %197 = vector.shape_cast %196 : vector<1x16x6xf32> to vector<16x6xf32>
    %cst_199 = arith.constant dense<0.000000e+00> : vector<16x100xf32>
    %198 = tpu.matmul %197, %195, %cst_199 {dimension_numbers = #tpu.dot_dimension_numbers<[1], [0], [0], [1], [0, 0, 1, 1], [], []>} : vector<16x6xf32>, vector<6x100xf32>, vector<16x100xf32> -> vector<16x100xf32>
    %199 = arith.addf %192, %198 : vector<16x100xf32>
    %c0_200 = arith.constant 0 : index
    %c0_201 = arith.constant 0 : index
    %200 = vector.load %arg7[%c0_200, %c0_201] : memref<16x1xf32, #tpu.memory_space<vmem>>, vector<16x1xf32>
    %201 = vector.broadcast %200 : vector<16x1xf32> to vector<16x100xf32>
    %202 = arith.addf %199, %201 : vector<16x100xf32>
    %cst_202 = arith.constant 0.000000e+00 : f32
    %203 = vector.broadcast %cst_202 : f32 to vector<16x100xf32>
    %204 = arith.maximumf %202, %203 : vector<16x100xf32>
    %c0_203 = arith.constant 0 : index
    %c0_204 = arith.constant 0 : index
    %c0_205 = arith.constant 0 : index
    %205 = vector.load %arg8[%c0_203, %c0_204, %c0_205] : memref<4x100x25xf32, #tpu.memory_space<vmem>>, vector<1x100x25xf32>
    %206 = vector.shape_cast %205 : vector<1x100x25xf32> to vector<100x25xf32>
    %cst_206 = arith.constant dense<0.000000e+00> : vector<16x25xf32>
    %207 = tpu.matmul %204, %206, %cst_206 {dimension_numbers = #tpu.dot_dimension_numbers<[1], [0], [0], [1], [0, 0, 1, 1], [], []>} : vector<16x100xf32>, vector<100x25xf32>, vector<16x25xf32> -> vector<16x25xf32>
    %c1_207 = arith.constant 1 : index
    %c0_208 = arith.constant 0 : index
    %c0_209 = arith.constant 0 : index
    %208 = vector.load %arg8[%c1_207, %c0_208, %c0_209] : memref<4x100x25xf32, #tpu.memory_space<vmem>>, vector<1x100x25xf32>
    %209 = vector.shape_cast %208 : vector<1x100x25xf32> to vector<100x25xf32>
    %cst_210 = arith.constant dense<0.000000e+00> : vector<16x25xf32>
    %210 = tpu.matmul %204, %209, %cst_210 {dimension_numbers = #tpu.dot_dimension_numbers<[1], [0], [0], [1], [0, 0, 1, 1], [], []>} : vector<16x100xf32>, vector<100x25xf32>, vector<16x25xf32> -> vector<16x25xf32>
    %211 = arith.maximumf %207, %210 : vector<16x25xf32>
    %c2_211 = arith.constant 2 : index
    %c0_212 = arith.constant 0 : index
    %c0_213 = arith.constant 0 : index
    %212 = vector.load %arg8[%c2_211, %c0_212, %c0_213] : memref<4x100x25xf32, #tpu.memory_space<vmem>>, vector<1x100x25xf32>
    %213 = vector.shape_cast %212 : vector<1x100x25xf32> to vector<100x25xf32>
    %cst_214 = arith.constant dense<0.000000e+00> : vector<16x25xf32>
    %214 = tpu.matmul %204, %213, %cst_214 {dimension_numbers = #tpu.dot_dimension_numbers<[1], [0], [0], [1], [0, 0, 1, 1], [], []>} : vector<16x100xf32>, vector<100x25xf32>, vector<16x25xf32> -> vector<16x25xf32>
    %215 = arith.maximumf %211, %214 : vector<16x25xf32>
    %c3_215 = arith.constant 3 : index
    %c0_216 = arith.constant 0 : index
    %c0_217 = arith.constant 0 : index
    %216 = vector.load %arg8[%c3_215, %c0_216, %c0_217] : memref<4x100x25xf32, #tpu.memory_space<vmem>>, vector<1x100x25xf32>
    %217 = vector.shape_cast %216 : vector<1x100x25xf32> to vector<100x25xf32>
    %cst_218 = arith.constant dense<0.000000e+00> : vector<16x25xf32>
    %218 = tpu.matmul %204, %217, %cst_218 {dimension_numbers = #tpu.dot_dimension_numbers<[1], [0], [0], [1], [0, 0, 1, 1], [], []>} : vector<16x100xf32>, vector<100x25xf32>, vector<16x25xf32> -> vector<16x25xf32>
    %219 = arith.maximumf %215, %218 : vector<16x25xf32>
    %c0_219 = arith.constant 0 : index
    %c0_220 = arith.constant 0 : index
    %220 = vector.load %arg16[%c0_219, %c0_220] : memref<16x25xf32, #tpu.memory_space<vmem>>, vector<16x25xf32>
    tpu.vector_store %arg16[%c0_219, %c0_220], %219 {strides = array<i32>} : memref<16x25xf32, #tpu.memory_space<vmem>>, vector<16x25xf32>,
    %cst_221 = arith.constant 0.000000e+00 : f32
    %221 = vector.broadcast %cst_221 : f32 to vector<1x120xf32>
    %c0_222 = arith.constant 0 : index
    %c0_223 = arith.constant 0 : index
    %222 = vector.load %arg16[%c0_222, %c0_223] : memref<16x25xf32, #tpu.memory_space<vmem>>, vector<1x25xf32>
    %c0_224 = arith.constant 0 : index
    %c0_225 = arith.constant 0 : index
    %c0_226 = arith.constant 0 : index
    %223 = vector.load %arg9[%c0_224, %c0_225, %c0_226] : memref<16x25x120xf32, #tpu.memory_space<vmem>>, vector<1x25x120xf32>
    %224 = vector.shape_cast %223 : vector<1x25x120xf32> to vector<25x120xf32>
    %cst_227 = arith.constant dense<0.000000e+00> : vector<1x120xf32>
    %225 = tpu.matmul %222, %224, %cst_227 {dimension_numbers = #tpu.dot_dimension_numbers<[1], [0], [0], [1], [0, 0, 1, 1], [], []>} : vector<1x25xf32>, vector<25x120xf32>, vector<1x120xf32> -> vector<1x120xf32>
    %226 = arith.addf %221, %225 : vector<1x120xf32>
    %c1_228 = arith.constant 1 : index
    %c0_229 = arith.constant 0 : index
    %227 = vector.load %arg16[%c1_228, %c0_229] : memref<16x25xf32, #tpu.memory_space<vmem>>, vector<1x25xf32>
    %c1_230 = arith.constant 1 : index
    %c0_231 = arith.constant 0 : index
    %c0_232 = arith.constant 0 : index
    %228 = vector.load %arg9[%c1_230, %c0_231, %c0_232] : memref<16x25x120xf32, #tpu.memory_space<vmem>>, vector<1x25x120xf32>
    %229 = vector.shape_cast %228 : vector<1x25x120xf32> to vector<25x120xf32>
    %cst_233 = arith.constant dense<0.000000e+00> : vector<1x120xf32>
    %230 = tpu.matmul %227, %229, %cst_233 {dimension_numbers = #tpu.dot_dimension_numbers<[1], [0], [0], [1], [0, 0, 1, 1], [], []>} : vector<1x25xf32>, vector<25x120xf32>, vector<1x120xf32> -> vector<1x120xf32>
    %231 = arith.addf %226, %230 : vector<1x120xf32>
    %c2_234 = arith.constant 2 : index
    %c0_235 = arith.constant 0 : index
    %232 = vector.load %arg16[%c2_234, %c0_235] : memref<16x25xf32, #tpu.memory_space<vmem>>, vector<1x25xf32>
    %c2_236 = arith.constant 2 : index
    %c0_237 = arith.constant 0 : index
    %c0_238 = arith.constant 0 : index
    %233 = vector.load %arg9[%c2_236, %c0_237, %c0_238] : memref<16x25x120xf32, #tpu.memory_space<vmem>>, vector<1x25x120xf32>
    %234 = vector.shape_cast %233 : vector<1x25x120xf32> to vector<25x120xf32>
    %cst_239 = arith.constant dense<0.000000e+00> : vector<1x120xf32>
    %235 = tpu.matmul %232, %234, %cst_239 {dimension_numbers = #tpu.dot_dimension_numbers<[1], [0], [0], [1], [0, 0, 1, 1], [], []>} : vector<1x25xf32>, vector<25x120xf32>, vector<1x120xf32> -> vector<1x120xf32>
    %236 = arith.addf %231, %235 : vector<1x120xf32>
    %c3_240 = arith.constant 3 : index
    %c0_241 = arith.constant 0 : index
    %237 = vector.load %arg16[%c3_240, %c0_241] : memref<16x25xf32, #tpu.memory_space<vmem>>, vector<1x25xf32>
    %c3_242 = arith.constant 3 : index
    %c0_243 = arith.constant 0 : index
    %c0_244 = arith.constant 0 : index
    %238 = vector.load %arg9[%c3_242, %c0_243, %c0_244] : memref<16x25x120xf32, #tpu.memory_space<vmem>>, vector<1x25x120xf32>
    %239 = vector.shape_cast %238 : vector<1x25x120xf32> to vector<25x120xf32>
    %cst_245 = arith.constant dense<0.000000e+00> : vector<1x120xf32>
    %240 = tpu.matmul %237, %239, %cst_245 {dimension_numbers = #tpu.dot_dimension_numbers<[1], [0], [0], [1], [0, 0, 1, 1], [], []>} : vector<1x25xf32>, vector<25x120xf32>, vector<1x120xf32> -> vector<1x120xf32>
    %241 = arith.addf %236, %240 : vector<1x120xf32>
    %c4_246 = arith.constant 4 : index
    %c0_247 = arith.constant 0 : index
    %242 = vector.load %arg16[%c4_246, %c0_247] : memref<16x25xf32, #tpu.memory_space<vmem>>, vector<1x25xf32>
    %c4_248 = arith.constant 4 : index
    %c0_249 = arith.constant 0 : index
    %c0_250 = arith.constant 0 : index
    %243 = vector.load %arg9[%c4_248, %c0_249, %c0_250] : memref<16x25x120xf32, #tpu.memory_space<vmem>>, vector<1x25x120xf32>
    %244 = vector.shape_cast %243 : vector<1x25x120xf32> to vector<25x120xf32>
    %cst_251 = arith.constant dense<0.000000e+00> : vector<1x120xf32>
    %245 = tpu.matmul %242, %244, %cst_251 {dimension_numbers = #tpu.dot_dimension_numbers<[1], [0], [0], [1], [0, 0, 1, 1], [], []>} : vector<1x25xf32>, vector<25x120xf32>, vector<1x120xf32> -> vector<1x120xf32>
    %246 = arith.addf %241, %245 : vector<1x120xf32>
    %c5_252 = arith.constant 5 : index
    %c0_253 = arith.constant 0 : index
    %247 = vector.load %arg16[%c5_252, %c0_253] : memref<16x25xf32, #tpu.memory_space<vmem>>, vector<1x25xf32>
    %c5_254 = arith.constant 5 : index
    %c0_255 = arith.constant 0 : index
    %c0_256 = arith.constant 0 : index
    %248 = vector.load %arg9[%c5_254, %c0_255, %c0_256] : memref<16x25x120xf32, #tpu.memory_space<vmem>>, vector<1x25x120xf32>
    %249 = vector.shape_cast %248 : vector<1x25x120xf32> to vector<25x120xf32>
    %cst_257 = arith.constant dense<0.000000e+00> : vector<1x120xf32>
    %250 = tpu.matmul %247, %249, %cst_257 {dimension_numbers = #tpu.dot_dimension_numbers<[1], [0], [0], [1], [0, 0, 1, 1], [], []>} : vector<1x25xf32>, vector<25x120xf32>, vector<1x120xf32> -> vector<1x120xf32>
    %251 = arith.addf %246, %250 : vector<1x120xf32>
    %c6_258 = arith.constant 6 : index
    %c0_259 = arith.constant 0 : index
    %252 = vector.load %arg16[%c6_258, %c0_259] : memref<16x25xf32, #tpu.memory_space<vmem>>, vector<1x25xf32>
    %c6_260 = arith.constant 6 : index
    %c0_261 = arith.constant 0 : index
    %c0_262 = arith.constant 0 : index
    %253 = vector.load %arg9[%c6_260, %c0_261, %c0_262] : memref<16x25x120xf32, #tpu.memory_space<vmem>>, vector<1x25x120xf32>
    %254 = vector.shape_cast %253 : vector<1x25x120xf32> to vector<25x120xf32>
    %cst_263 = arith.constant dense<0.000000e+00> : vector<1x120xf32>
    %255 = tpu.matmul %252, %254, %cst_263 {dimension_numbers = #tpu.dot_dimension_numbers<[1], [0], [0], [1], [0, 0, 1, 1], [], []>} : vector<1x25xf32>, vector<25x120xf32>, vector<1x120xf32> -> vector<1x120xf32>
    %256 = arith.addf %251, %255 : vector<1x120xf32>
    %c7_264 = arith.constant 7 : index
    %c0_265 = arith.constant 0 : index
    %257 = vector.load %arg16[%c7_264, %c0_265] : memref<16x25xf32, #tpu.memory_space<vmem>>, vector<1x25xf32>
    %c7_266 = arith.constant 7 : index
    %c0_267 = arith.constant 0 : index
    %c0_268 = arith.constant 0 : index
    %258 = vector.load %arg9[%c7_266, %c0_267, %c0_268] : memref<16x25x120xf32, #tpu.memory_space<vmem>>, vector<1x25x120xf32>
    %259 = vector.shape_cast %258 : vector<1x25x120xf32> to vector<25x120xf32>
    %cst_269 = arith.constant dense<0.000000e+00> : vector<1x120xf32>
    %260 = tpu.matmul %257, %259, %cst_269 {dimension_numbers = #tpu.dot_dimension_numbers<[1], [0], [0], [1], [0, 0, 1, 1], [], []>} : vector<1x25xf32>, vector<25x120xf32>, vector<1x120xf32> -> vector<1x120xf32>
    %261 = arith.addf %256, %260 : vector<1x120xf32>
    %c8_270 = arith.constant 8 : index
    %c0_271 = arith.constant 0 : index
    %262 = vector.load %arg16[%c8_270, %c0_271] : memref<16x25xf32, #tpu.memory_space<vmem>>, vector<1x25xf32>
    %c8_272 = arith.constant 8 : index
    %c0_273 = arith.constant 0 : index
    %c0_274 = arith.constant 0 : index
    %263 = vector.load %arg9[%c8_272, %c0_273, %c0_274] : memref<16x25x120xf32, #tpu.memory_space<vmem>>, vector<1x25x120xf32>
    %264 = vector.shape_cast %263 : vector<1x25x120xf32> to vector<25x120xf32>
    %cst_275 = arith.constant dense<0.000000e+00> : vector<1x120xf32>
    %265 = tpu.matmul %262, %264, %cst_275 {dimension_numbers = #tpu.dot_dimension_numbers<[1], [0], [0], [1], [0, 0, 1, 1], [], []>} : vector<1x25xf32>, vector<25x120xf32>, vector<1x120xf32> -> vector<1x120xf32>
    %266 = arith.addf %261, %265 : vector<1x120xf32>
    %c9_276 = arith.constant 9 : index
    %c0_277 = arith.constant 0 : index
    %267 = vector.load %arg16[%c9_276, %c0_277] : memref<16x25xf32, #tpu.memory_space<vmem>>, vector<1x25xf32>
    %c9_278 = arith.constant 9 : index
    %c0_279 = arith.constant 0 : index
    %c0_280 = arith.constant 0 : index
    %268 = vector.load %arg9[%c9_278, %c0_279, %c0_280] : memref<16x25x120xf32, #tpu.memory_space<vmem>>, vector<1x25x120xf32>
    %269 = vector.shape_cast %268 : vector<1x25x120xf32> to vector<25x120xf32>
    %cst_281 = arith.constant dense<0.000000e+00> : vector<1x120xf32>
    %270 = tpu.matmul %267, %269, %cst_281 {dimension_numbers = #tpu.dot_dimension_numbers<[1], [0], [0], [1], [0, 0, 1, 1], [], []>} : vector<1x25xf32>, vector<25x120xf32>, vector<1x120xf32> -> vector<1x120xf32>
    %271 = arith.addf %266, %270 : vector<1x120xf32>
    %c10_282 = arith.constant 10 : index
    %c0_283 = arith.constant 0 : index
    %272 = vector.load %arg16[%c10_282, %c0_283] : memref<16x25xf32, #tpu.memory_space<vmem>>, vector<1x25xf32>
    %c10_284 = arith.constant 10 : index
    %c0_285 = arith.constant 0 : index
    %c0_286 = arith.constant 0 : index
    %273 = vector.load %arg9[%c10_284, %c0_285, %c0_286] : memref<16x25x120xf32, #tpu.memory_space<vmem>>, vector<1x25x120xf32>
    %274 = vector.shape_cast %273 : vector<1x25x120xf32> to vector<25x120xf32>
    %cst_287 = arith.constant dense<0.000000e+00> : vector<1x120xf32>
    %275 = tpu.matmul %272, %274, %cst_287 {dimension_numbers = #tpu.dot_dimension_numbers<[1], [0], [0], [1], [0, 0, 1, 1], [], []>} : vector<1x25xf32>, vector<25x120xf32>, vector<1x120xf32> -> vector<1x120xf32>
    %276 = arith.addf %271, %275 : vector<1x120xf32>
    %c11_288 = arith.constant 11 : index
    %c0_289 = arith.constant 0 : index
    %277 = vector.load %arg16[%c11_288, %c0_289] : memref<16x25xf32, #tpu.memory_space<vmem>>, vector<1x25xf32>
    %c11_290 = arith.constant 11 : index
    %c0_291 = arith.constant 0 : index
    %c0_292 = arith.constant 0 : index
    %278 = vector.load %arg9[%c11_290, %c0_291, %c0_292] : memref<16x25x120xf32, #tpu.memory_space<vmem>>, vector<1x25x120xf32>
    %279 = vector.shape_cast %278 : vector<1x25x120xf32> to vector<25x120xf32>
    %cst_293 = arith.constant dense<0.000000e+00> : vector<1x120xf32>
    %280 = tpu.matmul %277, %279, %cst_293 {dimension_numbers = #tpu.dot_dimension_numbers<[1], [0], [0], [1], [0, 0, 1, 1], [], []>} : vector<1x25xf32>, vector<25x120xf32>, vector<1x120xf32> -> vector<1x120xf32>
    %281 = arith.addf %276, %280 : vector<1x120xf32>
    %c12_294 = arith.constant 12 : index
    %c0_295 = arith.constant 0 : index
    %282 = vector.load %arg16[%c12_294, %c0_295] : memref<16x25xf32, #tpu.memory_space<vmem>>, vector<1x25xf32>
    %c12_296 = arith.constant 12 : index
    %c0_297 = arith.constant 0 : index
    %c0_298 = arith.constant 0 : index
    %283 = vector.load %arg9[%c12_296, %c0_297, %c0_298] : memref<16x25x120xf32, #tpu.memory_space<vmem>>, vector<1x25x120xf32>
    %284 = vector.shape_cast %283 : vector<1x25x120xf32> to vector<25x120xf32>
    %cst_299 = arith.constant dense<0.000000e+00> : vector<1x120xf32>
    %285 = tpu.matmul %282, %284, %cst_299 {dimension_numbers = #tpu.dot_dimension_numbers<[1], [0], [0], [1], [0, 0, 1, 1], [], []>} : vector<1x25xf32>, vector<25x120xf32>, vector<1x120xf32> -> vector<1x120xf32>
    %286 = arith.addf %281, %285 : vector<1x120xf32>
    %c13_300 = arith.constant 13 : index
    %c0_301 = arith.constant 0 : index
    %287 = vector.load %arg16[%c13_300, %c0_301] : memref<16x25xf32, #tpu.memory_space<vmem>>, vector<1x25xf32>
    %c13_302 = arith.constant 13 : index
    %c0_303 = arith.constant 0 : index
    %c0_304 = arith.constant 0 : index
    %288 = vector.load %arg9[%c13_302, %c0_303, %c0_304] : memref<16x25x120xf32, #tpu.memory_space<vmem>>, vector<1x25x120xf32>
    %289 = vector.shape_cast %288 : vector<1x25x120xf32> to vector<25x120xf32>
    %cst_305 = arith.constant dense<0.000000e+00> : vector<1x120xf32>
    %290 = tpu.matmul %287, %289, %cst_305 {dimension_numbers = #tpu.dot_dimension_numbers<[1], [0], [0], [1], [0, 0, 1, 1], [], []>} : vector<1x25xf32>, vector<25x120xf32>, vector<1x120xf32> -> vector<1x120xf32>
    %291 = arith.addf %286, %290 : vector<1x120xf32>
    %c14_306 = arith.constant 14 : index
    %c0_307 = arith.constant 0 : index
    %292 = vector.load %arg16[%c14_306, %c0_307] : memref<16x25xf32, #tpu.memory_space<vmem>>, vector<1x25xf32>
    %c14_308 = arith.constant 14 : index
    %c0_309 = arith.constant 0 : index
    %c0_310 = arith.constant 0 : index
    %293 = vector.load %arg9[%c14_308, %c0_309, %c0_310] : memref<16x25x120xf32, #tpu.memory_space<vmem>>, vector<1x25x120xf32>
    %294 = vector.shape_cast %293 : vector<1x25x120xf32> to vector<25x120xf32>
    %cst_311 = arith.constant dense<0.000000e+00> : vector<1x120xf32>
    %295 = tpu.matmul %292, %294, %cst_311 {dimension_numbers = #tpu.dot_dimension_numbers<[1], [0], [0], [1], [0, 0, 1, 1], [], []>} : vector<1x25xf32>, vector<25x120xf32>, vector<1x120xf32> -> vector<1x120xf32>
    %296 = arith.addf %291, %295 : vector<1x120xf32>
    %c15_312 = arith.constant 15 : index
    %c0_313 = arith.constant 0 : index
    %297 = vector.load %arg16[%c15_312, %c0_313] : memref<16x25xf32, #tpu.memory_space<vmem>>, vector<1x25xf32>
    %c15_314 = arith.constant 15 : index
    %c0_315 = arith.constant 0 : index
    %c0_316 = arith.constant 0 : index
    %298 = vector.load %arg9[%c15_314, %c0_315, %c0_316] : memref<16x25x120xf32, #tpu.memory_space<vmem>>, vector<1x25x120xf32>
    %299 = vector.shape_cast %298 : vector<1x25x120xf32> to vector<25x120xf32>
    %cst_317 = arith.constant dense<0.000000e+00> : vector<1x120xf32>
    %300 = tpu.matmul %297, %299, %cst_317 {dimension_numbers = #tpu.dot_dimension_numbers<[1], [0], [0], [1], [0, 0, 1, 1], [], []>} : vector<1x25xf32>, vector<25x120xf32>, vector<1x120xf32> -> vector<1x120xf32>
    %301 = arith.addf %296, %300 : vector<1x120xf32>
    %c0_318 = arith.constant 0 : index
    %c0_319 = arith.constant 0 : index
    %302 = vector.load %arg10[%c0_318, %c0_319] : memref<1x120xf32, #tpu.memory_space<vmem>>, vector<1x120xf32>
    %303 = arith.addf %301, %302 : vector<1x120xf32>
    %cst_320 = arith.constant 0.000000e+00 : f32
    %304 = vector.broadcast %cst_320 : f32 to vector<1x120xf32>
    %305 = arith.maximumf %303, %304 : vector<1x120xf32>
    %c0_321 = arith.constant 0 : index
    %c0_322 = arith.constant 0 : index
    %306 = vector.load %arg11[%c0_321, %c0_322] : memref<120x84xf32, #tpu.memory_space<vmem>>, vector<120x84xf32>
    %cst_323 = arith.constant dense<0.000000e+00> : vector<1x84xf32>
    %307 = tpu.matmul %305, %306, %cst_323 {dimension_numbers = #tpu.dot_dimension_numbers<[1], [0], [0], [1], [0, 0, 1, 1], [], []>} : vector<1x120xf32>, vector<120x84xf32>, vector<1x84xf32> -> vector<1x84xf32>
    %c0_324 = arith.constant 0 : index
    %c0_325 = arith.constant 0 : index
    %308 = vector.load %arg12[%c0_324, %c0_325] : memref<1x84xf32, #tpu.memory_space<vmem>>, vector<1x84xf32>
    %309 = arith.addf %307, %308 : vector<1x84xf32>
    %cst_326 = arith.constant 0.000000e+00 : f32
    %310 = vector.broadcast %cst_326 : f32 to vector<1x84xf32>
    %311 = arith.maximumf %309, %310 : vector<1x84xf32>
    %c0_327 = arith.constant 0 : index
    %c0_328 = arith.constant 0 : index
    %312 = vector.load %arg13[%c0_327, %c0_328] : memref<84x10xf32, #tpu.memory_space<vmem>>, vector<84x10xf32>
    %cst_329 = arith.constant dense<0.000000e+00> : vector<1x10xf32>
    %313 = tpu.matmul %311, %312, %cst_329 {dimension_numbers = #tpu.dot_dimension_numbers<[1], [0], [0], [1], [0, 0, 1, 1], [], []>} : vector<1x84xf32>, vector<84x10xf32>, vector<1x10xf32> -> vector<1x10xf32>
    %c0_330 = arith.constant 0 : index
    %c0_331 = arith.constant 0 : index
    %314 = vector.load %arg14[%c0_330, %c0_331] : memref<1x10xf32, #tpu.memory_space<vmem>>, vector<1x10xf32>
    %315 = arith.addf %313, %314 : vector<1x10xf32>
    %c0_332 = arith.constant 0 : index
    %c0_333 = arith.constant 0 : index
    %c0_334 = arith.constant 0 : index
    %316 = vector.load %arg15[%c0_332, %c0_333, %c0_334] : memref<1x1x10xf32, #tpu.memory_space<vmem>>, vector<1x1x10xf32>
    %317 = vector.shape_cast %316 : vector<1x1x10xf32> to vector<1x10xf32>
    %318 = vector.shape_cast %315 : vector<1x10xf32> to vector<1x1x10xf32>
    tpu.vector_store %arg15[%c0_332, %c0_333, %c0_334], %318 {strides = array<i32>} : memref<1x1x10xf32, #tpu.memory_space<vmem>>, vector<1x1x10xf32>,
    return
  }
  func.func @transform_0(%arg0: i32) -> (i32, i32, i32) {
    %c0_i32 = arith.constant 0 : i32
    %c0_i32_0 = arith.constant 0 : i32
    %c0_i32_1 = arith.constant 0 : i32
    return %arg0, %c0_i32, %c0_i32_0 : i32, i32, i32
  }
  func.func @transform_1(%arg0: i32) -> (i32, i32) {
    %c0_i32 = arith.constant 0 : i32
    %c0_i32_0 = arith.constant 0 : i32
    %c0_i32_1 = arith.constant 0 : i32
    return %c0_i32, %c0_i32_0 : i32, i32
  }
  func.func @transform_2(%arg0: i32) -> (i32, i32) {
    %c0_i32 = arith.constant 0 : i32
    %c0_i32_0 = arith.constant 0 : i32
    %c0_i32_1 = arith.constant 0 : i32
    return %c0_i32, %c0_i32_0 : i32, i32
  }
  func.func @transform_3(%arg0: i32) -> (i32, i32, i32) {
    %c0_i32 = arith.constant 0 : i32
    %c0_i32_0 = arith.constant 0 : i32
    %c0_i32_1 = arith.constant 0 : i32
    %c0_i32_2 = arith.constant 0 : i32
    return %c0_i32, %c0_i32_0, %c0_i32_1 : i32, i32, i32
  }
  func.func @transform_4(%arg0: i32) -> (i32, i32, i32) {
    %c0_i32 = arith.constant 0 : i32
    %c0_i32_0 = arith.constant 0 : i32
    %c0_i32_1 = arith.constant 0 : i32
    %c0_i32_2 = arith.constant 0 : i32
    return %c0_i32, %c0_i32_0, %c0_i32_1 : i32, i32, i32
  }
  func.func @transform_5(%arg0: i32) -> (i32, i32, i32) {
    %c0_i32 = arith.constant 0 : i32
    %c0_i32_0 = arith.constant 0 : i32
    %c0_i32_1 = arith.constant 0 : i32
    %c0_i32_2 = arith.constant 0 : i32
    return %c0_i32, %c0_i32_0, %c0_i32_1 : i32, i32, i32
  }
  func.func @transform_6(%arg0: i32) -> (i32, i32) {
    %c0_i32 = arith.constant 0 : i32
    %c0_i32_0 = arith.constant 0 : i32
    %c0_i32_1 = arith.constant 0 : i32
    return %c0_i32, %c0_i32_0 : i32, i32
  }
  func.func @transform_7(%arg0: i32) -> (i32, i32, i32) {
    %c0_i32 = arith.constant 0 : i32
    %c0_i32_0 = arith.constant 0 : i32
    %c0_i32_1 = arith.constant 0 : i32
    %c0_i32_2 = arith.constant 0 : i32
    return %c0_i32, %c0_i32_0, %c0_i32_1 : i32, i32, i32
  }
  func.func @transform_8(%arg0: i32) -> (i32, i32, i32) {
    %c0_i32 = arith.constant 0 : i32
    %c0_i32_0 = arith.constant 0 : i32
    %c0_i32_1 = arith.constant 0 : i32
    %c0_i32_2 = arith.constant 0 : i32
    return %c0_i32, %c0_i32_0, %c0_i32_1 : i32, i32, i32
  }
  func.func @transform_9(%arg0: i32) -> (i32, i32) {
    %c0_i32 = arith.constant 0 : i32
    %c0_i32_0 = arith.constant 0 : i32
    %c0_i32_1 = arith.constant 0 : i32
    return %c0_i32, %c0_i32_0 : i32, i32
  }
  func.func @transform_10(%arg0: i32) -> (i32, i32) {
    %c0_i32 = arith.constant 0 : i32
    %c0_i32_0 = arith.constant 0 : i32
    %c0_i32_1 = arith.constant 0 : i32
    return %c0_i32, %c0_i32_0 : i32, i32
  }
  func.func @transform_11(%arg0: i32) -> (i32, i32) {
    %c0_i32 = arith.constant 0 : i32
    %c0_i32_0 = arith.constant 0 : i32
    %c0_i32_1 = arith.constant 0 : i32
    return %c0_i32, %c0_i32_0 : i32, i32
  }
  func.func @transform_12(%arg0: i32) -> (i32, i32) {
    %c0_i32 = arith.constant 0 : i32
    %c0_i32_0 = arith.constant 0 : i32
    %c0_i32_1 = arith.constant 0 : i32
    return %c0_i32, %c0_i32_0 : i32, i32
  }
  func.func @transform_13(%arg0: i32) -> (i32, i32) {
    %c0_i32 = arith.constant 0 : i32
    %c0_i32_0 = arith.constant 0 : i32
    %c0_i32_1 = arith.constant 0 : i32
    return %c0_i32, %c0_i32_0 : i32, i32
  }
  func.func @transform_14(%arg0: i32) -> (i32, i32, i32) {
    %c0_i32 = arith.constant 0 : i32
    %c0_i32_0 = arith.constant 0 : i32
    %c0_i32_1 = arith.constant 0 : i32
    return %arg0, %c0_i32, %c0_i32_0 : i32, i32, i32
  }
}

</mosaic_0001>

<bundles_post_ra>
// kernel: lenet_forward.1
= control target key start
LH: loop header
LB: loop body
LE: loop exit
PB: predicated region body
PF: predicated region fallthrough
CT: control target
= control target key end

     0   :  { %s19886_s0 = inlined_call_operand.vmem [shape: f32[2,75,784], index: 0, kind: input, shape index: {}]   ;;  %s19887_s1 = inlined_call_operand.vmem [shape: f32[6,75], index: 1, kind: input, shape index: {}]   ;;  %s19888_s2 = inlined_call_operand.vmem [shape: f32[6,1], index: 2, kind: input, shape index: {}]   ;;  %s19889_s3 = inlined_call_operand.vmem [shape: f32[4,784,196], index: 3, kind: input, shape index: {}]   ;;  %s19890_s4 = inlined_call_operand.vmem [shape: f32[25,196,100], index: 4, kind: input, shape index: {}]   ;;  %s19891_s5 = inlined_call_operand.vmem [shape: f32[25,16,6], index: 5, kind: input, shape index: {}]   ;;  %s19892_s6 = inlined_call_operand.vmem [shape: f32[16,1], index: 6, kind: input, shape index: {}]   ;;  %s19893_s7 = inlined_call_operand.vmem [shape: f32[4,100,25], index: 7, kind: input, shape index: {}]   ;;  %s19894_s8 = inlined_call_operand.vmem [shape: f32[16,25,120], index: 8, kind: input, shape index: {}]   ;;  %s19895_s9 = inlined_call_operand.vmem [shape: f32[1,120], index: 9, kind: input, shape index: {}]   ;;  %s19896_s10 = inlined_call_operand.vmem [shape: f32[120,84], index: 10, kind: input, shape index: {}]   ;;  %s19897_s11 = inlined_call_operand.vmem [shape: f32[1,84], index: 11, kind: input, shape index: {}]   ;;  %s19898_s12 = inlined_call_operand.vmem [shape: f32[84,10], index: 12, kind: input, shape index: {}]   ;;  %s19899_s13 = inlined_call_operand.vmem [shape: f32[1,10], index: 13, kind: input, shape index: {}]   ;;  %s19900_s14 = inlined_call_operand.hbm [shape: f32[2,1,10], index: 14, kind: output, shape index: {}]  }
   0x1   :  { %19902 = sst [smem:[#allocation8_spill]] %s19886_s0 }
   0x2   :  { %19903 = sst [smem:[#allocation9_spill]] %s19887_s1 }
   0x3   :  { %19904 = sst [smem:[#allocation10_spill]] %s19888_s2 }
   0x4   :  { %19 = vsyncpa [#allocation4], 0 }
   0x5   :  { %21 = vsyncpa [#allocation4 + $0x1], 0  ;;  %s14026_s29 = smov 0   ;;  %s14028_s30 = smov 0  }
   0x6   :  { %s14030_s15 = smov 0   ;;  %s14032_s16 = smov 0  }
   0x7 LB: > { %19905 = sst [smem:[#allocation6_spill]] %s13939_s15  ;;  %s14047_s17 = sadd.s32 4294967295, %s13943_s16   ;;  %s13943_s16 = sphi %s14032_s16, %s19920_s16   ;;  %s13939_s15 = sphi %s14030_s15, %s19917_s15   ;;  %s13935_s30 = sphi %s14028_s30, %s19919_s30   ;;  %s13931_s29 = sphi %s14026_s29, %s19918_s29  }
   0x8   : > { %s9470_s18 = sadd.s32 4294967294, %s13943_s16   ;;  %s14051_s19 = sadd.s32 1, %s13943_s16  }
   0x9   : > { %s333_s20 = sadd.s32 1, %s13939_s15  ;;  %s330_s21 = ssub.s32 %s13943_s16, %s14051_s19 }
   0xa   : > { %p343_p0 = scmp.ne.s32.totalorder %s13939_s15, %s13935_s30  ;;  %p331_p1 = scmp.eq.s32.totalorder %s330_s21, 0 }
   0xb   : > { %p344_p2 = scmp.eq.s32.totalorder %s14047_s17, 1  ;;  %p349_p3 = scmp.ne.s32.totalorder %s13935_s30, %s13931_s29 }
   0xc   : > { %p350_p4 = scmp.eq.s32.totalorder %s9470_s18, 1  ;;  %p9473_p7 = scmp.ge.s32.totalorder %s13943_s16, 1 }
   0xd   : > { %s14062_s22 = scalar_select %p331_p1, %s13939_s15, %s333_s20  }
   0xe   : > { %p14064_p5 = por %p344_p2, %p343_p0  ;;  %p14068_p6 = por %p350_p4, %p349_p3 }
   0xf   : > { %19906 = sst [smem:[#allocation7_spill]] %s14062_s22  ;;  %p415_p8 = scmp.lt.s32.totalorder %s13943_s16, 3 }
  0x11   : > { %p416_p9 = pnand %p9473_p7, %p415_p8 }
  0x12   : > { %p460_p10 = scmp.lt.s32.totalorder (!%p416_p9), %s14047_s17, 1  ;;  %v13945_v0 = vmov (!%p416_p9), 0.0   ;;  %v13946_v1 = vmov (!%p416_p9), 0   ;;  %s19909_s2 = sld [smem:[#allocation10_spill]] (!%p416_p9)  ;;  %v7492_v3 = vld [vmem:[%s19892_s6] sm:$0xff] (!%p416_p9)  ;;  %vm546_vm0 = vcmask (!%p416_p9), 1042432  }
  0x13   : > { %419 = sbr.rel (%p416_p9) target bundleno = 5376 (0x1500), region = 76  ;;  %632 = vmatprep.mubr.f32.mxu0 (!%p416_p9), %v13945_v0  ;;  %703 = vmatprep.mubr.f32.mxu1 (!%p416_p9), %v13945_v0  ;;  %s19910_s0 = sld [smem:[#allocation8_spill]] (!%p416_p9)  ;;  %vm13947_vm1 = vmmov (!%p416_p9), 1   ;;  %vm542_vm3 = vcmask (!%p416_p9), 613376   ;;  %vm13949_vm4 = vmmov (!%p416_p9), 0   ;;  %vm1054_vm5 = vcmask (!%p416_p9), 130048  }
  0x14   : > { %13879 = vset.pattern.permute.xlu0 (!%p416_p9), %v13946_v1  ;;  %13880 = vset.pattern.permute.xlu1 (!%p416_p9), %v13946_v1  ;;  %vm14126_vm2 = vmpackc.low (!%p416_p9), %vm546_vm0, %vm13947_vm1  ;;  %s19913_s1 = sld [smem:[#allocation9_spill]] (!%p416_p9)  ;;  %vm2820_vm6 = vcmask (!%p416_p9), 1043456   ;;  %vm2816_vm7 = vcmask (!%p416_p9), 556032   ;;  %vm2998_vm8 = vcmask (!%p416_p9), 48128   ;;  %vm3005_vm9 = vcmask (!%p416_p9), 1045504  }
  0x15   : > { %vm7521_vm10 = vcmask (!%p416_p9), 818176   ;;  %vm7905_vm11 = vcmask (!%p416_p9), 1040384   ;;  %vm7888_vm13 = vcmask (!%p416_p9), 203776   ;;  %vm9236_vm14 = vcmask (!%p416_p9), 982016  }
  0x16   : > { %vm19450_vm12 = vmpackc.low (!%p416_p9), %vm7905_vm11, %vm13947_vm1  ;;  %vm9323_vm15 = vcmask (!%p416_p9), 687104   ;;  %vm9400_vm0 = vcmask (!%p416_p9), 73728  }
  0x18   : > { %v536_v2 = vld [vmem:[%s19909_s2] sm:$0x3f] (!%p416_p9) }
  0x19   : > { %539 = vperm.xlu0 (!%p416_p9), %13879, %v536_v2  }
  0x1a   : > { %s461_s25 = scalar_select %p460_p10, %s14047_s17, 1 }
  0x1c   : > { %s13834_s28 = smul.u32 560, %s461_s25 }
  0x1d   : > { %7496 = vperm.xlu0 %13879, %v7492_v3  }
  0x1e   : > { %s14087_s15 = scalar_lea.vmem %s19910_s0, %s13834_s28  ;;  %s10997_s28 = sshll.u32 %s14047_s17, 4 }
  0x1f   : > { %v467_v4 = vld [vmem:[%s14087_s15 + $0x8] sm:$0xff]  ;;  %v474_v5 = vld [vmem:[%s14087_s15 + $0x40] sm:$0xff]  ;;  %v469_v6 = vld [vmem:[%s14087_s15 + $0x18] sm:$0xff]  ;;  %s19844_s22 = scalar_lea.hbm %s19900_s14, %s10997_s28  ;;  %s13950_s17 = smov [#allocation3]  }
  0x20   : > { %v11752_v7 = vpack.c.bf16 %v474_v5, %v467_v4  ;;  %v476_v8 = vld [vmem:[%s14087_s15 + $0x50] sm:$0xff]  ;;  %v466_v9 = vld [vmem:[%s14087_s15] sm:$0xff]  ;;  %v473_v10 = vld [vmem:[%s14087_s15 + $0x38] sm:$0xff]  ;;  %s13885_s2 = sshll.u32 %s13950_s17, 4  ;;  %s13886_s2 = int_to_ptr.vmem [resolvable:$false] %s13885_s2 }
  0x21   : > { %v11774_v11 = vpack.c.bf16 %v476_v8, %v469_v6  ;;  %v11754_v12 = vpack.c.bf16 %v473_v10, %v466_v9  ;;  %v468_v13 = vld [vmem:[%s14087_s15 + $0x10] sm:$0xff]  ;;  %v475_v14 = vld [vmem:[%s14087_s15 + $0x48] sm:$0xff]  ;;  %v481_v15 = vld [vmem:[%s14087_s15 + $0x78] sm:$0xff]  ;;  %s13887_s26 = scalar_lea.vmem %s13886_s2, 32 }
  0x22   : > { %11753 = vmatprep.subr.bf16.mxu0 %v11752_v7  ;;  %v11776_v16 = vpack.c.bf16 %v475_v14, %v468_v13  ;;  %v488_v17 = vld [vmem:[%s14087_s15 + $0xb0] sm:$0xff]  ;;  %v483_v18 = vld [vmem:[%s14087_s15 + $0x88] sm:$0xff]  ;;  %v490_v19 = vld [vmem:[%s14087_s15 + $0xc0] sm:$0xff] }
  0x23   : > { %11775 = vmatprep.subr.bf16.mxu1 %v11774_v11  ;;  %11755 = vmatpush1.bf16.msra.mxu0 %v11754_v12  ;;  %v11756_v20 = vpack.c.bf16 %v488_v17, %v481_v15  ;;  %v11778_v21 = vpack.c.bf16 %v490_v19, %v483_v18  ;;  %v480_v22 = vld [vmem:[%s14087_s15 + $0x70] sm:$0xff]  ;;  %v487_v23 = vld [vmem:[%s14087_s15 + $0xa8] sm:$0xff]  ;;  %v482_v24 = vld [vmem:[%s14087_s15 + $0x80] sm:$0xff]  ;;  %v13948_v18 = vmov 0.0|0.0  }
  0x24   : > { %11777 = vmatpush1.bf16.msra.mxu1 %v11776_v16  ;;  %v11758_v25 = vpack.c.bf16 %v487_v23, %v480_v22  ;;  %v489_v26 = vld [vmem:[%s14087_s15 + $0xb8] sm:$0xff]  ;;  %v495_v27 = vld [vmem:[%s14087_s15 + $0xe8] sm:$0xff]  ;;  %v502_v28 = vld [vmem:[%s14087_s15 + $0x120] sm:$0xff] }
  0x25   : > { %11757 = vmatprep.subr.bf16.mxu0 %v11756_v20  ;;  %11779 = vmatprep.subr.bf16.mxu1 %v11778_v21  ;;  %v11780_v29 = vpack.c.bf16 %v489_v26, %v482_v24  ;;  %v11760_v30 = vpack.c.bf16 %v502_v28, %v495_v27  ;;  %v497_v31 = vld [vmem:[%s14087_s15 + $0xf8] sm:$0xff]  ;;  %v504_v32 = vld [vmem:[%s14087_s15 + $0x130] sm:$0xff]  ;;  %v494_v33 = vld [vmem:[%s14087_s15 + $0xe0] sm:$0xff] }
  0x26   : > { %v11782_v34 = vpack.c.bf16 %v504_v32, %v497_v31  ;;  %v501_v35 = vld [vmem:[%s14087_s15 + $0x118] sm:$0xff]  ;;  %v496_v36 = vld [vmem:[%s14087_s15 + $0xf0] sm:$0xff]  ;;  %v503_v37 = vld [vmem:[%s14087_s15 + $0x128] sm:$0xff] }
  0x27   : > { %11759 = vmatpush1.bf16.msra.mxu0 %v11758_v25  ;;  %v11762_v38 = vpack.c.bf16 %v501_v35, %v494_v33  ;;  %v509_v39 = vld [vmem:[%s14087_s15 + $0x158] sm:$0xff]  ;;  %v516_v40 = vld [vmem:[%s14087_s15 + $0x190] sm:$0xff]  ;;  %v511_v41 = vld [vmem:[%s14087_s15 + $0x168] sm:$0xff]  ;;  %v11784_v42 = vpack.c.bf16 %v503_v37, %v496_v36 }
  0x28   : > { %11781 = vmatpush1.bf16.msra.mxu1 %v11780_v29  ;;  %11761 = vmatprep.subr.bf16.mxu0 %v11760_v30  ;;  %v11764_v43 = vpack.c.bf16 %v516_v40, %v509_v39  ;;  %v518_v44 = vld [vmem:[%s14087_s15 + $0x1a0] sm:$0xff]  ;;  %v508_v45 = vld [vmem:[%s14087_s15 + $0x150] sm:$0xff]  ;;  %v515_v46 = vld [vmem:[%s14087_s15 + $0x188] sm:$0xff] }
  0x29   : > { %11783 = vmatprep.subr.bf16.mxu1 %v11782_v34  ;;  %v11786_v47 = vpack.c.bf16 %v518_v44, %v511_v41  ;;  %v510_v48 = vld [vmem:[%s14087_s15 + $0x160] sm:$0xff]  ;;  %v517_v49 = vld [vmem:[%s14087_s15 + $0x198] sm:$0xff]  ;;  %v523_v50 = vld [vmem:[%s14087_s15 + $0x1c8] sm:$0xff]  ;;  %v11766_v54 = vpack.c.bf16 %v515_v46, %v508_v45 }
  0x2a   : > { %v530_v51 = vld [vmem:[%s14087_s15 + $0x200] sm:$0x7]  ;;  %v525_v52 = vld [vmem:[%s14087_s15 + $0x1d8] sm:$0xff]  ;;  %v532_v53 = vld [vmem:[%s14087_s15 + $0x210] sm:$0x7]  ;;  %v11788_v56 = vpack.c.bf16 %v517_v49, %v510_v48 }
  0x2b   : > { %11763 = vmatpush1.bf16.msra.mxu0 %v11762_v38  ;;  %v11768_v57 = vpack.c.bf16 %v530_v51, %v523_v50  ;;  %v522_v58 = vld [vmem:[%s14087_s15 + $0x1c0] sm:$0xff]  ;;  %v529_v59 = vld [vmem:[%s14087_s15 + $0x1f8] sm:$0x7]  ;;  %v524_v60 = vld [vmem:[%s14087_s15 + $0x1d0] sm:$0xff]  ;;  %v11790_v61 = vpack.c.bf16 %v532_v53, %v525_v52 }
  0x2c   : > { %11785 = vmatpush1.bf16.msra.mxu1 %v11784_v42  ;;  %11765 = vmatprep.subr.bf16.mxu0 %v11764_v43  ;;  %v531_v62 = vld [vmem:[%s14087_s15 + $0x208] sm:$0x7]  ;;  %v478_v1 = vld [vmem:[%s14087_s15 + $0x60] sm:$0xff]  ;;  %v11771_v2 = vpack.c.bf16 %v529_v59, %v522_v58  ;;  %v477_v6 = vld [vmem:[%s14087_s15 + $0x58] sm:$0xff] }
  0x2d   : > { %11787 = vmatprep.subr.bf16.mxu1 %v11786_v47  ;;  %v471_v63 = vld [vmem:[%s14087_s15 + $0x28] sm:$0xff]  ;;  %v11793_v3 = vpack.c.bf16 %v531_v62, %v524_v60  ;;  %v470_v5 = vld [vmem:[%s14087_s15 + $0x20] sm:$0xff]  ;;  %v472_v7 = vld [vmem:[%s14087_s15 + $0x30] sm:$0xff] }
  0x2e   : > { %v11796_v4 = vpack.c.bf16 %v478_v1, %v471_v63  ;;  %v479_v8 = vld [vmem:[%s14087_s15 + $0x68] sm:$0xff]  ;;  %v485_v9 = vld [vmem:[%s14087_s15 + $0x98] sm:$0xff]  ;;  %v492_v10 = vld [vmem:[%s14087_s15 + $0xd0] sm:$0xff]  ;;  %v11798_v12 = vpack.c.bf16 %v477_v6, %v470_v5 }
  0x2f   : > { %11767 = vmatpush1.bf16.msra.mxu0 %v11766_v54  ;;  %v14151_v11 = vld [vmem:[%s19913_s1] sm:$0x3f]  ;;  %v11819_v13 = vpack.c.bf16 %v479_v8, %v472_v7  ;;  %v11800_v14 = vpack.c.bf16 %v492_v10, %v485_v9  ;;  %v484_v15 = vld [vmem:[%s14087_s15 + $0x90] sm:$0xff]  ;;  %v491_v16 = vld [vmem:[%s14087_s15 + $0xc8] sm:$0xff] }
  0x30   : > { %11789 = vmatpush1.bf16.msra.mxu1 %v11788_v56  ;;  %11770 = vmatprep.subr.msk.bf16.mxu0 %vm14126_vm2, %v11768_v57  ;;  %v486_v17 = vld [vmem:[%s14087_s15 + $0xa0] sm:$0xff]  ;;  %v493_v19 = vld [vmem:[%s14087_s15 + $0xd8] sm:$0xff]  ;;  %v499_v20 = vld [vmem:[%s14087_s15 + $0x108] sm:$0xff]  ;;  %v11802_v22 = vpack.c.bf16 %v491_v16, %v484_v15 }
  0x31   : > { %11792 = vmatprep.subr.msk.bf16.mxu1 %vm14126_vm2, %v11790_v61  ;;  %v506_v21 = vld [vmem:[%s14087_s15 + $0x140] sm:$0xff]  ;;  %v11822_v23 = vpack.c.bf16 %v493_v19, %v486_v17  ;;  %v505_v26 = vld [vmem:[%s14087_s15 + $0x138] sm:$0xff]  ;;  %v500_v27 = vld [vmem:[%s14087_s15 + $0x110] sm:$0xff] }
  0x32   : > { %v11804_v24 = vpack.c.bf16 %v506_v21, %v499_v20  ;;  %v498_v25 = vld [vmem:[%s14087_s15 + $0x100] sm:$0xff]  ;;  %v507_v28 = vld [vmem:[%s14087_s15 + $0x148] sm:$0xff]  ;;  %v513_v29 = vld [vmem:[%s14087_s15 + $0x178] sm:$0xff] }
  0x33   : > { %11773 = vmatpush1.bf16.msk.msra.mxu0 %vm14126_vm2, %v11771_v2  ;;  %v520_v30 = vld [vmem:[%s14087_s15 + $0x1b0] sm:$0xff]  ;;  %v11806_v31 = vpack.c.bf16 %v505_v26, %v498_v25  ;;  %v11825_v32 = vpack.c.bf16 %v507_v28, %v500_v27  ;;  %v519_v35 = vld [vmem:[%s14087_s15 + $0x1a8] sm:$0xff]  ;;  %v514_v36 = vld [vmem:[%s14087_s15 + $0x180] sm:$0xff] }
  0x34   : > { %11795 = vmatpush1.bf16.msk.msra.mxu1 %vm14126_vm2, %v11793_v3  ;;  %11797 = vmatprep.subr.bf16.mxu0 %v11796_v4  ;;  %v11808_v33 = vpack.c.bf16 %v520_v30, %v513_v29  ;;  %v512_v34 = vld [vmem:[%s14087_s15 + $0x170] sm:$0xff]  ;;  %v521_v37 = vld [vmem:[%s14087_s15 + $0x1b8] sm:$0xff]  ;;  %v527_v38 = vld [vmem:[%s14087_s15 + $0x1e8] sm:$0xff] }
  0x35   : > { %11818 = vmatprep.subr.bf16.mxu1 %v13948_v18  ;;  %v534_v39 = vld [vmem:[%s14087_s15 + $0x220] sm:$0x7]  ;;  %v11810_v40 = vpack.c.bf16 %v519_v35, %v512_v34  ;;  %v11828_v41 = vpack.c.bf16 %v521_v37, %v514_v36  ;;  %v533_v44 = vld [vmem:[%s14087_s15 + $0x218] sm:$0x7]  ;;  %v859_v45 = vld [vmem:[%s19889_s3 + $0x8] sm:$0xff] }
  0x36   : > { %9477 = vmatmul.mubr.msk.f32.vlgmr.msra.gmra.mrb[0].mxu0 %vm542_vm3, %v14151_v11  ;;  %v11812_v42 = vpack.c.bf16 %v534_v39, %v527_v38  ;;  %v526_v43 = vld [vmem:[%s14087_s15 + $0x1e0] sm:$0xff]  ;;  %v528_v46 = vld [vmem:[%s14087_s15 + $0x1f0] sm:$0xff]  ;;  %v535_v47 = vld [vmem:[%s14087_s15 + $0x228] sm:$0x7]  ;;  %s458_s15 = sand.u32 1, %s13935_s30  }
  0x37   : > { %9480 = vmatmul.mubr.msk.f32.vlgmr.msra.gmra.mrb[0].mxu1 %vm542_vm3, %v14151_v11  ;;  %11799 = vmatpush1.bf16.msra.mxu0 %v11798_v12  ;;  %v861_v48 = vld [vmem:[%s19889_s3 + $0x18] sm:$0xff]  ;;  %v11815_v49 = vpack.c.bf16 %v533_v44, %v526_v43  ;;  %v11831_v50 = vpack.c.bf16 %v535_v47, %v528_v46  ;;  %v858_v52 = vld [vmem:[%s19889_s3] sm:$0xff]  ;;  %v860_v53 = vld [vmem:[%s19889_s3 + $0x10] sm:$0xff]  ;;  %s459_s18 = scalar_lea.vmem [#allocation3], %s458_s15  ;;  %s9403_s25 = scalar_lea.sflag [#allocation4], %s458_s15 }
  0x38   : > { %11820 = vmatpush3.bf16.msra.mxu1 %v11819_v13  ;;  %11801 = vmatprep.subr.bf16.mxu0 %v11800_v14  ;;  %v11834_v51 = vpack.c.bf16 %v861_v48, %v859_v45  ;;  %v863_v54 = vld [vmem:[%s19889_s3 + $0x28] sm:$0xff]  ;;  %v865_v56 = vld [vmem:[%s19889_s3 + $0x38] sm:$0xff]  ;;  %v11836_v57 = vpack.c.bf16 %v860_v53, %v858_v52  ;;  %v862_v59 = vld [vmem:[%s19889_s3 + $0x20] sm:$0xff]  ;;  %s9415_s20 = sshll.u32 %s459_s18, 4  ;;  %s19846_s20 = int_to_ptr.vmem [resolvable:$true] %s9415_s20 }
  0x39   : > { %11821 = vmatprep.subr.bf16.mxu1 %v13948_v18  ;;  %774 = vmatprep.mubr.f32.mxu0 %v13945_v0  ;;  %v11838_v58 = vpack.c.bf16 %v865_v56, %v863_v54  ;;  %v864_v60 = vld [vmem:[%s19889_s3 + $0x30] sm:$0xff]  ;;  %v867_v61 = vld [vmem:[%s19889_s3 + $0x48] sm:$0xff]  ;;  %v869_v62 = vld [vmem:[%s19889_s3 + $0x58] sm:$0xff]  ;;  %s13881_s1 = scalar_lea.vmem %s19846_s20, 16  ;;  %p13888_p0 = scmp.lt.s32.totalorder %s19846_s20, %s13886_s2 }
  0x3a   : > { %11274 = vmatprep.mubr.msk.f32.mxu1 %vm13949_vm4, %v13945_v0  ;;  %v11840_v55 = vpack.c.bf16 %v864_v60, %v862_v59  ;;  %v11842_v63 = vpack.c.bf16 %v869_v62, %v867_v61  ;;  %v866_v1 = vld [vmem:[%s19889_s3 + $0x40] sm:$0xff]  ;;  %v868_v2 = vld [vmem:[%s19889_s3 + $0x50] sm:$0xff]  ;;  %v871_v3 = vld [vmem:[%s19889_s3 + $0x68] sm:$0xff]  ;;  %p13882_p11 = scmp.ne.s32.totalorder %s19846_s20, %s13881_s1  ;;  %p13889_p1 = scmp.lt.s32.totalorder %s13887_s26, %s13881_s1 }
  0x3b   : > { %11803 = vmatpush1.bf16.msra.mxu0 %v11802_v22  ;;  %v873_v4 = vld [vmem:[%s19889_s3 + $0x78] sm:$0xff]  ;;  %v11844_v5 = vpack.c.bf16 %v868_v2, %v866_v1  ;;  %v870_v7 = vld [vmem:[%s19889_s3 + $0x60] sm:$0xff]  ;;  %v872_v8 = vld [vmem:[%s19889_s3 + $0x70] sm:$0xff] }
  0x3c   : > { %11823 = vmatpush3.bf16.msra.mxu1 %v11822_v23  ;;  %11805 = vmatprep.subr.bf16.mxu0 %v11804_v24  ;;  %v11846_v6 = vpack.c.bf16 %v873_v4, %v871_v3  ;;  %v875_v9 = vld [vmem:[%s19889_s3 + $0x88] sm:$0xff]  ;;  %v877_v10 = vld [vmem:[%s19889_s3 + $0x98] sm:$0xff]  ;;  %v874_v13 = vld [vmem:[%s19889_s3 + $0x80] sm:$0xff]  ;;  %p13883_p12 = pnand %p13882_p11, %p14064_p5  ;;  %p13890_p2 = por %p13889_p1, %p13888_p0 }
  0x3d   : > { %11824 = vmatprep.subr.bf16.mxu1 %v13948_v18  ;;  %v11850_v12 = vpack.c.bf16 %v877_v10, %v875_v9  ;;  %v876_v14 = vld [vmem:[%s19889_s3 + $0x90] sm:$0xff]  ;;  %v879_v15 = vld [vmem:[%s19889_s3 + $0xa8] sm:$0xff]  ;;  %v881_v16 = vld [vmem:[%s19889_s3 + $0xb8] sm:$0xff] }
  0x3e   : > { %v11852_v17 = vpack.c.bf16 %v876_v14, %v874_v13  ;;  %v11854_v19 = vpack.c.bf16 %v881_v16, %v879_v15  ;;  %v878_v20 = vld [vmem:[%s19889_s3 + $0xa0] sm:$0xff]  ;;  %v880_v21 = vld [vmem:[%s19889_s3 + $0xb0] sm:$0xff]  ;;  %v883_v22 = vld [vmem:[%s19889_s3 + $0xc8] sm:$0xff]  ;;  %p13884_p13 = pneg %p13883_p12 }
  0x3f   : > { %11807 = vmatpush1.bf16.msra.mxu0 %v11806_v31  ;;  %v885_v23 = vld [vmem:[%s19889_s3 + $0xd8] sm:$0xff]  ;;  %v11856_v24 = vpack.c.bf16 %v880_v21, %v878_v20  ;;  %v882_v26 = vld [vmem:[%s19889_s3 + $0xc0] sm:$0xff]  ;;  %v884_v27 = vld [vmem:[%s19889_s3 + $0xd0] sm:$0xff] }
  0x40   : > { %11826 = vmatpush3.bf16.msra.mxu1 %v11825_v32  ;;  %11809 = vmatprep.subr.bf16.mxu0 %v11808_v33  ;;  %v11858_v25 = vpack.c.bf16 %v885_v23, %v883_v22  ;;  %v887_v28 = vld [vmem:[%s19889_s3 + $0xe8] sm:$0xff]  ;;  %v889_v29 = vld [vmem:[%s19889_s3 + $0xf8] sm:$0xff]  ;;  %v11860_v30 = vpack.c.bf16 %v884_v27, %v882_v26  ;;  %v886_v32 = vld [vmem:[%s19889_s3 + $0xe0] sm:$0xff]  ;;  %p13891_p3 = pnand %p13890_p2, %p13884_p13 }
  0x41   : > { %11827 = vmatprep.subr.bf16.mxu1 %v13948_v18  ;;  %v11862_v31 = vpack.c.bf16 %v889_v29, %v887_v28  ;;  %v888_v33 = vld [vmem:[%s19889_s3 + $0xf0] sm:$0xff]  ;;  %v891_v34 = vld [vmem:[%s19889_s3 + $0x108] sm:$0xff]  ;;  %v893_v35 = vld [vmem:[%s19889_s3 + $0x118] sm:$0xff] }
  0x42   : > { %v11864_v36 = vpack.c.bf16 %v888_v33, %v886_v32  ;;  %v11866_v37 = vpack.c.bf16 %v893_v35, %v891_v34  ;;  %v890_v38 = vld [vmem:[%s19889_s3 + $0x100] sm:$0xff]  ;;  %v892_v39 = vld [vmem:[%s19889_s3 + $0x110] sm:$0xff]  ;;  %v899_v46 = vld [vmem:[%s19889_s3 + $0x148] sm:$0xff] }
  0x43   : > { %11811 = vmatpush1.bf16.msra.mxu0 %v11810_v40  ;;  %v895_v40 = vld [vmem:[%s19889_s3 + $0x128] sm:$0xff]  ;;  %v894_v44 = vld [vmem:[%s19889_s3 + $0x120] sm:$0xff]  ;;  %v896_v45 = vld [vmem:[%s19889_s3 + $0x130] sm:$0xff] }
  0x44   : > { %11829 = vmatpush3.bf16.msra.mxu1 %v11828_v41  ;;  %11814 = vmatprep.subr.msk.bf16.mxu0 %vm14126_vm2, %v11812_v42  ;;  %v897_v41 = vld [vmem:[%s19889_s3 + $0x138] sm:$0xff]  ;;  %v11868_v42 = vpack.c.bf16 %v892_v39, %v890_v38  ;;  %v11872_v48 = vpack.c.bf16 %v896_v45, %v894_v44  ;;  %v903_v52 = vld [vmem:[%s19889_s3 + $0x168] sm:$0xff]  ;;  %v1050_v27 = vld [vmem:[%s19889_s3 + $0x600] sm:$0xff] }
  0x45   : > { %11830 = vmatprep.subr.bf16.mxu1 %v13948_v18  ;;  %v11870_v43 = vpack.c.bf16 %v897_v41, %v895_v40  ;;  %v901_v47 = vld [vmem:[%s19889_s3 + $0x158] sm:$0xff]  ;;  %v907_v59 = vld [vmem:[%s19889_s3 + $0x188] sm:$0xff]  ;;  %v1052_v28 = vld [vmem:[%s19889_s3 + $0x610] sm:$0xff] }
  0x46   : > { %v905_v53 = vld [vmem:[%s19889_s3 + $0x178] sm:$0xff]  ;;  %v911_v1 = vld [vmem:[%s19889_s3 + $0x1a8] sm:$0xff]  ;;  %v12028_v29 = vpack.c.bf16 %v1052_v28, %v1050_v27  ;;  %v922_v38 = vld [vmem:[%s19889_s3 + $0x200] sm:$0xff] }
  0x47   : > { %11817 = vmatpush1.bf16.msk.msra.mxu0 %vm14126_vm2, %v11815_v49  ;;  %v11874_v49 = vpack.c.bf16 %v901_v47, %v899_v46  ;;  %v11878_v56 = vpack.c.bf16 %v905_v53, %v903_v52  ;;  %v909_v60 = vld [vmem:[%s19889_s3 + $0x198] sm:$0xff]  ;;  %v919_v14 = vld [vmem:[%s19889_s3 + $0x1e8] sm:$0xff]  ;;  %v924_v39 = vld [vmem:[%s19889_s3 + $0x210] sm:$0xff] }
  0x48   : > { %11833 = vmatpush3.bf16.msk.msra.mxu1 %vm14126_vm2, %v11831_v50  ;;  %11835 = vmatprep.subr.bf16.mxu0 %v11834_v51  ;;  %v898_v50 = vld [vmem:[%s19889_s3 + $0x140] sm:$0xff]  ;;  %v900_v51 = vld [vmem:[%s19889_s3 + $0x150] sm:$0xff]  ;;  %v11882_v62 = vpack.c.bf16 %v909_v60, %v907_v59  ;;  %v913_v2 = vld [vmem:[%s19889_s3 + $0x1b8] sm:$0xff]  ;;  %v11900_v47 = vpack.c.bf16 %v924_v39, %v922_v38 }
  0x49   : > { %v11876_v54 = vpack.c.bf16 %v900_v51, %v898_v50  ;;  %v11886_v4 = vpack.c.bf16 %v913_v2, %v911_v1  ;;  %v921_v15 = vld [vmem:[%s19889_s3 + $0x1f8] sm:$0xff]  ;;  %v923_v21 = vld [vmem:[%s19889_s3 + $0x208] sm:$0xff]  ;;  %v928_v50 = vld [vmem:[%s19889_s3 + $0x230] sm:$0xff] }
  0x4a   : > { %9483 = vmatmul.mubr.msk.f32.vlgmr.msra.gmra.mrb[2].mxu0 %vm542_vm3, %v14151_v11  ;;  %v11894_v16 = vpack.c.bf16 %v921_v15, %v919_v14  ;;  %v925_v22 = vld [vmem:[%s19889_s3 + $0x218] sm:$0xff]  ;;  %v931_v52 = vld [vmem:[%s19889_s3 + $0x248] sm:$0xff] }
  0x4b   : > { %11275 = vmatmul.mubr.msk.f32.vlgmr.msra.gmra.mrb[2].mxu1 %vm542_vm3, %v14151_v11  ;;  %11837 = vmatpush1.bf16.msra.mxu0 %v11836_v57  ;;  %v11848_v11 = vpack.c.bf16 %v872_v8, %v870_v7  ;;  %v902_v57 = vld [vmem:[%s19889_s3 + $0x160] sm:$0xff]  ;;  %v915_v7 = vld [vmem:[%s19889_s3 + $0x1c8] sm:$0xff]  ;;  %v917_v8 = vld [vmem:[%s19889_s3 + $0x1d8] sm:$0xff]  ;;  %v11898_v23 = vpack.c.bf16 %v925_v22, %v923_v21 }
  0x4c   : > { %11839 = vmatprep.subr.bf16.mxu0 %v11838_v58  ;;  %1335 = vmatprep.mubr.f32.mxu1 %v13945_v0  ;;  %v904_v58 = vld [vmem:[%s19889_s3 + $0x170] sm:$0xff]  ;;  %v11890_v10 = vpack.c.bf16 %v917_v8, %v915_v7  ;;  %v933_v53 = vld [vmem:[%s19889_s3 + $0x258] sm:$0xff]  ;;  %v935_v59 = vld [vmem:[%s19889_s3 + $0x268] sm:$0xff] }
  0x4d   : > { %v11880_v61 = vpack.c.bf16 %v904_v58, %v902_v57  ;;  %v930_v57 = vld [vmem:[%s19889_s3 + $0x240] sm:$0xff]  ;;  %v932_v58 = vld [vmem:[%s19889_s3 + $0x250] sm:$0xff]  ;;  %v937_v60 = vld [vmem:[%s19889_s3 + $0x278] sm:$0xff] }
  0x4e   : > { %v939_v1 = vld [vmem:[%s19889_s3 + $0x288] sm:$0xff]  ;;  %v941_v2 = vld [vmem:[%s19889_s3 + $0x298] sm:$0xff] }
  0x4f   : > { %11841 = vmatpush1.bf16.msra.mxu0 %v11840_v55  ;;  %v906_v55 = vld [vmem:[%s19889_s3 + $0x180] sm:$0xff]  ;;  %v943_v7 = vld [vmem:[%s19889_s3 + $0x2a8] sm:$0xff]  ;;  %v945_v8 = vld [vmem:[%s19889_s3 + $0x2b8] sm:$0xff] }
  0x50   : > { %11843 = vmatprep.subr.bf16.mxu0 %v11842_v63  ;;  %v908_v63 = vld [vmem:[%s19889_s3 + $0x190] sm:$0xff]  ;;  %v951_v38 = vld [vmem:[%s19889_s3 + $0x2e8] sm:$0xff]  ;;  %v953_v39 = vld [vmem:[%s19889_s3 + $0x2f8] sm:$0xff] }
  0x51   : > { %v11884_v3 = vpack.c.bf16 %v908_v63, %v906_v55  ;;  %v934_v55 = vld [vmem:[%s19889_s3 + $0x260] sm:$0xff]  ;;  %v936_v63 = vld [vmem:[%s19889_s3 + $0x270] sm:$0xff] }
  0x53   : > { %11845 = vmatpush1.bf16.msra.mxu0 %v11844_v5  ;;  %v910_v5 = vld [vmem:[%s19889_s3 + $0x1a0] sm:$0xff] }
  0x54   : > { %11847 = vmatprep.subr.bf16.mxu0 %v11846_v6  ;;  %v912_v6 = vld [vmem:[%s19889_s3 + $0x1b0] sm:$0xff] }
  0x55   : > { %v11888_v9 = vpack.c.bf16 %v912_v6, %v910_v5  ;;  %v938_v5 = vld [vmem:[%s19889_s3 + $0x280] sm:$0xff]  ;;  %v940_v6 = vld [vmem:[%s19889_s3 + $0x290] sm:$0xff] }
  0x57   : > { %11849 = vmatpush1.bf16.msra.mxu0 %v11848_v11  ;;  %v914_v11 = vld [vmem:[%s19889_s3 + $0x1c0] sm:$0xff] }
  0x58   : > { %11851 = vmatprep.subr.bf16.mxu0 %v11850_v12  ;;  %v916_v12 = vld [vmem:[%s19889_s3 + $0x1d0] sm:$0xff] }
  0x59   : > { %v11892_v13 = vpack.c.bf16 %v916_v12, %v914_v11  ;;  %v9487_v11 = vld [vmem:[%s19889_s3 + $0x620] sm:$0xff]  ;;  %v9489_v12 = vld [vmem:[%s19889_s3 + $0x630] sm:$0xff] }
  0x5b   : > { %11853 = vmatpush1.bf16.msra.mxu0 %v11852_v17  ;;  %v918_v17 = vld [vmem:[%s19889_s3 + $0x1e0] sm:$0xff] }
  0x5c   : > { %11855 = vmatprep.subr.bf16.mxu0 %v11854_v19  ;;  %v920_v19 = vld [vmem:[%s19889_s3 + $0x1f0] sm:$0xff] }
  0x5d   : > { %v11896_v20 = vpack.c.bf16 %v920_v19, %v918_v17  ;;  %v944_v17 = vld [vmem:[%s19889_s3 + $0x2b0] sm:$0xff]  ;;  %v9492_v19 = vld [vmem:[%s19889_s3 + $0x648] sm:$0xff] }
  0x5f   : > { %11857 = vmatpush1.bf16.msra.mxu0 %v11856_v24  ;;  %v1051_v24 = vld [vmem:[%s19889_s3 + $0x608] sm:$0xff] }
  0x60   : > { %11859 = vmatprep.subr.bf16.mxu0 %v11858_v25  ;;  %v1053_v25 = vld [vmem:[%s19889_s3 + $0x618] sm:$0xff] }
  0x61   : > { %v12026_v26 = vpack.c.bf16 %v1053_v25, %v1051_v24  ;;  %v949_v24 = vld [vmem:[%s19889_s3 + $0x2d8] sm:$0xff]  ;;  %v12032_v25 = vpack.c.bf16 %v9489_v12, %v9487_v11  ;;  %v960_v12 = vld [vmem:[%s19889_s3 + $0x330] sm:$0xff] }
  0x63   : > { %11861 = vmatpush1.bf16.msra.mxu0 %v11860_v30  ;;  %12027 = vmatprep.subr.bf16.mxu1 %v12026_v26  ;;  %v9488_v30 = vld [vmem:[%s19889_s3 + $0x628] sm:$0xff] }
  0x64   : > { %11863 = vmatprep.subr.bf16.mxu0 %v11862_v31  ;;  %12029 = vmatpush1.bf16.msra.mxu1 %v12028_v29  ;;  %v9490_v31 = vld [vmem:[%s19889_s3 + $0x638] sm:$0xff]  ;;  %v9491_v29 = vld [vmem:[%s19889_s3 + $0x640] sm:$0xff] }
  0x65   : > { %v12030_v32 = vpack.c.bf16 %v9490_v31, %v9488_v30  ;;  %v9493_v30 = vld [vmem:[%s19889_s3 + $0x650] sm:$0xff]  ;;  %v946_v31 = vld [vmem:[%s19889_s3 + $0x2c0] sm:$0xff] }
  0x67   : > { %11865 = vmatpush1.bf16.msra.mxu0 %v11864_v36  ;;  %12031 = vmatprep.subr.bf16.mxu1 %v12030_v32 }
  0x68   : > { %11867 = vmatprep.subr.bf16.mxu0 %v11866_v37 }
  0x6b   : > { %11869 = vmatpush1.bf16.msra.mxu0 %v11868_v42  ;;  %v927_v42 = vld [vmem:[%s19889_s3 + $0x228] sm:$0xff] }
  0x6c   : > { %11871 = vmatprep.subr.bf16.mxu0 %v11870_v43  ;;  %v929_v43 = vld [vmem:[%s19889_s3 + $0x238] sm:$0xff] }
  0x6f   : > { %11873 = vmatpush1.bf16.msra.mxu0 %v11872_v48  ;;  %v11902_v48 = vpack.c.bf16 %v929_v43, %v927_v42  ;;  %v9495_v43 = vld [vmem:[%s19889_s3 + $0x660] sm:$0xff] }
  0x70   : > { %11875 = vmatprep.subr.bf16.mxu0 %v11874_v49  ;;  %v926_v49 = vld [vmem:[%s19889_s3 + $0x220] sm:$0xff] }
  0x73   : > { %11877 = vmatpush1.bf16.msra.mxu0 %v11876_v54  ;;  %v11904_v54 = vpack.c.bf16 %v928_v50, %v926_v49  ;;  %v952_v49 = vld [vmem:[%s19889_s3 + $0x2f0] sm:$0xff]  ;;  %v9500_v50 = vld [vmem:[%s19889_s3 + $0x688] sm:$0xff] }
  0x74   : > { %11879 = vmatprep.subr.bf16.mxu0 %v11878_v56  ;;  %v11906_v56 = vpack.c.bf16 %v933_v53, %v931_v52  ;;  %v9502_v52 = vld [vmem:[%s19889_s3 + $0x698] sm:$0xff]  ;;  %v955_v53 = vld [vmem:[%s19889_s3 + $0x308] sm:$0xff] }
  0x77   : > { %11881 = vmatpush1.bf16.msra.mxu0 %v11880_v61  ;;  %v11908_v61 = vpack.c.bf16 %v932_v58, %v930_v57  ;;  %v12042_v58 = vpack.c.bf16 %v9502_v52, %v9500_v50  ;;  %v9515_v52 = vld [vmem:[%s19889_s3 + $0x700] sm:$0xff] }
  0x78   : > { %11883 = vmatprep.subr.bf16.mxu0 %v11882_v62  ;;  %v11910_v62 = vpack.c.bf16 %v937_v60, %v935_v59  ;;  %v9499_v59 = vld [vmem:[%s19889_s3 + $0x680] sm:$0xff]  ;;  %v9501_v60 = vld [vmem:[%s19889_s3 + $0x690] sm:$0xff] }
  0x7b   : > { %11885 = vmatpush1.bf16.msra.mxu0 %v11884_v3  ;;  %v11912_v3 = vpack.c.bf16 %v936_v63, %v934_v55  ;;  %v956_v55 = vld [vmem:[%s19889_s3 + $0x310] sm:$0xff]  ;;  %v9504_v63 = vld [vmem:[%s19889_s3 + $0x6a8] sm:$0xff] }
  0x7c   : > { %11887 = vmatprep.subr.bf16.mxu0 %v11886_v4  ;;  %v11914_v4 = vpack.c.bf16 %v941_v2, %v939_v1  ;;  %v9506_v1 = vld [vmem:[%s19889_s3 + $0x6b8] sm:$0xff]  ;;  %v959_v2 = vld [vmem:[%s19889_s3 + $0x328] sm:$0xff] }
  0x7f   : > { %11889 = vmatpush1.bf16.msra.mxu0 %v11888_v9 }
  0x80   : > { %11891 = vmatprep.subr.bf16.mxu0 %v11890_v10  ;;  %v11916_v10 = vpack.c.bf16 %v940_v6, %v938_v5  ;;  %v12046_v6 = vpack.c.bf16 %v9506_v1, %v9504_v63  ;;  %v9519_v1 = vld [vmem:[%s19889_s3 + $0x720] sm:$0xff] }
  0x83   : > { %11893 = vmatpush1.bf16.msra.mxu0 %v11892_v13  ;;  %v942_v13 = vld [vmem:[%s19889_s3 + $0x2a0] sm:$0xff] }
  0x84   : > { %11895 = vmatprep.subr.bf16.mxu0 %v11894_v16  ;;  %v11918_v16 = vpack.c.bf16 %v945_v8, %v943_v7  ;;  %v11920_v27 = vpack.c.bf16 %v944_v17, %v942_v13  ;;  %v9503_v7 = vld [vmem:[%s19889_s3 + $0x6a0] sm:$0xff]  ;;  %v9505_v8 = vld [vmem:[%s19889_s3 + $0x6b0] sm:$0xff]  ;;  %v9508_v13 = vld [vmem:[%s19889_s3 + $0x6c8] sm:$0xff] }
  0x85   : > { %v965_v17 = vld [vmem:[%s19889_s3 + $0x358] sm:$0xff] }
  0x87   : > { %11897 = vmatpush1.bf16.msra.mxu0 %v11896_v20  ;;  %v9494_v20 = vld [vmem:[%s19889_s3 + $0x658] sm:$0xff] }
  0x88   : > { %11899 = vmatprep.subr.bf16.mxu0 %v11898_v23  ;;  %v947_v23 = vld [vmem:[%s19889_s3 + $0x2c8] sm:$0xff]  ;;  %v12034_v28 = vpack.c.bf16 %v9494_v20, %v9492_v19  ;;  %v12048_v19 = vpack.c.bf16 %v9505_v8, %v9503_v7  ;;  %v9526_v7 = vld [vmem:[%s19889_s3 + $0x758] sm:$0xff] }
  0x89   : > { %v11922_v32 = vpack.c.bf16 %v949_v24, %v947_v23  ;;  %v9509_v23 = vld [vmem:[%s19889_s3 + $0x6d0] sm:$0xff]  ;;  %v962_v24 = vld [vmem:[%s19889_s3 + $0x340] sm:$0xff]  ;;  %v979_v8 = vld [vmem:[%s19889_s3 + $0x3c8] sm:$0xff] }
  0x98   : > { %v14416_v33 = vpop.permute.xlu0 %539 }
 0x109   : > { %v634_v34 = vpop.f32.mrb[0].mxu0 }
 0x10a   : > { %v14418_v35 = vpop.f32.mrb[0].mxu1  ;;  %v636_v36 = vpop.f32.mrb[1].mxu0  ;;  %v635_v37 = vadd.f32 %v634_v34, %v14416_v33  ;;  %v948_v34 = vld [vmem:[%s19889_s3 + $0x2d0] sm:$0xff] }
 0x10b   : > { %v637_v40 = vadd.f32 %v636_v36, %v14416_v33  ;;  %v707_v41 = vpop.f32.mrb[1].mxu1  ;;  %v9496_v36 = vld [vmem:[%s19889_s3 + $0x668] sm:$0xff] }
 0x10c   : > { %v708_v44 = vadd.f32 %v707_v41, %v14416_v33  ;;  %v14435_v45 = vmax.f32 %v635_v37, 0.0  ;;  %v9498_v37 = vld [vmem:[%s19889_s3 + $0x678] sm:$0xff]  ;;  %v11924_v41 = vpack.c.bf16 %v948_v34, %v946_v31 }
 0x10d   : > { %v14437_v46 = vmax.f32 %v637_v40, 0.0  ;;  %v12036_v40 = vpack.c.bf16 %v9493_v30, %v9491_v29  ;;  %v12038_v42 = vpack.c.bf16 %v9498_v37, %v9496_v36  ;;  %v9514_v29 = vld [vmem:[%s19889_s3 + $0x6f8] sm:$0xff]  ;;  %v967_v30 = vld [vmem:[%s19889_s3 + $0x368] sm:$0xff]  ;;  %v9511_v37 = vld [vmem:[%s19889_s3 + $0x6e0] sm:$0xff] }
 0x10e   : > { %v14445_v51 = vmax.f32 %v708_v44, 0.0  ;;  %v9497_v44 = vld [vmem:[%s19889_s3 + $0x670] sm:$0xff]  ;;  %v969_v31 = vld [vmem:[%s19889_s3 + $0x378] sm:$0xff] }
 0x10f   : > { %1122 = vmatprep.mubr.f32.mxu0 %v14437_v46 }
 0x110   : > { %1123 = vmatmul.mubr.f32.vlgmr.msra.gmra.mrb[4].mxu0 %v14435_v45 }
 0x111   : > { %11901 = vmatpush1.bf16.msra.mxu0 %v11900_v47  ;;  %1193 = vmatprep.mubr.f32.mxu0 %v14445_v51  ;;  %v950_v47 = vld [vmem:[%s19889_s3 + $0x2e0] sm:$0xff] }
 0x112   : > { %11903 = vmatprep.subr.bf16.mxu0 %v11902_v48  ;;  %v11926_v48 = vpack.c.bf16 %v953_v39, %v951_v38  ;;  %v11928_v57 = vpack.c.bf16 %v952_v49, %v950_v47  ;;  %v9513_v38 = vld [vmem:[%s19889_s3 + $0x6f0] sm:$0xff]  ;;  %v966_v39 = vld [vmem:[%s19889_s3 + $0x360] sm:$0xff]  ;;  %v973_v47 = vld [vmem:[%s19889_s3 + $0x398] sm:$0xff] }
 0x115   : > { %11905 = vmatpush1.bf16.msra.mxu0 %v11904_v54  ;;  %v957_v54 = vld [vmem:[%s19889_s3 + $0x318] sm:$0xff] }
 0x116   : > { %11907 = vmatprep.subr.bf16.mxu0 %v11906_v56  ;;  %v12040_v56 = vpack.c.bf16 %v9497_v44, %v9495_v43  ;;  %v9518_v43 = vld [vmem:[%s19889_s3 + $0x718] sm:$0xff]  ;;  %v971_v44 = vld [vmem:[%s19889_s3 + $0x388] sm:$0xff] }
 0x119   : > { %11909 = vmatpush1.bf16.msra.mxu0 %v11908_v61  ;;  %v954_v61 = vld [vmem:[%s19889_s3 + $0x300] sm:$0xff] }
 0x11a   : > { %11911 = vmatprep.subr.bf16.mxu0 %v11910_v62  ;;  %v11930_v62 = vpack.c.bf16 %v957_v54, %v955_v53  ;;  %v11932_v5 = vpack.c.bf16 %v956_v55, %v954_v61  ;;  %v9517_v53 = vld [vmem:[%s19889_s3 + $0x710] sm:$0xff]  ;;  %v970_v54 = vld [vmem:[%s19889_s3 + $0x380] sm:$0xff]  ;;  %v977_v61 = vld [vmem:[%s19889_s3 + $0x3b8] sm:$0xff] }
 0x11d   : > { %11913 = vmatpush1.bf16.msra.mxu0 %v11912_v3  ;;  %v14492_v9 = vpop.f32.mrb[2].mxu0  ;;  %v961_v3 = vld [vmem:[%s19889_s3 + $0x338] sm:$0xff] }
 0x11e   : > { %v847_v14 = vpop.f32.mrb[2].mxu1  ;;  %v14503_v15 = vpop.f32.mrb[3].mxu0  ;;  %11915 = vmatprep.subr.bf16.mxu0 %v11914_v4  ;;  %v12044_v4 = vpack.c.bf16 %v9501_v60, %v9499_v59  ;;  %v11934_v11 = vpack.c.bf16 %v961_v3, %v959_v2  ;;  %v9522_v59 = vld [vmem:[%s19889_s3 + $0x738] sm:$0xff]  ;;  %v975_v60 = vld [vmem:[%s19889_s3 + $0x3a8] sm:$0xff]  ;;  %v9521_v2 = vld [vmem:[%s19889_s3 + $0x730] sm:$0xff] }
 0x11f   : > { %v848_v21 = vadd.f32 %v847_v14, %v14416_v33  ;;  %v11276_v22 = vpop.f32.mrb[3].mxu1  ;;  %v9510_v14 = vld [vmem:[%s19889_s3 + $0x6d8] sm:$0xff]  ;;  %v974_v3 = vld [vmem:[%s19889_s3 + $0x3a0] sm:$0xff] }
 0x120   : > { %v9507_v22 = vld [vmem:[%s19889_s3 + $0x6c0] sm:$0xff] }
 0x121   : > { %v14521_v26 = vmax.f32 %v848_v21, 0.0  ;;  %11917 = vmatpush1.bf16.msra.mxu0 %v11916_v10  ;;  %v958_v10 = vld [vmem:[%s19889_s3 + $0x320] sm:$0xff]  ;;  %v12050_v21 = vpack.c.bf16 %v9510_v14, %v9508_v13 }
 0x122   : > { %11919 = vmatprep.subr.bf16.mxu0 %v11918_v16  ;;  %v963_v16 = vld [vmem:[%s19889_s3 + $0x348] sm:$0xff]  ;;  %v11936_v20 = vpack.c.bf16 %v960_v12, %v958_v10  ;;  %v981_v10 = vld [vmem:[%s19889_s3 + $0x3d8] sm:$0xff]  ;;  %v9523_v14 = vld [vmem:[%s19889_s3 + $0x740] sm:$0xff] }
 0x123   : > { %9486 = vmatmul.mubr.msk.f32.vlgmr.msra.gmra.mrb[4].mxu1 %vm1054_vm5, %v14521_v26 }
 0x124   : > { %12033 = vmatpush1.bf16.msra.mxu1 %v12032_v25  ;;  %1603 = vmatprep.mubr.f32.mxu1 %v14437_v46  ;;  %v11938_v25 = vpack.c.bf16 %v965_v17, %v963_v16  ;;  %v9525_v16 = vld [vmem:[%s19889_s3 + $0x750] sm:$0xff]  ;;  %v978_v17 = vld [vmem:[%s19889_s3 + $0x3c0] sm:$0xff] }
 0x125   : > { %11921 = vmatpush1.bf16.msra.mxu0 %v11920_v27  ;;  %12035 = vmatprep.subr.bf16.mxu1 %v12034_v28  ;;  %v964_v27 = vld [vmem:[%s19889_s3 + $0x350] sm:$0xff]  ;;  %v9512_v28 = vld [vmem:[%s19889_s3 + $0x6e8] sm:$0xff] }
 0x126   : > { %11923 = vmatprep.subr.bf16.mxu0 %v11922_v32  ;;  %v12052_v32 = vpack.c.bf16 %v9509_v23, %v9507_v22  ;;  %v11940_v34 = vpack.c.bf16 %v964_v27, %v962_v24  ;;  %v12054_v36 = vpack.c.bf16 %v9514_v29, %v9512_v28  ;;  %v9530_v22 = vld [vmem:[%s19889_s3 + $0x778] sm:$0xff]  ;;  %v983_v23 = vld [vmem:[%s19889_s3 + $0x3e8] sm:$0xff]  ;;  %v9527_v29 = vld [vmem:[%s19889_s3 + $0x760] sm:$0xff] }
 0x127   : > { %v985_v24 = vld [vmem:[%s19889_s3 + $0x3f8] sm:$0xff] }
 0x128   : > { %12037 = vmatpush1.bf16.msra.mxu1 %v12036_v40  ;;  %v11942_v40 = vpack.c.bf16 %v969_v31, %v967_v30  ;;  %v9529_v30 = vld [vmem:[%s19889_s3 + $0x770] sm:$0xff]  ;;  %v982_v31 = vld [vmem:[%s19889_s3 + $0x3e0] sm:$0xff] }
 0x129   : > { %11925 = vmatpush1.bf16.msra.mxu0 %v11924_v41  ;;  %12039 = vmatprep.subr.bf16.mxu1 %v12038_v42  ;;  %v968_v41 = vld [vmem:[%s19889_s3 + $0x370] sm:$0xff]  ;;  %v9516_v42 = vld [vmem:[%s19889_s3 + $0x708] sm:$0xff] }
 0x12a   : > { %11927 = vmatprep.subr.bf16.mxu0 %v11926_v48  ;;  %v12056_v48 = vpack.c.bf16 %v9513_v38, %v9511_v37  ;;  %v11944_v49 = vpack.c.bf16 %v968_v41, %v966_v39  ;;  %v12058_v50 = vpack.c.bf16 %v9518_v43, %v9516_v42  ;;  %v9534_v37 = vld [vmem:[%s19889_s3 + $0x798] sm:$0xff]  ;;  %v987_v38 = vld [vmem:[%s19889_s3 + $0x408] sm:$0xff]  ;;  %v9531_v43 = vld [vmem:[%s19889_s3 + $0x780] sm:$0xff] }
 0x12b   : > { %v989_v39 = vld [vmem:[%s19889_s3 + $0x418] sm:$0xff] }
 0x12c   : > { %12041 = vmatpush1.bf16.msra.mxu1 %v12040_v56  ;;  %v11946_v56 = vpack.c.bf16 %v973_v47, %v971_v44  ;;  %v9533_v44 = vld [vmem:[%s19889_s3 + $0x790] sm:$0xff]  ;;  %v706_v47 = vadd.f32 %v14418_v35, %v14416_v33  ;;  %v9538_v35 = vld [vmem:[%s19889_s3 + $0x7b8] sm:$0xff] }
 0x12d   : > { %11929 = vmatpush1.bf16.msra.mxu0 %v11928_v57  ;;  %12043 = vmatprep.subr.bf16.mxu1 %v12042_v58  ;;  %v972_v57 = vld [vmem:[%s19889_s3 + $0x390] sm:$0xff]  ;;  %v9520_v58 = vld [vmem:[%s19889_s3 + $0x728] sm:$0xff] }
 0x12e   : > { %11931 = vmatprep.subr.bf16.mxu0 %v11930_v62  ;;  %v12060_v62 = vpack.c.bf16 %v9517_v53, %v9515_v52  ;;  %v11948_v55 = vpack.c.bf16 %v972_v57, %v970_v54  ;;  %v12062_v63 = vpack.c.bf16 %v9522_v59, %v9520_v58  ;;  %v9536_v52 = vld [vmem:[%s19889_s3 + $0x7a8] sm:$0xff]  ;;  %v779_v53 = vadd.f32 %v14503_v15, %v14416_v33  ;;  %v9535_v15 = vld [vmem:[%s19889_s3 + $0x7a0] sm:$0xff]  ;;  %v9537_v59 = vld [vmem:[%s19889_s3 + $0x7b0] sm:$0xff] }
 0x12f   : > { %v991_v54 = vld [vmem:[%s19889_s3 + $0x428] sm:$0xff]  ;;  %v12076_v57 = vpack.c.bf16 %v9533_v44, %v9531_v43  ;;  %v1004_v43 = vld [vmem:[%s19889_s3 + $0x490] sm:$0xff] }
 0x130   : > { %12045 = vmatpush1.bf16.msra.mxu1 %v12044_v4  ;;  %v11950_v4 = vpack.c.bf16 %v977_v61, %v975_v60  ;;  %v990_v60 = vld [vmem:[%s19889_s3 + $0x420] sm:$0xff]  ;;  %v14803_v61 = vmax.f32 %v706_v47, 0.0  ;;  %v9552_v44 = vld [vmem:[%s19889_s3 + $0x828] sm:$0xff]  ;;  %v9554_v47 = vld [vmem:[%s19889_s3 + $0x838] sm:$0xff] }
 0x131   : > { %11933 = vmatpush1.bf16.msra.mxu0 %v11932_v5  ;;  %12047 = vmatprep.subr.bf16.mxu1 %v12046_v6  ;;  %v976_v5 = vld [vmem:[%s19889_s3 + $0x3b0] sm:$0xff]  ;;  %v9524_v6 = vld [vmem:[%s19889_s3 + $0x748] sm:$0xff] }
 0x132   : > { %11935 = vmatprep.subr.bf16.mxu0 %v11934_v11  ;;  %v12064_v11 = vpack.c.bf16 %v9521_v2, %v9519_v1  ;;  %v11952_v12 = vpack.c.bf16 %v976_v5, %v974_v3  ;;  %v12066_v13 = vpack.c.bf16 %v9526_v7, %v9524_v6  ;;  %v9540_v1 = vld [vmem:[%s19889_s3 + $0x7c8] sm:$0xff]  ;;  %v9542_v2 = vld [vmem:[%s19889_s3 + $0x7d8] sm:$0xff]  ;;  %v14814_v3 = vmax.f32 %v779_v53, 0.0 }
 0x133   : > { %v997_v5 = vld [vmem:[%s19889_s3 + $0x458] sm:$0xff]  ;;  %v12080_v6 = vpack.c.bf16 %v9537_v59, %v9535_v15  ;;  %v12094_v53 = vpack.c.bf16 %v9554_v47, %v9552_v44  ;;  %v9556_v15 = vld [vmem:[%s19889_s3 + $0x848] sm:$0xff]  ;;  %v9567_v47 = vld [vmem:[%s19889_s3 + $0x8a0] sm:$0xff] }
 0x134   : > { %12049 = vmatpush1.bf16.msra.mxu1 %v12048_v19  ;;  %v11954_v19 = vpack.c.bf16 %v981_v10, %v979_v8  ;;  %v12082_v8 = vpack.c.bf16 %v9542_v2, %v9540_v1  ;;  %v9539_v10 = vld [vmem:[%s19889_s3 + $0x7c0] sm:$0xff]  ;;  %v9558_v59 = vld [vmem:[%s19889_s3 + $0x858] sm:$0xff] }
 0x135   : > { %11937 = vmatpush1.bf16.msra.mxu0 %v11936_v20  ;;  %12051 = vmatprep.subr.bf16.mxu1 %v12050_v21  ;;  %v980_v20 = vld [vmem:[%s19889_s3 + $0x3d0] sm:$0xff]  ;;  %v9528_v21 = vld [vmem:[%s19889_s3 + $0x768] sm:$0xff]  ;;  %v12098_v1 = vpack.c.bf16 %v9558_v59, %v9556_v15  ;;  %v9555_v2 = vld [vmem:[%s19889_s3 + $0x840] sm:$0xff] }
 0x136   : > { %11939 = vmatprep.subr.bf16.mxu0 %v11938_v25  ;;  %v12068_v25 = vpack.c.bf16 %v9525_v16, %v9523_v14  ;;  %v11956_v27 = vpack.c.bf16 %v980_v20, %v978_v17  ;;  %v12070_v28 = vpack.c.bf16 %v9530_v22, %v9528_v21  ;;  %v996_v14 = vld [vmem:[%s19889_s3 + $0x450] sm:$0xff]  ;;  %v9544_v16 = vld [vmem:[%s19889_s3 + $0x7e8] sm:$0xff]  ;;  %v9546_v17 = vld [vmem:[%s19889_s3 + $0x7f8] sm:$0xff] }
 0x137   : > { %v1001_v20 = vld [vmem:[%s19889_s3 + $0x478] sm:$0xff]  ;;  %v9571_v59 = vld [vmem:[%s19889_s3 + $0x8c0] sm:$0xff] }
 0x138   : > { %12053 = vmatpush1.bf16.msra.mxu1 %v12052_v32  ;;  %v11958_v32 = vpack.c.bf16 %v985_v24, %v983_v23  ;;  %v12086_v23 = vpack.c.bf16 %v9546_v17, %v9544_v16  ;;  %v9543_v24 = vld [vmem:[%s19889_s3 + $0x7e0] sm:$0xff] }
 0x139   : > { %11941 = vmatpush1.bf16.msra.mxu0 %v11940_v34  ;;  %12055 = vmatprep.subr.bf16.mxu1 %v12054_v36  ;;  %v984_v34 = vld [vmem:[%s19889_s3 + $0x3f0] sm:$0xff]  ;;  %v9532_v36 = vld [vmem:[%s19889_s3 + $0x788] sm:$0xff]  ;;  %v9559_v17 = vld [vmem:[%s19889_s3 + $0x860] sm:$0xff] }
 0x13a   : > { %11943 = vmatprep.subr.bf16.mxu0 %v11942_v40  ;;  %v12072_v40 = vpack.c.bf16 %v9529_v30, %v9527_v29  ;;  %v11960_v41 = vpack.c.bf16 %v984_v34, %v982_v31  ;;  %v12074_v42 = vpack.c.bf16 %v9534_v37, %v9532_v36  ;;  %v1000_v29 = vld [vmem:[%s19889_s3 + $0x470] sm:$0xff]  ;;  %v9548_v30 = vld [vmem:[%s19889_s3 + $0x808] sm:$0xff]  ;;  %v9550_v31 = vld [vmem:[%s19889_s3 + $0x818] sm:$0xff] }
 0x13b   : > { %v1005_v34 = vld [vmem:[%s19889_s3 + $0x498] sm:$0xff] }
 0x13c   : > { %12057 = vmatpush1.bf16.msra.mxu1 %v12056_v48  ;;  %v11962_v48 = vpack.c.bf16 %v989_v39, %v987_v38  ;;  %v12090_v38 = vpack.c.bf16 %v9550_v31, %v9548_v30  ;;  %v9547_v39 = vld [vmem:[%s19889_s3 + $0x800] sm:$0xff] }
 0x13d   : > { %11945 = vmatpush1.bf16.msra.mxu0 %v11944_v49  ;;  %12059 = vmatprep.subr.bf16.mxu1 %v12058_v50  ;;  %v986_v49 = vld [vmem:[%s19889_s3 + $0x400] sm:$0xff]  ;;  %v988_v50 = vld [vmem:[%s19889_s3 + $0x410] sm:$0xff] }
 0x13e   : > { %11947 = vmatprep.subr.bf16.mxu0 %v11946_v56  ;;  %v993_v56 = vld [vmem:[%s19889_s3 + $0x438] sm:$0xff]  ;;  %v11964_v58 = vpack.c.bf16 %v988_v50, %v986_v49  ;;  %v9563_v31 = vld [vmem:[%s19889_s3 + $0x880] sm:$0xff] }
 0x13f   : > { %v1009_v49 = vld [vmem:[%s19889_s3 + $0x4b8] sm:$0xff] }
 0x140   : > { %12061 = vmatpush1.bf16.msra.mxu1 %v12060_v62  ;;  %v12078_v62 = vpack.c.bf16 %v9538_v35, %v9536_v52  ;;  %v9551_v35 = vld [vmem:[%s19889_s3 + $0x820] sm:$0xff] }
 0x141   : > { %11949 = vmatpush1.bf16.msra.mxu0 %v11948_v55  ;;  %12063 = vmatprep.subr.bf16.mxu1 %v12062_v63  ;;  %v11966_v55 = vpack.c.bf16 %v993_v56, %v991_v54  ;;  %v992_v63 = vld [vmem:[%s19889_s3 + $0x430] sm:$0xff]  ;;  %v1006_v56 = vld [vmem:[%s19889_s3 + $0x4a0] sm:$0xff] }
 0x142   : > { %11951 = vmatprep.subr.bf16.mxu0 %v11950_v4  ;;  %v995_v4 = vld [vmem:[%s19889_s3 + $0x448] sm:$0xff]  ;;  %v11968_v7 = vpack.c.bf16 %v992_v63, %v990_v60  ;;  %v9553_v54 = vld [vmem:[%s19889_s3 + $0x830] sm:$0xff] }
 0x143   : > { %v1011_v60 = vld [vmem:[%s19889_s3 + $0x4c8] sm:$0xff] }
 0x144   : > { %12065 = vmatpush1.bf16.msra.mxu1 %v12064_v11  ;;  %v9541_v11 = vld [vmem:[%s19889_s3 + $0x7d0] sm:$0xff] }
 0x145   : > { %11953 = vmatpush1.bf16.msra.mxu0 %v11952_v12  ;;  %12067 = vmatprep.subr.bf16.mxu1 %v12066_v13  ;;  %v994_v12 = vld [vmem:[%s19889_s3 + $0x440] sm:$0xff]  ;;  %v11970_v13 = vpack.c.bf16 %v997_v5, %v995_v4  ;;  %v12084_v21 = vpack.c.bf16 %v9541_v11, %v9539_v10  ;;  %v9557_v4 = vld [vmem:[%s19889_s3 + $0x850] sm:$0xff]  ;;  %v9562_v10 = vld [vmem:[%s19889_s3 + $0x878] sm:$0xff] }
 0x146   : > { %11955 = vmatprep.subr.bf16.mxu0 %v11954_v19  ;;  %v999_v19 = vld [vmem:[%s19889_s3 + $0x468] sm:$0xff]  ;;  %v11972_v22 = vpack.c.bf16 %v996_v14, %v994_v12  ;;  %v1010_v5 = vld [vmem:[%s19889_s3 + $0x4c0] sm:$0xff]  ;;  %v1017_v12 = vld [vmem:[%s19889_s3 + $0x4f8] sm:$0xff] }
 0x147   : > { %v1015_v11 = vld [vmem:[%s19889_s3 + $0x4e8] sm:$0xff] }
 0x148   : > { %12069 = vmatpush1.bf16.msra.mxu1 %v12068_v25  ;;  %v9545_v25 = vld [vmem:[%s19889_s3 + $0x7f0] sm:$0xff] }
 0x149   : > { %11957 = vmatpush1.bf16.msra.mxu0 %v11956_v27  ;;  %12071 = vmatprep.subr.bf16.mxu1 %v12070_v28  ;;  %v998_v27 = vld [vmem:[%s19889_s3 + $0x460] sm:$0xff]  ;;  %v11974_v28 = vpack.c.bf16 %v1001_v20, %v999_v19  ;;  %v12088_v36 = vpack.c.bf16 %v9545_v25, %v9543_v24  ;;  %v9561_v19 = vld [vmem:[%s19889_s3 + $0x870] sm:$0xff]  ;;  %v9566_v24 = vld [vmem:[%s19889_s3 + $0x898] sm:$0xff] }
 0x14a   : > { %11959 = vmatprep.subr.bf16.mxu0 %v11958_v32  ;;  %v1003_v32 = vld [vmem:[%s19889_s3 + $0x488] sm:$0xff]  ;;  %v11976_v37 = vpack.c.bf16 %v1000_v29, %v998_v27  ;;  %v1014_v20 = vld [vmem:[%s19889_s3 + $0x4e0] sm:$0xff]  ;;  %v1021_v27 = vld [vmem:[%s19889_s3 + $0x518] sm:$0xff] }
 0x14b   : > { %v1019_v25 = vld [vmem:[%s19889_s3 + $0x508] sm:$0xff] }
 0x14c   : > { %12073 = vmatpush1.bf16.msra.mxu1 %v12072_v40  ;;  %v9549_v40 = vld [vmem:[%s19889_s3 + $0x810] sm:$0xff] }
 0x14d   : > { %11961 = vmatpush1.bf16.msra.mxu0 %v11960_v41  ;;  %12075 = vmatprep.subr.bf16.mxu1 %v12074_v42  ;;  %v1002_v41 = vld [vmem:[%s19889_s3 + $0x480] sm:$0xff]  ;;  %v11978_v42 = vpack.c.bf16 %v1005_v34, %v1003_v32  ;;  %v12092_v50 = vpack.c.bf16 %v9549_v40, %v9547_v39  ;;  %v9565_v32 = vld [vmem:[%s19889_s3 + $0x890] sm:$0xff]  ;;  %v9570_v39 = vld [vmem:[%s19889_s3 + $0x8b8] sm:$0xff] }
 0x14e   : > { %11963 = vmatprep.subr.bf16.mxu0 %v11962_v48  ;;  %v1007_v48 = vld [vmem:[%s19889_s3 + $0x4a8] sm:$0xff]  ;;  %v11980_v52 = vpack.c.bf16 %v1004_v43, %v1002_v41  ;;  %v1018_v34 = vld [vmem:[%s19889_s3 + $0x500] sm:$0xff]  ;;  %v1025_v41 = vld [vmem:[%s19889_s3 + $0x538] sm:$0xff] }
 0x14f   : > { %v1023_v40 = vld [vmem:[%s19889_s3 + $0x528] sm:$0xff] }
 0x150   : > { %12077 = vmatpush1.bf16.msra.mxu1 %v12076_v57  ;;  %1194 = vmatmul.mubr.f32.vlgmr.msra.gmra.mrb[4].mxu0 %v14803_v61  ;;  %v11982_v57 = vpack.c.bf16 %v1009_v49, %v1007_v48  ;;  %v9569_v48 = vld [vmem:[%s19889_s3 + $0x8b0] sm:$0xff]  ;;  %v1022_v49 = vld [vmem:[%s19889_s3 + $0x520] sm:$0xff] }
 0x151   : > { %11965 = vmatpush1.bf16.msra.mxu0 %v11964_v58  ;;  %1264 = vmatprep.mubr.f32.mxu0 %v14814_v3  ;;  %v1008_v58 = vld [vmem:[%s19889_s3 + $0x4b0] sm:$0xff] }
 0x152   : > { %12079 = vmatprep.subr.bf16.mxu1 %v12078_v62  ;;  %11967 = vmatprep.subr.bf16.mxu0 %v11966_v55  ;;  %v1013_v62 = vld [vmem:[%s19889_s3 + $0x4d8] sm:$0xff]  ;;  %v12096_v55 = vpack.c.bf16 %v9553_v54, %v9551_v35  ;;  %v11984_v63 = vpack.c.bf16 %v1008_v58, %v1006_v56  ;;  %v1027_v54 = vld [vmem:[%s19889_s3 + $0x548] sm:$0xff] }
 0x153   : > { %v9574_v35 = vld [vmem:[%s19889_s3 + $0x8d8] sm:$0xff] }
 0x154   : > { %12081 = vmatpush1.bf16.msra.mxu1 %v12080_v6  ;;  %v11986_v6 = vpack.c.bf16 %v1013_v62, %v1011_v60  ;;  %v1029_v56 = vld [vmem:[%s19889_s3 + $0x558] sm:$0xff]  ;;  %v9573_v60 = vld [vmem:[%s19889_s3 + $0x8d0] sm:$0xff]  ;;  %v1026_v62 = vld [vmem:[%s19889_s3 + $0x540] sm:$0xff] }
 0x155   : > { %11969 = vmatpush1.bf16.msra.mxu0 %v11968_v7  ;;  %12083 = vmatprep.subr.bf16.mxu1 %v12082_v8  ;;  %v1012_v7 = vld [vmem:[%s19889_s3 + $0x4d0] sm:$0xff]  ;;  %v9560_v8 = vld [vmem:[%s19889_s3 + $0x868] sm:$0xff] }
 0x156   : > { %11971 = vmatprep.subr.bf16.mxu0 %v11970_v13  ;;  %v12100_v13 = vpack.c.bf16 %v9557_v4, %v9555_v2  ;;  %v11988_v14 = vpack.c.bf16 %v1012_v7, %v1010_v5  ;;  %v12102_v16 = vpack.c.bf16 %v9562_v10, %v9560_v8  ;;  %v9578_v2 = vld [vmem:[%s19889_s3 + $0x8f8] sm:$0xff]  ;;  %v1031_v4 = vld [vmem:[%s19889_s3 + $0x568] sm:$0xff]  ;;  %v9575_v10 = vld [vmem:[%s19889_s3 + $0x8e0] sm:$0xff] }
 0x157   : > { %v1033_v5 = vld [vmem:[%s19889_s3 + $0x578] sm:$0xff] }
 0x158   : > { %12085 = vmatpush1.bf16.msra.mxu1 %v12084_v21  ;;  %v11990_v21 = vpack.c.bf16 %v1017_v12, %v1015_v11  ;;  %v9577_v11 = vld [vmem:[%s19889_s3 + $0x8f0] sm:$0xff]  ;;  %v1030_v12 = vld [vmem:[%s19889_s3 + $0x560] sm:$0xff] }
 0x159   : > { %11973 = vmatpush1.bf16.msra.mxu0 %v11972_v22  ;;  %12087 = vmatprep.subr.bf16.mxu1 %v12086_v23  ;;  %v1016_v22 = vld [vmem:[%s19889_s3 + $0x4f0] sm:$0xff]  ;;  %v9564_v23 = vld [vmem:[%s19889_s3 + $0x888] sm:$0xff] }
 0x15a   : > { %11975 = vmatprep.subr.bf16.mxu0 %v11974_v28  ;;  %v12104_v28 = vpack.c.bf16 %v9561_v19, %v9559_v17  ;;  %v11992_v29 = vpack.c.bf16 %v1016_v22, %v1014_v20  ;;  %v12106_v30 = vpack.c.bf16 %v9566_v24, %v9564_v23  ;;  %v9582_v17 = vld [vmem:[%s19889_s3 + $0x918] sm:$0xff]  ;;  %v1035_v19 = vld [vmem:[%s19889_s3 + $0x588] sm:$0xff]  ;;  %v9579_v24 = vld [vmem:[%s19889_s3 + $0x900] sm:$0xff] }
 0x15b   : > { %v1037_v20 = vld [vmem:[%s19889_s3 + $0x598] sm:$0xff] }
 0x15c   : > { %12089 = vmatpush1.bf16.msra.mxu1 %v12088_v36  ;;  %v11994_v36 = vpack.c.bf16 %v1021_v27, %v1019_v25  ;;  %v9581_v25 = vld [vmem:[%s19889_s3 + $0x910] sm:$0xff]  ;;  %v1034_v27 = vld [vmem:[%s19889_s3 + $0x580] sm:$0xff] }
 0x15d   : > { %11977 = vmatpush1.bf16.msra.mxu0 %v11976_v37  ;;  %12091 = vmatprep.subr.bf16.mxu1 %v12090_v38  ;;  %v1020_v37 = vld [vmem:[%s19889_s3 + $0x510] sm:$0xff]  ;;  %v9568_v38 = vld [vmem:[%s19889_s3 + $0x8a8] sm:$0xff] }
 0x15e   : > { %11979 = vmatprep.subr.bf16.mxu0 %v11978_v42  ;;  %v12108_v42 = vpack.c.bf16 %v9565_v32, %v9563_v31  ;;  %v11996_v43 = vpack.c.bf16 %v1020_v37, %v1018_v34  ;;  %v12110_v44 = vpack.c.bf16 %v9570_v39, %v9568_v38  ;;  %v9586_v31 = vld [vmem:[%s19889_s3 + $0x938] sm:$0xff]  ;;  %v1039_v32 = vld [vmem:[%s19889_s3 + $0x5a8] sm:$0xff]  ;;  %v9583_v39 = vld [vmem:[%s19889_s3 + $0x920] sm:$0xff] }
 0x15f   : > { %v1041_v34 = vld [vmem:[%s19889_s3 + $0x5b8] sm:$0xff] }
 0x160   : > { %12093 = vmatpush1.bf16.msra.mxu1 %v12092_v50  ;;  %v11998_v50 = vpack.c.bf16 %v1025_v41, %v1023_v40  ;;  %v9585_v40 = vld [vmem:[%s19889_s3 + $0x930] sm:$0xff]  ;;  %v1038_v41 = vld [vmem:[%s19889_s3 + $0x5a0] sm:$0xff] }
 0x161   : > { %11981 = vmatpush1.bf16.msra.mxu0 %v11980_v52  ;;  %12095 = vmatprep.subr.bf16.mxu1 %v12094_v53  ;;  %v1024_v52 = vld [vmem:[%s19889_s3 + $0x530] sm:$0xff]  ;;  %v9572_v53 = vld [vmem:[%s19889_s3 + $0x8c8] sm:$0xff] }
 0x162   : > { %11983 = vmatprep.subr.bf16.mxu0 %v11982_v57  ;;  %v12112_v57 = vpack.c.bf16 %v9569_v48, %v9567_v47  ;;  %v12000_v58 = vpack.c.bf16 %v1024_v52, %v1022_v49  ;;  %v12114_v15 = vpack.c.bf16 %v9574_v35, %v9572_v53  ;;  %v9590_v47 = vld [vmem:[%s19889_s3 + $0x958] sm:$0xff]  ;;  %v1043_v48 = vld [vmem:[%s19889_s3 + $0x5c8] sm:$0xff]  ;;  %v9587_v35 = vld [vmem:[%s19889_s3 + $0x940] sm:$0xff] }
 0x163   : > { %1604 = vmatmul.mubr.f32.vlgmr.msra.gmra.mrb[6].mxu1 %v14435_v45  ;;  %v1045_v49 = vld [vmem:[%s19889_s3 + $0x5d8] sm:$0xff] }
 0x164   : > { %12097 = vmatpush1.bf16.msra.mxu1 %v12096_v55  ;;  %1674 = vmatprep.mubr.f32.mxu1 %v14445_v51  ;;  %v12002_v55 = vpack.c.bf16 %v1029_v56, %v1027_v54  ;;  %v9589_v54 = vld [vmem:[%s19889_s3 + $0x950] sm:$0xff]  ;;  %v1042_v56 = vld [vmem:[%s19889_s3 + $0x5c0] sm:$0xff] }
 0x165   : > { %11985 = vmatpush1.bf16.msra.mxu0 %v11984_v63  ;;  %12099 = vmatprep.subr.bf16.mxu1 %v12098_v1  ;;  %v1028_v63 = vld [vmem:[%s19889_s3 + $0x550] sm:$0xff]  ;;  %v9576_v1 = vld [vmem:[%s19889_s3 + $0x8e8] sm:$0xff] }
 0x166   : > { %11987 = vmatprep.subr.bf16.mxu0 %v11986_v6  ;;  %v12116_v6 = vpack.c.bf16 %v9573_v60, %v9571_v59  ;;  %v12004_v7 = vpack.c.bf16 %v1028_v63, %v1026_v62  ;;  %v12118_v8 = vpack.c.bf16 %v9578_v2, %v9576_v1  ;;  %v9594_v59 = vld [vmem:[%s19889_s3 + $0x978] sm:$0xff]  ;;  %v1047_v60 = vld [vmem:[%s19889_s3 + $0x5e8] sm:$0xff]  ;;  %v9591_v2 = vld [vmem:[%s19889_s3 + $0x960] sm:$0xff] }
 0x167   : > { %v1049_v62 = vld [vmem:[%s19889_s3 + $0x5f8] sm:$0xff] }
 0x168   : > { %12101 = vmatpush1.bf16.msra.mxu1 %v12100_v13  ;;  %v12006_v13 = vpack.c.bf16 %v1033_v5, %v1031_v4  ;;  %v9593_v4 = vld [vmem:[%s19889_s3 + $0x970] sm:$0xff]  ;;  %v1046_v5 = vld [vmem:[%s19889_s3 + $0x5e0] sm:$0xff] }
 0x169   : > { %11989 = vmatpush1.bf16.msra.mxu0 %v11988_v14  ;;  %12103 = vmatprep.subr.bf16.mxu1 %v12102_v16  ;;  %v1032_v14 = vld [vmem:[%s19889_s3 + $0x570] sm:$0xff]  ;;  %v9580_v16 = vld [vmem:[%s19889_s3 + $0x908] sm:$0xff] }
 0x16a   : > { %11991 = vmatprep.subr.bf16.mxu0 %v11990_v21  ;;  %v12120_v21 = vpack.c.bf16 %v9577_v11, %v9575_v10  ;;  %v12008_v22 = vpack.c.bf16 %v1032_v14, %v1030_v12  ;;  %v12122_v23 = vpack.c.bf16 %v9582_v17, %v9580_v16  ;;  %v9598_v10 = vld [vmem:[%s19889_s3 + $0x998] sm:$0xff]  ;;  %v9685_v11 = vld [vmem:[%s19889_s3 + $0xc48] sm:$0xff]  ;;  %v9595_v17 = vld [vmem:[%s19889_s3 + $0x980] sm:$0xff] }
 0x16b   : > { %v9687_v12 = vld [vmem:[%s19889_s3 + $0xc58] sm:$0xff] }
 0x16c   : > { %12105 = vmatpush1.bf16.msra.mxu1 %v12104_v28  ;;  %v12010_v28 = vpack.c.bf16 %v1037_v20, %v1035_v19  ;;  %v9597_v19 = vld [vmem:[%s19889_s3 + $0x990] sm:$0xff]  ;;  %v777_v20 = vadd.f32 %v14492_v9, %v14416_v33  ;;  %v9689_v33 = vld [vmem:[%s19889_s3 + $0xc68] sm:$0xff]  ;;  %v9691_v9 = vld [vmem:[%s19889_s3 + $0xc78] sm:$0xff] }
 0x16d   : > { %11993 = vmatpush1.bf16.msra.mxu0 %v11992_v29  ;;  %12107 = vmatprep.subr.bf16.mxu1 %v12106_v30  ;;  %v1036_v29 = vld [vmem:[%s19889_s3 + $0x590] sm:$0xff]  ;;  %v9584_v30 = vld [vmem:[%s19889_s3 + $0x928] sm:$0xff] }
 0x16e   : > { %11995 = vmatprep.subr.bf16.mxu0 %v11994_v36  ;;  %v12124_v36 = vpack.c.bf16 %v9581_v25, %v9579_v24  ;;  %v12012_v37 = vpack.c.bf16 %v1036_v29, %v1034_v27  ;;  %v12126_v38 = vpack.c.bf16 %v9586_v31, %v9584_v30  ;;  %v9600_v24 = vld [vmem:[%s19889_s3 + $0x9a8] sm:$0xff]  ;;  %v9602_v25 = vld [vmem:[%s19889_s3 + $0x9b8] sm:$0xff]  ;;  %v12140_v27 = vpack.c.bf16 %v9597_v19, %v9595_v17  ;;  %v9599_v29 = vld [vmem:[%s19889_s3 + $0x9a0] sm:$0xff] }
 0x16f   : > { %v9601_v30 = vld [vmem:[%s19889_s3 + $0x9b0] sm:$0xff]  ;;  %v9688_v31 = vld [vmem:[%s19889_s3 + $0xc60] sm:$0xff]  ;;  %v9618_v17 = vld [vmem:[%s19889_s3 + $0xa38] sm:$0xff] }
 0x170   : > { %12109 = vmatpush1.bf16.msra.mxu1 %v12108_v42  ;;  %v12014_v42 = vpack.c.bf16 %v1041_v34, %v1039_v32  ;;  %v15197_v32 = vmax.f32 %v777_v20, 0.0  ;;  %v12142_v34 = vpack.c.bf16 %v9602_v25, %v9600_v24  ;;  %v9705_v19 = vld [vmem:[%s19889_s3 + $0xce8] sm:$0xff]  ;;  %v9707_v20 = vld [vmem:[%s19889_s3 + $0xcf8] sm:$0xff]  ;;  %v9615_v24 = vld [vmem:[%s19889_s3 + $0xa20] sm:$0xff] }
 0x171   : > { %11997 = vmatpush1.bf16.msra.mxu0 %v11996_v43  ;;  %12111 = vmatprep.subr.bf16.mxu1 %v12110_v44  ;;  %v1040_v43 = vld [vmem:[%s19889_s3 + $0x5b0] sm:$0xff]  ;;  %v9588_v44 = vld [vmem:[%s19889_s3 + $0x948] sm:$0xff] }
 0x172   : > { %11999 = vmatprep.subr.bf16.mxu0 %v11998_v50  ;;  %v12128_v50 = vpack.c.bf16 %v9585_v40, %v9583_v39  ;;  %v12016_v52 = vpack.c.bf16 %v1040_v43, %v1038_v41  ;;  %v12130_v53 = vpack.c.bf16 %v9590_v47, %v9588_v44  ;;  %v9606_v39 = vld [vmem:[%s19889_s3 + $0x9d8] sm:$0xff]  ;;  %v9693_v40 = vld [vmem:[%s19889_s3 + $0xc88] sm:$0xff]  ;;  %v9603_v47 = vld [vmem:[%s19889_s3 + $0x9c0] sm:$0xff] }
 0x173   : > { %v9695_v41 = vld [vmem:[%s19889_s3 + $0xc98] sm:$0xff]  ;;  %v9617_v25 = vld [vmem:[%s19889_s3 + $0xa30] sm:$0xff] }
 0x174   : > { %12113 = vmatpush1.bf16.msra.mxu1 %v12112_v57  ;;  %v12018_v57 = vpack.c.bf16 %v1045_v49, %v1043_v48  ;;  %v9605_v48 = vld [vmem:[%s19889_s3 + $0x9d0] sm:$0xff]  ;;  %v9692_v49 = vld [vmem:[%s19889_s3 + $0xc80] sm:$0xff] }
 0x175   : > { %12001 = vmatpush1.bf16.msra.mxu0 %v12000_v58  ;;  %12115 = vmatprep.subr.bf16.mxu1 %v12114_v15  ;;  %v1044_v58 = vld [vmem:[%s19889_s3 + $0x5d0] sm:$0xff]  ;;  %v9592_v15 = vld [vmem:[%s19889_s3 + $0x968] sm:$0xff] }
 0x176   : > { %12003 = vmatprep.subr.bf16.mxu0 %v12002_v55  ;;  %v12132_v55 = vpack.c.bf16 %v9589_v54, %v9587_v35  ;;  %v12020_v63 = vpack.c.bf16 %v1044_v58, %v1042_v56  ;;  %v12134_v1 = vpack.c.bf16 %v9594_v59, %v9592_v15  ;;  %v9610_v35 = vld [vmem:[%s19889_s3 + $0x9f8] sm:$0xff]  ;;  %v9697_v54 = vld [vmem:[%s19889_s3 + $0xca8] sm:$0xff]  ;;  %v9607_v59 = vld [vmem:[%s19889_s3 + $0x9e0] sm:$0xff] }
 0x177   : > { %v9699_v56 = vld [vmem:[%s19889_s3 + $0xcb8] sm:$0xff] }
 0x178   : > { %12117 = vmatpush1.bf16.msra.mxu1 %v12116_v6  ;;  %v12022_v6 = vpack.c.bf16 %v1049_v62, %v1047_v60  ;;  %v9609_v60 = vld [vmem:[%s19889_s3 + $0x9f0] sm:$0xff]  ;;  %v9696_v62 = vld [vmem:[%s19889_s3 + $0xca0] sm:$0xff] }
 0x179   : > { %12005 = vmatpush1.bf16.msra.mxu0 %v12004_v7  ;;  %12119 = vmatprep.subr.bf16.mxu1 %v12118_v8  ;;  %v1048_v7 = vld [vmem:[%s19889_s3 + $0x5f0] sm:$0xff]  ;;  %v9596_v8 = vld [vmem:[%s19889_s3 + $0x988] sm:$0xff] }
 0x17a   : > { %12007 = vmatprep.subr.bf16.mxu0 %v12006_v13  ;;  %v12136_v13 = vpack.c.bf16 %v9593_v4, %v9591_v2  ;;  %v12024_v14 = vpack.c.bf16 %v1048_v7, %v1046_v5  ;;  %v12138_v16 = vpack.c.bf16 %v9598_v10, %v9596_v8  ;;  %v9614_v2 = vld [vmem:[%s19889_s3 + $0xa18] sm:$0xff]  ;;  %v9701_v4 = vld [vmem:[%s19889_s3 + $0xcc8] sm:$0xff]  ;;  %v9611_v10 = vld [vmem:[%s19889_s3 + $0xa00] sm:$0xff] }
 0x17b   : > { %v9703_v5 = vld [vmem:[%s19889_s3 + $0xcd8] sm:$0xff] }
 0x17c   : > { %12121 = vmatpush1.bf16.msra.mxu1 %v12120_v21  ;;  %v12226_v21 = vpack.c.bf16 %v9687_v12, %v9685_v11  ;;  %v9613_v11 = vld [vmem:[%s19889_s3 + $0xa10] sm:$0xff]  ;;  %v9700_v12 = vld [vmem:[%s19889_s3 + $0xcc0] sm:$0xff] }
 0x17d   : > { %12009 = vmatpush1.bf16.msra.mxu0 %v12008_v22  ;;  %12123 = vmatprep.subr.bf16.mxu1 %v12122_v23  ;;  %v9684_v22 = vld [vmem:[%s19889_s3 + $0xc40] sm:$0xff]  ;;  %v9686_v23 = vld [vmem:[%s19889_s3 + $0xc50] sm:$0xff] }
 0x17e   : > { %12011 = vmatprep.subr.bf16.mxu0 %v12010_v28  ;;  %v12228_v28 = vpack.c.bf16 %v9686_v23, %v9684_v22 }
 0x180   : > { %12125 = vmatpush1.bf16.msra.mxu1 %v12124_v36  ;;  %v12230_v36 = vpack.c.bf16 %v9691_v9, %v9689_v33  ;;  %v9704_v33 = vld [vmem:[%s19889_s3 + $0xce0] sm:$0xff]  ;;  %v12246_v9 = vpack.c.bf16 %v9707_v20, %v9705_v19 }
 0x181   : > { %12013 = vmatpush1.bf16.msra.mxu0 %v12012_v37  ;;  %12127 = vmatprep.subr.bf16.mxu1 %v12126_v38  ;;  %v9690_v37 = vld [vmem:[%s19889_s3 + $0xc70] sm:$0xff]  ;;  %v9604_v38 = vld [vmem:[%s19889_s3 + $0x9c8] sm:$0xff]  ;;  %v9720_v19 = vld [vmem:[%s19889_s3 + $0xd60] sm:$0xff] }
 0x182   : > { %12015 = vmatprep.subr.bf16.mxu0 %v12014_v42  ;;  %v12144_v42 = vpack.c.bf16 %v9601_v30, %v9599_v29  ;;  %v12232_v43 = vpack.c.bf16 %v9690_v37, %v9688_v31  ;;  %v12146_v44 = vpack.c.bf16 %v9606_v39, %v9604_v38  ;;  %v9622_v29 = vld [vmem:[%s19889_s3 + $0xa58] sm:$0xff]  ;;  %v9709_v30 = vld [vmem:[%s19889_s3 + $0xd08] sm:$0xff]  ;;  %v9619_v38 = vld [vmem:[%s19889_s3 + $0xa40] sm:$0xff] }
 0x183   : > { %v9711_v31 = vld [vmem:[%s19889_s3 + $0xd18] sm:$0xff]  ;;  %v9621_v39 = vld [vmem:[%s19889_s3 + $0xa50] sm:$0xff] }
 0x184   : > { %12129 = vmatpush1.bf16.msra.mxu1 %v12128_v50  ;;  %v12234_v50 = vpack.c.bf16 %v9695_v41, %v9693_v40  ;;  %v9708_v40 = vld [vmem:[%s19889_s3 + $0xd00] sm:$0xff]  ;;  %v12250_v41 = vpack.c.bf16 %v9711_v31, %v9709_v30 }
 0x185   : > { %12017 = vmatpush1.bf16.msra.mxu0 %v12016_v52  ;;  %12131 = vmatprep.subr.bf16.mxu1 %v12130_v53  ;;  %v9694_v52 = vld [vmem:[%s19889_s3 + $0xc90] sm:$0xff]  ;;  %v9608_v53 = vld [vmem:[%s19889_s3 + $0x9e8] sm:$0xff]  ;;  %v9724_v30 = vld [vmem:[%s19889_s3 + $0xd80] sm:$0xff] }
 0x186   : > { %12019 = vmatprep.subr.bf16.mxu0 %v12018_v57  ;;  %v12148_v57 = vpack.c.bf16 %v9605_v48, %v9603_v47  ;;  %v12236_v58 = vpack.c.bf16 %v9694_v52, %v9692_v49  ;;  %v12150_v15 = vpack.c.bf16 %v9610_v35, %v9608_v53  ;;  %v9713_v47 = vld [vmem:[%s19889_s3 + $0xd28] sm:$0xff]  ;;  %v9715_v48 = vld [vmem:[%s19889_s3 + $0xd38] sm:$0xff]  ;;  %v12164_v49 = vpack.c.bf16 %v9621_v39, %v9619_v38  ;;  %v9623_v53 = vld [vmem:[%s19889_s3 + $0xa60] sm:$0xff] }
 0x187   : > { %v9625_v35 = vld [vmem:[%s19889_s3 + $0xa70] sm:$0xff]  ;;  %v9729_v38 = vld [vmem:[%s19889_s3 + $0xda8] sm:$0xff]  ;;  %v9731_v39 = vld [vmem:[%s19889_s3 + $0xdb8] sm:$0xff] }
 0x188   : > { %12133 = vmatpush1.bf16.msra.mxu1 %v12132_v55  ;;  %v12238_v55 = vpack.c.bf16 %v9699_v56, %v9697_v54  ;;  %v9712_v54 = vld [vmem:[%s19889_s3 + $0xd20] sm:$0xff]  ;;  %v12254_v56 = vpack.c.bf16 %v9715_v48, %v9713_v47  ;;  %v12270_v48 = vpack.c.bf16 %v9731_v39, %v9729_v38 }
 0x189   : > { %12021 = vmatpush1.bf16.msra.mxu0 %v12020_v63  ;;  %12135 = vmatprep.subr.bf16.mxu1 %v12134_v1  ;;  %v9698_v63 = vld [vmem:[%s19889_s3 + $0xcb0] sm:$0xff]  ;;  %v9612_v1 = vld [vmem:[%s19889_s3 + $0xa08] sm:$0xff]  ;;  %v9728_v47 = vld [vmem:[%s19889_s3 + $0xda0] sm:$0xff] }
 0x18a   : > { %12023 = vmatprep.subr.bf16.mxu0 %v12022_v6  ;;  %v12152_v6 = vpack.c.bf16 %v9609_v60, %v9607_v59  ;;  %v12240_v7 = vpack.c.bf16 %v9698_v63, %v9696_v62  ;;  %v12154_v8 = vpack.c.bf16 %v9614_v2, %v9612_v1  ;;  %v9717_v59 = vld [vmem:[%s19889_s3 + $0xd48] sm:$0xff]  ;;  %v9719_v60 = vld [vmem:[%s19889_s3 + $0xd58] sm:$0xff]  ;;  %v12168_v62 = vpack.c.bf16 %v9625_v35, %v9623_v53  ;;  %v9627_v1 = vld [vmem:[%s19889_s3 + $0xa80] sm:$0xff] }
 0x18b   : > { %v9629_v2 = vld [vmem:[%s19889_s3 + $0xa90] sm:$0xff]  ;;  %v9733_v53 = vld [vmem:[%s19889_s3 + $0xdc8] sm:$0xff]  ;;  %v9735_v35 = vld [vmem:[%s19889_s3 + $0xdd8] sm:$0xff] }
 0x18c   : > { %12137 = vmatpush1.bf16.msra.mxu1 %v12136_v13  ;;  %v12242_v13 = vpack.c.bf16 %v9703_v5, %v9701_v4  ;;  %v9716_v4 = vld [vmem:[%s19889_s3 + $0xd40] sm:$0xff]  ;;  %v12258_v5 = vpack.c.bf16 %v9719_v60, %v9717_v59  ;;  %v12274_v60 = vpack.c.bf16 %v9735_v35, %v9733_v53 }
 0x18d   : > { %12025 = vmatpush1.bf16.msra.mxu0 %v12024_v14  ;;  %12139 = vmatprep.subr.bf16.mxu1 %v12138_v16  ;;  %v9702_v14 = vld [vmem:[%s19889_s3 + $0xcd0] sm:$0xff]  ;;  %v9616_v16 = vld [vmem:[%s19889_s3 + $0xa28] sm:$0xff]  ;;  %v9732_v59 = vld [vmem:[%s19889_s3 + $0xdc0] sm:$0xff] }
 0x18e   : > { %12227 = vmatprep.subr.bf16.mxu0 %v12226_v21  ;;  %v12156_v21 = vpack.c.bf16 %v9613_v11, %v9611_v10  ;;  %v12244_v22 = vpack.c.bf16 %v9702_v14, %v9700_v12  ;;  %v12158_v23 = vpack.c.bf16 %v9618_v17, %v9616_v16  ;;  %v9721_v10 = vld [vmem:[%s19889_s3 + $0xd68] sm:$0xff]  ;;  %v9723_v11 = vld [vmem:[%s19889_s3 + $0xd78] sm:$0xff]  ;;  %v12172_v12 = vpack.c.bf16 %v9629_v2, %v9627_v1  ;;  %v9631_v16 = vld [vmem:[%s19889_s3 + $0xaa0] sm:$0xff] }
 0x18f   : > { %v9633_v17 = vld [vmem:[%s19889_s3 + $0xab0] sm:$0xff]  ;;  %v12262_v20 = vpack.c.bf16 %v9723_v11, %v9721_v10  ;;  %v9737_v1 = vld [vmem:[%s19889_s3 + $0xde8] sm:$0xff]  ;;  %v9739_v2 = vld [vmem:[%s19889_s3 + $0xdf8] sm:$0xff] }
 0x190   : > { %12141 = vmatpush1.bf16.msra.mxu1 %v12140_v27  ;;  %1265 = vmatmul.mubr.f32.vlgmr.msra.gmra.mrb[4].mxu0 %v15197_v32  ;;  %v9706_v27 = vld [vmem:[%s19889_s3 + $0xcf0] sm:$0xff]  ;;  %v9736_v10 = vld [vmem:[%s19889_s3 + $0xde0] sm:$0xff]  ;;  %v12278_v11 = vpack.c.bf16 %v9739_v2, %v9737_v1 }
 0x191   : > { %12229 = vmatpush1.bf16.msra.mxu0 %v12228_v28  ;;  %2086 = vmatprep.mubr.f32.mxu0 %v14437_v46  ;;  %v9620_v28 = vld [vmem:[%s19889_s3 + $0xa48] sm:$0xff]  ;;  %v9744_v38 = vld [vmem:[%s19889_s3 + $0xe20] sm:$0xff] }
 0x192   : > { %12143 = vmatprep.subr.bf16.mxu1 %v12142_v34  ;;  %12231 = vmatprep.subr.bf16.mxu0 %v12230_v36  ;;  %v12160_v34 = vpack.c.bf16 %v9617_v25, %v9615_v24  ;;  %v12248_v36 = vpack.c.bf16 %v9706_v27, %v9704_v33  ;;  %v12162_v37 = vpack.c.bf16 %v9622_v29, %v9620_v28  ;;  %v9725_v24 = vld [vmem:[%s19889_s3 + $0xd88] sm:$0xff]  ;;  %v9727_v25 = vld [vmem:[%s19889_s3 + $0xd98] sm:$0xff]  ;;  %v9635_v28 = vld [vmem:[%s19889_s3 + $0xac0] sm:$0xff] }
 0x193   : > { %v12176_v33 = vpack.c.bf16 %v9633_v17, %v9631_v16  ;;  %v9637_v29 = vld [vmem:[%s19889_s3 + $0xad0] sm:$0xff]  ;;  %v12266_v31 = vpack.c.bf16 %v9727_v25, %v9725_v24  ;;  %v9741_v16 = vld [vmem:[%s19889_s3 + $0xe08] sm:$0xff]  ;;  %v9743_v17 = vld [vmem:[%s19889_s3 + $0xe18] sm:$0xff] }
 0x194   : > { %12145 = vmatpush1.bf16.msra.mxu1 %v12144_v42  ;;  %v9710_v42 = vld [vmem:[%s19889_s3 + $0xd10] sm:$0xff]  ;;  %v9740_v24 = vld [vmem:[%s19889_s3 + $0xe00] sm:$0xff]  ;;  %v12282_v25 = vpack.c.bf16 %v9743_v17, %v9741_v16 }
 0x195   : > { %12233 = vmatpush1.bf16.msra.mxu0 %v12232_v43  ;;  %12147 = vmatprep.subr.bf16.mxu1 %v12146_v44  ;;  %v9624_v43 = vld [vmem:[%s19889_s3 + $0xa68] sm:$0xff]  ;;  %v9626_v44 = vld [vmem:[%s19889_s3 + $0xa78] sm:$0xff]  ;;  %v9748_v35 = vld [vmem:[%s19889_s3 + $0xe40] sm:$0xff] }
 0x196   : > { %12235 = vmatprep.subr.bf16.mxu0 %v12234_v50  ;;  %v12252_v50 = vpack.c.bf16 %v9710_v42, %v9708_v40  ;;  %v12166_v52 = vpack.c.bf16 %v9626_v44, %v9624_v43  ;;  %v12180_v40 = vpack.c.bf16 %v9637_v29, %v9635_v28  ;;  %v9639_v43 = vld [vmem:[%s19889_s3 + $0xae0] sm:$0xff]  ;;  %v9641_v44 = vld [vmem:[%s19889_s3 + $0xaf0] sm:$0xff]  ;;  %v9745_v28 = vld [vmem:[%s19889_s3 + $0xe28] sm:$0xff] }
 0x197   : > { %v9747_v29 = vld [vmem:[%s19889_s3 + $0xe38] sm:$0xff]  ;;  %v9756_v16 = vld [vmem:[%s19889_s3 + $0xe80] sm:$0xff] }
 0x198   : > { %12149 = vmatpush1.bf16.msra.mxu1 %v12148_v57  ;;  %v9714_v57 = vld [vmem:[%s19889_s3 + $0xd30] sm:$0xff]  ;;  %v12286_v39 = vpack.c.bf16 %v9747_v29, %v9745_v28  ;;  %v9760_v28 = vld [vmem:[%s19889_s3 + $0xea0] sm:$0xff] }
 0x199   : > { %12237 = vmatpush1.bf16.msra.mxu0 %v12236_v58  ;;  %12151 = vmatprep.subr.bf16.mxu1 %v12150_v15  ;;  %v9628_v58 = vld [vmem:[%s19889_s3 + $0xa88] sm:$0xff]  ;;  %v9630_v15 = vld [vmem:[%s19889_s3 + $0xa98] sm:$0xff] }
 0x19a   : > { %12239 = vmatprep.subr.bf16.mxu0 %v12238_v55  ;;  %v12256_v55 = vpack.c.bf16 %v9714_v57, %v9712_v54  ;;  %v12170_v63 = vpack.c.bf16 %v9630_v15, %v9628_v58  ;;  %v12184_v54 = vpack.c.bf16 %v9641_v44, %v9639_v43  ;;  %v9643_v58 = vld [vmem:[%s19889_s3 + $0xb00] sm:$0xff]  ;;  %v9645_v15 = vld [vmem:[%s19889_s3 + $0xb10] sm:$0xff]  ;;  %v9749_v43 = vld [vmem:[%s19889_s3 + $0xe48] sm:$0xff] }
 0x19b   : > { %v9751_v44 = vld [vmem:[%s19889_s3 + $0xe58] sm:$0xff] }
 0x19c   : > { %12153 = vmatpush1.bf16.msra.mxu1 %v12152_v6  ;;  %v9718_v6 = vld [vmem:[%s19889_s3 + $0xd50] sm:$0xff]  ;;  %v12290_v53 = vpack.c.bf16 %v9751_v44, %v9749_v43  ;;  %v9764_v43 = vld [vmem:[%s19889_s3 + $0xec0] sm:$0xff] }
 0x19d   : > { %12241 = vmatpush1.bf16.msra.mxu0 %v12240_v7  ;;  %12155 = vmatprep.subr.bf16.mxu1 %v12154_v8  ;;  %v9632_v7 = vld [vmem:[%s19889_s3 + $0xaa8] sm:$0xff]  ;;  %v9634_v8 = vld [vmem:[%s19889_s3 + $0xab8] sm:$0xff] }
 0x19e   : > { %12243 = vmatprep.subr.bf16.mxu0 %v12242_v13  ;;  %v12260_v13 = vpack.c.bf16 %v9718_v6, %v9716_v4  ;;  %v12174_v14 = vpack.c.bf16 %v9634_v8, %v9632_v7  ;;  %v12188_v4 = vpack.c.bf16 %v9645_v15, %v9643_v58  ;;  %v9647_v7 = vld [vmem:[%s19889_s3 + $0xb20] sm:$0xff]  ;;  %v9649_v8 = vld [vmem:[%s19889_s3 + $0xb30] sm:$0xff]  ;;  %v9753_v58 = vld [vmem:[%s19889_s3 + $0xe68] sm:$0xff] }
 0x19f   : > { %v9755_v15 = vld [vmem:[%s19889_s3 + $0xe78] sm:$0xff] }
 0x1a0   : > { %12157 = vmatpush1.bf16.msra.mxu1 %v12156_v21  ;;  %v9722_v21 = vld [vmem:[%s19889_s3 + $0xd70] sm:$0xff]  ;;  %v12294_v2 = vpack.c.bf16 %v9755_v15, %v9753_v58 }
 0x1a1   : > { %12245 = vmatpush1.bf16.msra.mxu0 %v12244_v22  ;;  %12159 = vmatprep.subr.bf16.mxu1 %v12158_v23  ;;  %v9636_v22 = vld [vmem:[%s19889_s3 + $0xac8] sm:$0xff]  ;;  %v9638_v23 = vld [vmem:[%s19889_s3 + $0xad8] sm:$0xff]  ;;  %v9681_v58 = vld [vmem:[%s19889_s3 + $0xc30] sm:$0xff] }
 0x1a2   : > { %12247 = vmatprep.subr.bf16.mxu0 %v12246_v9  ;;  %v12264_v9 = vpack.c.bf16 %v9722_v21, %v9720_v19  ;;  %v12178_v27 = vpack.c.bf16 %v9638_v23, %v9636_v22  ;;  %v12192_v19 = vpack.c.bf16 %v9649_v8, %v9647_v7  ;;  %v9651_v22 = vld [vmem:[%s19889_s3 + $0xb40] sm:$0xff]  ;;  %v9653_v23 = vld [vmem:[%s19889_s3 + $0xb50] sm:$0xff]  ;;  %v9757_v7 = vld [vmem:[%s19889_s3 + $0xe88] sm:$0xff] }
 0x1a3   : > { %1675 = vmatmul.mubr.f32.vlgmr.msra.gmra.mrb[6].mxu1 %v14803_v61  ;;  %v9759_v8 = vld [vmem:[%s19889_s3 + $0xe98] sm:$0xff] }
 0x1a4   : > { %12161 = vmatpush1.bf16.msra.mxu1 %v12160_v34  ;;  %1745 = vmatprep.mubr.f32.mxu1 %v14814_v3  ;;  %v9726_v34 = vld [vmem:[%s19889_s3 + $0xd90] sm:$0xff]  ;;  %v12298_v17 = vpack.c.bf16 %v9759_v8, %v9757_v7  ;;  %v9777_v8 = vld [vmem:[%s19889_s3 + $0xf28] sm:$0xff] }
 0x1a5   : > { %12249 = vmatpush1.bf16.msra.mxu0 %v12248_v36  ;;  %12163 = vmatprep.subr.bf16.mxu1 %v12162_v37  ;;  %v9640_v36 = vld [vmem:[%s19889_s3 + $0xae8] sm:$0xff]  ;;  %v9642_v37 = vld [vmem:[%s19889_s3 + $0xaf8] sm:$0xff]  ;;  %v9774_v7 = vld [vmem:[%s19889_s3 + $0xf10] sm:$0xff] }
 0x1a6   : > { %12251 = vmatprep.subr.bf16.mxu0 %v12250_v41  ;;  %v12268_v41 = vpack.c.bf16 %v9726_v34, %v9724_v30  ;;  %v12182_v42 = vpack.c.bf16 %v9642_v37, %v9640_v36  ;;  %v12196_v30 = vpack.c.bf16 %v9653_v23, %v9651_v22  ;;  %v9655_v36 = vld [vmem:[%s19889_s3 + $0xb60] sm:$0xff]  ;;  %v9657_v37 = vld [vmem:[%s19889_s3 + $0xb70] sm:$0xff]  ;;  %v9761_v22 = vld [vmem:[%s19889_s3 + $0xea8] sm:$0xff] }
 0x1a7   : > { %v9763_v23 = vld [vmem:[%s19889_s3 + $0xeb8] sm:$0xff] }
 0x1a8   : > { %12165 = vmatpush1.bf16.msra.mxu1 %v12164_v49  ;;  %v9730_v49 = vld [vmem:[%s19889_s3 + $0xdb0] sm:$0xff]  ;;  %v12302_v29 = vpack.c.bf16 %v9763_v23, %v9761_v22  ;;  %v9783_v22 = vld [vmem:[%s19889_s3 + $0xf58] sm:$0xff] }
 0x1a9   : > { %12253 = vmatpush1.bf16.msra.mxu0 %v12252_v50  ;;  %12167 = vmatprep.subr.bf16.mxu1 %v12166_v52  ;;  %v9644_v50 = vld [vmem:[%s19889_s3 + $0xb08] sm:$0xff]  ;;  %v9646_v52 = vld [vmem:[%s19889_s3 + $0xb18] sm:$0xff] }
 0x1aa   : > { %12255 = vmatprep.subr.bf16.mxu0 %v12254_v56  ;;  %v12272_v56 = vpack.c.bf16 %v9730_v49, %v9728_v47  ;;  %v12186_v57 = vpack.c.bf16 %v9646_v52, %v9644_v50  ;;  %v12200_v47 = vpack.c.bf16 %v9657_v37, %v9655_v36  ;;  %v9659_v50 = vld [vmem:[%s19889_s3 + $0xb80] sm:$0xff]  ;;  %v9661_v52 = vld [vmem:[%s19889_s3 + $0xb90] sm:$0xff]  ;;  %v9765_v36 = vld [vmem:[%s19889_s3 + $0xec8] sm:$0xff] }
 0x1ab   : > { %v9767_v37 = vld [vmem:[%s19889_s3 + $0xed8] sm:$0xff] }
 0x1ac   : > { %12169 = vmatpush1.bf16.msra.mxu1 %v12168_v62  ;;  %v9734_v62 = vld [vmem:[%s19889_s3 + $0xdd0] sm:$0xff]  ;;  %v12306_v44 = vpack.c.bf16 %v9767_v37, %v9765_v36  ;;  %v9787_v36 = vld [vmem:[%s19889_s3 + $0xf78] sm:$0xff] }
 0x1ad   : > { %12257 = vmatpush1.bf16.msra.mxu0 %v12256_v55  ;;  %12171 = vmatprep.subr.bf16.mxu1 %v12170_v63  ;;  %v9648_v55 = vld [vmem:[%s19889_s3 + $0xb28] sm:$0xff]  ;;  %v9650_v63 = vld [vmem:[%s19889_s3 + $0xb38] sm:$0xff] }
 0x1ae   : > { %12259 = vmatprep.subr.bf16.mxu0 %v12258_v5  ;;  %v12276_v5 = vpack.c.bf16 %v9734_v62, %v9732_v59  ;;  %v12190_v6 = vpack.c.bf16 %v9650_v63, %v9648_v55  ;;  %v12204_v59 = vpack.c.bf16 %v9661_v52, %v9659_v50  ;;  %v9663_v62 = vld [vmem:[%s19889_s3 + $0xba0] sm:$0xff]  ;;  %v9665_v55 = vld [vmem:[%s19889_s3 + $0xbb0] sm:$0xff]  ;;  %v9769_v50 = vld [vmem:[%s19889_s3 + $0xee8] sm:$0xff] }
 0x1af   : > { %v9752_v63 = vld [vmem:[%s19889_s3 + $0xe60] sm:$0xff]  ;;  %v9771_v52 = vld [vmem:[%s19889_s3 + $0xef8] sm:$0xff] }
 0x1b0   : > { %12173 = vmatpush1.bf16.msra.mxu1 %v12172_v12  ;;  %v9738_v12 = vld [vmem:[%s19889_s3 + $0xdf0] sm:$0xff]  ;;  %v12310_v15 = vpack.c.bf16 %v9771_v52, %v9769_v50 }
 0x1b1   : > { %12261 = vmatpush1.bf16.msra.mxu0 %v12260_v13  ;;  %12175 = vmatprep.subr.bf16.mxu1 %v12174_v14  ;;  %v9652_v13 = vld [vmem:[%s19889_s3 + $0xb48] sm:$0xff]  ;;  %v9654_v14 = vld [vmem:[%s19889_s3 + $0xb58] sm:$0xff] }
 0x1b2   : > { %12263 = vmatprep.subr.bf16.mxu0 %v12262_v20  ;;  %v12280_v20 = vpack.c.bf16 %v9738_v12, %v9736_v10  ;;  %v12194_v21 = vpack.c.bf16 %v9654_v14, %v9652_v13  ;;  %v12208_v10 = vpack.c.bf16 %v9665_v55, %v9663_v62  ;;  %v9667_v13 = vld [vmem:[%s19889_s3 + $0xbc0] sm:$0xff]  ;;  %v9669_v14 = vld [vmem:[%s19889_s3 + $0xbd0] sm:$0xff]  ;;  %v9884_v62 = vld [vmem:[%s19889_s3 + $0x1278] sm:$0xff] }
 0x1b3   : > { %v9773_v55 = vld [vmem:[%s19889_s3 + $0xf08] sm:$0xff] }
 0x1b4   : > { %12177 = vmatpush1.bf16.msra.mxu1 %v12176_v33  ;;  %v9742_v33 = vld [vmem:[%s19889_s3 + $0xe10] sm:$0xff] }
 0x1b5   : > { %12265 = vmatpush1.bf16.msra.mxu0 %v12264_v9  ;;  %12179 = vmatprep.subr.bf16.mxu1 %v12178_v27  ;;  %v9656_v9 = vld [vmem:[%s19889_s3 + $0xb68] sm:$0xff]  ;;  %v9658_v27 = vld [vmem:[%s19889_s3 + $0xb78] sm:$0xff] }
 0x1b6   : > { %12267 = vmatprep.subr.bf16.mxu0 %v12266_v31  ;;  %v12284_v31 = vpack.c.bf16 %v9742_v33, %v9740_v24  ;;  %v12198_v34 = vpack.c.bf16 %v9658_v27, %v9656_v9  ;;  %v12212_v24 = vpack.c.bf16 %v9669_v14, %v9667_v13  ;;  %v9671_v9 = vld [vmem:[%s19889_s3 + $0xbe0] sm:$0xff]  ;;  %v9673_v27 = vld [vmem:[%s19889_s3 + $0xbf0] sm:$0xff] }
 0x1b7   : > { %v9883_v13 = vld [vmem:[%s19889_s3 + $0x1270] sm:$0xff]  ;;  %v9776_v14 = vld [vmem:[%s19889_s3 + $0xf20] sm:$0xff] }
 0x1b8   : > { %12181 = vmatpush1.bf16.msra.mxu1 %v12180_v40  ;;  %v9746_v40 = vld [vmem:[%s19889_s3 + $0xe30] sm:$0xff] }
 0x1b9   : > { %12269 = vmatpush1.bf16.msra.mxu0 %v12268_v41  ;;  %12183 = vmatprep.subr.bf16.mxu1 %v12182_v42  ;;  %v9660_v41 = vld [vmem:[%s19889_s3 + $0xb88] sm:$0xff]  ;;  %v9662_v42 = vld [vmem:[%s19889_s3 + $0xb98] sm:$0xff] }
 0x1ba   : > { %12271 = vmatprep.subr.bf16.mxu0 %v12270_v48  ;;  %v12288_v48 = vpack.c.bf16 %v9746_v40, %v9744_v38  ;;  %v12202_v49 = vpack.c.bf16 %v9662_v42, %v9660_v41  ;;  %v12216_v38 = vpack.c.bf16 %v9673_v27, %v9671_v9  ;;  %v9675_v41 = vld [vmem:[%s19889_s3 + $0xc00] sm:$0xff]  ;;  %v9677_v42 = vld [vmem:[%s19889_s3 + $0xc10] sm:$0xff] }
 0x1bb   : > { %v9887_v9 = vld [vmem:[%s19889_s3 + $0x1290] sm:$0xff]  ;;  %v9780_v27 = vld [vmem:[%s19889_s3 + $0xf40] sm:$0xff] }
 0x1bc   : > { %12185 = vmatpush1.bf16.msra.mxu1 %v12184_v54  ;;  %v9750_v54 = vld [vmem:[%s19889_s3 + $0xe50] sm:$0xff] }
 0x1bd   : > { %12273 = vmatpush1.bf16.msra.mxu0 %v12272_v56  ;;  %12187 = vmatprep.subr.bf16.mxu1 %v12186_v57  ;;  %v9664_v56 = vld [vmem:[%s19889_s3 + $0xba8] sm:$0xff]  ;;  %v9666_v57 = vld [vmem:[%s19889_s3 + $0xbb8] sm:$0xff] }
 0x1be   : > { %12275 = vmatprep.subr.bf16.mxu0 %v12274_v60  ;;  %v12292_v60 = vpack.c.bf16 %v9750_v54, %v9748_v35  ;;  %v12206_v1 = vpack.c.bf16 %v9666_v57, %v9664_v56  ;;  %v9768_v56 = vld [vmem:[%s19889_s3 + $0xee0] sm:$0xff] }
 0x1bf   : > { %v9679_v57 = vld [vmem:[%s19889_s3 + $0xc20] sm:$0xff] }
 0x1c0   : > { %12189 = vmatpush1.bf16.msra.mxu1 %v12188_v4  ;;  %v9754_v4 = vld [vmem:[%s19889_s3 + $0xe70] sm:$0xff] }
 0x1c1   : > { %12277 = vmatpush1.bf16.msra.mxu0 %v12276_v5  ;;  %12191 = vmatprep.subr.bf16.mxu1 %v12190_v6  ;;  %v9668_v5 = vld [vmem:[%s19889_s3 + $0xbc8] sm:$0xff]  ;;  %v9670_v6 = vld [vmem:[%s19889_s3 + $0xbd8] sm:$0xff] }
 0x1c2   : > { %12279 = vmatprep.subr.bf16.mxu0 %v12278_v11  ;;  %v12296_v11 = vpack.c.bf16 %v9754_v4, %v9752_v63  ;;  %v12210_v12 = vpack.c.bf16 %v9670_v6, %v9668_v5  ;;  %v9775_v63 = vld [vmem:[%s19889_s3 + $0xf18] sm:$0xff]  ;;  %v9772_v6 = vld [vmem:[%s19889_s3 + $0xf00] sm:$0xff] }
 0x1c3   : > { %v12314_v5 = vpack.c.bf16 %v9775_v63, %v9773_v55 }
 0x1c4   : > { %12193 = vmatpush1.bf16.msra.mxu1 %v12192_v19  ;;  %v9758_v19 = vld [vmem:[%s19889_s3 + $0xe90] sm:$0xff] }
 0x1c5   : > { %12281 = vmatpush1.bf16.msra.mxu0 %v12280_v20  ;;  %12195 = vmatprep.subr.bf16.mxu1 %v12194_v21  ;;  %v9672_v20 = vld [vmem:[%s19889_s3 + $0xbe8] sm:$0xff]  ;;  %v9674_v21 = vld [vmem:[%s19889_s3 + $0xbf8] sm:$0xff] }
 0x1c6   : > { %12283 = vmatprep.subr.bf16.mxu0 %v12282_v25  ;;  %v12300_v25 = vpack.c.bf16 %v9758_v19, %v9756_v16  ;;  %v12214_v33 = vpack.c.bf16 %v9674_v21, %v9672_v20  ;;  %v9886_v19 = vld [vmem:[%s19889_s3 + $0x1288] sm:$0xff]  ;;  %v9888_v20 = vld [vmem:[%s19889_s3 + $0x1298] sm:$0xff] }
 0x1c7   : > { %v9781_v21 = vld [vmem:[%s19889_s3 + $0xf48] sm:$0xff] }
 0x1c8   : > { %12197 = vmatpush1.bf16.msra.mxu1 %v12196_v30  ;;  %v9762_v30 = vld [vmem:[%s19889_s3 + $0xeb0] sm:$0xff] }
 0x1c9   : > { %12285 = vmatpush1.bf16.msra.mxu0 %v12284_v31  ;;  %12199 = vmatprep.subr.bf16.mxu1 %v12198_v34  ;;  %v9676_v31 = vld [vmem:[%s19889_s3 + $0xc08] sm:$0xff]  ;;  %v9678_v34 = vld [vmem:[%s19889_s3 + $0xc18] sm:$0xff] }
 0x1ca   : > { %12287 = vmatprep.subr.bf16.mxu0 %v12286_v39  ;;  %v12304_v39 = vpack.c.bf16 %v9762_v30, %v9760_v28  ;;  %v12218_v40 = vpack.c.bf16 %v9678_v34, %v9676_v31  ;;  %v12322_v28 = vpack.c.bf16 %v9783_v22, %v9781_v21  ;;  %v9890_v30 = vld [vmem:[%s19889_s3 + $0x12a8] sm:$0xff]  ;;  %v9892_v31 = vld [vmem:[%s19889_s3 + $0x12b8] sm:$0xff]  ;;  %v9903_v21 = vld [vmem:[%s19889_s3 + $0x1310] sm:$0xff] }
 0x1cb   : > { %v9785_v34 = vld [vmem:[%s19889_s3 + $0xf68] sm:$0xff]  ;;  %v9796_v22 = vld [vmem:[%s19889_s3 + $0xfc0] sm:$0xff] }
 0x1cc   : > { %12201 = vmatpush1.bf16.msra.mxu1 %v12200_v47  ;;  %v9766_v47 = vld [vmem:[%s19889_s3 + $0xed0] sm:$0xff] }
 0x1cd   : > { %12289 = vmatpush1.bf16.msra.mxu0 %v12288_v48  ;;  %12203 = vmatprep.subr.bf16.mxu1 %v12202_v49  ;;  %v9680_v48 = vld [vmem:[%s19889_s3 + $0xc28] sm:$0xff]  ;;  %v9682_v49 = vld [vmem:[%s19889_s3 + $0xc38] sm:$0xff]  ;;  %v12308_v35 = vpack.c.bf16 %v9766_v47, %v9764_v43  ;;  %v12326_v43 = vpack.c.bf16 %v9787_v36, %v9785_v34  ;;  %v9907_v34 = vld [vmem:[%s19889_s3 + $0x1330] sm:$0xff] }
 0x1ce   : > { %12291 = vmatprep.subr.bf16.mxu0 %v12290_v53  ;;  %v12220_v53 = vpack.c.bf16 %v9677_v42, %v9675_v41  ;;  %v12222_v54 = vpack.c.bf16 %v9682_v49, %v9680_v48  ;;  %v9891_v41 = vld [vmem:[%s19889_s3 + $0x12b0] sm:$0xff]  ;;  %v9784_v42 = vld [vmem:[%s19889_s3 + $0xf60] sm:$0xff]  ;;  %v9896_v47 = vld [vmem:[%s19889_s3 + $0x12d8] sm:$0xff] }
 0x1cf   : > { %v9789_v48 = vld [vmem:[%s19889_s3 + $0xf88] sm:$0xff]  ;;  %v9791_v49 = vld [vmem:[%s19889_s3 + $0xf98] sm:$0xff]  ;;  %v9800_v36 = vld [vmem:[%s19889_s3 + $0xfe0] sm:$0xff] }
 0x1d0   : > { %12205 = vmatpush1.bf16.msra.mxu1 %v12204_v59  ;;  %2087 = vmatmul.mubr.f32.vlgmr.msra.gmra.mrb[6].mxu0 %v14435_v45  ;;  %v9770_v59 = vld [vmem:[%s19889_s3 + $0xef0] sm:$0xff] }
 0x1d1   : > { %12293 = vmatpush1.bf16.msra.mxu0 %v12292_v60  ;;  %2157 = vmatprep.mubr.f32.mxu0 %v14445_v51  ;;  %v9882_v60 = vld [vmem:[%s19889_s3 + $0x1268] sm:$0xff] }
 0x1d2   : > { %12207 = vmatprep.subr.bf16.mxu1 %v12206_v1  ;;  %12295 = vmatprep.subr.bf16.mxu0 %v12294_v2  ;;  %v12224_v1 = vpack.c.bf16 %v9681_v58, %v9679_v57  ;;  %v12312_v2 = vpack.c.bf16 %v9770_v59, %v9768_v56  ;;  %v12422_v4 = vpack.c.bf16 %v9884_v62, %v9882_v60  ;;  %v9788_v56 = vld [vmem:[%s19889_s3 + $0xf80] sm:$0xff]  ;;  %v9790_v58 = vld [vmem:[%s19889_s3 + $0xf90] sm:$0xff]  ;;  %v9900_v59 = vld [vmem:[%s19889_s3 + $0x12f8] sm:$0xff] }
 0x1d3   : > { %v12330_v57 = vpack.c.bf16 %v9791_v49, %v9789_v48  ;;  %v9793_v60 = vld [vmem:[%s19889_s3 + $0xfa8] sm:$0xff]  ;;  %v9795_v62 = vld [vmem:[%s19889_s3 + $0xfb8] sm:$0xff]  ;;  %v12332_v63 = vpack.c.bf16 %v9790_v58, %v9788_v56  ;;  %v9911_v48 = vld [vmem:[%s19889_s3 + $0x1350] sm:$0xff] }
 0x1d4   : > { %12209 = vmatpush1.bf16.msra.mxu1 %v12208_v10  ;;  %v9779_v10 = vld [vmem:[%s19889_s3 + $0xf38] sm:$0xff]  ;;  %v9804_v49 = vld [vmem:[%s19889_s3 + $0x1000] sm:$0xff] }
 0x1d5   : > { %12297 = vmatpush1.bf16.msra.mxu0 %v12296_v11  ;;  %12211 = vmatprep.subr.bf16.mxu1 %v12210_v12  ;;  %v12316_v11 = vpack.c.bf16 %v9774_v7, %v9772_v6  ;;  %v9881_v12 = vld [vmem:[%s19889_s3 + $0x1260] sm:$0xff]  ;;  %v12318_v16 = vpack.c.bf16 %v9779_v10, %v9777_v8  ;;  %v12334_v7 = vpack.c.bf16 %v9795_v62, %v9793_v60  ;;  %v9794_v8 = vld [vmem:[%s19889_s3 + $0xfb0] sm:$0xff]  ;;  %v9902_v10 = vld [vmem:[%s19889_s3 + $0x1308] sm:$0xff] }
 0x1d6   : > { %12299 = vmatprep.subr.bf16.mxu0 %v12298_v17  ;;  %v9778_v17 = vld [vmem:[%s19889_s3 + $0xf30] sm:$0xff]  ;;  %v12424_v23 = vpack.c.bf16 %v9883_v13, %v9881_v12  ;;  %v9797_v13 = vld [vmem:[%s19889_s3 + $0xfc8] sm:$0xff]  ;;  %v9811_v56 = vld [vmem:[%s19889_s3 + $0x1038] sm:$0xff] }
 0x1d7   : > { %v9915_v60 = vld [vmem:[%s19889_s3 + $0x1370] sm:$0xff]  ;;  %v9808_v62 = vld [vmem:[%s19889_s3 + $0x1020] sm:$0xff] }
 0x1d8   : > { %12213 = vmatpush1.bf16.msra.mxu1 %v12212_v24  ;;  %v12320_v24 = vpack.c.bf16 %v9778_v17, %v9776_v14  ;;  %v9799_v14 = vld [vmem:[%s19889_s3 + $0xfd8] sm:$0xff] }
 0x1d9   : > { %12301 = vmatpush1.bf16.msra.mxu0 %v12300_v25  ;;  %12215 = vmatprep.subr.bf16.mxu1 %v12214_v33  ;;  %v12426_v25 = vpack.c.bf16 %v9888_v20, %v9886_v19  ;;  %v9885_v33 = vld [vmem:[%s19889_s3 + $0x1280] sm:$0xff] }
 0x1da   : > { %12303 = vmatprep.subr.bf16.mxu0 %v12302_v29  ;;  %v9782_v29 = vld [vmem:[%s19889_s3 + $0xf50] sm:$0xff]  ;;  %v12428_v37 = vpack.c.bf16 %v9887_v9, %v9885_v33  ;;  %v9901_v20 = vld [vmem:[%s19889_s3 + $0x1300] sm:$0xff]  ;;  %v9908_v33 = vld [vmem:[%s19889_s3 + $0x1338] sm:$0xff] }
 0x1db   : > { %v9801_v9 = vld [vmem:[%s19889_s3 + $0xfe8] sm:$0xff] }
 0x1dc   : > { %12217 = vmatpush1.bf16.msra.mxu1 %v12216_v38  ;;  %v12324_v38 = vpack.c.bf16 %v9782_v29, %v9780_v27  ;;  %v9803_v27 = vld [vmem:[%s19889_s3 + $0xff8] sm:$0xff] }
 0x1dd   : > { %12305 = vmatpush1.bf16.msra.mxu0 %v12304_v39  ;;  %12219 = vmatprep.subr.bf16.mxu1 %v12218_v40  ;;  %v12430_v39 = vpack.c.bf16 %v9892_v31, %v9890_v30  ;;  %v9889_v40 = vld [vmem:[%s19889_s3 + $0x12a0] sm:$0xff] }
 0x1de   : > { %12307 = vmatprep.subr.bf16.mxu0 %v12306_v44  ;;  %v9894_v44 = vld [vmem:[%s19889_s3 + $0x12c8] sm:$0xff]  ;;  %v12432_v50 = vpack.c.bf16 %v9891_v41, %v9889_v40  ;;  %v9905_v31 = vld [vmem:[%s19889_s3 + $0x1320] sm:$0xff]  ;;  %v9912_v40 = vld [vmem:[%s19889_s3 + $0x1358] sm:$0xff] }
 0x1df   : > { %v9805_v41 = vld [vmem:[%s19889_s3 + $0x1008] sm:$0xff] }
 0x1e0   : > { %12221 = vmatpush1.bf16.msra.mxu1 %v12220_v53  ;;  %v12434_v53 = vpack.c.bf16 %v9896_v47, %v9894_v44  ;;  %v9909_v47 = vld [vmem:[%s19889_s3 + $0x1340] sm:$0xff] }
 0x1e1   : > { %12309 = vmatpush1.bf16.msra.mxu0 %v12308_v35  ;;  %12223 = vmatprep.subr.bf16.mxu1 %v12222_v54  ;;  %v9893_v35 = vld [vmem:[%s19889_s3 + $0x12c0] sm:$0xff]  ;;  %v9895_v54 = vld [vmem:[%s19889_s3 + $0x12d0] sm:$0xff] }
 0x1e2   : > { %12311 = vmatprep.subr.bf16.mxu0 %v12310_v15  ;;  %v9898_v15 = vld [vmem:[%s19889_s3 + $0x12e8] sm:$0xff]  ;;  %v12436_v55 = vpack.c.bf16 %v9895_v54, %v9893_v35  ;;  %v9916_v35 = vld [vmem:[%s19889_s3 + $0x1378] sm:$0xff] }
 0x1e3   : > { %1746 = vmatmul.mubr.f32.vlgmr.msra.gmra.mrb[6].mxu1 %v15197_v32  ;;  %v9809_v54 = vld [vmem:[%s19889_s3 + $0x1028] sm:$0xff] }
 0x1e4   : > { %12225 = vmatpush1.bf16.msra.mxu1 %v12224_v1  ;;  %1816 = vmatprep.mubr.f32.mxu1 %v13945_v0  ;;  %v12438_v1 = vpack.c.bf16 %v9900_v59, %v9898_v15  ;;  %v9913_v59 = vld [vmem:[%s19889_s3 + $0x1360] sm:$0xff] }
 0x1e5   : > { %12313 = vmatpush1.bf16.msra.mxu0 %v12312_v2  ;;  %12423 = vmatprep.subr.bf16.mxu1 %v12422_v4  ;;  %v9897_v2 = vld [vmem:[%s19889_s3 + $0x12e0] sm:$0xff]  ;;  %v9899_v4 = vld [vmem:[%s19889_s3 + $0x12f0] sm:$0xff] }
 0x1e6   : > { %12315 = vmatprep.subr.bf16.mxu0 %v12314_v5  ;;  %v9792_v5 = vld [vmem:[%s19889_s3 + $0xfa0] sm:$0xff] }
 0x1e7   : > { %v12336_v17 = vpack.c.bf16 %v9794_v8, %v9792_v5  ;;  %v9815_v5 = vld [vmem:[%s19889_s3 + $0x1058] sm:$0xff] }
 0x1e9   : > { %12317 = vmatpush1.bf16.msra.mxu0 %v12316_v11  ;;  %v9904_v11 = vld [vmem:[%s19889_s3 + $0x1318] sm:$0xff] }
 0x1ea   : > { %12319 = vmatprep.subr.bf16.mxu0 %v12318_v16  ;;  %v12440_v16 = vpack.c.bf16 %v9899_v4, %v9897_v2  ;;  %v12442_v19 = vpack.c.bf16 %v9904_v11, %v9902_v10  ;;  %v9920_v2 = vld [vmem:[%s19889_s3 + $0x1398] sm:$0xff]  ;;  %v9813_v4 = vld [vmem:[%s19889_s3 + $0x1048] sm:$0xff]  ;;  %v9917_v11 = vld [vmem:[%s19889_s3 + $0x1380] sm:$0xff] }
 0x1eb   : > { %9683 = vmatmul.mubr.msk.f32.vlgmr.msra.gmra.mrb[6].mxu1 %vm1054_vm5, %v14521_v26 }
 0x1ec   : > { %12425 = vmatpush1.bf16.msra.mxu1 %v12424_v23  ;;  %2569 = vmatprep.mubr.f32.mxu1 %v14437_v46  ;;  %v9786_v46 = vld [vmem:[%s19889_s3 + $0xf70] sm:$0xff]  ;;  %v12338_v23 = vpack.c.bf16 %v9799_v14, %v9797_v13  ;;  %v12354_v14 = vpack.c.bf16 %v9815_v5, %v9813_v4  ;;  %v9828_v5 = vld [vmem:[%s19889_s3 + $0x10c0] sm:$0xff] }
 0x1ed   : > { %12321 = vmatpush1.bf16.msra.mxu0 %v12320_v24  ;;  %12427 = vmatprep.subr.bf16.mxu1 %v12426_v25  ;;  %v12328_v52 = vpack.c.bf16 %v9786_v46, %v9784_v42  ;;  %v9798_v24 = vld [vmem:[%s19889_s3 + $0xfd0] sm:$0xff]  ;;  %v9906_v25 = vld [vmem:[%s19889_s3 + $0x1328] sm:$0xff]  ;;  %v9807_v42 = vld [vmem:[%s19889_s3 + $0x1018] sm:$0xff] }
 0x1ee   : > { %12323 = vmatprep.subr.bf16.mxu0 %v12322_v28  ;;  %v12444_v28 = vpack.c.bf16 %v9903_v21, %v9901_v20  ;;  %v12340_v29 = vpack.c.bf16 %v9798_v24, %v9796_v22  ;;  %v12446_v30 = vpack.c.bf16 %v9908_v33, %v9906_v25  ;;  %v9919_v13 = vld [vmem:[%s19889_s3 + $0x1390] sm:$0xff]  ;;  %v9924_v20 = vld [vmem:[%s19889_s3 + $0x13b8] sm:$0xff]  ;;  %v9817_v21 = vld [vmem:[%s19889_s3 + $0x1068] sm:$0xff] }
 0x1ef   : > { %v9819_v22 = vld [vmem:[%s19889_s3 + $0x1078] sm:$0xff]  ;;  %v9921_v25 = vld [vmem:[%s19889_s3 + $0x13a0] sm:$0xff]  ;;  %v9923_v33 = vld [vmem:[%s19889_s3 + $0x13b0] sm:$0xff] }
 0x1f0   : > { %12429 = vmatpush1.bf16.msra.mxu1 %v12428_v37  ;;  %v12342_v37 = vpack.c.bf16 %v9803_v27, %v9801_v9  ;;  %v9816_v9 = vld [vmem:[%s19889_s3 + $0x1060] sm:$0xff]  ;;  %v9935_v4 = vld [vmem:[%s19889_s3 + $0x1410] sm:$0xff] }
 0x1f1   : > { %12325 = vmatpush1.bf16.msra.mxu0 %v12324_v38  ;;  %12431 = vmatprep.subr.bf16.mxu1 %v12430_v39  ;;  %v9802_v38 = vld [vmem:[%s19889_s3 + $0xff0] sm:$0xff]  ;;  %v9910_v39 = vld [vmem:[%s19889_s3 + $0x1348] sm:$0xff] }
 0x1f2   : > { %12327 = vmatprep.subr.bf16.mxu0 %v12326_v43  ;;  %v12448_v43 = vpack.c.bf16 %v9907_v34, %v9905_v31  ;;  %v12344_v46 = vpack.c.bf16 %v9802_v38, %v9800_v36  ;;  %v12450_v44 = vpack.c.bf16 %v9912_v40, %v9910_v39  ;;  %v9928_v31 = vld [vmem:[%s19889_s3 + $0x13d8] sm:$0xff]  ;;  %v9821_v34 = vld [vmem:[%s19889_s3 + $0x1088] sm:$0xff]  ;;  %v9925_v40 = vld [vmem:[%s19889_s3 + $0x13c0] sm:$0xff] }
 0x1f3   : > { %v9823_v36 = vld [vmem:[%s19889_s3 + $0x1098] sm:$0xff] }
 0x1f4   : > { %12433 = vmatpush1.bf16.msra.mxu1 %v12432_v50  ;;  %v12346_v50 = vpack.c.bf16 %v9807_v42, %v9805_v41  ;;  %v9927_v41 = vld [vmem:[%s19889_s3 + $0x13d0] sm:$0xff]  ;;  %v9820_v42 = vld [vmem:[%s19889_s3 + $0x1080] sm:$0xff] }
 0x1f5   : > { %12329 = vmatpush1.bf16.msra.mxu0 %v12328_v52  ;;  %12435 = vmatprep.subr.bf16.mxu1 %v12434_v53  ;;  %v9806_v52 = vld [vmem:[%s19889_s3 + $0x1010] sm:$0xff]  ;;  %v9914_v53 = vld [vmem:[%s19889_s3 + $0x1368] sm:$0xff] }
 0x1f6   : > { %v15822_v6 = vpop.f32.mrb[4].mxu1  ;;  %12331 = vmatprep.subr.bf16.mxu0 %v12330_v57  ;;  %v12452_v57 = vpack.c.bf16 %v9911_v48, %v9909_v47  ;;  %v12348_v58 = vpack.c.bf16 %v9806_v52, %v9804_v49  ;;  %v12454_v15 = vpack.c.bf16 %v9916_v35, %v9914_v53  ;;  %v9932_v47 = vld [vmem:[%s19889_s3 + $0x13f8] sm:$0xff]  ;;  %v9825_v48 = vld [vmem:[%s19889_s3 + $0x10a8] sm:$0xff]  ;;  %v9929_v35 = vld [vmem:[%s19889_s3 + $0x13e0] sm:$0xff] }
 0x1f7   : > { %v15833_v12 = vpop.f32.mrb[5].mxu1  ;;  %v9827_v49 = vld [vmem:[%s19889_s3 + $0x10b8] sm:$0xff] }
 0x1f8   : > { %12437 = vmatpush1.bf16.msra.mxu1 %v12436_v55  ;;  %v12350_v55 = vpack.c.bf16 %v9811_v56, %v9809_v54  ;;  %v9931_v54 = vld [vmem:[%s19889_s3 + $0x13f0] sm:$0xff]  ;;  %v9824_v56 = vld [vmem:[%s19889_s3 + $0x10a0] sm:$0xff] }
 0x1f9   : > { %12333 = vmatpush1.bf16.msra.mxu0 %v12332_v63  ;;  %12439 = vmatprep.subr.bf16.mxu1 %v12438_v1  ;;  %v9810_v63 = vld [vmem:[%s19889_s3 + $0x1030] sm:$0xff]  ;;  %v9918_v1 = vld [vmem:[%s19889_s3 + $0x1388] sm:$0xff] }
 0x1fa   : > { %12335 = vmatprep.subr.bf16.mxu0 %v12334_v7  ;;  %v12456_v7 = vpack.c.bf16 %v9915_v60, %v9913_v59  ;;  %v12352_v8 = vpack.c.bf16 %v9810_v63, %v9808_v62  ;;  %v12458_v10 = vpack.c.bf16 %v9920_v2, %v9918_v1  ;;  %v9936_v59 = vld [vmem:[%s19889_s3 + $0x1418] sm:$0xff]  ;;  %v9829_v60 = vld [vmem:[%s19889_s3 + $0x10c8] sm:$0xff]  ;;  %v9933_v2 = vld [vmem:[%s19889_s3 + $0x1400] sm:$0xff] }
 0x1fb   : > { %v9831_v62 = vld [vmem:[%s19889_s3 + $0x10d8] sm:$0xff] }
 0x1fc   : > { %12441 = vmatpush1.bf16.msra.mxu1 %v12440_v16  ;;  %v9812_v16 = vld [vmem:[%s19889_s3 + $0x1040] sm:$0xff] }
 0x1fd   : > { %12337 = vmatpush1.bf16.msra.mxu0 %v12336_v17  ;;  %12443 = vmatprep.subr.bf16.mxu1 %v12442_v19  ;;  %v9814_v17 = vld [vmem:[%s19889_s3 + $0x1050] sm:$0xff]  ;;  %v9922_v19 = vld [vmem:[%s19889_s3 + $0x13a8] sm:$0xff] }
 0x1fe   : > { %12339 = vmatprep.subr.bf16.mxu0 %v12338_v23  ;;  %v12460_v23 = vpack.c.bf16 %v9919_v13, %v9917_v11  ;;  %v12356_v24 = vpack.c.bf16 %v9814_v17, %v9812_v16  ;;  %v12462_v27 = vpack.c.bf16 %v9924_v20, %v9922_v19  ;;  %v9940_v11 = vld [vmem:[%s19889_s3 + $0x1438] sm:$0xff]  ;;  %v9833_v13 = vld [vmem:[%s19889_s3 + $0x10e8] sm:$0xff]  ;;  %v12476_v16 = vpack.c.bf16 %v9935_v4, %v9933_v2  ;;  %v9937_v20 = vld [vmem:[%s19889_s3 + $0x1420] sm:$0xff] }
 0x1ff   : > { %v9956_v2 = vld [vmem:[%s19889_s3 + $0x14b8] sm:$0xff]  ;;  %v9849_v4 = vld [vmem:[%s19889_s3 + $0x1168] sm:$0xff] }
 0x200   : > { %12445 = vmatpush1.bf16.msra.mxu1 %v12444_v28  ;;  %v12358_v28 = vpack.c.bf16 %v9819_v22, %v9817_v21  ;;  %v9939_v21 = vld [vmem:[%s19889_s3 + $0x1430] sm:$0xff]  ;;  %v9832_v22 = vld [vmem:[%s19889_s3 + $0x10e0] sm:$0xff] }
 0x201   : > { %12341 = vmatpush1.bf16.msra.mxu0 %v12340_v29  ;;  %12447 = vmatprep.subr.bf16.mxu1 %v12446_v30  ;;  %v9818_v29 = vld [vmem:[%s19889_s3 + $0x1070] sm:$0xff]  ;;  %v9926_v30 = vld [vmem:[%s19889_s3 + $0x13c8] sm:$0xff] }
 0x202   : > { %12343 = vmatprep.subr.bf16.mxu0 %v12342_v37  ;;  %v12464_v37 = vpack.c.bf16 %v9923_v33, %v9921_v25  ;;  %v12360_v38 = vpack.c.bf16 %v9818_v29, %v9816_v9  ;;  %v12466_v39 = vpack.c.bf16 %v9928_v31, %v9926_v30  ;;  %v9942_v25 = vld [vmem:[%s19889_s3 + $0x1448] sm:$0xff]  ;;  %v9944_v33 = vld [vmem:[%s19889_s3 + $0x1458] sm:$0xff]  ;;  %v9941_v31 = vld [vmem:[%s19889_s3 + $0x1440] sm:$0xff] }
 0x203   : > { %v9837_v9 = vld [vmem:[%s19889_s3 + $0x1108] sm:$0xff]  ;;  %v12482_v30 = vpack.c.bf16 %v9944_v33, %v9942_v25  ;;  %v9959_v25 = vld [vmem:[%s19889_s3 + $0x14d0] sm:$0xff]  ;;  %v9852_v33 = vld [vmem:[%s19889_s3 + $0x1180] sm:$0xff] }
 0x204   : > { %12449 = vmatpush1.bf16.msra.mxu1 %v12448_v43  ;;  %v12362_v43 = vpack.c.bf16 %v9823_v36, %v9821_v34  ;;  %v9943_v34 = vld [vmem:[%s19889_s3 + $0x1450] sm:$0xff]  ;;  %v9836_v36 = vld [vmem:[%s19889_s3 + $0x1100] sm:$0xff] }
 0x205   : > { %12345 = vmatpush1.bf16.msra.mxu0 %v12344_v46  ;;  %12451 = vmatprep.subr.bf16.mxu1 %v12450_v44  ;;  %v9822_v46 = vld [vmem:[%s19889_s3 + $0x1090] sm:$0xff]  ;;  %v9930_v44 = vld [vmem:[%s19889_s3 + $0x13e8] sm:$0xff] }
 0x206   : > { %12347 = vmatprep.subr.bf16.mxu0 %v12346_v50  ;;  %v12468_v50 = vpack.c.bf16 %v9927_v41, %v9925_v40  ;;  %v12364_v52 = vpack.c.bf16 %v9822_v46, %v9820_v42  ;;  %v12470_v53 = vpack.c.bf16 %v9932_v47, %v9930_v44  ;;  %v9948_v40 = vld [vmem:[%s19889_s3 + $0x1478] sm:$0xff]  ;;  %v9841_v41 = vld [vmem:[%s19889_s3 + $0x1128] sm:$0xff]  ;;  %v9945_v47 = vld [vmem:[%s19889_s3 + $0x1460] sm:$0xff] }
 0x207   : > { %v9843_v42 = vld [vmem:[%s19889_s3 + $0x1138] sm:$0xff] }
 0x208   : > { %12453 = vmatpush1.bf16.msra.mxu1 %v12452_v57  ;;  %v12366_v57 = vpack.c.bf16 %v9827_v49, %v9825_v48  ;;  %v9947_v48 = vld [vmem:[%s19889_s3 + $0x1470] sm:$0xff]  ;;  %v9840_v49 = vld [vmem:[%s19889_s3 + $0x1120] sm:$0xff] }
 0x209   : > { %12349 = vmatpush1.bf16.msra.mxu0 %v12348_v58  ;;  %12455 = vmatprep.subr.bf16.mxu1 %v12454_v15  ;;  %v9826_v58 = vld [vmem:[%s19889_s3 + $0x10b0] sm:$0xff]  ;;  %v9934_v15 = vld [vmem:[%s19889_s3 + $0x1408] sm:$0xff] }
 0x20a   : > { %12351 = vmatprep.subr.bf16.mxu0 %v12350_v55  ;;  %v12472_v55 = vpack.c.bf16 %v9931_v54, %v9929_v35  ;;  %v12368_v63 = vpack.c.bf16 %v9826_v58, %v9824_v56  ;;  %v12474_v1 = vpack.c.bf16 %v9936_v59, %v9934_v15  ;;  %v9952_v35 = vld [vmem:[%s19889_s3 + $0x1498] sm:$0xff]  ;;  %v9845_v54 = vld [vmem:[%s19889_s3 + $0x1148] sm:$0xff]  ;;  %v9949_v59 = vld [vmem:[%s19889_s3 + $0x1480] sm:$0xff] }
 0x20b   : > { %v9847_v56 = vld [vmem:[%s19889_s3 + $0x1158] sm:$0xff] }
 0x20c   : > { %12457 = vmatpush1.bf16.msra.mxu1 %v12456_v7  ;;  %v12370_v7 = vpack.c.bf16 %v9831_v62, %v9829_v60  ;;  %v9951_v60 = vld [vmem:[%s19889_s3 + $0x1490] sm:$0xff]  ;;  %v9844_v62 = vld [vmem:[%s19889_s3 + $0x1140] sm:$0xff] }
 0x20d   : > { %12353 = vmatpush1.bf16.msra.mxu0 %v12352_v8  ;;  %12459 = vmatprep.subr.bf16.mxu1 %v12458_v10  ;;  %v9830_v8 = vld [vmem:[%s19889_s3 + $0x10d0] sm:$0xff]  ;;  %v9938_v10 = vld [vmem:[%s19889_s3 + $0x1428] sm:$0xff] }
 0x20e   : > { %12355 = vmatprep.subr.bf16.mxu0 %v12354_v14  ;;  %v9835_v14 = vld [vmem:[%s19889_s3 + $0x10f8] sm:$0xff]  ;;  %v12372_v17 = vpack.c.bf16 %v9830_v8, %v9828_v5  ;;  %v12478_v19 = vpack.c.bf16 %v9940_v11, %v9938_v10  ;;  %v9955_v11 = vld [vmem:[%s19889_s3 + $0x14b0] sm:$0xff] }
 0x20f   : > { %v9851_v5 = vld [vmem:[%s19889_s3 + $0x1178] sm:$0xff] }
 0x210   : > { %12461 = vmatpush1.bf16.msra.mxu1 %v12460_v23  ;;  %2158 = vmatmul.mubr.f32.vlgmr.msra.gmra.mrb[6].mxu0 %v14803_v61  ;;  %v12374_v23 = vpack.c.bf16 %v9835_v14, %v9833_v13  ;;  %v9848_v13 = vld [vmem:[%s19889_s3 + $0x1160] sm:$0xff]  ;;  %v12390_v14 = vpack.c.bf16 %v9851_v5, %v9849_v4  ;;  %v9866_v5 = vld [vmem:[%s19889_s3 + $0x11f0] sm:$0xff] }
 0x211   : > { %12357 = vmatpush1.bf16.msra.mxu0 %v12356_v24  ;;  %2228 = vmatprep.mubr.f32.mxu0 %v14814_v3  ;;  %v9834_v24 = vld [vmem:[%s19889_s3 + $0x10f0] sm:$0xff] }
 0x212   : > { %12463 = vmatprep.subr.bf16.mxu1 %v12462_v27  ;;  %12359 = vmatprep.subr.bf16.mxu0 %v12358_v28  ;;  %v9839_v27 = vld [vmem:[%s19889_s3 + $0x1118] sm:$0xff]  ;;  %v12480_v28 = vpack.c.bf16 %v9939_v21, %v9937_v20  ;;  %v12376_v29 = vpack.c.bf16 %v9834_v24, %v9832_v22  ;;  %v9957_v24 = vld [vmem:[%s19889_s3 + $0x14c0] sm:$0xff] }
 0x213   : > { %v9855_v20 = vld [vmem:[%s19889_s3 + $0x1198] sm:$0xff] }
 0x214   : > { %12465 = vmatpush1.bf16.msra.mxu1 %v12464_v37  ;;  %v12378_v37 = vpack.c.bf16 %v9839_v27, %v9837_v9  ;;  %v9854_v27 = vld [vmem:[%s19889_s3 + $0x1190] sm:$0xff] }
 0x215   : > { %12361 = vmatpush1.bf16.msra.mxu0 %v12360_v38  ;;  %12467 = vmatprep.subr.bf16.mxu1 %v12466_v39  ;;  %v9838_v38 = vld [vmem:[%s19889_s3 + $0x1110] sm:$0xff]  ;;  %v9946_v39 = vld [vmem:[%s19889_s3 + $0x1468] sm:$0xff] }
 0x216   : > { %12363 = vmatprep.subr.bf16.mxu0 %v12362_v43  ;;  %v12484_v43 = vpack.c.bf16 %v9943_v34, %v9941_v31  ;;  %v12380_v46 = vpack.c.bf16 %v9838_v38, %v9836_v36  ;;  %v12486_v44 = vpack.c.bf16 %v9948_v40, %v9946_v39  ;;  %v9859_v31 = vld [vmem:[%s19889_s3 + $0x11b8] sm:$0xff]  ;;  %v12500_v34 = vpack.c.bf16 %v9959_v25, %v9957_v24  ;;  %v9961_v38 = vld [vmem:[%s19889_s3 + $0x14e0] sm:$0xff]  ;;  %v9963_v39 = vld [vmem:[%s19889_s3 + $0x14f0] sm:$0xff] }
 0x217   : > { %v12396_v36 = vpack.c.bf16 %v9854_v27, %v9852_v33  ;;  %v9856_v40 = vld [vmem:[%s19889_s3 + $0x11a0] sm:$0xff]  ;;  %v9875_v24 = vld [vmem:[%s19889_s3 + $0x1238] sm:$0xff] }
 0x218   : > { %12469 = vmatpush1.bf16.msra.mxu1 %v12468_v50  ;;  %v12382_v50 = vpack.c.bf16 %v9843_v42, %v9841_v41  ;;  %v9858_v42 = vld [vmem:[%s19889_s3 + $0x11b0] sm:$0xff]  ;;  %v9977_v27 = vld [vmem:[%s19889_s3 + $0x1560] sm:$0xff] }
 0x219   : > { %12365 = vmatpush1.bf16.msra.mxu0 %v12364_v52  ;;  %12471 = vmatprep.subr.bf16.mxu1 %v12470_v53  ;;  %v9842_v52 = vld [vmem:[%s19889_s3 + $0x1130] sm:$0xff]  ;;  %v9950_v53 = vld [vmem:[%s19889_s3 + $0x1488] sm:$0xff] }
 0x21a   : > { %12367 = vmatprep.subr.bf16.mxu0 %v12366_v57  ;;  %v12488_v57 = vpack.c.bf16 %v9947_v48, %v9945_v47  ;;  %v12384_v58 = vpack.c.bf16 %v9842_v52, %v9840_v49  ;;  %v12490_v15 = vpack.c.bf16 %v9952_v35, %v9950_v53  ;;  %v9863_v47 = vld [vmem:[%s19889_s3 + $0x11d8] sm:$0xff]  ;;  %v12504_v48 = vpack.c.bf16 %v9963_v39, %v9961_v38  ;;  %v9965_v52 = vld [vmem:[%s19889_s3 + $0x1500] sm:$0xff]  ;;  %v9967_v53 = vld [vmem:[%s19889_s3 + $0x1510] sm:$0xff] }
 0x21b   : > { %v12400_v49 = vpack.c.bf16 %v9858_v42, %v9856_v40  ;;  %v9860_v35 = vld [vmem:[%s19889_s3 + $0x11c0] sm:$0xff]  ;;  %v9879_v38 = vld [vmem:[%s19889_s3 + $0x1258] sm:$0xff] }
 0x21c   : > { %12473 = vmatpush1.bf16.msra.mxu1 %v12472_v55  ;;  %v12386_v55 = vpack.c.bf16 %v9847_v56, %v9845_v54  ;;  %v9862_v56 = vld [vmem:[%s19889_s3 + $0x11d0] sm:$0xff]  ;;  %v9981_v42 = vld [vmem:[%s19889_s3 + $0x1580] sm:$0xff] }
 0x21d   : > { %12369 = vmatpush1.bf16.msra.mxu0 %v12368_v63  ;;  %12475 = vmatprep.subr.bf16.mxu1 %v12474_v1  ;;  %v9846_v63 = vld [vmem:[%s19889_s3 + $0x1150] sm:$0xff]  ;;  %v9954_v1 = vld [vmem:[%s19889_s3 + $0x14a8] sm:$0xff] }
 0x21e   : > { %12371 = vmatprep.subr.bf16.mxu0 %v12370_v7  ;;  %v12492_v7 = vpack.c.bf16 %v9951_v60, %v9949_v59  ;;  %v12388_v8 = vpack.c.bf16 %v9846_v63, %v9844_v62  ;;  %v12494_v10 = vpack.c.bf16 %v9956_v2, %v9954_v1  ;;  %v9867_v59 = vld [vmem:[%s19889_s3 + $0x11f8] sm:$0xff]  ;;  %v12508_v60 = vpack.c.bf16 %v9967_v53, %v9965_v52  ;;  %v9969_v63 = vld [vmem:[%s19889_s3 + $0x1520] sm:$0xff]  ;;  %v9971_v1 = vld [vmem:[%s19889_s3 + $0x1530] sm:$0xff] }
 0x21f   : > { %v12404_v62 = vpack.c.bf16 %v9862_v56, %v9860_v35  ;;  %v9864_v2 = vld [vmem:[%s19889_s3 + $0x11e0] sm:$0xff]  ;;  %v9987_v35 = vld [vmem:[%s19889_s3 + $0x15b0] sm:$0xff]  ;;  %v9990_v56 = vld [vmem:[%s19889_s3 + $0x15c8] sm:$0xff] }
 0x220   : > { %12477 = vmatpush1.bf16.msra.mxu1 %v12476_v16  ;;  %v9958_v16 = vld [vmem:[%s19889_s3 + $0x14c8] sm:$0xff]  ;;  %v9985_v53 = vld [vmem:[%s19889_s3 + $0x15a0] sm:$0xff] }
 0x221   : > { %12373 = vmatpush1.bf16.msra.mxu0 %v12372_v17  ;;  %12479 = vmatprep.subr.bf16.mxu1 %v12478_v19  ;;  %v9960_v17 = vld [vmem:[%s19889_s3 + $0x14d8] sm:$0xff]  ;;  %v9853_v19 = vld [vmem:[%s19889_s3 + $0x1188] sm:$0xff] }
 0x222   : > { %12375 = vmatprep.subr.bf16.mxu0 %v12374_v23  ;;  %v12498_v23 = vpack.c.bf16 %v9960_v17, %v9958_v16  ;;  %v12394_v9 = vpack.c.bf16 %v9855_v20, %v9853_v19  ;;  %v9975_v16 = vld [vmem:[%s19889_s3 + $0x1550] sm:$0xff]  ;;  %v9868_v17 = vld [vmem:[%s19889_s3 + $0x1200] sm:$0xff] }
 0x223   : > { %v9870_v20 = vld [vmem:[%s19889_s3 + $0x1210] sm:$0xff] }
 0x224   : > { %12481 = vmatpush1.bf16.msra.mxu1 %v12480_v28  ;;  %v9962_v28 = vld [vmem:[%s19889_s3 + $0x14e8] sm:$0xff]  ;;  %v12412_v33 = vpack.c.bf16 %v9870_v20, %v9868_v17  ;;  %v10001_v17 = vld [vmem:[%s19889_s3 + $0x1620] sm:$0xff] }
 0x225   : > { %12377 = vmatpush1.bf16.msra.mxu0 %v12376_v29  ;;  %12483 = vmatprep.subr.bf16.mxu1 %v12482_v30  ;;  %v9964_v29 = vld [vmem:[%s19889_s3 + $0x14f8] sm:$0xff]  ;;  %v9857_v30 = vld [vmem:[%s19889_s3 + $0x11a8] sm:$0xff] }
 0x226   : > { %12379 = vmatprep.subr.bf16.mxu0 %v12378_v37  ;;  %v12502_v37 = vpack.c.bf16 %v9964_v29, %v9962_v28  ;;  %v12398_v41 = vpack.c.bf16 %v9859_v31, %v9857_v30  ;;  %v9979_v28 = vld [vmem:[%s19889_s3 + $0x1570] sm:$0xff]  ;;  %v9872_v29 = vld [vmem:[%s19889_s3 + $0x1220] sm:$0xff]  ;;  %v10006_v20 = vld [vmem:[%s19889_s3 + $0x1648] sm:$0xff] }
 0x227   : > { %v9874_v31 = vld [vmem:[%s19889_s3 + $0x1230] sm:$0xff]  ;;  %v12520_v39 = vpack.c.bf16 %v9979_v28, %v9977_v27 }
 0x228   : > { %12485 = vmatpush1.bf16.msra.mxu1 %v12484_v43  ;;  %v9966_v43 = vld [vmem:[%s19889_s3 + $0x1508] sm:$0xff]  ;;  %v12416_v40 = vpack.c.bf16 %v9874_v31, %v9872_v29 }
 0x229   : > { %12381 = vmatpush1.bf16.msra.mxu0 %v12380_v46  ;;  %12487 = vmatprep.subr.bf16.mxu1 %v12486_v44  ;;  %v9968_v46 = vld [vmem:[%s19889_s3 + $0x1518] sm:$0xff]  ;;  %v9861_v44 = vld [vmem:[%s19889_s3 + $0x11c8] sm:$0xff] }
 0x22a   : > { %12383 = vmatprep.subr.bf16.mxu0 %v12382_v50  ;;  %v12506_v50 = vpack.c.bf16 %v9968_v46, %v9966_v43  ;;  %v12402_v54 = vpack.c.bf16 %v9863_v47, %v9861_v44  ;;  %v9983_v43 = vld [vmem:[%s19889_s3 + $0x1590] sm:$0xff]  ;;  %v9986_v46 = vld [vmem:[%s19889_s3 + $0x15a8] sm:$0xff]  ;;  %v9988_v44 = vld [vmem:[%s19889_s3 + $0x15b8] sm:$0xff] }
 0x22b   : > { %2570 = vmatmul.mubr.f32.vlgmr.msra.gmra.mrb[8].mxu1 %v14435_v45  ;;  %v9953_v45 = vld [vmem:[%s19889_s3 + $0x14a0] sm:$0xff]  ;;  %v12526_v52 = vpack.c.bf16 %v9988_v44, %v9986_v46 }
 0x22c   : > { %12489 = vmatpush1.bf16.msra.mxu1 %v12488_v57  ;;  %2640 = vmatprep.mubr.f32.mxu1 %v14445_v51  ;;  %v9850_v51 = vld [vmem:[%s19889_s3 + $0x1170] sm:$0xff]  ;;  %v12496_v21 = vpack.c.bf16 %v9955_v11, %v9953_v45  ;;  %v9970_v57 = vld [vmem:[%s19889_s3 + $0x1528] sm:$0xff]  ;;  %v9871_v45 = vld [vmem:[%s19889_s3 + $0x1218] sm:$0xff]  ;;  %v12512_v11 = vpack.c.bf16 %v9971_v1, %v9969_v63 }
 0x22d   : > { %12385 = vmatpush1.bf16.msra.mxu0 %v12384_v58  ;;  %12491 = vmatprep.subr.bf16.mxu1 %v12490_v15  ;;  %v12392_v22 = vpack.c.bf16 %v9850_v51, %v9848_v13  ;;  %v9972_v58 = vld [vmem:[%s19889_s3 + $0x1538] sm:$0xff]  ;;  %v9865_v15 = vld [vmem:[%s19889_s3 + $0x11e8] sm:$0xff]  ;;  %v12408_v13 = vpack.c.bf16 %v9866_v5, %v9864_v2  ;;  %v9973_v51 = vld [vmem:[%s19889_s3 + $0x1540] sm:$0xff] }
 0x22e   : > { %12387 = vmatprep.subr.bf16.mxu0 %v12386_v55  ;;  %v12510_v55 = vpack.c.bf16 %v9972_v58, %v9970_v57  ;;  %v12406_v4 = vpack.c.bf16 %v9867_v59, %v9865_v15  ;;  %v12516_v25 = vpack.c.bf16 %v9975_v16, %v9973_v51  ;;  %v9992_v57 = vld [vmem:[%s19889_s3 + $0x15d8] sm:$0xff]  ;;  %v12528_v58 = vpack.c.bf16 %v9987_v35, %v9985_v53  ;;  %v9989_v59 = vld [vmem:[%s19889_s3 + $0x15c0] sm:$0xff]  ;;  %v9998_v5 = vld [vmem:[%s19889_s3 + $0x1608] sm:$0xff] }
 0x22f   : > { %v12530_v15 = vpack.c.bf16 %v9992_v57, %v9990_v56  ;;  %v9993_v2 = vld [vmem:[%s19889_s3 + $0x15e0] sm:$0xff]  ;;  %v10023_v53 = vld [vmem:[%s19889_s3 + $0x16d0] sm:$0xff]  ;;  %v10026_v35 = vld [vmem:[%s19889_s3 + $0x16e8] sm:$0xff] }
 0x230   : > { %12493 = vmatpush1.bf16.msra.mxu1 %v12492_v7  ;;  %v9974_v7 = vld [vmem:[%s19889_s3 + $0x1548] sm:$0xff] }
 0x231   : > { %12389 = vmatpush1.bf16.msra.mxu0 %v12388_v8  ;;  %12495 = vmatprep.subr.bf16.mxu1 %v12494_v10  ;;  %v9976_v8 = vld [vmem:[%s19889_s3 + $0x1558] sm:$0xff]  ;;  %v9869_v10 = vld [vmem:[%s19889_s3 + $0x1208] sm:$0xff] }
 0x232   : > { %12391 = vmatprep.subr.bf16.mxu0 %v12390_v14  ;;  %v12514_v14 = vpack.c.bf16 %v9976_v8, %v9974_v7  ;;  %v12410_v19 = vpack.c.bf16 %v9871_v45, %v9869_v10  ;;  %v10000_v7 = vld [vmem:[%s19889_s3 + $0x1618] sm:$0xff]  ;;  %v9997_v45 = vld [vmem:[%s19889_s3 + $0x1600] sm:$0xff] }
 0x233   : > { %v12538_v10 = vpack.c.bf16 %v10000_v7, %v9998_v5 }
 0x234   : > { %12497 = vmatpush1.bf16.msra.mxu1 %v12496_v21  ;;  %v9978_v21 = vld [vmem:[%s19889_s3 + $0x1568] sm:$0xff] }
 0x235   : > { %12393 = vmatpush1.bf16.msra.mxu0 %v12392_v22  ;;  %12499 = vmatprep.subr.bf16.mxu1 %v12498_v23  ;;  %v9980_v22 = vld [vmem:[%s19889_s3 + $0x1578] sm:$0xff]  ;;  %v9873_v23 = vld [vmem:[%s19889_s3 + $0x1228] sm:$0xff] }
 0x236   : > { %12395 = vmatprep.subr.bf16.mxu0 %v12394_v9  ;;  %v12518_v9 = vpack.c.bf16 %v9980_v22, %v9978_v21  ;;  %v12414_v30 = vpack.c.bf16 %v9875_v24, %v9873_v23  ;;  %v10008_v21 = vld [vmem:[%s19889_s3 + $0x1658] sm:$0xff]  ;;  %v10005_v24 = vld [vmem:[%s19889_s3 + $0x1640] sm:$0xff] }
 0x237   : > { %v12546_v23 = vpack.c.bf16 %v10008_v21, %v10006_v20 }
 0x238   : > { %12501 = vmatpush1.bf16.msra.mxu1 %v12500_v34  ;;  %v9982_v34 = vld [vmem:[%s19889_s3 + $0x1588] sm:$0xff] }
 0x239   : > { %12397 = vmatpush1.bf16.msra.mxu0 %v12396_v36  ;;  %12503 = vmatprep.subr.bf16.mxu1 %v12502_v37  ;;  %v9984_v36 = vld [vmem:[%s19889_s3 + $0x1598] sm:$0xff]  ;;  %v9877_v37 = vld [vmem:[%s19889_s3 + $0x1248] sm:$0xff] }
 0x23a   : > { %12399 = vmatprep.subr.bf16.mxu0 %v12398_v41  ;;  %v12522_v41 = vpack.c.bf16 %v9984_v36, %v9982_v34  ;;  %v12418_v47 = vpack.c.bf16 %v9879_v38, %v9877_v37  ;;  %v10009_v36 = vld [vmem:[%s19889_s3 + $0x1660] sm:$0xff]  ;;  %v10011_v37 = vld [vmem:[%s19889_s3 + $0x1670] sm:$0xff]  ;;  %v10016_v38 = vld [vmem:[%s19889_s3 + $0x1698] sm:$0xff] }
 0x23c   : > { %12505 = vmatpush1.bf16.msra.mxu1 %v12504_v48  ;;  %v9876_v48 = vld [vmem:[%s19889_s3 + $0x1240] sm:$0xff] }
 0x23d   : > { %12401 = vmatpush1.bf16.msra.mxu0 %v12400_v49  ;;  %12507 = vmatprep.subr.bf16.mxu1 %v12506_v50  ;;  %v9878_v49 = vld [vmem:[%s19889_s3 + $0x1250] sm:$0xff]  ;;  %v12524_v50 = vpack.c.bf16 %v9983_v43, %v9981_v42  ;;  %v10018_v42 = vld [vmem:[%s19889_s3 + $0x16a8] sm:$0xff]  ;;  %v10020_v43 = vld [vmem:[%s19889_s3 + $0x16b8] sm:$0xff] }
 0x23e   : > { %12403 = vmatprep.subr.bf16.mxu0 %v12402_v54  ;;  %v12420_v54 = vpack.c.bf16 %v9878_v49, %v9876_v48  ;;  %v12558_v44 = vpack.c.bf16 %v10020_v43, %v10018_v42  ;;  %v10019_v48 = vld [vmem:[%s19889_s3 + $0x16b0] sm:$0xff]  ;;  %v10022_v49 = vld [vmem:[%s19889_s3 + $0x16c8] sm:$0xff]  ;;  %v10053_v42 = vld [vmem:[%s19889_s3 + $0x17c0] sm:$0xff] }
 0x23f   : > { %v10055_v43 = vld [vmem:[%s19889_s3 + $0x17d0] sm:$0xff] }
 0x240   : > { %12509 = vmatpush1.bf16.msra.mxu1 %v12508_v60  ;;  %v9991_v60 = vld [vmem:[%s19889_s3 + $0x15d0] sm:$0xff] }
 0x241   : > { %12405 = vmatpush1.bf16.msra.mxu0 %v12404_v62  ;;  %12511 = vmatprep.subr.bf16.mxu1 %v12510_v55  ;;  %v9994_v62 = vld [vmem:[%s19889_s3 + $0x15e8] sm:$0xff]  ;;  %v9996_v55 = vld [vmem:[%s19889_s3 + $0x15f8] sm:$0xff]  ;;  %v12532_v63 = vpack.c.bf16 %v9991_v60, %v9989_v59 }
 0x242   : > { %12407 = vmatprep.subr.bf16.mxu0 %v12406_v4  ;;  %v12534_v1 = vpack.c.bf16 %v9996_v55, %v9994_v62  ;;  %v9995_v4 = vld [vmem:[%s19889_s3 + $0x15f0] sm:$0xff]  ;;  %v10030_v59 = vld [vmem:[%s19889_s3 + $0x1708] sm:$0xff]  ;;  %v10032_v60 = vld [vmem:[%s19889_s3 + $0x1718] sm:$0xff] }
 0x243   : > { %v12536_v8 = vpack.c.bf16 %v9995_v4, %v9993_v2  ;;  %v12570_v55 = vpack.c.bf16 %v10032_v60, %v10030_v59  ;;  %v10034_v2 = vld [vmem:[%s19889_s3 + $0x1728] sm:$0xff]  ;;  %v10036_v4 = vld [vmem:[%s19889_s3 + $0x1738] sm:$0xff]  ;;  %v10065_v59 = vld [vmem:[%s19889_s3 + $0x1820] sm:$0xff] }
 0x244   : > { %12513 = vmatpush1.bf16.msra.mxu1 %v12512_v11  ;;  %v9999_v11 = vld [vmem:[%s19889_s3 + $0x1610] sm:$0xff]  ;;  %v12574_v7 = vpack.c.bf16 %v10036_v4, %v10034_v2  ;;  %v10069_v2 = vld [vmem:[%s19889_s3 + $0x1840] sm:$0xff] }
 0x245   : > { %12409 = vmatpush1.bf16.msra.mxu0 %v12408_v13  ;;  %12515 = vmatprep.subr.bf16.mxu1 %v12514_v14  ;;  %v10002_v13 = vld [vmem:[%s19889_s3 + $0x1628] sm:$0xff]  ;;  %v10004_v14 = vld [vmem:[%s19889_s3 + $0x1638] sm:$0xff]  ;;  %v12540_v51 = vpack.c.bf16 %v9999_v11, %v9997_v45  ;;  %v10067_v60 = vld [vmem:[%s19889_s3 + $0x1830] sm:$0xff] }
 0x246   : > { %12411 = vmatprep.subr.bf16.mxu0 %v12410_v19  ;;  %v12542_v16 = vpack.c.bf16 %v10004_v14, %v10002_v13  ;;  %v10003_v19 = vld [vmem:[%s19889_s3 + $0x1630] sm:$0xff]  ;;  %v10038_v45 = vld [vmem:[%s19889_s3 + $0x1748] sm:$0xff]  ;;  %v10040_v11 = vld [vmem:[%s19889_s3 + $0x1758] sm:$0xff] }
 0x247   : > { %v12544_v22 = vpack.c.bf16 %v10003_v19, %v10001_v17  ;;  %v12578_v14 = vpack.c.bf16 %v10040_v11, %v10038_v45  ;;  %v10042_v17 = vld [vmem:[%s19889_s3 + $0x1768] sm:$0xff]  ;;  %v10044_v19 = vld [vmem:[%s19889_s3 + $0x1778] sm:$0xff]  ;;  %v10071_v4 = vld [vmem:[%s19889_s3 + $0x1850] sm:$0xff] }
 0x248   : > { %12517 = vmatpush1.bf16.msra.mxu1 %v12516_v25  ;;  %v10007_v25 = vld [vmem:[%s19889_s3 + $0x1650] sm:$0xff]  ;;  %v12582_v21 = vpack.c.bf16 %v10044_v19, %v10042_v17  ;;  %v10073_v45 = vld [vmem:[%s19889_s3 + $0x1860] sm:$0xff] }
 0x249   : > { %12413 = vmatpush1.bf16.msra.mxu0 %v12412_v33  ;;  %12519 = vmatprep.subr.bf16.mxu1 %v12518_v9  ;;  %v10010_v33 = vld [vmem:[%s19889_s3 + $0x1668] sm:$0xff]  ;;  %v10012_v9 = vld [vmem:[%s19889_s3 + $0x1678] sm:$0xff]  ;;  %v10075_v11 = vld [vmem:[%s19889_s3 + $0x1870] sm:$0xff] }
 0x24a   : > { %12415 = vmatprep.subr.bf16.mxu0 %v12414_v30  ;;  %v12548_v30 = vpack.c.bf16 %v10007_v25, %v10005_v24  ;;  %v12550_v34 = vpack.c.bf16 %v10012_v9, %v10010_v33  ;;  %v10046_v24 = vld [vmem:[%s19889_s3 + $0x1788] sm:$0xff]  ;;  %v10048_v25 = vld [vmem:[%s19889_s3 + $0x1798] sm:$0xff]  ;;  %v2793_v19 = vld [vmem:[%s19890_s4 + $0x10] sm:$0xff] }
 0x24b   : > { %v12586_v9 = vpack.c.bf16 %v10048_v25, %v10046_v24  ;;  %v2795_v25 = vld [vmem:[%s19890_s4 + $0x20] sm:$0xff] }
 0x24c   : > { %12521 = vmatpush1.bf16.msra.mxu1 %v12520_v39 }
 0x24d   : > { %12417 = vmatpush1.bf16.msra.mxu0 %v12416_v40  ;;  %12523 = vmatprep.subr.bf16.mxu1 %v12522_v41  ;;  %v10013_v40 = vld [vmem:[%s19889_s3 + $0x1680] sm:$0xff]  ;;  %v10015_v41 = vld [vmem:[%s19889_s3 + $0x1690] sm:$0xff] }
 0x24e   : > { %12419 = vmatprep.subr.bf16.mxu0 %v12418_v47  ;;  %v12556_v46 = vpack.c.bf16 %v10015_v41, %v10013_v40  ;;  %v10017_v47 = vld [vmem:[%s19889_s3 + $0x16a0] sm:$0xff] }
 0x250   : > { %12525 = vmatpush1.bf16.msra.mxu1 %v12524_v50  ;;  %2229 = vmatmul.mubr.f32.vlgmr.msra.gmra.mrb[6].mxu0 %v15197_v32 }
 0x251   : > { %12527 = vmatprep.subr.bf16.mxu1 %v12526_v52  ;;  %12421 = vmatpush1.bf16.msra.mxu0 %v12420_v54  ;;  %v10021_v52 = vld [vmem:[%s19889_s3 + $0x16c0] sm:$0xff]  ;;  %v10028_v54 = vld [vmem:[%s19889_s3 + $0x16f8] sm:$0xff] }
 0x252   : > { %2299 = vmatprep.mubr.f32.mxu0 %v13945_v0  ;;  %12618 = vmatprep.subr.bf16.mxu0 %v13948_v18  ;;  %v12564_v56 = vpack.c.bf16 %v10023_v53, %v10021_v52  ;;  %v12566_v57 = vpack.c.bf16 %v10028_v54, %v10026_v35  ;;  %v10061_v35 = vld [vmem:[%s19889_s3 + $0x1800] sm:$0xff]  ;;  %v10063_v54 = vld [vmem:[%s19889_s3 + $0x1810] sm:$0xff] }
 0x254   : > { %12529 = vmatpush1.bf16.msra.mxu1 %v12528_v58  ;;  %v10025_v58 = vld [vmem:[%s19889_s3 + $0x16e0] sm:$0xff] }
 0x255   : > { %12531 = vmatprep.subr.bf16.mxu1 %v12530_v15  ;;  %v10027_v15 = vld [vmem:[%s19889_s3 + $0x16f0] sm:$0xff] }
 0x256   : > { %v12568_v62 = vpack.c.bf16 %v10027_v15, %v10025_v58  ;;  %v12604_v58 = vpack.c.bf16 %v10063_v54, %v10061_v35  ;;  %v2803_v35 = vld [vmem:[%s19890_s4 + $0x60] sm:$0xff]  ;;  %v2804_v54 = vld [vmem:[%s19890_s4 + $0x68] sm:$0xff] }
 0x258   : > { %12533 = vmatpush1.bf16.msra.mxu1 %v12532_v63  ;;  %9880 = vmatmul.mubr.msk.f32.vlgmr.msra.gmra.mrb[6].mxu0 %vm1054_vm5, %v14521_v26  ;;  %v10029_v63 = vld [vmem:[%s19889_s3 + $0x1700] sm:$0xff] }
 0x259   : > { %12535 = vmatprep.subr.bf16.mxu1 %v12534_v1  ;;  %v10031_v1 = vld [vmem:[%s19889_s3 + $0x1710] sm:$0xff] }
 0x25a   : > { %v12572_v5 = vpack.c.bf16 %v10031_v1, %v10029_v63  ;;  %v12608_v63 = vpack.c.bf16 %v10067_v60, %v10065_v59  ;;  %v2805_v59 = vld [vmem:[%s19890_s4 + $0x70] sm:$0xff]  ;;  %v2806_v60 = vld [vmem:[%s19890_s4 + $0x78] sm:$0xff] }
 0x25c   : > { %12537 = vmatpush1.bf16.msra.mxu1 %v12536_v8  ;;  %v10033_v8 = vld [vmem:[%s19889_s3 + $0x1720] sm:$0xff] }
 0x25d   : > { %12539 = vmatprep.subr.bf16.mxu1 %v12538_v10  ;;  %v10035_v10 = vld [vmem:[%s19889_s3 + $0x1730] sm:$0xff] }
 0x25e   : > { %v12576_v13 = vpack.c.bf16 %v10035_v10, %v10033_v8  ;;  %v12612_v8 = vpack.c.bf16 %v10071_v4, %v10069_v2  ;;  %v2807_v2 = vld [vmem:[%s19890_s4 + $0x80] sm:$0xff]  ;;  %v2808_v4 = vld [vmem:[%s19890_s4 + $0x88] sm:$0xff] }
 0x260   : > { %12541 = vmatpush1.bf16.msra.mxu1 %v12540_v51  ;;  %v10037_v51 = vld [vmem:[%s19889_s3 + $0x1740] sm:$0xff] }
 0x261   : > { %12543 = vmatprep.subr.bf16.mxu1 %v12542_v16  ;;  %v10039_v16 = vld [vmem:[%s19889_s3 + $0x1750] sm:$0xff] }
 0x262   : > { %v12580_v20 = vpack.c.bf16 %v10039_v16, %v10037_v51  ;;  %v10081_v51 = vld [vmem:[%s19890_s4 + $0xd0] sm:$0xff]  ;;  %v2791_v16 = vld [vmem:[%s19890_s4] sm:$0xff] }
 0x263   : > { %v1266_v27 = vpop.f32.mrb[4].mxu0 }
 0x264   : > { %12545 = vmatpush1.bf16.msra.mxu1 %v12544_v22  ;;  %v16421_v28 = vadd.f32 %v15822_v6, %v1266_v27  ;;  %v1268_v29 = vpop.f32.mrb[5].mxu0  ;;  %v10014_v6 = vld [vmem:[%s19889_s3 + $0x1688] sm:$0xff]  ;;  %v10041_v22 = vld [vmem:[%s19889_s3 + $0x1760] sm:$0xff] }
 0x265   : > { %v16424_v31 = vadd.f32 %v15833_v12, %v1268_v29  ;;  %12547 = vmatprep.subr.bf16.mxu1 %v12546_v23  ;;  %v12552_v12 = vpack.c.bf16 %v10011_v37, %v10009_v36  ;;  %v12554_v39 = vpack.c.bf16 %v10016_v38, %v10014_v6  ;;  %v10043_v23 = vld [vmem:[%s19889_s3 + $0x1770] sm:$0xff]  ;;  %v10045_v27 = vld [vmem:[%s19889_s3 + $0x1780] sm:$0xff] }
 0x266   : > { %v12584_v33 = vpack.c.bf16 %v10043_v23, %v10041_v22  ;;  %v10047_v29 = vld [vmem:[%s19889_s3 + $0x1790] sm:$0xff]  ;;  %v10049_v6 = vld [vmem:[%s19889_s3 + $0x17a0] sm:$0xff]  ;;  %v10082_v22 = vld [vmem:[%s19890_s4 + $0xd8] sm:$0xff] }
 0x267   : > { %v12588_v36 = vpack.c.bf16 %v10047_v29, %v10045_v27  ;;  %v10051_v38 = vld [vmem:[%s19889_s3 + $0x17b0] sm:$0xff]  ;;  %v10083_v23 = vld [vmem:[%s19890_s4 + $0xe0] sm:$0xff]  ;;  %v10084_v27 = vld [vmem:[%s19890_s4 + $0xe8] sm:$0xff] }
 0x268   : > { %12549 = vmatpush1.bf16.msra.mxu1 %v12548_v30  ;;  %v10050_v30 = vld [vmem:[%s19889_s3 + $0x17a8] sm:$0xff]  ;;  %v12592_v40 = vpack.c.bf16 %v10051_v38, %v10049_v6  ;;  %v10085_v29 = vld [vmem:[%s19890_s4 + $0xf0] sm:$0xff]  ;;  %v10087_v6 = vld [vmem:[%s19890_s4 + $0x100] sm:$0xff] }
 0x269   : > { %12551 = vmatprep.subr.bf16.mxu1 %v12550_v34  ;;  %v10052_v34 = vld [vmem:[%s19889_s3 + $0x17b8] sm:$0xff] }
 0x26a   : > { %v12590_v37 = vpack.c.bf16 %v10052_v34, %v10050_v30  ;;  %v2798_v34 = vld [vmem:[%s19890_s4 + $0x38] sm:$0xff] }
 0x26b   : > { %2641 = vmatmul.mubr.f32.vlgmr.msra.gmra.mrb[8].mxu1 %v14803_v61  ;;  %v10024_v61 = vld [vmem:[%s19889_s3 + $0x16d8] sm:$0xff] }
 0x26c   : > { %12553 = vmatpush1.bf16.msra.mxu1 %v12552_v12  ;;  %2711 = vmatprep.mubr.f32.mxu1 %v14814_v3  ;;  %v12560_v3 = vpack.c.bf16 %v10019_v48, %v10017_v47  ;;  %v12562_v50 = vpack.c.bf16 %v10024_v61, %v10022_v49  ;;  %v10054_v12 = vld [vmem:[%s19889_s3 + $0x17c8] sm:$0xff]  ;;  %v12596_v47 = vpack.c.bf16 %v10055_v43, %v10053_v42  ;;  %v10057_v49 = vld [vmem:[%s19889_s3 + $0x17e0] sm:$0xff]  ;;  %v10059_v61 = vld [vmem:[%s19889_s3 + $0x17f0] sm:$0xff] }
 0x26d   : > { %12555 = vmatprep.subr.bf16.mxu1 %v12554_v39  ;;  %v10056_v39 = vld [vmem:[%s19889_s3 + $0x17d8] sm:$0xff]  ;;  %v12600_v52 = vpack.c.bf16 %v10059_v61, %v10057_v49  ;;  %v10089_v42 = vld [vmem:[%s19890_s4 + $0x110] sm:$0xff] }
 0x26e   : > { %v12594_v41 = vpack.c.bf16 %v10056_v39, %v10054_v12  ;;  %v2799_v12 = vld [vmem:[%s19890_s4 + $0x40] sm:$0xff]  ;;  %v2800_v39 = vld [vmem:[%s19890_s4 + $0x48] sm:$0xff] }
 0x26f   : > { %v12631_v43 = vpack.c.bf16 %v2800_v39, %v2799_v12  ;;  %v10116_v12 = vld [vmem:[%s19890_s4 + $0x198] sm:$0xff] }
 0x270   : > { %12557 = vmatpush1.bf16.msra.mxu1 %v12556_v46  ;;  %v10058_v46 = vld [vmem:[%s19889_s3 + $0x17e8] sm:$0xff] }
 0x271   : > { %12559 = vmatprep.subr.bf16.mxu1 %v12558_v44  ;;  %v10060_v44 = vld [vmem:[%s19889_s3 + $0x17f8] sm:$0xff] }
 0x272   : > { %v12598_v48 = vpack.c.bf16 %v10060_v44, %v10058_v46  ;;  %v2801_v44 = vld [vmem:[%s19890_s4 + $0x50] sm:$0xff] }
 0x274   : > { %12561 = vmatpush1.bf16.msra.mxu1 %v12560_v3  ;;  %v10062_v3 = vld [vmem:[%s19889_s3 + $0x1808] sm:$0xff] }
 0x275   : > { %12563 = vmatprep.subr.bf16.mxu1 %v12562_v50  ;;  %v10064_v50 = vld [vmem:[%s19889_s3 + $0x1818] sm:$0xff] }
 0x276   : > { %v12602_v53 = vpack.c.bf16 %v10064_v50, %v10062_v3  ;;  %v10090_v50 = vld [vmem:[%s19890_s4 + $0x118] sm:$0xff] }
 0x278   : > { %12565 = vmatpush1.bf16.msra.mxu1 %v12564_v56  ;;  %v10066_v56 = vld [vmem:[%s19889_s3 + $0x1828] sm:$0xff] }
 0x279   : > { %12567 = vmatprep.subr.bf16.mxu1 %v12566_v57  ;;  %v10068_v57 = vld [vmem:[%s19889_s3 + $0x1838] sm:$0xff] }
 0x27a   : > { %v12606_v15 = vpack.c.bf16 %v10068_v57, %v10066_v56  ;;  %v10092_v57 = vld [vmem:[%s19890_s4 + $0x128] sm:$0xff] }
 0x27c   : > { %12569 = vmatpush1.bf16.msra.mxu1 %v12568_v62  ;;  %v10070_v62 = vld [vmem:[%s19889_s3 + $0x1848] sm:$0xff] }
 0x27d   : > { %12571 = vmatprep.subr.bf16.mxu1 %v12570_v55  ;;  %v10072_v55 = vld [vmem:[%s19889_s3 + $0x1858] sm:$0xff] }
 0x27e   : > { %v12610_v1 = vpack.c.bf16 %v10072_v55, %v10070_v62  ;;  %v10094_v55 = vld [vmem:[%s19890_s4 + $0x138] sm:$0xff] }
 0x280   : > { %12573 = vmatpush1.bf16.msra.mxu1 %v12572_v5  ;;  %v10074_v5 = vld [vmem:[%s19889_s3 + $0x1868] sm:$0xff] }
 0x281   : > { %12575 = vmatprep.subr.bf16.mxu1 %v12574_v7  ;;  %v10076_v7 = vld [vmem:[%s19889_s3 + $0x1878] sm:$0xff] }
 0x282   : > { %v12614_v10 = vpack.c.bf16 %v10076_v7, %v10074_v5  ;;  %v10096_v7 = vld [vmem:[%s19890_s4 + $0x148] sm:$0xff] }
 0x284   : > { %12577 = vmatpush1.bf16.msra.mxu1 %v12576_v13  ;;  %v12616_v13 = vpack.c.bf16 %v10075_v11, %v10073_v45  ;;  %v2809_v45 = vld [vmem:[%s19890_s4 + $0x90] sm:$0xff]  ;;  %v2810_v11 = vld [vmem:[%s19890_s4 + $0x98] sm:$0xff] }
 0x285   : > { %12579 = vmatprep.subr.bf16.mxu1 %v12578_v14  ;;  %v10080_v14 = vld [vmem:[%s19890_s4 + $0xc8] sm:$0xff] }
 0x288   : > { %12581 = vmatpush1.bf16.msra.mxu1 %v12580_v20  ;;  %v2794_v20 = vld [vmem:[%s19890_s4 + $0x18] sm:$0xff] }
 0x289   : > { %12583 = vmatprep.subr.bf16.mxu1 %v12582_v21  ;;  %v12655_v21 = vpack.c.bf16 %v10081_v51, %v10080_v14  ;;  %v12622_v24 = vpack.c.bf16 %v2794_v20, %v2793_v19  ;;  %v10098_v14 = vld [vmem:[%s19890_s4 + $0x158] sm:$0xff]  ;;  %v10099_v51 = vld [vmem:[%s19890_s4 + $0x160] sm:$0xff]  ;;  %v10100_v20 = vld [vmem:[%s19890_s4 + $0x168] sm:$0xff] }
 0x28a   : > { %v12682_v19 = vpack.c.bf16 %v10099_v51, %v10098_v14  ;;  %v10179_v14 = vld [vmem:[%s19890_s4 + $0x320] sm:$0xff]  ;;  %v10180_v51 = vld [vmem:[%s19890_s4 + $0x328] sm:$0xff] }
 0x28c   : > { %12585 = vmatpush1.bf16.msra.mxu1 %v12584_v33  ;;  %v2796_v33 = vld [vmem:[%s19890_s4 + $0x28] sm:$0xff] }
 0x28d   : > { %12587 = vmatprep.subr.bf16.mxu1 %v12586_v9  ;;  %v12658_v9 = vpack.c.bf16 %v10083_v23, %v10082_v22  ;;  %v12625_v30 = vpack.c.bf16 %v2796_v33, %v2795_v25  ;;  %v10103_v25 = vld [vmem:[%s19890_s4 + $0x180] sm:$0xff] }
 0x290   : > { %12589 = vmatpush1.bf16.msra.mxu1 %v12588_v36  ;;  %v12661_v36 = vpack.c.bf16 %v10085_v29, %v10084_v27  ;;  %v2814_v27 = vld [vmem:[%s19890_s4 + $0xb8] sm:$0xff] }
 0x291   : > { %12591 = vmatprep.subr.bf16.mxu1 %v12590_v37  ;;  %v10086_v37 = vld [vmem:[%s19890_s4 + $0xf8] sm:$0xff] }
 0x294   : > { %12593 = vmatpush1.bf16.msra.mxu1 %v12592_v40  ;;  %v12664_v40 = vpack.c.bf16 %v10087_v6, %v10086_v37 }
 0x295   : > { %12595 = vmatprep.subr.bf16.mxu1 %v12594_v41  ;;  %v10088_v41 = vld [vmem:[%s19890_s4 + $0x108] sm:$0xff] }
 0x296   : > { %v12667_v3 = vpack.c.bf16 %v10089_v42, %v10088_v41 }
 0x298   : > { %12597 = vmatpush1.bf16.msra.mxu1 %v12596_v47  ;;  %v2802_v47 = vld [vmem:[%s19890_s4 + $0x58] sm:$0xff] }
 0x299   : > { %12599 = vmatprep.subr.bf16.mxu1 %v12598_v48 }
 0x29c   : > { %12601 = vmatpush1.bf16.msra.mxu1 %v12600_v52  ;;  %v10091_v52 = vld [vmem:[%s19890_s4 + $0x120] sm:$0xff] }
 0x29d   : > { %12603 = vmatprep.subr.bf16.mxu1 %v12602_v53  ;;  %v12634_v53 = vpack.c.bf16 %v2802_v47, %v2801_v44  ;;  %v12670_v56 = vpack.c.bf16 %v10091_v52, %v10090_v50  ;;  %v10119_v44 = vld [vmem:[%s19890_s4 + $0x1b0] sm:$0xff]  ;;  %v10120_v47 = vld [vmem:[%s19890_s4 + $0x1b8] sm:$0xff] }
 0x29e   : > { %v10123_v50 = vld [vmem:[%s19890_s4 + $0x1d0] sm:$0xff]  ;;  %v10124_v52 = vld [vmem:[%s19890_s4 + $0x1d8] sm:$0xff] }
 0x2a0   : > { %12605 = vmatpush1.bf16.msra.mxu1 %v12604_v58  ;;  %v10093_v58 = vld [vmem:[%s19890_s4 + $0x130] sm:$0xff] }
 0x2a1   : > { %12607 = vmatprep.subr.bf16.mxu1 %v12606_v15  ;;  %v12637_v15 = vpack.c.bf16 %v2804_v54, %v2803_v35  ;;  %v12673_v62 = vpack.c.bf16 %v10093_v58, %v10092_v57  ;;  %v10125_v35 = vld [vmem:[%s19890_s4 + $0x1e0] sm:$0xff]  ;;  %v10126_v54 = vld [vmem:[%s19890_s4 + $0x1e8] sm:$0xff]  ;;  %v10127_v57 = vld [vmem:[%s19890_s4 + $0x1f0] sm:$0xff] }
 0x2a2   : > { %v10128_v58 = vld [vmem:[%s19890_s4 + $0x1f8] sm:$0xff] }
 0x2a4   : > { %12609 = vmatpush1.bf16.msra.mxu1 %v12608_v63  ;;  %v10095_v63 = vld [vmem:[%s19890_s4 + $0x140] sm:$0xff] }
 0x2a5   : > { %12611 = vmatprep.subr.bf16.mxu1 %v12610_v1  ;;  %v12640_v1 = vpack.c.bf16 %v2806_v60, %v2805_v59  ;;  %v12676_v5 = vpack.c.bf16 %v10095_v63, %v10094_v55  ;;  %v10129_v59 = vld [vmem:[%s19890_s4 + $0x200] sm:$0xff]  ;;  %v10130_v60 = vld [vmem:[%s19890_s4 + $0x208] sm:$0xff]  ;;  %v10131_v55 = vld [vmem:[%s19890_s4 + $0x210] sm:$0xff] }
 0x2a6   : > { %v10132_v63 = vld [vmem:[%s19890_s4 + $0x218] sm:$0xff] }
 0x2a8   : > { %12613 = vmatpush1.bf16.msra.mxu1 %v12612_v8  ;;  %v10097_v8 = vld [vmem:[%s19890_s4 + $0x150] sm:$0xff] }
 0x2a9   : > { %12615 = vmatprep.subr.bf16.mxu1 %v12614_v10  ;;  %v12643_v10 = vpack.c.bf16 %v2808_v4, %v2807_v2  ;;  %v10133_v2 = vld [vmem:[%s19890_s4 + $0x220] sm:$0xff]  ;;  %v10134_v4 = vld [vmem:[%s19890_s4 + $0x228] sm:$0xff] }
 0x2ab   : > { %2712 = vmatmul.mubr.f32.vlgmr.msra.gmra.mrb[8].mxu1 %v15197_v32  ;;  %v2792_v32 = vld [vmem:[%s19890_s4 + $0x8] sm:$0xff] }
 0x2ac   : > { %12617 = vmatpush1.bf16.msra.mxu1 %v12616_v13  ;;  %2782 = vmatprep.mubr.f32.mxu1 %v13945_v0  ;;  %v12619_v17 = vpack.c.bf16 %v2792_v32, %v2791_v16  ;;  %v12679_v13 = vpack.c.bf16 %v10097_v8, %v10096_v7  ;;  %v12646_v16 = vpack.c.bf16 %v2810_v11, %v2809_v45  ;;  %v2811_v32 = vld [vmem:[%s19890_s4 + $0xa0] sm:$0xff]  ;;  %v10135_v7 = vld [vmem:[%s19890_s4 + $0x230] sm:$0xff]  ;;  %v10136_v8 = vld [vmem:[%s19890_s4 + $0x238] sm:$0xff] }
 0x2ad   : > { %12654 = vmatprep.subr.bf16.mxu1 %v13948_v18  ;;  %v10137_v45 = vld [vmem:[%s19890_s4 + $0x240] sm:$0xff]  ;;  %v10138_v11 = vld [vmem:[%s19890_s4 + $0x248] sm:$0xff] }
 0x2ae   : > { %12620 = vmatpush1.bf16.msra.mxu0 %v12619_v17  ;;  %v2812_v17 = vld [vmem:[%s19890_s4 + $0xa8] sm:$0xff] }
 0x2af   : > { %12621 = vmatprep.subr.bf16.mxu0 %v13948_v18  ;;  %v12649_v22 = vpack.c.bf16 %v2812_v17, %v2811_v32  ;;  %v12763_v32 = vpack.c.bf16 %v10180_v51, %v10179_v14  ;;  %v10181_v17 = vld [vmem:[%s19890_s4 + $0x330] sm:$0xff]  ;;  %v10257_v14 = vld [vmem:[%s19890_s4 + $0x520] sm:$0xff]  ;;  %v10258_v51 = vld [vmem:[%s19890_s4 + $0x528] sm:$0xff] }
 0x2b2   : > { %12623 = vmatpush1.bf16.msra.mxu0 %v12622_v24  ;;  %v10102_v24 = vld [vmem:[%s19890_s4 + $0x178] sm:$0xff] }
 0x2b3   : > { %10077 = vmatmul.mubr.msk.f32.vlgmr.msra.gmra.mrb[8].mxu1 %vm1054_vm5, %v14521_v26  ;;  %12624 = vmatprep.subr.bf16.mxu0 %v13948_v18  ;;  %v2797_v26 = vld [vmem:[%s19890_s4 + $0x30] sm:$0xff]  ;;  %v12688_v33 = vpack.c.bf16 %v10103_v25, %v10102_v24  ;;  %v10186_v25 = vld [vmem:[%s19890_s4 + $0x358] sm:$0xff] }
 0x2b4   : > { %12656 = vmatpush1.bf16.msra.mxu1 %v12655_v21  ;;  %v12628_v38 = vpack.c.bf16 %v2798_v34, %v2797_v26  ;;  %v10101_v21 = vld [vmem:[%s19890_s4 + $0x170] sm:$0xff]  ;;  %v2815_v26 = vld [vmem:[%s19890_s4 + $0xc0] sm:$0xf] }
 0x2b5   : > { %12657 = vmatprep.subr.bf16.mxu1 %v13948_v18  ;;  %v12685_v23 = vpack.c.bf16 %v10101_v21, %v10100_v20  ;;  %v10183_v21 = vld [vmem:[%s19890_s4 + $0x340] sm:$0xff]  ;;  %v10185_v24 = vld [vmem:[%s19890_s4 + $0x350] sm:$0xff] }
 0x2b6   : > { %12626 = vmatpush1.bf16.msra.mxu0 %v12625_v30  ;;  %v10104_v30 = vld [vmem:[%s19890_s4 + $0x188] sm:$0xf] }
 0x2b7   : > { %12627 = vmatprep.subr.bf16.mxu0 %v13948_v18 }
 0x2b8   : > { %12659 = vmatpush1.bf16.msra.mxu1 %v12658_v9  ;;  %v2813_v9 = vld [vmem:[%s19890_s4 + $0xb0] sm:$0xff] }
 0x2b9   : > { %12660 = vmatprep.subr.bf16.mxu1 %v13948_v18  ;;  %v12652_v29 = vpack.c.bf16 %v2814_v27, %v2813_v9  ;;  %v10187_v9 = vld [vmem:[%s19890_s4 + $0x360] sm:$0xff]  ;;  %v10188_v27 = vld [vmem:[%s19890_s4 + $0x368] sm:$0xff] }
 0x2ba   : > { %12629 = vmatpush1.bf16.msra.mxu0 %v12628_v38  ;;  %v10115_v38 = vld [vmem:[%s19890_s4 + $0x190] sm:$0xff] }
 0x2bb   : > { %12630 = vmatprep.subr.bf16.mxu0 %v13948_v18  ;;  %v12691_v42 = vpack.c.bf16 %v10116_v12, %v10115_v38  ;;  %v10193_v38 = vld [vmem:[%s19890_s4 + $0x390] sm:$0xff]  ;;  %v10194_v12 = vld [vmem:[%s19890_s4 + $0x398] sm:$0xff] }
 0x2bc   : > { %12662 = vmatpush1.bf16.msra.mxu1 %v12661_v36 }
 0x2bd   : > { %12663 = vmatprep.subr.bf16.mxu1 %v13948_v18 }
 0x2be   : > { %v16697_v46 = vpop.f32.mrb[6].mxu1  ;;  %12632 = vmatpush1.bf16.msra.mxu0 %v12631_v43  ;;  %v10118_v43 = vld [vmem:[%s19890_s4 + $0x1a8] sm:$0xff] }
 0x2bf   : > { %v1823_v48 = vmax.f32 %v16421_v28, %v16697_v46  ;;  %v16708_v49 = vpop.f32.mrb[7].mxu1  ;;  %12633 = vmatprep.subr.bf16.mxu0 %v13948_v18 }
 0x2c0   : > { %v1824_v61 = vmax.f32 %v16424_v31, %v16708_v49  ;;  %12665 = vmatpush1.bf16.msra.mxu1 %v12664_v40  ;;  %v10117_v31 = vld [vmem:[%s19890_s4 + $0x1a0] sm:$0xff] }
 0x2c1   : > { %12666 = vmatprep.subr.bf16.mxu1 %v13948_v18  ;;  %v12694_v46 = vpack.c.bf16 %v10118_v43, %v10117_v31  ;;  %v10121_v49 = vld [vmem:[%s19890_s4 + $0x1c0] sm:$0xff]  ;;  %v10197_v43 = vld [vmem:[%s19890_s4 + $0x3b0] sm:$0xff] }
 0x2c2   : > { %12635 = vmatpush1.bf16.msra.mxu0 %v12634_v53  ;;  %v12703_v53 = vpack.c.bf16 %v10124_v52, %v10123_v50  ;;  %v10202_v50 = vld [vmem:[%s19890_s4 + $0x3d8] sm:$0xff] }
 0x2c3   : > { %12636 = vmatprep.subr.bf16.mxu0 %v13948_v18 }
 0x2c4   : > { %12668 = vmatpush1.bf16.msra.mxu1 %v12667_v3 }
 0x2c5   : > { %12669 = vmatprep.subr.bf16.mxu1 %v13948_v18 }
 0x2c6   : > { %12638 = vmatpush1.bf16.msra.mxu0 %v12637_v15  ;;  %v12709_v15 = vpack.c.bf16 %v10128_v58, %v10127_v57  ;;  %v10245_v57 = vld [vmem:[%s19890_s4 + $0x4c0] sm:$0xff]  ;;  %v10246_v58 = vld [vmem:[%s19890_s4 + $0x4c8] sm:$0xff] }
 0x2c7   : > { %12639 = vmatprep.subr.bf16.mxu0 %v13948_v18 }
 0x2c8   : > { %12671 = vmatpush1.bf16.msra.mxu1 %v12670_v56  ;;  %v12706_v56 = vpack.c.bf16 %v10126_v54, %v10125_v35  ;;  %v10244_v35 = vld [vmem:[%s19890_s4 + $0x4b8] sm:$0xff]  ;;  %v10203_v54 = vld [vmem:[%s19890_s4 + $0x3e0] sm:$0xf] }
 0x2c9   : > { %12672 = vmatprep.subr.bf16.mxu1 %v13948_v18 }
 0x2ca   : > { %12641 = vmatpush1.bf16.msra.mxu0 %v12640_v1  ;;  %v12715_v1 = vpack.c.bf16 %v10132_v63, %v10131_v55  ;;  %v10249_v55 = vld [vmem:[%s19890_s4 + $0x4e0] sm:$0xff]  ;;  %v10250_v63 = vld [vmem:[%s19890_s4 + $0x4e8] sm:$0xff] }
 0x2cb   : > { %12642 = vmatprep.subr.bf16.mxu0 %v13948_v18 }
 0x2cc   : > { %12674 = vmatpush1.bf16.msra.mxu1 %v12673_v62  ;;  %v12712_v62 = vpack.c.bf16 %v10130_v60, %v10129_v59  ;;  %v10247_v59 = vld [vmem:[%s19890_s4 + $0x4d0] sm:$0xff]  ;;  %v10248_v60 = vld [vmem:[%s19890_s4 + $0x4d8] sm:$0xff] }
 0x2cd   : > { %12675 = vmatprep.subr.bf16.mxu1 %v13948_v18 }
 0x2ce   : > { %12644 = vmatpush1.bf16.msra.mxu0 %v12643_v10  ;;  %v12721_v10 = vpack.c.bf16 %v10136_v8, %v10135_v7  ;;  %v10253_v7 = vld [vmem:[%s19890_s4 + $0x500] sm:$0xff]  ;;  %v10254_v8 = vld [vmem:[%s19890_s4 + $0x508] sm:$0xff] }
 0x2cf   : > { %12645 = vmatprep.subr.bf16.mxu0 %v13948_v18 }
 0x2d0   : > { %12677 = vmatpush1.bf16.msra.mxu1 %v12676_v5  ;;  %v12718_v5 = vpack.c.bf16 %v10134_v4, %v10133_v2  ;;  %v10251_v2 = vld [vmem:[%s19890_s4 + $0x4f0] sm:$0xff]  ;;  %v10252_v4 = vld [vmem:[%s19890_s4 + $0x4f8] sm:$0xff] }
 0x2d1   : > { %12678 = vmatprep.subr.bf16.mxu1 %v13948_v18 }
 0x2d2   : > { %12647 = vmatpush1.bf16.msra.mxu0 %v12646_v16  ;;  %v10139_v16 = vld [vmem:[%s19890_s4 + $0x250] sm:$0xf] }
 0x2d3   : > { %12648 = vmatprep.subr.bf16.mxu0 %v13948_v18 }
 0x2d4   : > { %12680 = vmatpush1.bf16.msra.mxu1 %v12679_v13  ;;  %v12724_v13 = vpack.c.bf16 %v10138_v11, %v10137_v45  ;;  %v10255_v45 = vld [vmem:[%s19890_s4 + $0x510] sm:$0xff]  ;;  %v10256_v11 = vld [vmem:[%s19890_s4 + $0x518] sm:$0xff] }
 0x2d5   : > { %12681 = vmatprep.subr.bf16.mxu1 %v13948_v18 }
 0x2d6   : > { %12650 = vmatpush1.bf16.msra.mxu0 %v12649_v22  ;;  %v10184_v22 = vld [vmem:[%s19890_s4 + $0x348] sm:$0xff] }
 0x2d7   : > { %12651 = vmatprep.subr.bf16.mxu0 %v13948_v18 }
 0x2d8   : > { %12683 = vmatpush1.bf16.msra.mxu1 %v12682_v19  ;;  %v10182_v19 = vld [vmem:[%s19890_s4 + $0x338] sm:$0xff] }
 0x2d9   : > { %12684 = vmatprep.subr.bf16.mxu1 %v13948_v18  ;;  %v12766_v20 = vpack.c.bf16 %v10182_v19, %v10181_v17  ;;  %v10260_v17 = vld [vmem:[%s19890_s4 + $0x538] sm:$0xff] }
 0x2da   : > { %12653 = vmatpush1.bf16.msra.mxu0 %v12652_v29  ;;  %v12775_v29 = vpack.c.bf16 %v10188_v27, %v10187_v9  ;;  %v10266_v9 = vld [vmem:[%s19890_s4 + $0x568] sm:$0xff] }
 0x2db   : > { %2872 = vmatprep.subr.mxu0 %v13945_v0 }
 0x2dc   : > { %12686 = vmatpush1.bf16.msra.mxu1 %v12685_v23  ;;  %v12769_v23 = vpack.c.bf16 %v10184_v22, %v10183_v21  ;;  %v10262_v21 = vld [vmem:[%s19890_s4 + $0x548] sm:$0xff] }
 0x2dd   : > { %12687 = vmatprep.subr.bf16.mxu1 %v13948_v18 }
 0x2de   : > { %10078 = vmatpush1.msk.msra.mxu0 %vm2820_vm6, %v2815_v26  ;;  %v10190_v26 = vld [vmem:[%s19890_s4 + $0x378] sm:$0xff] }
 0x2e0   : > { %12689 = vmatpush1.bf16.msra.mxu1 %v12688_v33  ;;  %v12772_v33 = vpack.c.bf16 %v10186_v25, %v10185_v24  ;;  %v10264_v24 = vld [vmem:[%s19890_s4 + $0x558] sm:$0xff] }
 0x2e1   : > { %2973 = vmatprep.subr.mxu1 %v13945_v0 }
 0x2e4   : > { %10105 = vmatpush1.msk.msra.mxu1 %vm2820_vm6, %v10104_v30  ;;  %v10189_v30 = vld [vmem:[%s19890_s4 + $0x370] sm:$0xff] }
 0x2e5   : > { %12690 = vmatprep.subr.bf16.mxu1 %v13948_v18 }
 0x32b   : > { %v2301_v34 = vpop.f32.mrb[6].mxu0 }
 0x32c   : > { %v2306_v36 = vmax.f32 %v1823_v48, %v2301_v34  ;;  %v2303_v37 = vpop.f32.mrb[7].mxu0  ;;  %v12697_v48 = vpack.c.bf16 %v10120_v47, %v10119_v44  ;;  %v12778_v34 = vpack.c.bf16 %v10190_v26, %v10189_v30  ;;  %v10199_v47 = vld [vmem:[%s19890_s4 + $0x3c0] sm:$0xff]  ;;  %v10308_v30 = vld [vmem:[%s19890_s4 + $0x648] sm:$0xff]  ;;  %v10267_v26 = vld [vmem:[%s19890_s4 + $0x570] sm:$0xf] }
 0x32d   : > { %v2307_v6 = vmax.f32 %v1824_v61, %v2303_v37  ;;  %v10122_v61 = vld [vmem:[%s19890_s4 + $0x1c8] sm:$0xff] }
 0x32e   : > { %v12700_v3 = vpack.c.bf16 %v10122_v61, %v10121_v49  ;;  %v10192_v37 = vld [vmem:[%s19890_s4 + $0x388] sm:$0xff]  ;;  %v10107_v49 = vld [vmem:[%s19891_s5 + $0x10] sm:$0xff] }
 0x386   : > { %v2784_v39 = vpop.f32.mrb[8].mxu1 }
 0x387   : > { %v16828_v40 = vmax.f32 %v2306_v36, %v2784_v39  ;;  %v2786_v41 = vpop.f32.mrb[9].mxu1  ;;  %v10191_v36 = vld [vmem:[%s19890_s4 + $0x380] sm:$0xff]  ;;  %v12784_v39 = vpack.c.bf16 %v10194_v12, %v10193_v38  ;;  %v10312_v12 = vld [vmem:[%s19890_s4 + $0x668] sm:$0xff] }
 0x388   : > { %v16830_v28 = vmax.f32 %v2307_v6, %v2786_v41  ;;  %v12781_v6 = vpack.c.bf16 %v10192_v37, %v10191_v36  ;;  %v10195_v41 = vld [vmem:[%s19890_s4 + $0x3a0] sm:$0xff]  ;;  %v10309_v36 = vld [vmem:[%s19890_s4 + $0x650] sm:$0xff]  ;;  %v10310_v37 = vld [vmem:[%s19890_s4 + $0x658] sm:$0xff] }
 0x389   : > { %v10311_v38 = vld [vmem:[%s19890_s4 + $0x660] sm:$0xff] }
 0x38a   : > { %10079 = vmatprep.mubr.msk.f32.mxu0 %vm2816_vm7, %v16830_v28  ;;  %10106 = vmatprep.mubr.msk.f32.mxu1 %vm2816_vm7, %v16830_v28 }
 0x38b   : > { %2889 = vmatmul.mubr.f32.vlgmr.msra.gmra.mrb[8].mxu0 %v16828_v40  ;;  %2990 = vmatmul.mubr.f32.vlgmr.msra.gmra.mrb[10].mxu1 %v16828_v40 }
 0x38c   : > { %12692 = vmatpush1.bf16.msra.mxu1 %v12691_v42  ;;  %10141 = vmatprep.mubr.msk.f32.mxu1 %vm2816_vm7, %v16830_v28  ;;  %v10196_v42 = vld [vmem:[%s19890_s4 + $0x3a8] sm:$0xff] }
 0x38d   : > { %12693 = vmatprep.subr.bf16.mxu1 %v13948_v18  ;;  %v12787_v31 = vpack.c.bf16 %v10196_v42, %v10195_v41  ;;  %11279 = vmatprep.mubr.msk.f32.mxu0 %vm2998_vm8, %v10107_v49  ;;  %v10313_v41 = vld [vmem:[%s19890_s4 + $0x670] sm:$0xff]  ;;  %v10314_v42 = vld [vmem:[%s19890_s4 + $0x678] sm:$0xff] }
 0x390   : > { %12695 = vmatpush1.bf16.msra.mxu1 %v12694_v46  ;;  %v10198_v46 = vld [vmem:[%s19890_s4 + $0x3b8] sm:$0xff] }
 0x391   : > { %12696 = vmatprep.subr.bf16.mxu1 %v13948_v18  ;;  %v12790_v44 = vpack.c.bf16 %v10198_v46, %v10197_v43  ;;  %v10315_v43 = vld [vmem:[%s19890_s4 + $0x680] sm:$0xff]  ;;  %v10316_v46 = vld [vmem:[%s19890_s4 + $0x688] sm:$0xff] }
 0x394   : > { %12698 = vmatpush1.bf16.msra.mxu1 %v12697_v48  ;;  %v10200_v48 = vld [vmem:[%s19890_s4 + $0x3c8] sm:$0xff] }
 0x395   : > { %12699 = vmatprep.subr.bf16.mxu1 %v13948_v18  ;;  %v12793_v61 = vpack.c.bf16 %v10200_v48, %v10199_v47  ;;  %v10317_v47 = vld [vmem:[%s19890_s4 + $0x690] sm:$0xff]  ;;  %v10318_v48 = vld [vmem:[%s19890_s4 + $0x698] sm:$0xff] }
 0x396   : > { %v12922_v49 = vpack.c.bf16 %v10318_v48, %v10317_v47  ;;  %v10391_v47 = vld [vmem:[%s19890_s4 + $0x870] sm:$0xff]  ;;  %v10392_v48 = vld [vmem:[%s19890_s4 + $0x878] sm:$0xff] }
 0x398   : > { %12701 = vmatpush1.bf16.msra.mxu1 %v12700_v3  ;;  %v10201_v3 = vld [vmem:[%s19890_s4 + $0x3d0] sm:$0xff] }
 0x399   : > { %12702 = vmatprep.subr.bf16.mxu1 %v13948_v18  ;;  %v12796_v52 = vpack.c.bf16 %v10202_v50, %v10201_v3  ;;  %v10320_v3 = vld [vmem:[%s19890_s4 + $0x6a8] sm:$0xff] }
 0x39c   : > { %12704 = vmatpush1.bf16.msra.mxu1 %v12703_v53  ;;  %v10243_v53 = vld [vmem:[%s19890_s4 + $0x4b0] sm:$0xff] }
 0x39d   : > { %12705 = vmatprep.subr.bf16.mxu1 %v13948_v18 }
 0x3a0   : > { %12707 = vmatpush1.bf16.msra.mxu1 %v12706_v56  ;;  %v12835_v56 = vpack.c.bf16 %v10244_v35, %v10243_v53  ;;  %v10322_v53 = vld [vmem:[%s19890_s4 + $0x6b8] sm:$0xff] }
 0x3a1   : > { %12708 = vmatprep.subr.bf16.mxu1 %v13948_v18 }
 0x3a4   : > { %12710 = vmatpush1.bf16.msra.mxu1 %v12709_v15  ;;  %v12838_v15 = vpack.c.bf16 %v10246_v58, %v10245_v57  ;;  %v10325_v58 = vld [vmem:[%s19890_s4 + $0x6d0] sm:$0xff] }
 0x3a5   : > { %12711 = vmatprep.subr.bf16.mxu1 %v13948_v18 }
 0x3a8   : > { %12713 = vmatpush1.bf16.msra.mxu1 %v12712_v62  ;;  %v12841_v62 = vpack.c.bf16 %v10248_v60, %v10247_v59  ;;  %v10327_v60 = vld [vmem:[%s19890_s4 + $0x6e0] sm:$0xff] }
 0x3a9   : > { %12714 = vmatprep.subr.bf16.mxu1 %v13948_v18 }
 0x3ac   : > { %12716 = vmatpush1.bf16.msra.mxu1 %v12715_v1  ;;  %v12844_v1 = vpack.c.bf16 %v10250_v63, %v10249_v55  ;;  %v10329_v63 = vld [vmem:[%s19890_s4 + $0x6f0] sm:$0xff] }
 0x3ad   : > { %12717 = vmatprep.subr.bf16.mxu1 %v13948_v18 }
 0x3b0   : > { %12719 = vmatpush1.bf16.msra.mxu1 %v12718_v5  ;;  %v12847_v5 = vpack.c.bf16 %v10252_v4, %v10251_v2  ;;  %v10371_v4 = vld [vmem:[%s19890_s4 + $0x7d0] sm:$0xff] }
 0x3b1   : > { %12720 = vmatprep.subr.bf16.mxu1 %v13948_v18 }
 0x3b4   : > { %12722 = vmatpush1.bf16.msra.mxu1 %v12721_v10  ;;  %v12850_v10 = vpack.c.bf16 %v10254_v8, %v10253_v7  ;;  %v10331_v7 = vld [vmem:[%s19890_s4 + $0x700] sm:$0xf] }
 0x3b5   : > { %12723 = vmatprep.subr.bf16.mxu1 %v13948_v18 }
 0x3b8   : > { %12725 = vmatpush1.bf16.msra.mxu1 %v12724_v13  ;;  %v12853_v13 = vpack.c.bf16 %v10256_v11, %v10255_v45  ;;  %v10374_v45 = vld [vmem:[%s19890_s4 + $0x7e8] sm:$0xff] }
 0x3b9   : > { %3245 = vmatprep.subr.mxu1 %v13945_v0 }
 0x3bc   : > { %10140 = vmatpush1.msk.msra.mxu1 %vm2820_vm6, %v10139_v16  ;;  %v12856_v16 = vpack.c.bf16 %v10258_v51, %v10257_v14  ;;  %v10376_v14 = vld [vmem:[%s19890_s4 + $0x7f8] sm:$0xff] }
 0x3bd   : > { %3262 = vmatmul.mubr.f32.vlgmr.msra.gmra.mrb[12].mxu1 %v16828_v40  ;;  %12762 = vmatprep.subr.bf16.mxu1 %v13948_v18 }
 0x3be   : > { %12764 = vmatpush1.bf16.msra.mxu1 %v12763_v32  ;;  %10205 = vmatprep.mubr.msk.f32.mxu1 %vm2816_vm7, %v16830_v28  ;;  %v10259_v32 = vld [vmem:[%s19890_s4 + $0x530] sm:$0xff] }
 0x3bf   : > { %12765 = vmatprep.subr.bf16.mxu1 %v13948_v18  ;;  %v12859_v19 = vpack.c.bf16 %v10260_v17, %v10259_v32  ;;  %v10378_v32 = vld [vmem:[%s19890_s4 + $0x808] sm:$0xff] }
 0x3c2   : > { %12767 = vmatpush1.bf16.msra.mxu1 %v12766_v20  ;;  %v10261_v20 = vld [vmem:[%s19890_s4 + $0x540] sm:$0xff] }
 0x3c3   : > { %12768 = vmatprep.subr.bf16.mxu1 %v13948_v18  ;;  %v12862_v22 = vpack.c.bf16 %v10262_v21, %v10261_v20  ;;  %v10380_v20 = vld [vmem:[%s19890_s4 + $0x818] sm:$0xff] }
 0x3c6   : > { %12770 = vmatpush1.bf16.msra.mxu1 %v12769_v23  ;;  %v10263_v23 = vld [vmem:[%s19890_s4 + $0x550] sm:$0xff] }
 0x3c7   : > { %12771 = vmatprep.subr.bf16.mxu1 %v13948_v18  ;;  %v12865_v25 = vpack.c.bf16 %v10264_v24, %v10263_v23  ;;  %v10108_v23 = vld [vmem:[%s19891_s5 + $0x18] sm:$0xff] }
 0x3ca   : > { %12773 = vmatpush1.bf16.msra.mxu1 %v12772_v33  ;;  %v10265_v33 = vld [vmem:[%s19890_s4 + $0x560] sm:$0xff] }
 0x3cb   : > { %12774 = vmatprep.subr.bf16.mxu1 %v13948_v18  ;;  %v12868_v27 = vpack.c.bf16 %v10266_v9, %v10265_v33  ;;  %v2894_v9 = vld [vmem:[%s19891_s5] sm:$0xff] }
 0x3ce   : > { %12776 = vmatpush1.bf16.msra.mxu1 %v12775_v29  ;;  %v10307_v29 = vld [vmem:[%s19890_s4 + $0x640] sm:$0xff] }
 0x3cf   : > { %12777 = vmatprep.subr.bf16.mxu1 %v13948_v18 }
 0x3d2   : > { %12779 = vmatpush1.bf16.msra.mxu1 %v12778_v34  ;;  %v12907_v34 = vpack.c.bf16 %v10308_v30, %v10307_v29  ;;  %v10382_v29 = vld [vmem:[%s19890_s4 + $0x828] sm:$0xff] }
 0x3d3   : > { %12780 = vmatprep.subr.bf16.mxu1 %v13948_v18 }
 0x3d6   : > { %12782 = vmatpush1.bf16.msra.mxu1 %v12781_v6  ;;  %v12910_v6 = vpack.c.bf16 %v10310_v37, %v10309_v36  ;;  %v2895_v36 = vld [vmem:[%s19891_s5 + $0x8] sm:$0xff]  ;;  %v10142_v37 = vld [vmem:[%s19891_s5 + $0x20] sm:$0xff] }
 0x3d7   : > { %12783 = vmatprep.subr.bf16.mxu1 %v13948_v18 }
 0x3da   : > { %12785 = vmatpush1.bf16.msra.mxu1 %v12784_v39  ;;  %v12913_v39 = vpack.c.bf16 %v10312_v12, %v10311_v38  ;;  %v10385_v38 = vld [vmem:[%s19890_s4 + $0x840] sm:$0xff]  ;;  %v10386_v12 = vld [vmem:[%s19890_s4 + $0x848] sm:$0xff] }
 0x3db   : > { %12786 = vmatprep.subr.bf16.mxu1 %v13948_v18 }
 0x3de   : > { %12788 = vmatpush1.bf16.msra.mxu1 %v12787_v31  ;;  %v12916_v31 = vpack.c.bf16 %v10314_v42, %v10313_v41  ;;  %v10387_v41 = vld [vmem:[%s19890_s4 + $0x850] sm:$0xff]  ;;  %v10388_v42 = vld [vmem:[%s19890_s4 + $0x858] sm:$0xff] }
 0x3df   : > { %12789 = vmatprep.subr.bf16.mxu1 %v13948_v18 }
 0x3e2   : > { %12791 = vmatpush1.bf16.msra.mxu1 %v12790_v44  ;;  %v12919_v44 = vpack.c.bf16 %v10316_v46, %v10315_v43  ;;  %v10389_v43 = vld [vmem:[%s19890_s4 + $0x860] sm:$0xff]  ;;  %v10390_v46 = vld [vmem:[%s19890_s4 + $0x868] sm:$0xff] }
 0x3e3   : > { %12792 = vmatprep.subr.bf16.mxu1 %v13948_v18 }
 0x3e6   : > { %12794 = vmatpush1.bf16.msra.mxu1 %v12793_v61  ;;  %v10319_v61 = vld [vmem:[%s19890_s4 + $0x6a0] sm:$0xff] }
 0x3e7   : > { %12795 = vmatprep.subr.bf16.mxu1 %v13948_v18  ;;  %v12925_v50 = vpack.c.bf16 %v10320_v3, %v10319_v61  ;;  %v10393_v61 = vld [vmem:[%s19890_s4 + $0x880] sm:$0xff]  ;;  %v10394_v3 = vld [vmem:[%s19890_s4 + $0x888] sm:$0xff] }
 0x3ea   : > { %12797 = vmatpush1.bf16.msra.mxu1 %v12796_v52  ;;  %v10321_v52 = vld [vmem:[%s19890_s4 + $0x6b0] sm:$0xff] }
 0x3eb   : > { %3621 = vmatprep.subr.mxu1 %v13945_v0  ;;  %v12928_v35 = vpack.c.bf16 %v10322_v53, %v10321_v52  ;;  %v10435_v52 = vld [vmem:[%s19890_s4 + $0x960] sm:$0xff]  ;;  %v10436_v53 = vld [vmem:[%s19890_s4 + $0x968] sm:$0xff] }
 0x3ee   : > { %10204 = vmatpush1.msk.msra.mxu1 %vm2820_vm6, %v10203_v54  ;;  %v10323_v54 = vld [vmem:[%s19890_s4 + $0x6c0] sm:$0xff] }
 0x3ef   : > { %3638 = vmatmul.mubr.f32.vlgmr.msra.gmra.mrb[14].mxu1 %v16828_v40  ;;  %12834 = vmatprep.subr.bf16.mxu1 %v13948_v18 }
 0x3f0   : > { %12836 = vmatpush1.bf16.msra.mxu1 %v12835_v56  ;;  %10269 = vmatprep.mubr.msk.f32.mxu1 %vm2816_vm7, %v16830_v28  ;;  %v10324_v56 = vld [vmem:[%s19890_s4 + $0x6c8] sm:$0xff] }
 0x3f1   : > { %12837 = vmatprep.subr.bf16.mxu1 %v13948_v18  ;;  %v12931_v57 = vpack.c.bf16 %v10324_v56, %v10323_v54  ;;  %v13051_v54 = vpack.c.bf16 %v10436_v53, %v10435_v52  ;;  %v10437_v56 = vld [vmem:[%s19890_s4 + $0x970] sm:$0xff]  ;;  %v10458_v53 = vld [vmem:[%s19890_s4 + $0xa18] sm:$0xff] }
 0x3f2   : > { %v10457_v52 = vld [vmem:[%s19890_s4 + $0xa10] sm:$0xff] }
 0x3f4   : > { %12839 = vmatpush1.bf16.msra.mxu1 %v12838_v15  ;;  %v10326_v15 = vld [vmem:[%s19890_s4 + $0x6d8] sm:$0xff] }
 0x3f5   : > { %12840 = vmatprep.subr.bf16.mxu1 %v13948_v18  ;;  %v12934_v59 = vpack.c.bf16 %v10326_v15, %v10325_v58  ;;  %v10439_v15 = vld [vmem:[%s19890_s4 + $0x980] sm:$0xff] }
 0x3f8   : > { %12842 = vmatpush1.bf16.msra.mxu1 %v12841_v62  ;;  %v10328_v62 = vld [vmem:[%s19890_s4 + $0x6e8] sm:$0xff] }
 0x3f9   : > { %12843 = vmatprep.subr.bf16.mxu1 %v13948_v18  ;;  %v12937_v55 = vpack.c.bf16 %v10328_v62, %v10327_v60  ;;  %v10441_v62 = vld [vmem:[%s19890_s4 + $0x990] sm:$0xff] }
 0x3fc   : > { %12845 = vmatpush1.bf16.msra.mxu1 %v12844_v1  ;;  %v10330_v1 = vld [vmem:[%s19890_s4 + $0x6f8] sm:$0xff] }
 0x3fd   : > { %12846 = vmatprep.subr.bf16.mxu1 %v13948_v18  ;;  %v12940_v2 = vpack.c.bf16 %v10330_v1, %v10329_v63  ;;  %v10147_v63 = vld [vmem:[%s19890_s4 + $0x258] sm:$0xff]  ;;  %v10148_v1 = vld [vmem:[%s19890_s4 + $0x260] sm:$0xff] }
 0x400   : > { %12848 = vmatpush1.bf16.msra.mxu1 %v12847_v5  ;;  %v10372_v5 = vld [vmem:[%s19890_s4 + $0x7d8] sm:$0xff] }
 0x401   : > { %12849 = vmatprep.subr.bf16.mxu1 %v13948_v18  ;;  %v12979_v8 = vpack.c.bf16 %v10372_v5, %v10371_v4  ;;  %v10443_v4 = vld [vmem:[%s19890_s4 + $0x9a0] sm:$0xff]  ;;  %v10444_v5 = vld [vmem:[%s19890_s4 + $0x9a8] sm:$0xff] }
 0x404   : > { %12851 = vmatpush1.bf16.msra.mxu1 %v12850_v10  ;;  %v10373_v10 = vld [vmem:[%s19890_s4 + $0x7e0] sm:$0xff] }
 0x405   : > { %12852 = vmatprep.subr.bf16.mxu1 %v13948_v18  ;;  %v12982_v11 = vpack.c.bf16 %v10374_v45, %v10373_v10  ;;  %v12727_v10 = vpack.c.bf16 %v10148_v1, %v10147_v63 }
 0x408   : > { %12854 = vmatpush1.bf16.msra.mxu1 %v12853_v13  ;;  %v10375_v13 = vld [vmem:[%s19890_s4 + $0x7f0] sm:$0xff] }
 0x409   : > { %12855 = vmatprep.subr.bf16.mxu1 %v13948_v18  ;;  %v12985_v51 = vpack.c.bf16 %v10376_v14, %v10375_v13  ;;  %v10150_v13 = vld [vmem:[%s19890_s4 + $0x270] sm:$0xff]  ;;  %v13063_v14 = vpack.c.bf16 %v10444_v5, %v10443_v4  ;;  %v10168_v4 = vld [vmem:[%s19890_s4 + $0x300] sm:$0xff]  ;;  %v10469_v5 = vld [vmem:[%s19890_s4 + $0xa38] sm:$0xff] }
 0x40c   : > { %12857 = vmatpush1.bf16.msra.mxu1 %v12856_v16  ;;  %v10377_v16 = vld [vmem:[%s19890_s4 + $0x800] sm:$0xff] }
 0x40d   : > { %12858 = vmatprep.subr.bf16.mxu1 %v13948_v18  ;;  %v12988_v17 = vpack.c.bf16 %v10378_v32, %v10377_v16  ;;  %v10446_v16 = vld [vmem:[%s19890_s4 + $0x9b8] sm:$0xff] }
 0x410   : > { %12860 = vmatpush1.bf16.msra.mxu1 %v12859_v19  ;;  %v10379_v19 = vld [vmem:[%s19890_s4 + $0x810] sm:$0xff] }
 0x411   : > { %12861 = vmatprep.subr.bf16.mxu1 %v13948_v18  ;;  %v12991_v33 = vpack.c.bf16 %v10380_v20, %v10379_v19  ;;  %v10152_v19 = vld [vmem:[%s19890_s4 + $0x280] sm:$0xff] }
 0x414   : > { %12863 = vmatpush1.bf16.msra.mxu1 %v12862_v22 }
 0x415   : > { %12864 = vmatprep.subr.bf16.mxu1 %v13948_v18 }
 0x418   : > { %12866 = vmatpush1.bf16.msra.mxu1 %v12865_v25 }
 0x419   : > { %12867 = vmatprep.subr.bf16.mxu1 %v13948_v18 }
 0x41c   : > { %12869 = vmatpush1.bf16.msra.mxu1 %v12868_v27  ;;  %v10381_v27 = vld [vmem:[%s19890_s4 + $0x820] sm:$0xff] }
 0x41d   : > { %3997 = vmatprep.subr.mxu1 %v13945_v0  ;;  %v12994_v30 = vpack.c.bf16 %v10382_v29, %v10381_v27  ;;  %v10450_v27 = vld [vmem:[%s19890_s4 + $0x9d8] sm:$0xff] }
 0x420   : > { %10268 = vmatpush1.msk.msra.mxu1 %vm2820_vm6, %v10267_v26  ;;  %v10383_v26 = vld [vmem:[%s19890_s4 + $0x830] sm:$0xff] }
 0x421   : > { %4014 = vmatmul.mubr.f32.vlgmr.msra.gmra.mrb[16].mxu1 %v16828_v40  ;;  %12906 = vmatprep.subr.bf16.mxu1 %v13948_v18 }
 0x422   : > { %12908 = vmatpush1.bf16.msra.mxu1 %v12907_v34  ;;  %10333 = vmatprep.mubr.msk.f32.mxu1 %vm2816_vm7, %v16830_v28  ;;  %v10384_v34 = vld [vmem:[%s19890_s4 + $0x838] sm:$0xff] }
 0x423   : > { %12909 = vmatprep.subr.bf16.mxu1 %v13948_v18 }
 0x426   : > { %12911 = vmatpush1.bf16.msra.mxu1 %v12910_v6  ;;  %v12997_v6 = vpack.c.bf16 %v10384_v34, %v10383_v26  ;;  %v10156_v26 = vld [vmem:[%s19890_s4 + $0x2a0] sm:$0xff] }
 0x427   : > { %12912 = vmatprep.subr.bf16.mxu1 %v13948_v18 }
 0x42a   : > { %12914 = vmatpush1.bf16.msra.mxu1 %v12913_v39  ;;  %v13000_v39 = vpack.c.bf16 %v10386_v12, %v10385_v38  ;;  %v10157_v38 = vld [vmem:[%s19890_s4 + $0x2a8] sm:$0xff]  ;;  %v10158_v12 = vld [vmem:[%s19890_s4 + $0x2b0] sm:$0xff] }
 0x42b   : > { %12915 = vmatprep.subr.bf16.mxu1 %v13948_v18 }
 0x42e   : > { %12917 = vmatpush1.bf16.msra.mxu1 %v12916_v31  ;;  %v13003_v31 = vpack.c.bf16 %v10388_v42, %v10387_v41  ;;  %v10453_v41 = vld [vmem:[%s19890_s4 + $0x9f0] sm:$0xff]  ;;  %v10454_v42 = vld [vmem:[%s19890_s4 + $0x9f8] sm:$0xff] }
 0x42f   : > { %12918 = vmatprep.subr.bf16.mxu1 %v13948_v18 }
 0x432   : > { %12920 = vmatpush1.bf16.msra.mxu1 %v12919_v44  ;;  %v13006_v44 = vpack.c.bf16 %v10390_v46, %v10389_v43  ;;  %v10159_v43 = vld [vmem:[%s19890_s4 + $0x2b8] sm:$0xff]  ;;  %v10160_v46 = vld [vmem:[%s19890_s4 + $0x2c0] sm:$0xff] }
 0x433   : > { %12921 = vmatprep.subr.bf16.mxu1 %v13948_v18 }
 0x436   : > { %12923 = vmatpush1.bf16.msra.mxu1 %v12922_v49  ;;  %v13009_v49 = vpack.c.bf16 %v10392_v48, %v10391_v47  ;;  %v10455_v47 = vld [vmem:[%s19890_s4 + $0xa00] sm:$0xff]  ;;  %v10456_v48 = vld [vmem:[%s19890_s4 + $0xa08] sm:$0xff] }
 0x437   : > { %12924 = vmatprep.subr.bf16.mxu1 %v13948_v18 }
 0x43a   : > { %12926 = vmatpush1.bf16.msra.mxu1 %v12925_v50  ;;  %v13012_v50 = vpack.c.bf16 %v10394_v3, %v10393_v61  ;;  %v10161_v61 = vld [vmem:[%s19890_s4 + $0x2c8] sm:$0xff]  ;;  %v10162_v3 = vld [vmem:[%s19890_s4 + $0x2d0] sm:$0xff] }
 0x43b   : > { %12927 = vmatprep.subr.bf16.mxu1 %v13948_v18 }
 0x43e   : > { %12929 = vmatpush1.bf16.msra.mxu1 %v12928_v35  ;;  %v10395_v35 = vld [vmem:[%s19890_s4 + $0x890] sm:$0xf] }
 0x43f   : > { %12930 = vmatprep.subr.bf16.mxu1 %v13948_v18 }
 0x442   : > { %12932 = vmatpush1.bf16.msra.mxu1 %v12931_v57  ;;  %v10438_v57 = vld [vmem:[%s19890_s4 + $0x978] sm:$0xff] }
 0x443   : > { %12933 = vmatprep.subr.bf16.mxu1 %v13948_v18  ;;  %v13054_v58 = vpack.c.bf16 %v10438_v57, %v10437_v56  ;;  %v10164_v56 = vld [vmem:[%s19890_s4 + $0x2e0] sm:$0xff]  ;;  %v13084_v57 = vpack.c.bf16 %v10458_v53, %v10457_v52  ;;  %v10533_v52 = vld [vmem:[%s19890_s4 + $0xbc8] sm:$0xff]  ;;  %v10534_v53 = vld [vmem:[%s19890_s4 + $0xbd0] sm:$0xff] }
 0x446   : > { %12935 = vmatpush1.bf16.msra.mxu1 %v12934_v59  ;;  %v10440_v59 = vld [vmem:[%s19890_s4 + $0x988] sm:$0xff] }
 0x447   : > { %12936 = vmatprep.subr.bf16.mxu1 %v13948_v18  ;;  %v13057_v60 = vpack.c.bf16 %v10440_v59, %v10439_v15  ;;  %v10165_v15 = vld [vmem:[%s19890_s4 + $0x2e8] sm:$0xff]  ;;  %v10166_v59 = vld [vmem:[%s19890_s4 + $0x2f0] sm:$0xff] }
 0x448   : > { %v12754_v63 = vpack.c.bf16 %v10166_v59, %v10165_v15  ;;  %v10538_v15 = vld [vmem:[%s19890_s4 + $0xbf0] sm:$0xff] }
 0x44a   : > { %12938 = vmatpush1.bf16.msra.mxu1 %v12937_v55  ;;  %v10442_v55 = vld [vmem:[%s19890_s4 + $0x998] sm:$0xff] }
 0x44b   : > { %12939 = vmatprep.subr.bf16.mxu1 %v13948_v18 }
 0x44e   : > { %12941 = vmatpush1.bf16.msra.mxu1 %v12940_v2  ;;  %v13060_v2 = vpack.c.bf16 %v10442_v55, %v10441_v62  ;;  %v10468_v62 = vld [vmem:[%s19890_s4 + $0xa30] sm:$0xff]  ;;  %v10459_v55 = vld [vmem:[%s19890_s4 + $0xa20] sm:$0xf] }
 0x44f   : > { %4373 = vmatprep.subr.mxu1 %v13945_v0 }
 0x452   : > { %10332 = vmatpush1.msk.msra.mxu1 %vm2820_vm6, %v10331_v7 }
 0x453   : > { %4390 = vmatmul.mubr.f32.vlgmr.msra.gmra.mrb[18].mxu1 %v16828_v40  ;;  %12978 = vmatprep.subr.bf16.mxu1 %v13948_v18 }
 0x454   : > { %12980 = vmatpush1.bf16.msra.mxu1 %v12979_v8  ;;  %10397 = vmatprep.mubr.msk.f32.mxu1 %vm2816_vm7, %v16830_v28  ;;  %v10143_v8 = vld [vmem:[%s19891_s5 + $0x28] sm:$0xff] }
 0x455   : > { %12981 = vmatprep.subr.bf16.mxu1 %v13948_v18 }
 0x458   : > { %12983 = vmatpush1.bf16.msra.mxu1 %v12982_v11  ;;  %v10149_v11 = vld [vmem:[%s19890_s4 + $0x268] sm:$0xff] }
 0x459   : > { %12984 = vmatprep.subr.bf16.mxu1 %v13948_v18  ;;  %v12730_v32 = vpack.c.bf16 %v10150_v13, %v10149_v11  ;;  %v10170_v11 = vld [vmem:[%s19890_s4 + $0x310] sm:$0xff]  ;;  %v10471_v13 = vld [vmem:[%s19890_s4 + $0xa48] sm:$0xff] }
 0x45c   : > { %12986 = vmatpush1.bf16.msra.mxu1 %v12985_v51  ;;  %v10445_v51 = vld [vmem:[%s19890_s4 + $0x9b0] sm:$0xff] }
 0x45d   : > { %12987 = vmatprep.subr.bf16.mxu1 %v13948_v18  ;;  %v13066_v20 = vpack.c.bf16 %v10446_v16, %v10445_v51 }
 0x45e   : > { %v2890_v21 = vpop.f32.mrb[8].mxu0  ;;  %v2991_v22 = vpop.f32.mrb[10].mxu1 }
 0x45f   : > { %v2892_v24 = vpop.f32.mrb[9].mxu0  ;;  %v2993_v25 = vpop.f32.mrb[11].mxu1  ;;  %11277 = vmatprep.subr.msk.mxu0 %vm3005_vm9, %v2991_v22 }
 0x460   : > { %12989 = vmatpush1.bf16.msra.mxu1 %v12988_v17  ;;  %11278 = vmatpush3.msk.msra.mxu0 %vm3005_vm9, %v2991_v22  ;;  %v10151_v17 = vld [vmem:[%s19890_s4 + $0x278] sm:$0xff]  ;;  %v10448_v22 = vld [vmem:[%s19890_s4 + $0x9c8] sm:$0xff]  ;;  %v10154_v25 = vld [vmem:[%s19890_s4 + $0x290] sm:$0xff] }
 0x461   : > { %11282 = vmatprep.subr.msk.mxu0 %vm3005_vm9, %v2890_v21  ;;  %11280 = vmatmul.mubr.msk.f32.vlgmr.msra.gmra.mrb[10].mxu0 %vm2998_vm8, %v10108_v23  ;;  %v12733_v23 = vpack.c.bf16 %v10152_v19, %v10151_v17  ;;  %v10153_v24 = vld [vmem:[%s19890_s4 + $0x288] sm:$0xff]  ;;  %v10474_v17 = vld [vmem:[%s19890_s4 + $0xa60] sm:$0xff] }
 0x462   : > { %11283 = vmatpush3.msk.msra.mxu0 %vm3005_vm9, %v2890_v21  ;;  %12990 = vmatprep.subr.bf16.mxu1 %v13948_v18  ;;  %v10447_v21 = vld [vmem:[%s19890_s4 + $0x9c0] sm:$0xff]  ;;  %v12736_v29 = vpack.c.bf16 %v10154_v25, %v10153_v24 }
 0x463   : > { %11284 = vmatprep.mubr.msk.f32.mxu0 %vm2998_vm8, %v2894_v9  ;;  %v10449_v9 = vld [vmem:[%s19890_s4 + $0x9d0] sm:$0xff] }
 0x464   : > { %12992 = vmatpush1.bf16.msra.mxu1 %v12991_v33  ;;  %v13069_v33 = vpack.c.bf16 %v10448_v22, %v10447_v21  ;;  %v13072_v34 = vpack.c.bf16 %v10450_v27, %v10449_v9  ;;  %v10475_v21 = vld [vmem:[%s19890_s4 + $0xa68] sm:$0xff]  ;;  %v10476_v22 = vld [vmem:[%s19890_s4 + $0xa70] sm:$0xff]  ;;  %v10478_v9 = vld [vmem:[%s19890_s4 + $0xa80] sm:$0xff] }
 0x465   : > { %12993 = vmatprep.subr.bf16.mxu1 %v13948_v18  ;;  %v13099_v25 = vpack.c.bf16 %v10476_v22, %v10475_v21  ;;  %v10552_v21 = vld [vmem:[%s19890_s4 + $0xc60] sm:$0xff] }
 0x468   : > { %12995 = vmatpush1.bf16.msra.mxu1 %v12994_v30  ;;  %v10155_v30 = vld [vmem:[%s19890_s4 + $0x298] sm:$0xff] }
 0x469   : > { %12996 = vmatprep.subr.bf16.mxu1 %v13948_v18  ;;  %11285 = vmatmul.mubr.msk.f32.vlgmr.msra.gmra.mrb[10].mxu0 %vm2998_vm8, %v2895_v36  ;;  %v10451_v36 = vld [vmem:[%s19890_s4 + $0x9e0] sm:$0xff] }
 0x46a   : > { %11289 = vmatprep.mubr.msk.f32.mxu0 %vm2998_vm8, %v10142_v37  ;;  %v10452_v37 = vld [vmem:[%s19890_s4 + $0x9e8] sm:$0xff] }
 0x46c   : > { %12998 = vmatpush1.bf16.msra.mxu1 %v12997_v6  ;;  %v12739_v6 = vpack.c.bf16 %v10156_v26, %v10155_v30  ;;  %v10480_v30 = vld [vmem:[%s19890_s4 + $0xa90] sm:$0xff] }
 0x46d   : > { %12999 = vmatprep.subr.bf16.mxu1 %v13948_v18 }
 0x470   : > { %13001 = vmatpush1.bf16.msra.mxu1 %v13000_v39  ;;  %v13075_v39 = vpack.c.bf16 %v10452_v37, %v10451_v36  ;;  %v10482_v36 = vld [vmem:[%s19890_s4 + $0xaa0] sm:$0xff] }
 0x471   : > { %13002 = vmatprep.subr.bf16.mxu1 %v13948_v18 }
 0x474   : > { %13004 = vmatpush1.bf16.msra.mxu1 %v13003_v31  ;;  %v12742_v31 = vpack.c.bf16 %v10158_v12, %v10157_v38  ;;  %v10484_v38 = vld [vmem:[%s19890_s4 + $0xab0] sm:$0xff] }
 0x475   : > { %13005 = vmatprep.subr.bf16.mxu1 %v13948_v18 }
 0x478   : > { %13007 = vmatpush1.bf16.msra.mxu1 %v13006_v44  ;;  %v13078_v44 = vpack.c.bf16 %v10454_v42, %v10453_v41  ;;  %v10486_v41 = vld [vmem:[%s19890_s4 + $0xac0] sm:$0xff] }
 0x479   : > { %13008 = vmatprep.subr.bf16.mxu1 %v13948_v18 }
 0x47c   : > { %13010 = vmatpush1.bf16.msra.mxu1 %v13009_v49  ;;  %v12745_v49 = vpack.c.bf16 %v10160_v46, %v10159_v43  ;;  %v10488_v43 = vld [vmem:[%s19890_s4 + $0xad0] sm:$0xff] }
 0x47d   : > { %13011 = vmatprep.subr.bf16.mxu1 %v13948_v18 }
 0x480   : > { %13013 = vmatpush1.bf16.msra.mxu1 %v13012_v50  ;;  %v13081_v50 = vpack.c.bf16 %v10456_v48, %v10455_v47  ;;  %v10490_v47 = vld [vmem:[%s19890_s4 + $0xae0] sm:$0xff] }
 0x481   : > { %4749 = vmatprep.subr.mxu1 %v13945_v0 }
 0x484   : > { %10396 = vmatpush1.msk.msra.mxu1 %vm2820_vm6, %v10395_v35  ;;  %v12748_v35 = vpack.c.bf16 %v10162_v3, %v10161_v61  ;;  %v10532_v61 = vld [vmem:[%s19890_s4 + $0xbc0] sm:$0xff]  ;;  %v10491_v3 = vld [vmem:[%s19890_s4 + $0xae8] sm:$0xf] }
 0x485   : > { %4766 = vmatmul.mubr.f32.vlgmr.msra.gmra.mrb[20].mxu1 %v16828_v40  ;;  %13050 = vmatprep.subr.bf16.mxu1 %v13948_v18 }
 0x486   : > { %13052 = vmatpush1.bf16.msra.mxu1 %v13051_v54  ;;  %10461 = vmatprep.mubr.msk.f32.mxu1 %vm2816_vm7, %v16830_v28  ;;  %v10163_v54 = vld [vmem:[%s19890_s4 + $0x2d8] sm:$0xff] }
 0x487   : > { %13053 = vmatprep.subr.bf16.mxu1 %v13948_v18 }
 0x48a   : > { %13055 = vmatpush1.bf16.msra.mxu1 %v13054_v58  ;;  %v12751_v58 = vpack.c.bf16 %v10164_v56, %v10163_v54  ;;  %v10535_v54 = vld [vmem:[%s19890_s4 + $0xbd8] sm:$0xff]  ;;  %v10536_v56 = vld [vmem:[%s19890_s4 + $0xbe0] sm:$0xff] }
 0x48b   : > { %13056 = vmatprep.subr.bf16.mxu1 %v13948_v18 }
 0x48e   : > { %13058 = vmatpush1.bf16.msra.mxu1 %v13057_v60  ;;  %v10467_v60 = vld [vmem:[%s19890_s4 + $0xa28] sm:$0xff] }
 0x48f   : > { %13059 = vmatprep.subr.bf16.mxu1 %v13948_v18  ;;  %v13087_v1 = vpack.c.bf16 %v10468_v62, %v10467_v60  ;;  %v10539_v60 = vld [vmem:[%s19890_s4 + $0xbf8] sm:$0xff]  ;;  %v10540_v62 = vld [vmem:[%s19890_s4 + $0xc00] sm:$0xff] }
 0x490   : > { %v3263_v7 = vpop.f32.mrb[12].mxu1 }
 0x491   : > { %v3265_v45 = vpop.f32.mrb[13].mxu1  ;;  %11287 = vmatprep.subr.msk.mxu0 %vm3005_vm9, %v3263_v7 }
 0x492   : > { %11288 = vmatpush3.msk.msra.mxu0 %vm3005_vm9, %v3263_v7  ;;  %13061 = vmatpush1.bf16.msra.mxu1 %v13060_v2  ;;  %v10167_v2 = vld [vmem:[%s19890_s4 + $0x2f8] sm:$0xff]  ;;  %v10470_v7 = vld [vmem:[%s19890_s4 + $0xa40] sm:$0xff]  ;;  %v10169_v45 = vld [vmem:[%s19890_s4 + $0x308] sm:$0xff] }
 0x493   : > { %11290 = vmatmul.mubr.msk.f32.vlgmr.msra.gmra.mrb[10].mxu0 %vm2998_vm8, %v10143_v8  ;;  %12726 = vmatprep.subr.bf16.mxu0 %v13948_v18  ;;  %v12757_v8 = vpack.c.bf16 %v10168_v4, %v10167_v2  ;;  %v12760_v51 = vpack.c.bf16 %v10170_v11, %v10169_v45  ;;  %v10541_v2 = vld [vmem:[%s19890_s4 + $0xc08] sm:$0xff]  ;;  %v10542_v4 = vld [vmem:[%s19890_s4 + $0xc10] sm:$0xff] }
 0x494   : > { %12728 = vmatpush1.bf16.msra.mxu0 %v12727_v10  ;;  %10173 = vmatprep.mubr.msk.f32.mxu0 %vm2816_vm7, %v16830_v28  ;;  %v13090_v10 = vpack.c.bf16 %v10470_v7, %v10469_v5  ;;  %v13174_v5 = vpack.c.bf16 %v10542_v4, %v10541_v2  ;;  %v10543_v7 = vld [vmem:[%s19890_s4 + $0xc18] sm:$0xff]  ;;  %v10545_v45 = vld [vmem:[%s19890_s4 + $0xc28] sm:$0xff]  ;;  %v10546_v11 = vld [vmem:[%s19890_s4 + $0xc30] sm:$0xff] }
 0x495   : > { %13062 = vmatprep.subr.bf16.mxu1 %v13948_v18  ;;  %12729 = vmatprep.subr.bf16.mxu0 %v13948_v18  ;;  %v10617_v2 = vld [vmem:[%s19890_s4 + $0xdf8] sm:$0xff]  ;;  %v10618_v4 = vld [vmem:[%s19890_s4 + $0xe00] sm:$0xff] }
 0x496   : > { %13064 = vmatpush1.bf16.msra.mxu1 %v13063_v14  ;;  %v10472_v14 = vld [vmem:[%s19890_s4 + $0xa50] sm:$0xff] }
 0x497   : > { %13065 = vmatprep.subr.bf16.mxu1 %v13948_v18  ;;  %v13093_v16 = vpack.c.bf16 %v10472_v14, %v10471_v13  ;;  %v13180_v13 = vpack.c.bf16 %v10546_v11, %v10545_v45  ;;  %v10547_v14 = vld [vmem:[%s19890_s4 + $0xc38] sm:$0xff]  ;;  %v10661_v11 = vld [vmem:[%s19890_s4 + $0xee8] sm:$0xff] }
 0x498   : > { %12731 = vmatpush1.bf16.msra.mxu0 %v12730_v32  ;;  %v10473_v32 = vld [vmem:[%s19890_s4 + $0xa58] sm:$0xff] }
 0x499   : > { %12732 = vmatprep.subr.bf16.mxu0 %v13948_v18  ;;  %v13096_v19 = vpack.c.bf16 %v10474_v17, %v10473_v32  ;;  %v10549_v32 = vld [vmem:[%s19890_s4 + $0xc48] sm:$0xff]  ;;  %v10550_v17 = vld [vmem:[%s19890_s4 + $0xc50] sm:$0xff] }
 0x49a   : > { %13067 = vmatpush1.bf16.msra.mxu1 %v13066_v20  ;;  %v10171_v20 = vld [vmem:[%s19890_s4 + $0x318] sm:$0xf] }
 0x49b   : > { %13068 = vmatprep.subr.bf16.mxu1 %v13948_v18 }
 0x49c   : > { %12734 = vmatpush1.bf16.msra.mxu0 %v12733_v23 }
 0x49d   : > { %12735 = vmatprep.subr.bf16.mxu0 %v13948_v18 }
 0x49e   : > { %13070 = vmatpush1.bf16.msra.mxu1 %v13069_v33  ;;  %v10477_v33 = vld [vmem:[%s19890_s4 + $0xa78] sm:$0xff] }
 0x49f   : > { %13071 = vmatprep.subr.bf16.mxu1 %v13948_v18  ;;  %v13102_v27 = vpack.c.bf16 %v10478_v9, %v10477_v33  ;;  %v10595_v9 = vld [vmem:[%s19890_s4 + $0xd48] sm:$0xff] }
 0x4a0   : > { %12737 = vmatpush1.bf16.msra.mxu0 %v12736_v29  ;;  %v10479_v29 = vld [vmem:[%s19890_s4 + $0xa88] sm:$0xff] }
 0x4a1   : > { %12738 = vmatprep.subr.bf16.mxu0 %v13948_v18  ;;  %v13105_v26 = vpack.c.bf16 %v10480_v30, %v10479_v29  ;;  %v10555_v29 = vld [vmem:[%s19890_s4 + $0xc78] sm:$0xf] }
 0x4a2   : > { %13073 = vmatpush1.bf16.msra.mxu1 %v13072_v34  ;;  %v10481_v34 = vld [vmem:[%s19890_s4 + $0xa98] sm:$0xff] }
 0x4a3   : > { %13074 = vmatprep.subr.bf16.mxu1 %v13948_v18  ;;  %v13108_v37 = vpack.c.bf16 %v10482_v36, %v10481_v34  ;;  %v10598_v34 = vld [vmem:[%s19890_s4 + $0xd60] sm:$0xff]  ;;  %v10174_v36 = vld [vmem:[%s19891_s5 + $0x30] sm:$0xff] }
 0x4a4   : > { %12740 = vmatpush1.bf16.msra.mxu0 %v12739_v6  ;;  %v10483_v6 = vld [vmem:[%s19890_s4 + $0xaa8] sm:$0xff] }
 0x4a5   : > { %12741 = vmatprep.subr.bf16.mxu0 %v13948_v18  ;;  %v13111_v12 = vpack.c.bf16 %v10484_v38, %v10483_v6  ;;  %v10599_v6 = vld [vmem:[%s19890_s4 + $0xd68] sm:$0xff]  ;;  %v10600_v38 = vld [vmem:[%s19890_s4 + $0xd70] sm:$0xff] }
 0x4a6   : > { %13076 = vmatpush1.bf16.msra.mxu1 %v13075_v39  ;;  %v10485_v39 = vld [vmem:[%s19890_s4 + $0xab8] sm:$0xff] }
 0x4a7   : > { %13077 = vmatprep.subr.bf16.mxu1 %v13948_v18  ;;  %v13114_v42 = vpack.c.bf16 %v10486_v41, %v10485_v39  ;;  %v10601_v39 = vld [vmem:[%s19890_s4 + $0xd78] sm:$0xff]  ;;  %v10602_v41 = vld [vmem:[%s19890_s4 + $0xd80] sm:$0xff] }
 0x4a8   : > { %12743 = vmatpush1.bf16.msra.mxu0 %v12742_v31  ;;  %v10487_v31 = vld [vmem:[%s19890_s4 + $0xac8] sm:$0xff] }
 0x4a9   : > { %12744 = vmatprep.subr.bf16.mxu0 %v13948_v18  ;;  %v13117_v46 = vpack.c.bf16 %v10488_v43, %v10487_v31  ;;  %v10603_v31 = vld [vmem:[%s19890_s4 + $0xd88] sm:$0xff]  ;;  %v10604_v43 = vld [vmem:[%s19890_s4 + $0xd90] sm:$0xff] }
 0x4aa   : > { %13079 = vmatpush1.bf16.msra.mxu1 %v13078_v44  ;;  %v10489_v44 = vld [vmem:[%s19890_s4 + $0xad8] sm:$0xff] }
 0x4ab   : > { %13080 = vmatprep.subr.bf16.mxu1 %v13948_v18  ;;  %v13120_v48 = vpack.c.bf16 %v10490_v47, %v10489_v44  ;;  %v13243_v47 = vpack.c.bf16 %v10604_v43, %v10603_v31  ;;  %v10679_v43 = vld [vmem:[%s19890_s4 + $0xf78] sm:$0xff] }
 0x4ac   : > { %12746 = vmatpush1.bf16.msra.mxu0 %v12745_v49  ;;  %v10531_v49 = vld [vmem:[%s19890_s4 + $0xbb8] sm:$0xff] }
 0x4ad   : > { %12747 = vmatprep.subr.bf16.mxu0 %v13948_v18 }
 0x4ae   : > { %13082 = vmatpush1.bf16.msra.mxu1 %v13081_v50  ;;  %v13159_v50 = vpack.c.bf16 %v10532_v61, %v10531_v49  ;;  %v10606_v49 = vld [vmem:[%s19890_s4 + $0xda0] sm:$0xff] }
 0x4af   : > { %13083 = vmatprep.subr.bf16.mxu1 %v13948_v18 }
 0x4b0   : > { %12749 = vmatpush1.bf16.msra.mxu0 %v12748_v35  ;;  %v13162_v35 = vpack.c.bf16 %v10534_v53, %v10533_v52  ;;  %v10609_v53 = vld [vmem:[%s19890_s4 + $0xdb8] sm:$0xff] }
 0x4b1   : > { %12750 = vmatprep.subr.bf16.mxu0 %v13948_v18 }
 0x4b2   : > { %13085 = vmatpush1.bf16.msra.mxu1 %v13084_v57  ;;  %v13165_v57 = vpack.c.bf16 %v10536_v56, %v10535_v54  ;;  %v10611_v56 = vld [vmem:[%s19890_s4 + $0xdc8] sm:$0xff] }
 0x4b3   : > { %5125 = vmatprep.subr.mxu1 %v13945_v0 }
 0x4b4   : > { %12752 = vmatpush1.bf16.msra.mxu0 %v12751_v58  ;;  %v10537_v58 = vld [vmem:[%s19890_s4 + $0xbe8] sm:$0xff] }
 0x4b5   : > { %12753 = vmatprep.subr.bf16.mxu0 %v13948_v18  ;;  %v13168_v59 = vpack.c.bf16 %v10538_v15, %v10537_v58  ;;  %v10613_v15 = vld [vmem:[%s19890_s4 + $0xdd8] sm:$0xff] }
 0x4b6   : > { %10460 = vmatpush1.msk.msra.mxu1 %vm2820_vm6, %v10459_v55 }
 0x4b7   : > { %5142 = vmatmul.mubr.f32.vlgmr.msra.gmra.mrb[22].mxu1 %v16828_v40  ;;  %13086 = vmatprep.subr.bf16.mxu1 %v13948_v18 }
 0x4b8   : > { %12755 = vmatpush1.bf16.msra.mxu0 %v12754_v63  ;;  %13088 = vmatpush1.bf16.msra.mxu1 %v13087_v1  ;;  %v13171_v1 = vpack.c.bf16 %v10540_v62, %v10539_v60  ;;  %v10615_v62 = vld [vmem:[%s19890_s4 + $0xde8] sm:$0xff] }
 0x4b9   : > { %10493 = vmatprep.mubr.msk.f32.mxu1 %vm2816_vm7, %v16830_v28  ;;  %12756 = vmatprep.subr.bf16.mxu0 %v13948_v18 }
 0x4ba   : > { %13089 = vmatprep.subr.bf16.mxu1 %v13948_v18 }
 0x4bc   : > { %12758 = vmatpush1.bf16.msra.mxu0 %v12757_v8  ;;  %13091 = vmatpush1.bf16.msra.mxu1 %v13090_v10  ;;  %v10544_v8 = vld [vmem:[%s19890_s4 + $0xc20] sm:$0xff] }
 0x4bd   : > { %12759 = vmatprep.subr.bf16.mxu0 %v13948_v18  ;;  %13092 = vmatprep.subr.bf16.mxu1 %v13948_v18  ;;  %v13177_v10 = vpack.c.bf16 %v10544_v8, %v10543_v7  ;;  %v10659_v7 = vld [vmem:[%s19890_s4 + $0xed8] sm:$0xff]  ;;  %v10660_v8 = vld [vmem:[%s19890_s4 + $0xee0] sm:$0xff] }
 0x4be   : > { %v13303_v45 = vpack.c.bf16 %v10660_v8, %v10659_v7  ;;  %v10733_v7 = vld [vmem:[%s19890_s4 + $0x10b8] sm:$0xff]  ;;  %v10734_v8 = vld [vmem:[%s19890_s4 + $0x10c0] sm:$0xff] }
 0x4c0   : > { %12761 = vmatpush1.bf16.msra.mxu0 %v12760_v51  ;;  %13094 = vmatpush1.bf16.msra.mxu1 %v13093_v16  ;;  %v10548_v51 = vld [vmem:[%s19890_s4 + $0xc40] sm:$0xff] }
 0x4c1   : > { %3433 = vmatprep.subr.mxu0 %v13945_v0  ;;  %13095 = vmatprep.subr.bf16.mxu1 %v13948_v18  ;;  %v13183_v16 = vpack.c.bf16 %v10548_v51, %v10547_v14  ;;  %v10663_v51 = vld [vmem:[%s19890_s4 + $0xef8] sm:$0xff] }
 0x4c2   : > { %v17539_v23 = vpop.f32.mrb[14].mxu1 }
 0x4c3   : > { %v3641_v24 = vpop.f32.mrb[15].mxu1 }
 0x4c4   : > { %10172 = vmatpush1.msk.msra.mxu0 %vm2820_vm6, %v10171_v20  ;;  %13097 = vmatpush1.bf16.msra.mxu1 %v13096_v19  ;;  %v13186_v19 = vpack.c.bf16 %v10550_v17, %v10549_v32  ;;  %v10551_v20 = vld [vmem:[%s19890_s4 + $0xc58] sm:$0xff]  ;;  %v10553_v24 = vld [vmem:[%s19890_s4 + $0xc68] sm:$0xff] }
 0x4c5   : > { %3450 = vmatmul.mubr.f32.vlgmr.msra.gmra.mrb[12].mxu0 %v16828_v40  ;;  %13098 = vmatprep.subr.bf16.mxu1 %v13948_v18  ;;  %v13189_v22 = vpack.c.bf16 %v10552_v21, %v10551_v20  ;;  %v10665_v17 = vld [vmem:[%s19890_s4 + $0xf08] sm:$0xff]  ;;  %v10667_v21 = vld [vmem:[%s19890_s4 + $0xf18] sm:$0xff] }
 0x4c6   : > { %11294 = vmatprep.mubr.msk.f32.mxu0 %vm2998_vm8, %v10174_v36  ;;  %v10673_v36 = vld [vmem:[%s19890_s4 + $0xf48] sm:$0xff] }
 0x4c8   : > { %13100 = vmatpush1.bf16.msra.mxu1 %v13099_v25  ;;  %v10554_v25 = vld [vmem:[%s19890_s4 + $0xc70] sm:$0xff] }
 0x4c9   : > { %13101 = vmatprep.subr.bf16.mxu1 %v13948_v18  ;;  %v13192_v33 = vpack.c.bf16 %v10554_v25, %v10553_v24 }
 0x4cc   : > { %13103 = vmatpush1.bf16.msra.mxu1 %v13102_v27  ;;  %v10596_v27 = vld [vmem:[%s19890_s4 + $0xd50] sm:$0xff] }
 0x4cd   : > { %13104 = vmatprep.subr.bf16.mxu1 %v13948_v18  ;;  %v13231_v30 = vpack.c.bf16 %v10596_v27, %v10595_v9  ;;  %v10669_v9 = vld [vmem:[%s19890_s4 + $0xf28] sm:$0xff]  ;;  %v10670_v27 = vld [vmem:[%s19890_s4 + $0xf30] sm:$0xff] }
 0x4d0   : > { %13106 = vmatpush1.bf16.msra.mxu1 %v13105_v26  ;;  %v10597_v26 = vld [vmem:[%s19890_s4 + $0xd58] sm:$0xff] }
 0x4d1   : > { %13107 = vmatprep.subr.bf16.mxu1 %v13948_v18 }
 0x4d4   : > { %13109 = vmatpush1.bf16.msra.mxu1 %v13108_v37  ;;  %v13234_v37 = vpack.c.bf16 %v10598_v34, %v10597_v26  ;;  %v10672_v26 = vld [vmem:[%s19890_s4 + $0xf40] sm:$0xff] }
 0x4d5   : > { %13110 = vmatprep.subr.bf16.mxu1 %v13948_v18 }
 0x4d8   : > { %13112 = vmatpush1.bf16.msra.mxu1 %v13111_v12  ;;  %v13237_v12 = vpack.c.bf16 %v10600_v38, %v10599_v6  ;;  %v10675_v38 = vld [vmem:[%s19890_s4 + $0xf58] sm:$0xff] }
 0x4d9   : > { %13113 = vmatprep.subr.bf16.mxu1 %v13948_v18 }
 0x4dc   : > { %13115 = vmatpush1.bf16.msra.mxu1 %v13114_v42  ;;  %v13240_v42 = vpack.c.bf16 %v10602_v41, %v10601_v39  ;;  %v10677_v41 = vld [vmem:[%s19890_s4 + $0xf68] sm:$0xff] }
 0x4dd   : > { %13116 = vmatprep.subr.bf16.mxu1 %v13948_v18 }
 0x4e0   : > { %13118 = vmatpush1.bf16.msra.mxu1 %v13117_v46 }
 0x4e1   : > { %13119 = vmatprep.subr.bf16.mxu1 %v13948_v18 }
 0x4e4   : > { %13121 = vmatpush1.bf16.msra.mxu1 %v13120_v48  ;;  %v10605_v48 = vld [vmem:[%s19890_s4 + $0xd98] sm:$0xff] }
 0x4e5   : > { %5313 = vmatprep.subr.mxu1 %v13945_v0  ;;  %v13246_v61 = vpack.c.bf16 %v10606_v49, %v10605_v48  ;;  %v10681_v48 = vld [vmem:[%s19890_s4 + $0xf88] sm:$0xff]  ;;  %v10682_v49 = vld [vmem:[%s19890_s4 + $0xf90] sm:$0xff] }
 0x4e8   : > { %10492 = vmatpush1.msk.msra.mxu1 %vm2820_vm6, %v10491_v3  ;;  %v10607_v3 = vld [vmem:[%s19890_s4 + $0xda8] sm:$0xff] }
 0x4e9   : > { %5330 = vmatmul.mubr.f32.vlgmr.msra.gmra.mrb[24].mxu1 %v16828_v40  ;;  %13158 = vmatprep.subr.bf16.mxu1 %v13948_v18 }
 0x4ea   : > { %13160 = vmatpush1.bf16.msra.mxu1 %v13159_v50  ;;  %10557 = vmatprep.mubr.msk.f32.mxu1 %vm2816_vm7, %v16830_v28  ;;  %v10608_v50 = vld [vmem:[%s19890_s4 + $0xdb0] sm:$0xff] }
 0x4eb   : > { %13161 = vmatprep.subr.bf16.mxu1 %v13948_v18  ;;  %v13249_v52 = vpack.c.bf16 %v10608_v50, %v10607_v3  ;;  %v10723_v3 = vld [vmem:[%s19890_s4 + $0x1068] sm:$0xff]  ;;  %v10724_v50 = vld [vmem:[%s19890_s4 + $0x1070] sm:$0xff] }
 0x4ee   : > { %13163 = vmatpush1.bf16.msra.mxu1 %v13162_v35  ;;  %v10610_v35 = vld [vmem:[%s19890_s4 + $0xdc0] sm:$0xff] }
 0x4ef   : > { %13164 = vmatprep.subr.bf16.mxu1 %v13948_v18  ;;  %v13252_v54 = vpack.c.bf16 %v10610_v35, %v10609_v53  ;;  %v13375_v53 = vpack.c.bf16 %v10724_v50, %v10723_v3  ;;  %v10725_v35 = vld [vmem:[%s19890_s4 + $0x1078] sm:$0xff]  ;;  %v10788_v3 = vld [vmem:[%s19890_s4 + $0x1200] sm:$0xff]  ;;  %v10219_v50 = vld [vmem:[%s19890_s4 + $0x428] sm:$0xff] }
 0x4f2   : > { %13166 = vmatpush1.bf16.msra.mxu1 %v13165_v57  ;;  %v10612_v57 = vld [vmem:[%s19890_s4 + $0xdd0] sm:$0xff] }
 0x4f3   : > { %13167 = vmatprep.subr.bf16.mxu1 %v13948_v18  ;;  %v13255_v58 = vpack.c.bf16 %v10612_v57, %v10611_v56  ;;  %v10727_v57 = vld [vmem:[%s19890_s4 + $0x1088] sm:$0xff] }
 0x4f4   : > { %v17635_v55 = vpop.f32.mrb[16].mxu1 }
 0x4f5   : > { %v4017_v63 = vpop.f32.mrb[17].mxu1 }
 0x4f6   : > { %13169 = vmatpush1.bf16.msra.mxu1 %v13168_v59  ;;  %v10614_v59 = vld [vmem:[%s19890_s4 + $0xde0] sm:$0xff]  ;;  %v10616_v63 = vld [vmem:[%s19890_s4 + $0xdf0] sm:$0xff] }
 0x4f7   : > { %13170 = vmatprep.subr.bf16.mxu1 %v13948_v18  ;;  %v13258_v60 = vpack.c.bf16 %v10614_v59, %v10613_v15  ;;  %v10729_v59 = vld [vmem:[%s19890_s4 + $0x1098] sm:$0xff] }
 0x4fa   : > { %13172 = vmatpush1.bf16.msra.mxu1 %v13171_v1  ;;  %v13261_v1 = vpack.c.bf16 %v10616_v63, %v10615_v62  ;;  %v10731_v63 = vld [vmem:[%s19890_s4 + $0x10a8] sm:$0xff] }
 0x4fb   : > { %13173 = vmatprep.subr.bf16.mxu1 %v13948_v18 }
 0x4fe   : > { %13175 = vmatpush1.bf16.msra.mxu1 %v13174_v5  ;;  %v13264_v5 = vpack.c.bf16 %v10618_v4, %v10617_v2 }
 0x4ff   : > { %13176 = vmatprep.subr.bf16.mxu1 %v13948_v18 }
 0x502   : > { %13178 = vmatpush1.bf16.msra.mxu1 %v13177_v10  ;;  %v10619_v10 = vld [vmem:[%s19890_s4 + $0xe08] sm:$0xf] }
 0x503   : > { %13179 = vmatprep.subr.bf16.mxu1 %v13948_v18 }
 0x506   : > { %13181 = vmatpush1.bf16.msra.mxu1 %v13180_v13  ;;  %v10662_v13 = vld [vmem:[%s19890_s4 + $0xef0] sm:$0xff] }
 0x507   : > { %13182 = vmatprep.subr.bf16.mxu1 %v13948_v18  ;;  %v13306_v14 = vpack.c.bf16 %v10662_v13, %v10661_v11  ;;  %v10736_v11 = vld [vmem:[%s19890_s4 + $0x10d0] sm:$0xff] }
 0x50a   : > { %13184 = vmatpush1.bf16.msra.mxu1 %v13183_v16  ;;  %v10664_v16 = vld [vmem:[%s19890_s4 + $0xf00] sm:$0xff] }
 0x50b   : > { %13185 = vmatprep.subr.bf16.mxu1 %v13948_v18  ;;  %v13309_v32 = vpack.c.bf16 %v10664_v16, %v10663_v51  ;;  %v10738_v51 = vld [vmem:[%s19890_s4 + $0x10e0] sm:$0xff] }
 0x50e   : > { %13187 = vmatpush1.bf16.msra.mxu1 %v13186_v19  ;;  %v10666_v19 = vld [vmem:[%s19890_s4 + $0xf10] sm:$0xff] }
 0x50f   : > { %13188 = vmatprep.subr.bf16.mxu1 %v13948_v18  ;;  %v13312_v20 = vpack.c.bf16 %v10666_v19, %v10665_v17 }
 0x512   : > { %13190 = vmatpush1.bf16.msra.mxu1 %v13189_v22  ;;  %v10668_v22 = vld [vmem:[%s19890_s4 + $0xf20] sm:$0xff] }
 0x513   : > { %13191 = vmatprep.subr.bf16.mxu1 %v13948_v18 }
 0x516   : > { %13193 = vmatpush1.bf16.msra.mxu1 %v13192_v33  ;;  %v13315_v33 = vpack.c.bf16 %v10668_v22, %v10667_v21  ;;  %v10740_v21 = vld [vmem:[%s19890_s4 + $0x10f0] sm:$0xff]  ;;  %v10206_v22 = vld [vmem:[%s19891_s5 + $0x40] sm:$0xff] }
 0x517   : > { %5689 = vmatprep.subr.mxu1 %v13945_v0 }
 0x51a   : > { %10556 = vmatpush1.msk.msra.mxu1 %vm2820_vm6, %v10555_v29  ;;  %v13318_v29 = vpack.c.bf16 %v10670_v27, %v10669_v9  ;;  %v10212_v9 = vld [vmem:[%s19890_s4 + $0x3f0] sm:$0xff]  ;;  %v10742_v27 = vld [vmem:[%s19890_s4 + $0x1100] sm:$0xff] }
 0x51b   : > { %5706 = vmatmul.mubr.f32.vlgmr.msra.gmra.mrb[26].mxu1 %v16828_v40  ;;  %13230 = vmatprep.subr.bf16.mxu1 %v13948_v18 }
 0x51c   : > { %13232 = vmatpush1.bf16.msra.mxu1 %v13231_v30  ;;  %10621 = vmatprep.mubr.msk.f32.mxu1 %vm2816_vm7, %v16830_v28  ;;  %v10671_v30 = vld [vmem:[%s19890_s4 + $0xf38] sm:$0xff] }
 0x51d   : > { %13233 = vmatprep.subr.bf16.mxu1 %v13948_v18  ;;  %v13321_v34 = vpack.c.bf16 %v10672_v26, %v10671_v30 }
 0x520   : > { %13235 = vmatpush1.bf16.msra.mxu1 %v13234_v37  ;;  %v10674_v37 = vld [vmem:[%s19890_s4 + $0xf50] sm:$0xff] }
 0x521   : > { %13236 = vmatprep.subr.bf16.mxu1 %v13948_v18  ;;  %v13324_v6 = vpack.c.bf16 %v10674_v37, %v10673_v36  ;;  %v10214_v36 = vld [vmem:[%s19890_s4 + $0x400] sm:$0xff]  ;;  %v10743_v37 = vld [vmem:[%s19890_s4 + $0x1108] sm:$0xff] }
 0x524   : > { %13238 = vmatpush1.bf16.msra.mxu1 %v13237_v12  ;;  %v10676_v12 = vld [vmem:[%s19890_s4 + $0xf60] sm:$0xff] }
 0x525   : > { %13239 = vmatprep.subr.bf16.mxu1 %v13948_v18  ;;  %v13327_v39 = vpack.c.bf16 %v10676_v12, %v10675_v38 }
 0x526   : > { %v17733_v46 = vpop.f32.mrb[18].mxu1 }
 0x527   : > { %v4393_v44 = vpop.f32.mrb[19].mxu1 }
 0x528   : > { %13241 = vmatpush1.bf16.msra.mxu1 %v13240_v42  ;;  %v10678_v42 = vld [vmem:[%s19890_s4 + $0xf70] sm:$0xff]  ;;  %v10680_v44 = vld [vmem:[%s19890_s4 + $0xf80] sm:$0xff] }
 0x529   : > { %13242 = vmatprep.subr.bf16.mxu1 %v13948_v18  ;;  %v13330_v31 = vpack.c.bf16 %v10678_v42, %v10677_v41  ;;  %v10216_v41 = vld [vmem:[%s19890_s4 + $0x410] sm:$0xff]  ;;  %v10745_v42 = vld [vmem:[%s19890_s4 + $0x1118] sm:$0xff] }
 0x52c   : > { %13244 = vmatpush1.bf16.msra.mxu1 %v13243_v47  ;;  %v13333_v47 = vpack.c.bf16 %v10680_v44, %v10679_v43 }
 0x52d   : > { %13245 = vmatprep.subr.bf16.mxu1 %v13948_v18 }
 0x530   : > { %13247 = vmatpush1.bf16.msra.mxu1 %v13246_v61  ;;  %v13336_v61 = vpack.c.bf16 %v10682_v49, %v10681_v48  ;;  %v10218_v48 = vld [vmem:[%s19890_s4 + $0x420] sm:$0xff] }
 0x531   : > { %13248 = vmatprep.subr.bf16.mxu1 %v13948_v18 }
 0x534   : > { %13250 = vmatpush1.bf16.msra.mxu1 %v13249_v52  ;;  %v10683_v52 = vld [vmem:[%s19890_s4 + $0xf98] sm:$0xf] }
 0x535   : > { %13251 = vmatprep.subr.bf16.mxu1 %v13948_v18 }
 0x538   : > { %13253 = vmatpush1.bf16.msra.mxu1 %v13252_v54  ;;  %v10726_v54 = vld [vmem:[%s19890_s4 + $0x1080] sm:$0xff] }
 0x539   : > { %13254 = vmatprep.subr.bf16.mxu1 %v13948_v18  ;;  %v13378_v56 = vpack.c.bf16 %v10726_v54, %v10725_v35 }
 0x53c   : > { %13256 = vmatpush1.bf16.msra.mxu1 %v13255_v58  ;;  %v10728_v58 = vld [vmem:[%s19890_s4 + $0x1090] sm:$0xff] }
 0x53d   : > { %13257 = vmatprep.subr.bf16.mxu1 %v13948_v18  ;;  %v13381_v15 = vpack.c.bf16 %v10728_v58, %v10727_v57  ;;  %v10790_v57 = vld [vmem:[%s19890_s4 + $0x1210] sm:$0xff]  ;;  %v10221_v58 = vld [vmem:[%s19890_s4 + $0x438] sm:$0xff] }
 0x540   : > { %13259 = vmatpush1.bf16.msra.mxu1 %v13258_v60  ;;  %v10730_v60 = vld [vmem:[%s19890_s4 + $0x10a0] sm:$0xff] }
 0x541   : > { %13260 = vmatprep.subr.bf16.mxu1 %v13948_v18  ;;  %v13384_v62 = vpack.c.bf16 %v10730_v60, %v10729_v59 }
 0x544   : > { %13262 = vmatpush1.bf16.msra.mxu1 %v13261_v1  ;;  %v10732_v1 = vld [vmem:[%s19890_s4 + $0x10b0] sm:$0xff] }
 0x545   : > { %13263 = vmatprep.subr.bf16.mxu1 %v13948_v18 }
 0x548   : > { %13265 = vmatpush1.bf16.msra.mxu1 %v13264_v5  ;;  %v13387_v5 = vpack.c.bf16 %v10732_v1, %v10731_v63  ;;  %v10792_v63 = vld [vmem:[%s19890_s4 + $0x1220] sm:$0xff]  ;;  %v10223_v1 = vld [vmem:[%s19890_s4 + $0x448] sm:$0xff] }
 0x549   : > { %6065 = vmatprep.subr.mxu1 %v13945_v0 }
 0x54c   : > { %10620 = vmatpush1.msk.msra.mxu1 %vm2820_vm6, %v10619_v10  ;;  %v13390_v10 = vpack.c.bf16 %v10734_v8, %v10733_v7  ;;  %v10793_v8 = vld [vmem:[%s19890_s4 + $0x1228] sm:$0xff] }
 0x54d   : > { %6082 = vmatmul.mubr.f32.vlgmr.msra.gmra.mrb[28].mxu1 %v16828_v40  ;;  %13302 = vmatprep.subr.bf16.mxu1 %v13948_v18 }
 0x54e   : > { %13304 = vmatpush1.bf16.msra.mxu1 %v13303_v45  ;;  %10685 = vmatprep.mubr.msk.f32.mxu1 %vm2816_vm7, %v16830_v28  ;;  %v10735_v45 = vld [vmem:[%s19890_s4 + $0x10c8] sm:$0xff] }
 0x54f   : > { %13305 = vmatprep.subr.bf16.mxu1 %v13948_v18  ;;  %v13393_v13 = vpack.c.bf16 %v10736_v11, %v10735_v45  ;;  %v10225_v45 = vld [vmem:[%s19890_s4 + $0x458] sm:$0xff]  ;;  %v10226_v11 = vld [vmem:[%s19890_s4 + $0x460] sm:$0xff] }
 0x552   : > { %13307 = vmatpush1.bf16.msra.mxu1 %v13306_v14  ;;  %v10737_v14 = vld [vmem:[%s19890_s4 + $0x10d8] sm:$0xff] }
 0x553   : > { %13308 = vmatprep.subr.bf16.mxu1 %v13948_v18  ;;  %v13396_v17 = vpack.c.bf16 %v10738_v51, %v10737_v14  ;;  %v12820_v51 = vpack.c.bf16 %v10226_v11, %v10225_v45  ;;  %v10270_v45 = vld [vmem:[%s19891_s5 + $0x60] sm:$0xff]  ;;  %v10275_v11 = vld [vmem:[%s19890_s4 + $0x578] sm:$0xff] }
 0x556   : > { %13310 = vmatpush1.bf16.msra.mxu1 %v13309_v32  ;;  %v10175_v32 = vld [vmem:[%s19891_s5 + $0x38] sm:$0xff] }
 0x557   : > { %13311 = vmatprep.subr.bf16.mxu1 %v13948_v18 }
 0x558   : > { %v17827_v24 = vpop.f32.mrb[20].mxu1 }
 0x559   : > { %v4769_v25 = vpop.f32.mrb[21].mxu1 }
 0x55a   : > { %13313 = vmatpush1.bf16.msra.mxu1 %v13312_v20  ;;  %v10739_v20 = vld [vmem:[%s19890_s4 + $0x10e8] sm:$0xff] }
 0x55b   : > { %13314 = vmatprep.subr.bf16.mxu1 %v13948_v18  ;;  %v13399_v25 = vpack.c.bf16 %v10740_v21, %v10739_v20  ;;  %v10228_v20 = vld [vmem:[%s19890_s4 + $0x470] sm:$0xff] }
 0x55e   : > { %13316 = vmatpush1.bf16.msra.mxu1 %v13315_v33  ;;  %v10211_v33 = vld [vmem:[%s19890_s4 + $0x3e8] sm:$0xff] }
 0x55f   : > { %13317 = vmatprep.subr.bf16.mxu1 %v13948_v18  ;;  %v12799_v30 = vpack.c.bf16 %v10212_v9, %v10211_v33  ;;  %v10798_v33 = vld [vmem:[%s19890_s4 + $0x1250] sm:$0xff]  ;;  %v10229_v9 = vld [vmem:[%s19890_s4 + $0x478] sm:$0xff] }
 0x562   : > { %13319 = vmatpush1.bf16.msra.mxu1 %v13318_v29  ;;  %v10207_v29 = vld [vmem:[%s19891_s5 + $0x48] sm:$0xff] }
 0x563   : > { %13320 = vmatprep.subr.bf16.mxu1 %v13948_v18 }
 0x566   : > { %13322 = vmatpush1.bf16.msra.mxu1 %v13321_v34  ;;  %v10213_v34 = vld [vmem:[%s19890_s4 + $0x3f8] sm:$0xff] }
 0x567   : > { %13323 = vmatprep.subr.bf16.mxu1 %v13948_v18  ;;  %v12802_v38 = vpack.c.bf16 %v10214_v36, %v10213_v34  ;;  %v10231_v34 = vld [vmem:[%s19890_s4 + $0x488] sm:$0xff]  ;;  %v10232_v36 = vld [vmem:[%s19890_s4 + $0x490] sm:$0xff] }
 0x56a   : > { %13325 = vmatpush1.bf16.msra.mxu1 %v13324_v6  ;;  %v10744_v6 = vld [vmem:[%s19890_s4 + $0x1110] sm:$0xff] }
 0x56b   : > { %13326 = vmatprep.subr.bf16.mxu1 %v13948_v18  ;;  %v13405_v12 = vpack.c.bf16 %v10744_v6, %v10743_v37  ;;  %v12829_v6 = vpack.c.bf16 %v10232_v36, %v10231_v34  ;;  %v10286_v34 = vld [vmem:[%s19890_s4 + $0x5d0] sm:$0xff] }
 0x56e   : > { %13328 = vmatpush1.bf16.msra.mxu1 %v13327_v39  ;;  %v10215_v39 = vld [vmem:[%s19890_s4 + $0x408] sm:$0xff] }
 0x56f   : > { %13329 = vmatprep.subr.bf16.mxu1 %v13948_v18  ;;  %v12805_v43 = vpack.c.bf16 %v10216_v41, %v10215_v39  ;;  %v10233_v39 = vld [vmem:[%s19890_s4 + $0x498] sm:$0xff]  ;;  %v10234_v41 = vld [vmem:[%s19890_s4 + $0x4a0] sm:$0xff] }
 0x572   : > { %13331 = vmatpush1.bf16.msra.mxu1 %v13330_v31  ;;  %v10746_v31 = vld [vmem:[%s19890_s4 + $0x1120] sm:$0xff] }
 0x573   : > { %13332 = vmatprep.subr.bf16.mxu1 %v13948_v18  ;;  %v13408_v44 = vpack.c.bf16 %v10746_v31, %v10745_v42  ;;  %v12832_v31 = vpack.c.bf16 %v10234_v41, %v10233_v39  ;;  %v10290_v39 = vld [vmem:[%s19890_s4 + $0x5f0] sm:$0xff] }
 0x576   : > { %13334 = vmatpush1.bf16.msra.mxu1 %v13333_v47  ;;  %v10217_v47 = vld [vmem:[%s19890_s4 + $0x418] sm:$0xff] }
 0x577   : > { %13335 = vmatprep.subr.bf16.mxu1 %v13948_v18  ;;  %v12808_v49 = vpack.c.bf16 %v10218_v48, %v10217_v47  ;;  %v10805_v48 = vld [vmem:[%s19890_s4 + $0x1288] sm:$0xff] }
 0x57a   : > { %13337 = vmatpush1.bf16.msra.mxu1 %v13336_v61  ;;  %v10787_v61 = vld [vmem:[%s19890_s4 + $0x11f8] sm:$0xff] }
 0x57b   : > { %6441 = vmatprep.subr.mxu1 %v13945_v0  ;;  %v13447_v35 = vpack.c.bf16 %v10788_v3, %v10787_v61  ;;  %v10235_v61 = vld [vmem:[%s19890_s4 + $0x4a8] sm:$0xf] }
 0x57e   : > { %10684 = vmatpush1.msk.msra.mxu1 %vm2820_vm6, %v10683_v52  ;;  %v10220_v52 = vld [vmem:[%s19890_s4 + $0x430] sm:$0xff] }
 0x57f   : > { %6458 = vmatmul.mubr.f32.vlgmr.msra.gmra.mrb[30].mxu1 %v16828_v40  ;;  %13374 = vmatprep.subr.bf16.mxu1 %v13948_v18  ;;  %v12811_v54 = vpack.c.bf16 %v10220_v52, %v10219_v50  ;;  %v10807_v50 = vld [vmem:[%s19890_s4 + $0x1298] sm:$0xff]  ;;  %v10808_v52 = vld [vmem:[%s19890_s4 + $0x12a0] sm:$0xff] }
 0x580   : > { %13376 = vmatpush1.bf16.msra.mxu1 %v13375_v53  ;;  %10749 = vmatprep.mubr.msk.f32.mxu1 %vm2816_vm7, %v16830_v28  ;;  %v10747_v53 = vld [vmem:[%s19890_s4 + $0x1128] sm:$0xf] }
 0x581   : > { %13377 = vmatprep.subr.bf16.mxu1 %v13948_v18 }
 0x584   : > { %13379 = vmatpush1.bf16.msra.mxu1 %v13378_v56  ;;  %v10789_v56 = vld [vmem:[%s19890_s4 + $0x1208] sm:$0xff] }
 0x585   : > { %13380 = vmatprep.subr.bf16.mxu1 %v13948_v18  ;;  %v13450_v59 = vpack.c.bf16 %v10790_v57, %v10789_v56  ;;  %v10811_v57 = vld [vmem:[%s19890_s4 + $0x12b8] sm:$0xf] }
 0x588   : > { %13382 = vmatpush1.bf16.msra.mxu1 %v13381_v15  ;;  %v10222_v15 = vld [vmem:[%s19890_s4 + $0x440] sm:$0xff] }
 0x589   : > { %13383 = vmatprep.subr.bf16.mxu1 %v13948_v18  ;;  %v12814_v60 = vpack.c.bf16 %v10222_v15, %v10221_v58 }
 0x58a   : > { %v17921_v2 = vpop.f32.mrb[22].mxu1 }
 0x58b   : > { %v5145_v4 = vpop.f32.mrb[23].mxu1 }
 0x58c   : > { %13385 = vmatpush1.bf16.msra.mxu1 %v13384_v62  ;;  %v10791_v62 = vld [vmem:[%s19890_s4 + $0x1218] sm:$0xff]  ;;  %v10224_v4 = vld [vmem:[%s19890_s4 + $0x450] sm:$0xff] }
 0x58d   : > { %13386 = vmatprep.subr.bf16.mxu1 %v13948_v18  ;;  %v12817_v7 = vpack.c.bf16 %v10224_v4, %v10223_v1 }
 0x590   : > { %13388 = vmatpush1.bf16.msra.mxu1 %v13387_v5  ;;  %v13453_v5 = vpack.c.bf16 %v10792_v63, %v10791_v62  ;;  %v10238_v62 = vld [vmem:[%s19891_s5 + $0x50] sm:$0xff] }
 0x591   : > { %13389 = vmatprep.subr.bf16.mxu1 %v13948_v18 }
 0x594   : > { %13391 = vmatpush1.bf16.msra.mxu1 %v13390_v10  ;;  %v10794_v10 = vld [vmem:[%s19890_s4 + $0x1230] sm:$0xff] }
 0x595   : > { %13392 = vmatprep.subr.bf16.mxu1 %v13948_v18 }
 0x598   : > { %v3451_v16 = vpop.f32.mrb[12].mxu0  ;;  %13394 = vmatpush1.bf16.msra.mxu1 %v13393_v13  ;;  %v13456_v13 = vpack.c.bf16 %v10794_v10, %v10793_v8  ;;  %v10239_v8 = vld [vmem:[%s19891_s5 + $0x58] sm:$0xff] }
 0x599   : > { %v3453_v19 = vpop.f32.mrb[13].mxu0  ;;  %11292 = vmatprep.subr.msk.mxu0 %vm3005_vm9, %v3451_v16  ;;  %13395 = vmatprep.subr.bf16.mxu1 %v13948_v18 }
 0x59a   : > { %11293 = vmatpush3.msk.msra.mxu0 %vm3005_vm9, %v3451_v16  ;;  %v10795_v16 = vld [vmem:[%s19890_s4 + $0x1238] sm:$0xff]  ;;  %v10227_v19 = vld [vmem:[%s19890_s4 + $0x468] sm:$0xff] }
 0x59b   : > { %11295 = vmatmul.mubr.msk.f32.vlgmr.msra.gmra.mrb[10].mxu0 %vm2998_vm8, %v10175_v32  ;;  %11297 = vmatprep.subr.msk.mxu0 %vm3005_vm9, %v17539_v23  ;;  %v10796_v32 = vld [vmem:[%s19890_s4 + $0x1240] sm:$0xff] }
 0x59c   : > { %11298 = vmatpush3.msk.msra.mxu0 %vm3005_vm9, %v17539_v23  ;;  %13397 = vmatpush1.bf16.msra.mxu1 %v13396_v17  ;;  %v10741_v23 = vld [vmem:[%s19890_s4 + $0x10f8] sm:$0xff]  ;;  %v13459_v21 = vpack.c.bf16 %v10796_v32, %v10795_v16  ;;  %v10278_v32 = vld [vmem:[%s19890_s4 + $0x590] sm:$0xff] }
 0x59d   : > { %13398 = vmatprep.subr.bf16.mxu1 %v13948_v18  ;;  %11299 = vmatprep.mubr.msk.f32.mxu0 %vm2998_vm8, %v10206_v22  ;;  %v13402_v26 = vpack.c.bf16 %v10742_v27, %v10741_v23  ;;  %v12823_v22 = vpack.c.bf16 %v10228_v20, %v10227_v19  ;;  %v10230_v23 = vld [vmem:[%s19890_s4 + $0x480] sm:$0xff]  ;;  %v10279_v19 = vld [vmem:[%s19890_s4 + $0x598] sm:$0xff] }
 0x59e   : > { %12798 = vmatprep.subr.bf16.mxu0 %v13948_v18  ;;  %v10280_v20 = vld [vmem:[%s19890_s4 + $0x5a0] sm:$0xff] }
 0x5a0   : > { %13400 = vmatpush1.bf16.msra.mxu1 %v13399_v25  ;;  %v10797_v25 = vld [vmem:[%s19890_s4 + $0x1248] sm:$0xff] }
 0x5a1   : > { %13401 = vmatprep.subr.bf16.mxu1 %v13948_v18  ;;  %v13462_v27 = vpack.c.bf16 %v10798_v33, %v10797_v25  ;;  %v12877_v25 = vpack.c.bf16 %v10280_v20, %v10279_v19  ;;  %v10281_v33 = vld [vmem:[%s19890_s4 + $0x5a8] sm:$0xff]  ;;  %v10349_v20 = vld [vmem:[%s19890_s4 + $0x758] sm:$0xff] }
 0x5a3   : > { %11300 = vmatmul.mubr.msk.f32.vlgmr.msra.gmra.mrb[10].mxu0 %vm2998_vm8, %v10207_v29  ;;  %v12826_v29 = vpack.c.bf16 %v10230_v23, %v10229_v9  ;;  %v10282_v9 = vld [vmem:[%s19890_s4 + $0x5b0] sm:$0xff] }
 0x5a4   : > { %12800 = vmatpush1.bf16.msra.mxu0 %v12799_v30  ;;  %10237 = vmatprep.mubr.msk.f32.mxu0 %vm2816_vm7, %v16830_v28  ;;  %v10799_v30 = vld [vmem:[%s19890_s4 + $0x1258] sm:$0xff]  ;;  %v12880_v23 = vpack.c.bf16 %v10282_v9, %v10281_v33  ;;  %v10351_v33 = vld [vmem:[%s19890_s4 + $0x768] sm:$0xff]  ;;  %v10352_v9 = vld [vmem:[%s19890_s4 + $0x770] sm:$0xff] }
 0x5a5   : > { %13403 = vmatpush1.bf16.msra.mxu1 %v13402_v26  ;;  %12801 = vmatprep.subr.bf16.mxu0 %v13948_v18  ;;  %v10800_v26 = vld [vmem:[%s19890_s4 + $0x1260] sm:$0xff] }
 0x5a6   : > { %13404 = vmatprep.subr.bf16.mxu1 %v13948_v18  ;;  %v13465_v37 = vpack.c.bf16 %v10800_v26, %v10799_v30  ;;  %v10285_v26 = vld [vmem:[%s19890_s4 + $0x5c8] sm:$0xff] }
 0x5a7   : > { %v12886_v36 = vpack.c.bf16 %v10286_v34, %v10285_v26  ;;  %v10355_v26 = vld [vmem:[%s19890_s4 + $0x788] sm:$0xff]  ;;  %v10356_v34 = vld [vmem:[%s19890_s4 + $0x790] sm:$0xff] }
 0x5a8   : > { %12803 = vmatpush1.bf16.msra.mxu0 %v12802_v38  ;;  %v10801_v38 = vld [vmem:[%s19890_s4 + $0x1268] sm:$0xff] }
 0x5a9   : > { %13406 = vmatpush1.bf16.msra.mxu1 %v13405_v12  ;;  %12804 = vmatprep.subr.bf16.mxu0 %v13948_v18  ;;  %v10802_v12 = vld [vmem:[%s19890_s4 + $0x1270] sm:$0xff] }
 0x5aa   : > { %13407 = vmatprep.subr.bf16.mxu1 %v13948_v18  ;;  %v13468_v42 = vpack.c.bf16 %v10802_v12, %v10801_v38  ;;  %v10289_v12 = vld [vmem:[%s19890_s4 + $0x5e8] sm:$0xff] }
 0x5ab   : > { %v12892_v41 = vpack.c.bf16 %v10290_v39, %v10289_v12  ;;  %v10359_v12 = vld [vmem:[%s19890_s4 + $0x7a8] sm:$0xff]  ;;  %v10360_v39 = vld [vmem:[%s19890_s4 + $0x7b0] sm:$0xff] }
 0x5ac   : > { %12806 = vmatpush1.bf16.msra.mxu0 %v12805_v43  ;;  %v10803_v43 = vld [vmem:[%s19890_s4 + $0x1278] sm:$0xff] }
 0x5ad   : > { %13409 = vmatpush1.bf16.msra.mxu1 %v13408_v44  ;;  %12807 = vmatprep.subr.bf16.mxu0 %v13948_v18  ;;  %v10804_v44 = vld [vmem:[%s19890_s4 + $0x1280] sm:$0xff] }
 0x5ae   : > { %6817 = vmatprep.subr.mxu1 %v13945_v0  ;;  %v13471_v47 = vpack.c.bf16 %v10804_v44, %v10803_v43  ;;  %v10293_v44 = vld [vmem:[%s19890_s4 + $0x608] sm:$0xff] }
 0x5b0   : > { %12809 = vmatpush1.bf16.msra.mxu0 %v12808_v49  ;;  %v10806_v49 = vld [vmem:[%s19890_s4 + $0x1290] sm:$0xff] }
 0x5b1   : > { %10748 = vmatpush1.msk.msra.mxu1 %vm2820_vm6, %v10747_v53  ;;  %12810 = vmatprep.subr.bf16.mxu0 %v13948_v18  ;;  %v13474_v3 = vpack.c.bf16 %v10806_v49, %v10805_v48  ;;  %v13477_v53 = vpack.c.bf16 %v10808_v52, %v10807_v50  ;;  %v10295_v49 = vld [vmem:[%s19890_s4 + $0x618] sm:$0xff]  ;;  %v10297_v50 = vld [vmem:[%s19890_s4 + $0x628] sm:$0xff]  ;;  %v10298_v52 = vld [vmem:[%s19890_s4 + $0x630] sm:$0xff] }
 0x5b2   : > { %6834 = vmatmul.mubr.f32.vlgmr.msra.gmra.mrb[32].mxu1 %v16828_v40  ;;  %13446 = vmatprep.subr.bf16.mxu1 %v13948_v18 }
 0x5b3   : > { %13448 = vmatpush1.bf16.msra.mxu1 %v13447_v35  ;;  %10813 = vmatprep.mubr.msk.f32.mxu1 %vm2816_vm7, %v16830_v28  ;;  %v10809_v35 = vld [vmem:[%s19890_s4 + $0x12a8] sm:$0xff] }
 0x5b4   : > { %12812 = vmatpush1.bf16.msra.mxu0 %v12811_v54  ;;  %13449 = vmatprep.subr.bf16.mxu1 %v13948_v18  ;;  %v10810_v54 = vld [vmem:[%s19890_s4 + $0x12b0] sm:$0xff] }
 0x5b5   : > { %12813 = vmatprep.subr.bf16.mxu0 %v13948_v18  ;;  %v13480_v56 = vpack.c.bf16 %v10810_v54, %v10809_v35  ;;  %v10299_v35 = vld [vmem:[%s19890_s4 + $0x638] sm:$0xf]  ;;  %v10302_v54 = vld [vmem:[%s19891_s5 + $0x70] sm:$0xff] }
 0x5b7   : > { %13451 = vmatpush1.bf16.msra.mxu1 %v13450_v59 }
 0x5b8   : > { %12815 = vmatpush1.bf16.msra.mxu0 %v12814_v60  ;;  %13452 = vmatprep.subr.bf16.mxu1 %v13948_v18 }
 0x5b9   : > { %12816 = vmatprep.subr.bf16.mxu0 %v13948_v18 }
 0x5bb   : > { %13454 = vmatpush1.bf16.msra.mxu1 %v13453_v5 }
 0x5bc   : > { %12818 = vmatpush1.bf16.msra.mxu0 %v12817_v7  ;;  %v18083_v14 = vpop.f32.mrb[24].mxu1  ;;  %13455 = vmatprep.subr.bf16.mxu1 %v13948_v18 }
 0x5bd   : > { %v5333_v17 = vpop.f32.mrb[25].mxu1  ;;  %12819 = vmatprep.subr.bf16.mxu0 %v13948_v18 }
 0x5bf   : > { %13457 = vmatpush1.bf16.msra.mxu1 %v13456_v13  ;;  %v10276_v13 = vld [vmem:[%s19890_s4 + $0x580] sm:$0xff] }
 0x5c0   : > { %12821 = vmatpush1.bf16.msra.mxu0 %v12820_v51  ;;  %13458 = vmatprep.subr.bf16.mxu1 %v13948_v18  ;;  %v10271_v51 = vld [vmem:[%s19891_s5 + $0x68] sm:$0xff]  ;;  %v12871_v16 = vpack.c.bf16 %v10276_v13, %v10275_v11  ;;  %v10344_v11 = vld [vmem:[%s19890_s4 + $0x730] sm:$0xff] }
 0x5c1   : > { %12822 = vmatprep.subr.bf16.mxu0 %v13948_v18 }
 0x5c3   : > { %13460 = vmatpush1.bf16.msra.mxu1 %v13459_v21 }
 0x5c4   : > { %12824 = vmatpush1.bf16.msra.mxu0 %v12823_v22  ;;  %13461 = vmatprep.subr.bf16.mxu1 %v13948_v18 }
 0x5c5   : > { %12825 = vmatprep.subr.bf16.mxu0 %v13948_v18 }
 0x5c7   : > { %13463 = vmatpush1.bf16.msra.mxu1 %v13462_v27  ;;  %v10283_v27 = vld [vmem:[%s19890_s4 + $0x5b8] sm:$0xff] }
 0x5c8   : > { %12827 = vmatpush1.bf16.msra.mxu0 %v12826_v29  ;;  %13464 = vmatprep.subr.bf16.mxu1 %v13948_v18  ;;  %v10284_v29 = vld [vmem:[%s19890_s4 + $0x5c0] sm:$0xff] }
 0x5c9   : > { %12828 = vmatprep.subr.bf16.mxu0 %v13948_v18  ;;  %v12883_v30 = vpack.c.bf16 %v10284_v29, %v10283_v27  ;;  %v10353_v27 = vld [vmem:[%s19890_s4 + $0x778] sm:$0xff]  ;;  %v10354_v29 = vld [vmem:[%s19890_s4 + $0x780] sm:$0xff] }
 0x5cb   : > { %13466 = vmatpush1.bf16.msra.mxu1 %v13465_v37  ;;  %v10287_v37 = vld [vmem:[%s19890_s4 + $0x5d8] sm:$0xff] }
 0x5cc   : > { %12830 = vmatpush1.bf16.msra.mxu0 %v12829_v6  ;;  %13467 = vmatprep.subr.bf16.mxu1 %v13948_v18  ;;  %v10288_v6 = vld [vmem:[%s19890_s4 + $0x5e0] sm:$0xff] }
 0x5cd   : > { %12831 = vmatprep.subr.bf16.mxu0 %v13948_v18  ;;  %v12889_v38 = vpack.c.bf16 %v10288_v6, %v10287_v37  ;;  %v10357_v37 = vld [vmem:[%s19890_s4 + $0x798] sm:$0xff]  ;;  %v10358_v6 = vld [vmem:[%s19890_s4 + $0x7a0] sm:$0xff] }
 0x5cf   : > { %13469 = vmatpush1.bf16.msra.mxu1 %v13468_v42  ;;  %v10291_v42 = vld [vmem:[%s19890_s4 + $0x5f8] sm:$0xff] }
 0x5d0   : > { %12833 = vmatpush1.bf16.msra.mxu0 %v12832_v31  ;;  %13470 = vmatprep.subr.bf16.mxu1 %v13948_v18  ;;  %v10292_v31 = vld [vmem:[%s19890_s4 + $0x600] sm:$0xff] }
 0x5d1   : > { %3809 = vmatprep.subr.mxu0 %v13945_v0  ;;  %v12895_v43 = vpack.c.bf16 %v10292_v31, %v10291_v42  ;;  %v10361_v42 = vld [vmem:[%s19890_s4 + $0x7b8] sm:$0xff]  ;;  %v10362_v31 = vld [vmem:[%s19890_s4 + $0x7c0] sm:$0xff] }
 0x5d3   : > { %13472 = vmatpush1.bf16.msra.mxu1 %v13471_v47  ;;  %v10294_v47 = vld [vmem:[%s19890_s4 + $0x610] sm:$0xff] }
 0x5d4   : > { %10236 = vmatpush1.msk.msra.mxu0 %vm2820_vm6, %v10235_v61  ;;  %13473 = vmatprep.subr.bf16.mxu1 %v13948_v18  ;;  %v12898_v48 = vpack.c.bf16 %v10294_v47, %v10293_v44  ;;  %v10296_v61 = vld [vmem:[%s19890_s4 + $0x620] sm:$0xff]  ;;  %v10363_v44 = vld [vmem:[%s19890_s4 + $0x7c8] sm:$0xf]  ;;  %v10366_v47 = vld [vmem:[%s19891_s5 + $0x90] sm:$0xff] }
 0x5d5   : > { %3826 = vmatmul.mubr.f32.vlgmr.msra.gmra.mrb[14].mxu0 %v16828_v40 }
 0x5d6   : > { %11304 = vmatprep.mubr.msk.f32.mxu0 %vm2998_vm8, %v10238_v62  ;;  %v10339_v62 = vld [vmem:[%s19890_s4 + $0x708] sm:$0xff] }
 0x5d7   : > { %13475 = vmatpush1.bf16.msra.mxu1 %v13474_v3  ;;  %v12901_v3 = vpack.c.bf16 %v10296_v61, %v10295_v49  ;;  %v10367_v49 = vld [vmem:[%s19891_s5 + $0x98] sm:$0xff] }
 0x5d8   : > { %13476 = vmatprep.subr.bf16.mxu1 %v13948_v18 }
 0x5db   : > { %13478 = vmatpush1.bf16.msra.mxu1 %v13477_v53  ;;  %v12904_v53 = vpack.c.bf16 %v10298_v52, %v10297_v50  ;;  %v10403_v50 = vld [vmem:[%s19890_s4 + $0x898] sm:$0xff]  ;;  %v10404_v52 = vld [vmem:[%s19890_s4 + $0x8a0] sm:$0xff] }
 0x5dc   : > { %13479 = vmatprep.subr.bf16.mxu1 %v13948_v18 }
 0x5df   : > { %13481 = vmatpush1.bf16.msra.mxu1 %v13480_v56 }
 0x5e0   : > { %7193 = vmatprep.subr.mxu1 %v13945_v0 }
 0x5e3   : > { %10812 = vmatpush1.msk.msra.mxu1 %vm2820_vm6, %v10811_v57  ;;  %v10303_v57 = vld [vmem:[%s19891_s5 + $0x78] sm:$0xff] }
 0x5e4   : > { %7210 = vmatmul.mubr.f32.vlgmr.msra.gmra.mrb[34].mxu1 %v16828_v40 }
 0x5ee   : > { %v18183_v58 = vpop.f32.mrb[26].mxu1 }
 0x5ef   : > { %v5709_v15 = vpop.f32.mrb[27].mxu1 }
 0x620   : > { %v18185_v59 = vpop.f32.mrb[28].mxu1 }
 0x621   : > { %v6085_v60 = vpop.f32.mrb[29].mxu1 }
 0x622   : > { %v10334_v60 = vld [vmem:[%s19891_s5 + $0x80] sm:$0xff] }
 0x652   : > { %v18191_v63 = vpop.f32.mrb[30].mxu1 }
 0x653   : > { %v6461_v1 = vpop.f32.mrb[31].mxu1 }
 0x654   : > { %v10340_v1 = vld [vmem:[%s19890_s4 + $0x710] sm:$0xff] }
 0x685   : > { %v18193_v4 = vpop.f32.mrb[32].mxu1 }
 0x686   : > { %v6837_v5 = vpop.f32.mrb[33].mxu1 }
 0x687   : > { %v10335_v5 = vld [vmem:[%s19891_s5 + $0x88] sm:$0xff] }
 0x6a8   : > { %v3827_v7 = vpop.f32.mrb[14].mxu0 }
 0x6a9   : > { %v3829_v10 = vpop.f32.mrb[15].mxu0  ;;  %11302 = vmatprep.subr.msk.mxu0 %vm3005_vm9, %v3827_v7 }
 0x6aa   : > { %11303 = vmatpush3.msk.msra.mxu0 %vm3005_vm9, %v3827_v7  ;;  %v12943_v7 = vpack.c.bf16 %v10340_v1, %v10339_v62  ;;  %v10409_v62 = vld [vmem:[%s19890_s4 + $0x8c8] sm:$0xff]  ;;  %v10410_v1 = vld [vmem:[%s19890_s4 + $0x8d0] sm:$0xff] }
 0x6ab   : > { %11305 = vmatmul.mubr.msk.f32.vlgmr.msra.gmra.mrb[10].mxu0 %vm2998_vm8, %v10239_v8  ;;  %11307 = vmatprep.subr.msk.mxu0 %vm3005_vm9, %v17635_v55  ;;  %v10342_v8 = vld [vmem:[%s19890_s4 + $0x720] sm:$0xff] }
 0x6ac   : > { %11308 = vmatpush3.msk.msra.mxu0 %vm3005_vm9, %v17635_v55  ;;  %11309 = vmatprep.mubr.msk.f32.mxu0 %vm2998_vm8, %v10270_v45  ;;  %v10277_v55 = vld [vmem:[%s19890_s4 + $0x588] sm:$0xff] }
 0x6ad   : > { %12870 = vmatprep.subr.bf16.mxu0 %v13948_v18  ;;  %v12874_v17 = vpack.c.bf16 %v10278_v32, %v10277_v55  ;;  %v10343_v45 = vld [vmem:[%s19890_s4 + $0x728] sm:$0xff] }
 0x6ae   : > { %v12949_v13 = vpack.c.bf16 %v10344_v11, %v10343_v45  ;;  %v10347_v32 = vld [vmem:[%s19890_s4 + $0x748] sm:$0xff]  ;;  %v10414_v45 = vld [vmem:[%s19890_s4 + $0x8f0] sm:$0xff] }
 0x6b3   : > { %11310 = vmatmul.mubr.msk.f32.vlgmr.msra.gmra.mrb[10].mxu0 %vm2998_vm8, %v10271_v51  ;;  %v10345_v51 = vld [vmem:[%s19890_s4 + $0x738] sm:$0xff] }
 0x6b4   : > { %12872 = vmatpush1.bf16.msra.mxu0 %v12871_v16  ;;  %10301 = vmatprep.mubr.msk.f32.mxu0 %vm2816_vm7, %v16830_v28  ;;  %v10346_v16 = vld [vmem:[%s19890_s4 + $0x740] sm:$0xff] }
 0x6b5   : > { %12873 = vmatprep.subr.bf16.mxu0 %v13948_v18  ;;  %v12952_v55 = vpack.c.bf16 %v10346_v16, %v10345_v51  ;;  %v10416_v51 = vld [vmem:[%s19890_s4 + $0x900] sm:$0xff] }
 0x6b7   : > { %v18235_v21 = vpop.f32.mrb[34].mxu1 }
 0x6b8   : > { %12875 = vmatpush1.bf16.msra.mxu0 %v12874_v17  ;;  %v7213_v22 = vpop.f32.mrb[35].mxu1  ;;  %v10348_v17 = vld [vmem:[%s19890_s4 + $0x750] sm:$0xff] }
 0x6b9   : > { %12876 = vmatprep.subr.bf16.mxu0 %v13948_v18  ;;  %v12955_v19 = vpack.c.bf16 %v10348_v17, %v10347_v32  ;;  %v10350_v22 = vld [vmem:[%s19890_s4 + $0x760] sm:$0xff]  ;;  %v10418_v32 = vld [vmem:[%s19890_s4 + $0x910] sm:$0xff] }
 0x6bc   : > { %12878 = vmatpush1.bf16.msra.mxu0 %v12877_v25  ;;  %v12958_v25 = vpack.c.bf16 %v10350_v22, %v10349_v20  ;;  %v10420_v20 = vld [vmem:[%s19890_s4 + $0x920] sm:$0xff] }
 0x6bd   : > { %12879 = vmatprep.subr.bf16.mxu0 %v13948_v18 }
 0x6c0   : > { %12881 = vmatpush1.bf16.msra.mxu0 %v12880_v23  ;;  %v12961_v23 = vpack.c.bf16 %v10352_v9, %v10351_v33  ;;  %v10422_v33 = vld [vmem:[%s19890_s4 + $0x930] sm:$0xff] }
 0x6c1   : > { %12882 = vmatprep.subr.bf16.mxu0 %v13948_v18 }
 0x6c4   : > { %12884 = vmatpush1.bf16.msra.mxu0 %v12883_v30  ;;  %v12964_v30 = vpack.c.bf16 %v10354_v29, %v10353_v27  ;;  %v10424_v27 = vld [vmem:[%s19890_s4 + $0x940] sm:$0xff] }
 0x6c5   : > { %12885 = vmatprep.subr.bf16.mxu0 %v13948_v18 }
 0x6c8   : > { %12887 = vmatpush1.bf16.msra.mxu0 %v12886_v36  ;;  %v12967_v36 = vpack.c.bf16 %v10356_v34, %v10355_v26  ;;  %v10426_v26 = vld [vmem:[%s19890_s4 + $0x950] sm:$0xff] }
 0x6c9   : > { %12888 = vmatprep.subr.bf16.mxu0 %v13948_v18 }
 0x6cc   : > { %12890 = vmatpush1.bf16.msra.mxu0 %v12889_v38  ;;  %v12970_v38 = vpack.c.bf16 %v10358_v6, %v10357_v37  ;;  %v10430_v37 = vld [vmem:[%s19891_s5 + $0xb0] sm:$0xff] }
 0x6cd   : > { %12891 = vmatprep.subr.bf16.mxu0 %v13948_v18 }
 0x6d0   : > { %12893 = vmatpush1.bf16.msra.mxu0 %v12892_v41  ;;  %v12973_v41 = vpack.c.bf16 %v10360_v39, %v10359_v12  ;;  %v10462_v39 = vld [vmem:[%s19891_s5 + $0xc0] sm:$0xff] }
 0x6d1   : > { %12894 = vmatprep.subr.bf16.mxu0 %v13948_v18 }
 0x6d4   : > { %12896 = vmatpush1.bf16.msra.mxu0 %v12895_v43  ;;  %v12976_v43 = vpack.c.bf16 %v10362_v31, %v10361_v42  ;;  %v10494_v42 = vld [vmem:[%s19891_s5 + $0xd0] sm:$0xff]  ;;  %v10500_v31 = vld [vmem:[%s19890_s4 + $0xaf8] sm:$0xff] }
 0x6d5   : > { %12897 = vmatprep.subr.bf16.mxu0 %v13948_v18 }
 0x6d8   : > { %12899 = vmatpush1.bf16.msra.mxu0 %v12898_v48 }
 0x6d9   : > { %12900 = vmatprep.subr.bf16.mxu0 %v13948_v18 }
 0x6dc   : > { %12902 = vmatpush1.bf16.msra.mxu0 %v12901_v3  ;;  %v10398_v3 = vld [vmem:[%s19891_s5 + $0xa0] sm:$0xff] }
 0x6dd   : > { %12903 = vmatprep.subr.bf16.mxu0 %v13948_v18 }
 0x6e0   : > { %12905 = vmatpush1.bf16.msra.mxu0 %v12904_v53  ;;  %v10399_v53 = vld [vmem:[%s19891_s5 + $0xa8] sm:$0xff] }
 0x6e1   : > { %4185 = vmatprep.subr.mxu0 %v13945_v0 }
 0x6e4   : > { %10300 = vmatpush1.msk.msra.mxu0 %vm2820_vm6, %v10299_v35  ;;  %v13015_v35 = vpack.c.bf16 %v10404_v52, %v10403_v50  ;;  %v10505_v50 = vld [vmem:[%s19890_s4 + $0xb20] sm:$0xff]  ;;  %v10506_v52 = vld [vmem:[%s19890_s4 + $0xb28] sm:$0xff] }
 0x6e5   : > { %4202 = vmatmul.mubr.f32.vlgmr.msra.gmra.mrb[16].mxu0 %v16828_v40 }
 0x6e6   : > { %11314 = vmatprep.mubr.msk.f32.mxu0 %vm2998_vm8, %v10302_v54  ;;  %v10406_v54 = vld [vmem:[%s19890_s4 + $0x8b0] sm:$0xff] }
 0x7b8   : > { %v4203_v56 = vpop.f32.mrb[16].mxu0 }
 0x7b9   : > { %v4205_v15 = vpop.f32.mrb[17].mxu0  ;;  %11312 = vmatprep.subr.msk.mxu0 %vm3005_vm9, %v4203_v56 }
 0x7ba   : > { %11313 = vmatpush3.msk.msra.mxu0 %vm3005_vm9, %v4203_v56  ;;  %v10408_v15 = vld [vmem:[%s19890_s4 + $0x8c0] sm:$0xff] }
 0x7bb   : > { %11315 = vmatmul.mubr.msk.f32.vlgmr.msra.gmra.mrb[10].mxu0 %vm2998_vm8, %v10303_v57  ;;  %11317 = vmatprep.subr.msk.mxu0 %vm3005_vm9, %v17733_v46  ;;  %v10407_v57 = vld [vmem:[%s19890_s4 + $0x8b8] sm:$0xff] }
 0x7bc   : > { %11318 = vmatpush3.msk.msra.mxu0 %vm3005_vm9, %v17733_v46  ;;  %11319 = vmatprep.mubr.msk.f32.mxu0 %vm2998_vm8, %v10334_v60  ;;  %v10341_v46 = vld [vmem:[%s19890_s4 + $0x718] sm:$0xff]  ;;  %v13021_v60 = vpack.c.bf16 %v10408_v15, %v10407_v57  ;;  %v10510_v57 = vld [vmem:[%s19890_s4 + $0xb48] sm:$0xff] }
 0x7bd   : > { %12942 = vmatprep.subr.bf16.mxu0 %v13948_v18  ;;  %v12946_v10 = vpack.c.bf16 %v10342_v8, %v10341_v46  ;;  %v10412_v46 = vld [vmem:[%s19890_s4 + $0x8e0] sm:$0xff] }
 0x7c3   : > { %11320 = vmatmul.mubr.msk.f32.vlgmr.msra.gmra.mrb[10].mxu0 %vm2998_vm8, %v10335_v5  ;;  %v13024_v5 = vpack.c.bf16 %v10410_v1, %v10409_v62  ;;  %v10512_v62 = vld [vmem:[%s19890_s4 + $0xb58] sm:$0xff] }
 0x7c4   : > { %12944 = vmatpush1.bf16.msra.mxu0 %v12943_v7  ;;  %10365 = vmatprep.mubr.msk.f32.mxu0 %vm2816_vm7, %v16830_v28  ;;  %v10411_v7 = vld [vmem:[%s19890_s4 + $0x8d8] sm:$0xff] }
 0x7c5   : > { %12945 = vmatprep.subr.bf16.mxu0 %v13948_v18  ;;  %v13027_v8 = vpack.c.bf16 %v10412_v46, %v10411_v7  ;;  %v10514_v7 = vld [vmem:[%s19890_s4 + $0xb68] sm:$0xff] }
 0x7c8   : > { %12947 = vmatpush1.bf16.msra.mxu0 %v12946_v10  ;;  %v10413_v10 = vld [vmem:[%s19890_s4 + $0x8e8] sm:$0xff] }
 0x7c9   : > { %12948 = vmatprep.subr.bf16.mxu0 %v13948_v18  ;;  %v13030_v11 = vpack.c.bf16 %v10414_v45, %v10413_v10  ;;  %v10516_v10 = vld [vmem:[%s19890_s4 + $0xb78] sm:$0xff] }
 0x7cc   : > { %12950 = vmatpush1.bf16.msra.mxu0 %v12949_v13  ;;  %v10415_v13 = vld [vmem:[%s19890_s4 + $0x8f8] sm:$0xff] }
 0x7cd   : > { %12951 = vmatprep.subr.bf16.mxu0 %v13948_v18  ;;  %v13033_v16 = vpack.c.bf16 %v10416_v51, %v10415_v13  ;;  %v10518_v13 = vld [vmem:[%s19890_s4 + $0xb88] sm:$0xff] }
 0x7d0   : > { %12953 = vmatpush1.bf16.msra.mxu0 %v12952_v55  ;;  %v10417_v55 = vld [vmem:[%s19890_s4 + $0x908] sm:$0xff] }
 0x7d1   : > { %12954 = vmatprep.subr.bf16.mxu0 %v13948_v18  ;;  %v13036_v17 = vpack.c.bf16 %v10418_v32, %v10417_v55  ;;  %v10520_v55 = vld [vmem:[%s19890_s4 + $0xb98] sm:$0xff] }
 0x7d4   : > { %12956 = vmatpush1.bf16.msra.mxu0 %v12955_v19  ;;  %v10419_v19 = vld [vmem:[%s19890_s4 + $0x918] sm:$0xff] }
 0x7d5   : > { %12957 = vmatprep.subr.bf16.mxu0 %v13948_v18  ;;  %v13039_v22 = vpack.c.bf16 %v10420_v20, %v10419_v19  ;;  %v10522_v19 = vld [vmem:[%s19890_s4 + $0xba8] sm:$0xff] }
 0x7d8   : > { %12959 = vmatpush1.bf16.msra.mxu0 %v12958_v25  ;;  %v10421_v25 = vld [vmem:[%s19890_s4 + $0x928] sm:$0xff] }
 0x7d9   : > { %12960 = vmatprep.subr.bf16.mxu0 %v13948_v18  ;;  %v13042_v9 = vpack.c.bf16 %v10422_v33, %v10421_v25  ;;  %v10526_v25 = vld [vmem:[%s19891_s5 + $0xe0] sm:$0xff] }
 0x7dc   : > { %12962 = vmatpush1.bf16.msra.mxu0 %v12961_v23  ;;  %v10423_v23 = vld [vmem:[%s19890_s4 + $0x938] sm:$0xff] }
 0x7dd   : > { %12963 = vmatprep.subr.bf16.mxu0 %v13948_v18  ;;  %v13045_v29 = vpack.c.bf16 %v10424_v27, %v10423_v23  ;;  %v10558_v27 = vld [vmem:[%s19891_s5 + $0xf0] sm:$0xff] }
 0x7e0   : > { %12965 = vmatpush1.bf16.msra.mxu0 %v12964_v30  ;;  %v10425_v30 = vld [vmem:[%s19890_s4 + $0x948] sm:$0xff] }
 0x7e1   : > { %12966 = vmatprep.subr.bf16.mxu0 %v13948_v18  ;;  %v13048_v34 = vpack.c.bf16 %v10426_v26, %v10425_v30  ;;  %v10564_v30 = vld [vmem:[%s19890_s4 + $0xc88] sm:$0xff]  ;;  %v10559_v26 = vld [vmem:[%s19891_s5 + $0xf8] sm:$0xff] }
 0x7e4   : > { %12968 = vmatpush1.bf16.msra.mxu0 %v12967_v36  ;;  %v10427_v36 = vld [vmem:[%s19890_s4 + $0x958] sm:$0xf] }
 0x7e5   : > { %12969 = vmatprep.subr.bf16.mxu0 %v13948_v18 }
 0x7e8   : > { %12971 = vmatpush1.bf16.msra.mxu0 %v12970_v38  ;;  %v10431_v38 = vld [vmem:[%s19891_s5 + $0xb8] sm:$0xff] }
 0x7e9   : > { %12972 = vmatprep.subr.bf16.mxu0 %v13948_v18 }
 0x7ec   : > { %12974 = vmatpush1.bf16.msra.mxu0 %v12973_v41  ;;  %v10463_v41 = vld [vmem:[%s19891_s5 + $0xc8] sm:$0xff] }
 0x7ed   : > { %12975 = vmatprep.subr.bf16.mxu0 %v13948_v18 }
 0x7f0   : > { %12977 = vmatpush1.bf16.msra.mxu0 %v12976_v43  ;;  %v10495_v43 = vld [vmem:[%s19891_s5 + $0xd8] sm:$0xff] }
 0x7f1   : > { %4561 = vmatprep.subr.mxu0 %v13945_v0 }
 0x7f4   : > { %10364 = vmatpush1.msk.msra.mxu0 %vm2820_vm6, %v10363_v44 }
 0x7f5   : > { %4578 = vmatmul.mubr.f32.vlgmr.msra.gmra.mrb[18].mxu0 %v16828_v40 }
 0x7f6   : > { %11324 = vmatprep.mubr.msk.f32.mxu0 %vm2998_vm8, %v10366_v47  ;;  %v10502_v47 = vld [vmem:[%s19890_s4 + $0xb08] sm:$0xff] }
 0x8c8   : > { %v4579_v48 = vpop.f32.mrb[18].mxu0 }
 0x8c9   : > { %v4581_v61 = vpop.f32.mrb[19].mxu0  ;;  %11322 = vmatprep.subr.msk.mxu0 %vm3005_vm9, %v4579_v48 }
 0x8ca   : > { %11323 = vmatpush3.msk.msra.mxu0 %vm3005_vm9, %v4579_v48  ;;  %v10504_v61 = vld [vmem:[%s19890_s4 + $0xb18] sm:$0xff] }
 0x8cb   : > { %11325 = vmatmul.mubr.msk.f32.vlgmr.msra.gmra.mrb[10].mxu0 %vm2998_vm8, %v10367_v49  ;;  %11327 = vmatprep.subr.msk.mxu0 %vm3005_vm9, %v17827_v24  ;;  %v10503_v49 = vld [vmem:[%s19890_s4 + $0xb10] sm:$0xff] }
 0x8cc   : > { %11328 = vmatpush3.msk.msra.mxu0 %vm3005_vm9, %v17827_v24  ;;  %11329 = vmatprep.mubr.msk.f32.mxu0 %vm2998_vm8, %v10398_v3  ;;  %v10405_v24 = vld [vmem:[%s19890_s4 + $0x8a8] sm:$0xff]  ;;  %v13129_v3 = vpack.c.bf16 %v10504_v61, %v10503_v49 }
 0x8cd   : > { %13014 = vmatprep.subr.bf16.mxu0 %v13948_v18  ;;  %v13018_v56 = vpack.c.bf16 %v10406_v54, %v10405_v24  ;;  %v10508_v24 = vld [vmem:[%s19890_s4 + $0xb38] sm:$0xff]  ;;  %v10576_v49 = vld [vmem:[%s19890_s4 + $0xce8] sm:$0xff] }
 0x8d3   : > { %11330 = vmatmul.mubr.msk.f32.vlgmr.msra.gmra.mrb[10].mxu0 %vm2998_vm8, %v10399_v53  ;;  %v13132_v53 = vpack.c.bf16 %v10506_v52, %v10505_v50  ;;  %v10578_v50 = vld [vmem:[%s19890_s4 + $0xcf8] sm:$0xff] }
 0x8d4   : > { %13016 = vmatpush1.bf16.msra.mxu0 %v13015_v35  ;;  %10429 = vmatprep.mubr.msk.f32.mxu0 %vm2816_vm7, %v16830_v28  ;;  %v10507_v35 = vld [vmem:[%s19890_s4 + $0xb30] sm:$0xff] }
 0x8d5   : > { %13017 = vmatprep.subr.bf16.mxu0 %v13948_v18  ;;  %v13135_v54 = vpack.c.bf16 %v10508_v24, %v10507_v35  ;;  %v10580_v35 = vld [vmem:[%s19890_s4 + $0xd08] sm:$0xff] }
 0x8d8   : > { %13019 = vmatpush1.bf16.msra.mxu0 %v13018_v56  ;;  %v10509_v56 = vld [vmem:[%s19890_s4 + $0xb40] sm:$0xff] }
 0x8d9   : > { %13020 = vmatprep.subr.bf16.mxu0 %v13948_v18  ;;  %v13138_v15 = vpack.c.bf16 %v10510_v57, %v10509_v56  ;;  %v10582_v56 = vld [vmem:[%s19890_s4 + $0xd18] sm:$0xff] }
 0x8dc   : > { %13022 = vmatpush1.bf16.msra.mxu0 %v13021_v60  ;;  %v10511_v60 = vld [vmem:[%s19890_s4 + $0xb50] sm:$0xff] }
 0x8dd   : > { %13023 = vmatprep.subr.bf16.mxu0 %v13948_v18  ;;  %v13141_v1 = vpack.c.bf16 %v10512_v62, %v10511_v60  ;;  %v10584_v60 = vld [vmem:[%s19890_s4 + $0xd28] sm:$0xff] }
 0x8e0   : > { %13025 = vmatpush1.bf16.msra.mxu0 %v13024_v5  ;;  %v10513_v5 = vld [vmem:[%s19890_s4 + $0xb60] sm:$0xff] }
 0x8e1   : > { %13026 = vmatprep.subr.bf16.mxu0 %v13948_v18  ;;  %v13144_v46 = vpack.c.bf16 %v10514_v7, %v10513_v5  ;;  %v10586_v5 = vld [vmem:[%s19890_s4 + $0xd38] sm:$0xff] }
 0x8e4   : > { %13028 = vmatpush1.bf16.msra.mxu0 %v13027_v8  ;;  %v10515_v8 = vld [vmem:[%s19890_s4 + $0xb70] sm:$0xff] }
 0x8e5   : > { %13029 = vmatprep.subr.bf16.mxu0 %v13948_v18  ;;  %v13147_v45 = vpack.c.bf16 %v10516_v10, %v10515_v8  ;;  %v10590_v8 = vld [vmem:[%s19891_s5 + $0x100] sm:$0xff] }
 0x8e8   : > { %13031 = vmatpush1.bf16.msra.mxu0 %v13030_v11  ;;  %v10517_v11 = vld [vmem:[%s19890_s4 + $0xb80] sm:$0xff] }
 0x8e9   : > { %13032 = vmatprep.subr.bf16.mxu0 %v13948_v18  ;;  %v13150_v51 = vpack.c.bf16 %v10518_v13, %v10517_v11  ;;  %v10622_v13 = vld [vmem:[%s19891_s5 + $0x110] sm:$0xff] }
 0x8ec   : > { %13034 = vmatpush1.bf16.msra.mxu0 %v13033_v16  ;;  %v10519_v16 = vld [vmem:[%s19890_s4 + $0xb90] sm:$0xff] }
 0x8ed   : > { %13035 = vmatprep.subr.bf16.mxu0 %v13948_v18  ;;  %v13153_v32 = vpack.c.bf16 %v10520_v55, %v10519_v16  ;;  %v10628_v16 = vld [vmem:[%s19890_s4 + $0xe18] sm:$0xff] }
 0x8ee   : > { %v10623_v55 = vld [vmem:[%s19891_s5 + $0x118] sm:$0xff] }
 0x8f0   : > { %13037 = vmatpush1.bf16.msra.mxu0 %v13036_v17  ;;  %v10521_v17 = vld [vmem:[%s19890_s4 + $0xba0] sm:$0xff] }
 0x8f1   : > { %13038 = vmatprep.subr.bf16.mxu0 %v13948_v18  ;;  %v13156_v20 = vpack.c.bf16 %v10522_v19, %v10521_v17  ;;  %v10630_v17 = vld [vmem:[%s19890_s4 + $0xe28] sm:$0xff] }
 0x8f4   : > { %13040 = vmatpush1.bf16.msra.mxu0 %v13039_v22  ;;  %v10523_v22 = vld [vmem:[%s19890_s4 + $0xbb0] sm:$0xf] }
 0x8f5   : > { %13041 = vmatprep.subr.bf16.mxu0 %v13948_v18 }
 0x8f8   : > { %13043 = vmatpush1.bf16.msra.mxu0 %v13042_v9  ;;  %v10527_v9 = vld [vmem:[%s19891_s5 + $0xe8] sm:$0xff] }
 0x8f9   : > { %13044 = vmatprep.subr.bf16.mxu0 %v13948_v18 }
 0x8fc   : > { %13046 = vmatpush1.bf16.msra.mxu0 %v13045_v29  ;;  %v10563_v29 = vld [vmem:[%s19890_s4 + $0xc80] sm:$0xff] }
 0x8fd   : > { %13047 = vmatprep.subr.bf16.mxu0 %v13948_v18 }
 0x900   : > { %13049 = vmatpush1.bf16.msra.mxu0 %v13048_v34  ;;  %v13195_v34 = vpack.c.bf16 %v10564_v30, %v10563_v29  ;;  %v10636_v29 = vld [vmem:[%s19890_s4 + $0xe58] sm:$0xff] }
 0x901   : > { %4937 = vmatprep.subr.mxu0 %v13945_v0 }
 0x904   : > { %10428 = vmatpush1.msk.msra.mxu0 %vm2820_vm6, %v10427_v36  ;;  %v10566_v36 = vld [vmem:[%s19890_s4 + $0xc98] sm:$0xff] }
 0x905   : > { %4954 = vmatmul.mubr.f32.vlgmr.msra.gmra.mrb[20].mxu0 %v16828_v40 }
 0x906   : > { %11334 = vmatprep.mubr.msk.f32.mxu0 %vm2998_vm8, %v10430_v37 }
 0x9d8   : > { %v4955_v6 = vpop.f32.mrb[20].mxu0 }
 0x9d9   : > { %v4957_v12 = vpop.f32.mrb[21].mxu0  ;;  %11332 = vmatprep.subr.msk.mxu0 %vm3005_vm9, %v4955_v6 }
 0x9da   : > { %11333 = vmatpush3.msk.msra.mxu0 %vm3005_vm9, %v4955_v6  ;;  %v10567_v6 = vld [vmem:[%s19890_s4 + $0xca0] sm:$0xff] }
 0x9db   : > { %11335 = vmatmul.mubr.msk.f32.vlgmr.msra.gmra.mrb[10].mxu0 %vm2998_vm8, %v10431_v38  ;;  %11337 = vmatprep.subr.msk.mxu0 %vm3005_vm9, %v17921_v2  ;;  %v10568_v38 = vld [vmem:[%s19890_s4 + $0xca8] sm:$0xff] }
 0x9dc   : > { %11338 = vmatpush3.msk.msra.mxu0 %vm3005_vm9, %v17921_v2  ;;  %11339 = vmatprep.mubr.msk.f32.mxu0 %vm2998_vm8, %v10462_v39  ;;  %v10499_v2 = vld [vmem:[%s19890_s4 + $0xaf0] sm:$0xff]  ;;  %v13201_v12 = vpack.c.bf16 %v10568_v38, %v10567_v6  ;;  %v10641_v38 = vld [vmem:[%s19890_s4 + $0xe80] sm:$0xff] }
 0x9dd   : > { %11342 = vmatprep.subr.msk.mxu0 %vm3005_vm9, %v18083_v14  ;;  %v13123_v44 = vpack.c.bf16 %v10500_v31, %v10499_v2  ;;  %v10569_v39 = vld [vmem:[%s19890_s4 + $0xcb0] sm:$0xff]  ;;  %v10571_v2 = vld [vmem:[%s19890_s4 + $0xcc0] sm:$0xff]  ;;  %v10572_v31 = vld [vmem:[%s19890_s4 + $0xcc8] sm:$0xff] }
 0x9e3   : > { %11340 = vmatmul.mubr.msk.f32.vlgmr.msra.gmra.mrb[10].mxu0 %vm2998_vm8, %v10463_v41  ;;  %v10570_v41 = vld [vmem:[%s19890_s4 + $0xcb8] sm:$0xff] }
 0x9e4   : > { %11343 = vmatpush3.msk.msra.mxu0 %vm3005_vm9, %v18083_v14  ;;  %11344 = vmatprep.mubr.msk.f32.mxu0 %vm2998_vm8, %v10494_v42  ;;  %v10501_v14 = vld [vmem:[%s19890_s4 + $0xb00] sm:$0xff]  ;;  %v13204_v42 = vpack.c.bf16 %v10570_v41, %v10569_v39  ;;  %v10643_v41 = vld [vmem:[%s19890_s4 + $0xe90] sm:$0xff] }
 0x9e5   : > { %13122 = vmatprep.subr.bf16.mxu0 %v13948_v18  ;;  %v13126_v48 = vpack.c.bf16 %v10502_v47, %v10501_v14  ;;  %v10574_v14 = vld [vmem:[%s19890_s4 + $0xcd8] sm:$0xff] }
 0x9eb   : > { %11345 = vmatmul.mubr.msk.f32.vlgmr.msra.gmra.mrb[10].mxu0 %vm2998_vm8, %v10495_v43  ;;  %v13207_v43 = vpack.c.bf16 %v10572_v31, %v10571_v2  ;;  %v10645_v31 = vld [vmem:[%s19890_s4 + $0xea0] sm:$0xff] }
 0x9ec   : > { %13124 = vmatpush1.bf16.msra.mxu0 %v13123_v44  ;;  %10525 = vmatprep.mubr.msk.f32.mxu0 %vm2816_vm7, %v16830_v28  ;;  %v10573_v44 = vld [vmem:[%s19890_s4 + $0xcd0] sm:$0xff] }
 0x9ed   : > { %13125 = vmatprep.subr.bf16.mxu0 %v13948_v18  ;;  %v13210_v47 = vpack.c.bf16 %v10574_v14, %v10573_v44  ;;  %v10647_v14 = vld [vmem:[%s19890_s4 + $0xeb0] sm:$0xff] }
 0x9f0   : > { %13127 = vmatpush1.bf16.msra.mxu0 %v13126_v48  ;;  %v10575_v48 = vld [vmem:[%s19890_s4 + $0xce0] sm:$0xff] }
 0x9f1   : > { %13128 = vmatprep.subr.bf16.mxu0 %v13948_v18  ;;  %v13213_v61 = vpack.c.bf16 %v10576_v49, %v10575_v48  ;;  %v10649_v49 = vld [vmem:[%s19890_s4 + $0xec0] sm:$0xff] }
 0x9f4   : > { %13130 = vmatpush1.bf16.msra.mxu0 %v13129_v3  ;;  %v10577_v3 = vld [vmem:[%s19890_s4 + $0xcf0] sm:$0xff] }
 0x9f5   : > { %13131 = vmatprep.subr.bf16.mxu0 %v13948_v18  ;;  %v13216_v52 = vpack.c.bf16 %v10578_v50, %v10577_v3  ;;  %v10651_v50 = vld [vmem:[%s19890_s4 + $0xed0] sm:$0xf] }
 0x9f8   : > { %13133 = vmatpush1.bf16.msra.mxu0 %v13132_v53  ;;  %v10579_v53 = vld [vmem:[%s19890_s4 + $0xd00] sm:$0xff] }
 0x9f9   : > { %13134 = vmatprep.subr.bf16.mxu0 %v13948_v18  ;;  %v13219_v24 = vpack.c.bf16 %v10580_v35, %v10579_v53  ;;  %v10655_v35 = vld [vmem:[%s19891_s5 + $0x128] sm:$0xff] }
 0x9fc   : > { %13136 = vmatpush1.bf16.msra.mxu0 %v13135_v54  ;;  %v10581_v54 = vld [vmem:[%s19890_s4 + $0xd10] sm:$0xff] }
 0x9fd   : > { %13137 = vmatprep.subr.bf16.mxu0 %v13948_v18  ;;  %v13222_v57 = vpack.c.bf16 %v10582_v56, %v10581_v54  ;;  %v10686_v54 = vld [vmem:[%s19891_s5 + $0x130] sm:$0xff]  ;;  %v10691_v56 = vld [vmem:[%s19890_s4 + $0xfa0] sm:$0xff] }
 0xa00   : > { %13139 = vmatpush1.bf16.msra.mxu0 %v13138_v15  ;;  %v10583_v15 = vld [vmem:[%s19890_s4 + $0xd20] sm:$0xff] }
 0xa01   : > { %13140 = vmatprep.subr.bf16.mxu0 %v13948_v18  ;;  %v13225_v62 = vpack.c.bf16 %v10584_v60, %v10583_v15  ;;  %v10687_v15 = vld [vmem:[%s19891_s5 + $0x138] sm:$0xff] }
 0xa04   : > { %13142 = vmatpush1.bf16.msra.mxu0 %v13141_v1  ;;  %v10585_v1 = vld [vmem:[%s19890_s4 + $0xd30] sm:$0xff] }
 0xa05   : > { %13143 = vmatprep.subr.bf16.mxu0 %v13948_v18  ;;  %v13228_v7 = vpack.c.bf16 %v10586_v5, %v10585_v1  ;;  %v10695_v5 = vld [vmem:[%s19890_s4 + $0xfc0] sm:$0xff] }
 0xa08   : > { %13145 = vmatpush1.bf16.msra.mxu0 %v13144_v46  ;;  %v10587_v46 = vld [vmem:[%s19890_s4 + $0xd40] sm:$0xf] }
 0xa09   : > { %13146 = vmatprep.subr.bf16.mxu0 %v13948_v18 }
 0xa0c   : > { %13148 = vmatpush1.bf16.msra.mxu0 %v13147_v45  ;;  %v10591_v45 = vld [vmem:[%s19891_s5 + $0x108] sm:$0xff] }
 0xa0d   : > { %13149 = vmatprep.subr.bf16.mxu0 %v13948_v18 }
 0xa10   : > { %13151 = vmatpush1.bf16.msra.mxu0 %v13150_v51  ;;  %v10627_v51 = vld [vmem:[%s19890_s4 + $0xe10] sm:$0xff] }
 0xa11   : > { %13152 = vmatprep.subr.bf16.mxu0 %v13948_v18 }
 0xa14   : > { %13154 = vmatpush1.bf16.msra.mxu0 %v13153_v32  ;;  %v13267_v32 = vpack.c.bf16 %v10628_v16, %v10627_v51  ;;  %v10701_v16 = vld [vmem:[%s19890_s4 + $0xff0] sm:$0xff] }
 0xa15   : > { %13155 = vmatprep.subr.bf16.mxu0 %v13948_v18 }
 0xa18   : > { %13157 = vmatpush1.bf16.msra.mxu0 %v13156_v20  ;;  %v10631_v20 = vld [vmem:[%s19890_s4 + $0xe30] sm:$0xff] }
 0xa19   : > { %5501 = vmatprep.subr.mxu0 %v13945_v0 }
 0xa1c   : > { %10524 = vmatpush1.msk.msra.mxu0 %vm2820_vm6, %v10523_v22  ;;  %v10632_v22 = vld [vmem:[%s19890_s4 + $0xe38] sm:$0xff] }
 0xa1d   : > { %5518 = vmatmul.mubr.f32.vlgmr.msra.gmra.mrb[22].mxu0 %v16828_v40 }
 0xa1e   : > { %11349 = vmatprep.mubr.msk.f32.mxu0 %vm2998_vm8, %v10526_v25  ;;  %v13273_v25 = vpack.c.bf16 %v10632_v22, %v10631_v20  ;;  %v10705_v20 = vld [vmem:[%s19890_s4 + $0x1010] sm:$0xff]  ;;  %v10706_v22 = vld [vmem:[%s19890_s4 + $0x1018] sm:$0xff] }
 0xaf0   : > { %v5519_v33 = vpop.f32.mrb[22].mxu0 }
 0xaf1   : > { %v5521_v23 = vpop.f32.mrb[23].mxu0  ;;  %11347 = vmatprep.subr.msk.mxu0 %vm3005_vm9, %v5519_v33 }
 0xaf2   : > { %11348 = vmatpush3.msk.msra.mxu0 %vm3005_vm9, %v5519_v33  ;;  %v10633_v33 = vld [vmem:[%s19890_s4 + $0xe40] sm:$0xff] }
 0xaf3   : > { %11350 = vmatmul.mubr.msk.f32.vlgmr.msra.gmra.mrb[10].mxu0 %vm2998_vm8, %v10527_v9  ;;  %11352 = vmatprep.subr.msk.mxu0 %vm3005_vm9, %v18183_v58  ;;  %v10634_v9 = vld [vmem:[%s19890_s4 + $0xe48] sm:$0xff] }
 0xaf4   : > { %11353 = vmatpush3.msk.msra.mxu0 %vm3005_vm9, %v18183_v58  ;;  %11354 = vmatprep.mubr.msk.f32.mxu0 %vm2998_vm8, %v10558_v27  ;;  %v10565_v58 = vld [vmem:[%s19890_s4 + $0xc90] sm:$0xff]  ;;  %v13276_v23 = vpack.c.bf16 %v10634_v9, %v10633_v33  ;;  %v10707_v33 = vld [vmem:[%s19890_s4 + $0x1020] sm:$0xff]  ;;  %v10708_v9 = vld [vmem:[%s19890_s4 + $0x1028] sm:$0xff] }
 0xaf5   : > { %13194 = vmatprep.subr.bf16.mxu0 %v13948_v18  ;;  %v13198_v37 = vpack.c.bf16 %v10566_v36, %v10565_v58  ;;  %v10635_v27 = vld [vmem:[%s19890_s4 + $0xe50] sm:$0xff] }
 0xaf6   : > { %v13279_v30 = vpack.c.bf16 %v10636_v29, %v10635_v27  ;;  %v10639_v36 = vld [vmem:[%s19890_s4 + $0xe70] sm:$0xff]  ;;  %v10710_v29 = vld [vmem:[%s19890_s4 + $0x1038] sm:$0xff] }
 0xaf7   : > { %v10709_v27 = vld [vmem:[%s19890_s4 + $0x1030] sm:$0xff] }
 0xafb   : > { %11355 = vmatmul.mubr.msk.f32.vlgmr.msra.gmra.mrb[10].mxu0 %vm2998_vm8, %v10559_v26  ;;  %v10637_v26 = vld [vmem:[%s19890_s4 + $0xe60] sm:$0xff] }
 0xafc   : > { %13196 = vmatpush1.bf16.msra.mxu0 %v13195_v34  ;;  %10589 = vmatprep.mubr.msk.f32.mxu0 %vm2816_vm7, %v16830_v28  ;;  %v10638_v34 = vld [vmem:[%s19890_s4 + $0xe68] sm:$0xff] }
 0xafd   : > { %13197 = vmatprep.subr.bf16.mxu0 %v13948_v18  ;;  %v13282_v58 = vpack.c.bf16 %v10638_v34, %v10637_v26  ;;  %v10711_v26 = vld [vmem:[%s19890_s4 + $0x1040] sm:$0xff]  ;;  %v10712_v34 = vld [vmem:[%s19890_s4 + $0x1048] sm:$0xff] }
 0xb00   : > { %13199 = vmatpush1.bf16.msra.mxu0 %v13198_v37  ;;  %v10640_v37 = vld [vmem:[%s19890_s4 + $0xe78] sm:$0xff] }
 0xb01   : > { %13200 = vmatprep.subr.bf16.mxu0 %v13948_v18  ;;  %v13285_v6 = vpack.c.bf16 %v10640_v37, %v10639_v36  ;;  %v10713_v36 = vld [vmem:[%s19890_s4 + $0x1050] sm:$0xff]  ;;  %v10714_v37 = vld [vmem:[%s19890_s4 + $0x1058] sm:$0xff] }
 0xb04   : > { %13202 = vmatpush1.bf16.msra.mxu0 %v13201_v12  ;;  %v10642_v12 = vld [vmem:[%s19890_s4 + $0xe88] sm:$0xff] }
 0xb05   : > { %13203 = vmatprep.subr.bf16.mxu0 %v13948_v18  ;;  %v13288_v39 = vpack.c.bf16 %v10642_v12, %v10641_v38  ;;  %v10715_v38 = vld [vmem:[%s19890_s4 + $0x1060] sm:$0xf] }
 0xb06   : > { %v10718_v12 = vld [vmem:[%s19891_s5 + $0x140] sm:$0xff] }
 0xb08   : > { %13205 = vmatpush1.bf16.msra.mxu0 %v13204_v42  ;;  %v10644_v42 = vld [vmem:[%s19890_s4 + $0xe98] sm:$0xff] }
 0xb09   : > { %13206 = vmatprep.subr.bf16.mxu0 %v13948_v18  ;;  %v13291_v2 = vpack.c.bf16 %v10644_v42, %v10643_v41  ;;  %v10719_v41 = vld [vmem:[%s19891_s5 + $0x148] sm:$0xff] }
 0xb0c   : > { %13208 = vmatpush1.bf16.msra.mxu0 %v13207_v43  ;;  %v10646_v43 = vld [vmem:[%s19890_s4 + $0xea8] sm:$0xff] }
 0xb0d   : > { %13209 = vmatprep.subr.bf16.mxu0 %v13948_v18  ;;  %v13294_v44 = vpack.c.bf16 %v10646_v43, %v10645_v31  ;;  %v10755_v31 = vld [vmem:[%s19890_s4 + $0x1130] sm:$0xff]  ;;  %v10756_v43 = vld [vmem:[%s19890_s4 + $0x1138] sm:$0xff] }
 0xb10   : > { %13211 = vmatpush1.bf16.msra.mxu0 %v13210_v47  ;;  %v10648_v47 = vld [vmem:[%s19890_s4 + $0xeb8] sm:$0xff] }
 0xb11   : > { %13212 = vmatprep.subr.bf16.mxu0 %v13948_v18  ;;  %v13297_v48 = vpack.c.bf16 %v10648_v47, %v10647_v14  ;;  %v13411_v14 = vpack.c.bf16 %v10756_v43, %v10755_v31  ;;  %v10758_v47 = vld [vmem:[%s19890_s4 + $0x1148] sm:$0xff]  ;;  %v10831_v43 = vld [vmem:[%s19890_s4 + $0x1320] sm:$0xff] }
 0xb14   : > { %13214 = vmatpush1.bf16.msra.mxu0 %v13213_v61  ;;  %v10650_v61 = vld [vmem:[%s19890_s4 + $0xec8] sm:$0xff] }
 0xb15   : > { %13215 = vmatprep.subr.bf16.mxu0 %v13948_v18  ;;  %v13300_v3 = vpack.c.bf16 %v10650_v61, %v10649_v49  ;;  %v10759_v49 = vld [vmem:[%s19890_s4 + $0x1150] sm:$0xff]  ;;  %v10760_v61 = vld [vmem:[%s19890_s4 + $0x1158] sm:$0xff] }
 0xb18   : > { %13217 = vmatpush1.bf16.msra.mxu0 %v13216_v52  ;;  %v10654_v52 = vld [vmem:[%s19891_s5 + $0x120] sm:$0xff] }
 0xb19   : > { %13218 = vmatprep.subr.bf16.mxu0 %v13948_v18 }
 0xb1c   : > { %13220 = vmatpush1.bf16.msra.mxu0 %v13219_v24 }
 0xb1d   : > { %13221 = vmatprep.subr.bf16.mxu0 %v13948_v18 }
 0xb20   : > { %13223 = vmatpush1.bf16.msra.mxu0 %v13222_v57  ;;  %v10692_v57 = vld [vmem:[%s19890_s4 + $0xfa8] sm:$0xff] }
 0xb21   : > { %13224 = vmatprep.subr.bf16.mxu0 %v13948_v18  ;;  %v13339_v60 = vpack.c.bf16 %v10692_v57, %v10691_v56  ;;  %v10765_v56 = vld [vmem:[%s19890_s4 + $0x1180] sm:$0xff]  ;;  %v10766_v57 = vld [vmem:[%s19890_s4 + $0x1188] sm:$0xff] }
 0xb24   : > { %13226 = vmatpush1.bf16.msra.mxu0 %v13225_v62  ;;  %v10694_v62 = vld [vmem:[%s19890_s4 + $0xfb8] sm:$0xff] }
 0xb25   : > { %13227 = vmatprep.subr.bf16.mxu0 %v13948_v18 }
 0xb28   : > { %13229 = vmatpush1.bf16.msra.mxu0 %v13228_v7  ;;  %v10696_v7 = vld [vmem:[%s19890_s4 + $0xfc8] sm:$0xff] }
 0xb29   : > { %5877 = vmatprep.subr.mxu0 %v13945_v0 }
 0xb2c   : > { %10588 = vmatpush1.msk.msra.mxu0 %vm2820_vm6, %v10587_v46  ;;  %v13345_v46 = vpack.c.bf16 %v10696_v7, %v10695_v5  ;;  %v10770_v5 = vld [vmem:[%s19890_s4 + $0x11a8] sm:$0xff] }
 0xb2d   : > { %5894 = vmatmul.mubr.f32.vlgmr.msra.gmra.mrb[24].mxu0 %v16828_v40 }
 0xb2e   : > { %11359 = vmatprep.mubr.msk.f32.mxu0 %vm2998_vm8, %v10590_v8  ;;  %v10697_v8 = vld [vmem:[%s19890_s4 + $0xfd0] sm:$0xff] }
 0xc00   : > { %v5895_v10 = vpop.f32.mrb[24].mxu0 }
 0xc01   : > { %v5897_v11 = vpop.f32.mrb[25].mxu0  ;;  %11357 = vmatprep.subr.msk.mxu0 %vm3005_vm9, %v5895_v10 }
 0xc02   : > { %11358 = vmatpush3.msk.msra.mxu0 %vm3005_vm9, %v5895_v10  ;;  %v10698_v10 = vld [vmem:[%s19890_s4 + $0xfd8] sm:$0xff]  ;;  %v10699_v11 = vld [vmem:[%s19890_s4 + $0xfe0] sm:$0xff] }
 0xc03   : > { %11360 = vmatmul.mubr.msk.f32.vlgmr.msra.gmra.mrb[10].mxu0 %vm2998_vm8, %v10591_v45  ;;  %11362 = vmatprep.subr.msk.mxu0 %vm3005_vm9, %v18185_v59  ;;  %v13348_v45 = vpack.c.bf16 %v10698_v10, %v10697_v8  ;;  %v10772_v8 = vld [vmem:[%s19890_s4 + $0x11b8] sm:$0xff] }
 0xc04   : > { %11363 = vmatpush3.msk.msra.mxu0 %vm3005_vm9, %v18185_v59  ;;  %11364 = vmatprep.mubr.msk.f32.mxu0 %vm2998_vm8, %v10622_v13  ;;  %v10629_v59 = vld [vmem:[%s19890_s4 + $0xe20] sm:$0xff]  ;;  %v10700_v13 = vld [vmem:[%s19890_s4 + $0xfe8] sm:$0xff] }
 0xc05   : > { %13266 = vmatprep.subr.bf16.mxu0 %v13948_v18  ;;  %v13270_v19 = vpack.c.bf16 %v10630_v17, %v10629_v59  ;;  %v13351_v51 = vpack.c.bf16 %v10700_v13, %v10699_v11  ;;  %v10703_v59 = vld [vmem:[%s19890_s4 + $0x1000] sm:$0xff]  ;;  %v10704_v17 = vld [vmem:[%s19890_s4 + $0x1008] sm:$0xff] }
 0xc06   : > { %v10774_v11 = vld [vmem:[%s19890_s4 + $0x11c8] sm:$0xff] }
 0xc0b   : > { %11365 = vmatmul.mubr.msk.f32.vlgmr.msra.gmra.mrb[10].mxu0 %vm2998_vm8, %v10623_v55  ;;  %v10702_v55 = vld [vmem:[%s19890_s4 + $0xff8] sm:$0xff] }
 0xc0c   : > { %13268 = vmatpush1.bf16.msra.mxu0 %v13267_v32  ;;  %10653 = vmatprep.mubr.msk.f32.mxu0 %vm2816_vm7, %v16830_v28  ;;  %v13354_v32 = vpack.c.bf16 %v10702_v55, %v10701_v16  ;;  %v10776_v16 = vld [vmem:[%s19890_s4 + $0x11d8] sm:$0xff] }
 0xc0d   : > { %13269 = vmatprep.subr.bf16.mxu0 %v13948_v18 }
 0xc10   : > { %13271 = vmatpush1.bf16.msra.mxu0 %v13270_v19  ;;  %v13357_v19 = vpack.c.bf16 %v10704_v17, %v10703_v59  ;;  %v10778_v59 = vld [vmem:[%s19890_s4 + $0x11e8] sm:$0xff] }
 0xc11   : > { %13272 = vmatprep.subr.bf16.mxu0 %v13948_v18 }
 0xc14   : > { %13274 = vmatpush1.bf16.msra.mxu0 %v13273_v25  ;;  %v13360_v25 = vpack.c.bf16 %v10706_v22, %v10705_v20  ;;  %v10782_v20 = vld [vmem:[%s19891_s5 + $0x160] sm:$0xff] }
 0xc15   : > { %13275 = vmatprep.subr.bf16.mxu0 %v13948_v18 }
 0xc18   : > { %13277 = vmatpush1.bf16.msra.mxu0 %v13276_v23  ;;  %v13363_v23 = vpack.c.bf16 %v10708_v9, %v10707_v33  ;;  %v10814_v9 = vld [vmem:[%s19891_s5 + $0x170] sm:$0xff] }
 0xc19   : > { %13278 = vmatprep.subr.bf16.mxu0 %v13948_v18 }
 0xc1c   : > { %13280 = vmatpush1.bf16.msra.mxu0 %v13279_v30  ;;  %v13366_v30 = vpack.c.bf16 %v10710_v29, %v10709_v27  ;;  %v10820_v27 = vld [vmem:[%s19890_s4 + $0x12c8] sm:$0xff]  ;;  %v10815_v29 = vld [vmem:[%s19891_s5 + $0x178] sm:$0xff] }
 0xc1d   : > { %13281 = vmatprep.subr.bf16.mxu0 %v13948_v18 }
 0xc20   : > { %13283 = vmatpush1.bf16.msra.mxu0 %v13282_v58  ;;  %v13369_v58 = vpack.c.bf16 %v10712_v34, %v10711_v26  ;;  %v10822_v26 = vld [vmem:[%s19890_s4 + $0x12d8] sm:$0xff] }
 0xc21   : > { %13284 = vmatprep.subr.bf16.mxu0 %v13948_v18 }
 0xc24   : > { %13286 = vmatpush1.bf16.msra.mxu0 %v13285_v6  ;;  %v13372_v6 = vpack.c.bf16 %v10714_v37, %v10713_v36  ;;  %v10824_v36 = vld [vmem:[%s19890_s4 + $0x12e8] sm:$0xff] }
 0xc25   : > { %13287 = vmatprep.subr.bf16.mxu0 %v13948_v18 }
 0xc28   : > { %13289 = vmatpush1.bf16.msra.mxu0 %v13288_v39 }
 0xc29   : > { %13290 = vmatprep.subr.bf16.mxu0 %v13948_v18 }
 0xc2c   : > { %13292 = vmatpush1.bf16.msra.mxu0 %v13291_v2  ;;  %v10750_v2 = vld [vmem:[%s19891_s5 + $0x150] sm:$0xff] }
 0xc2d   : > { %13293 = vmatprep.subr.bf16.mxu0 %v13948_v18 }
 0xc30   : > { %13295 = vmatpush1.bf16.msra.mxu0 %v13294_v44  ;;  %v10751_v44 = vld [vmem:[%s19891_s5 + $0x158] sm:$0xff] }
 0xc31   : > { %13296 = vmatprep.subr.bf16.mxu0 %v13948_v18 }
 0xc34   : > { %13298 = vmatpush1.bf16.msra.mxu0 %v13297_v48 }
 0xc35   : > { %13299 = vmatprep.subr.bf16.mxu0 %v13948_v18 }
 0xc38   : > { %13301 = vmatpush1.bf16.msra.mxu0 %v13300_v3  ;;  %v13417_v3 = vpack.c.bf16 %v10760_v61, %v10759_v49  ;;  %v10835_v49 = vld [vmem:[%s19890_s4 + $0x1340] sm:$0xff]  ;;  %v10836_v61 = vld [vmem:[%s19890_s4 + $0x1348] sm:$0xff] }
 0xc39   : > { %6253 = vmatprep.subr.mxu0 %v13945_v0 }
 0xc3c   : > { %10652 = vmatpush1.msk.msra.mxu0 %vm2820_vm6, %v10651_v50  ;;  %v10761_v50 = vld [vmem:[%s19890_s4 + $0x1160] sm:$0xff] }
 0xc3d   : > { %6270 = vmatmul.mubr.f32.vlgmr.msra.gmra.mrb[26].mxu0 %v16828_v40 }
 0xc3e   : > { %11369 = vmatprep.mubr.msk.f32.mxu0 %vm2998_vm8, %v10654_v52  ;;  %v10762_v52 = vld [vmem:[%s19890_s4 + $0x1168] sm:$0xff] }
 0xd10   : > { %v6271_v53 = vpop.f32.mrb[26].mxu0 }
 0xd11   : > { %v6273_v24 = vpop.f32.mrb[27].mxu0  ;;  %11367 = vmatprep.subr.msk.mxu0 %vm3005_vm9, %v6271_v53 }
 0xd12   : > { %11368 = vmatpush3.msk.msra.mxu0 %vm3005_vm9, %v6271_v53  ;;  %v13420_v53 = vpack.c.bf16 %v10762_v52, %v10761_v50  ;;  %v10764_v24 = vld [vmem:[%s19890_s4 + $0x1178] sm:$0xff]  ;;  %v10837_v50 = vld [vmem:[%s19890_s4 + $0x1350] sm:$0xff] }
 0xd13   : > { %11370 = vmatmul.mubr.msk.f32.vlgmr.msra.gmra.mrb[10].mxu0 %vm2998_vm8, %v10655_v35  ;;  %11372 = vmatprep.subr.msk.mxu0 %vm3005_vm9, %v18191_v63  ;;  %v10763_v35 = vld [vmem:[%s19890_s4 + $0x1170] sm:$0xff]  ;;  %v10838_v52 = vld [vmem:[%s19890_s4 + $0x1358] sm:$0xff] }
 0xd14   : > { %11373 = vmatpush3.msk.msra.mxu0 %vm3005_vm9, %v18191_v63  ;;  %11374 = vmatprep.mubr.msk.f32.mxu0 %vm2998_vm8, %v10686_v54  ;;  %v10693_v63 = vld [vmem:[%s19890_s4 + $0xfb0] sm:$0xff]  ;;  %v13423_v54 = vpack.c.bf16 %v10764_v24, %v10763_v35  ;;  %v10839_v35 = vld [vmem:[%s19890_s4 + $0x1360] sm:$0xff]  ;;  %v10840_v24 = vld [vmem:[%s19890_s4 + $0x1368] sm:$0xff] }
 0xd15   : > { %13338 = vmatprep.subr.bf16.mxu0 %v13948_v18  ;;  %v13342_v1 = vpack.c.bf16 %v10694_v62, %v10693_v63  ;;  %v10768_v63 = vld [vmem:[%s19890_s4 + $0x1198] sm:$0xff] }
 0xd1b   : > { %11375 = vmatmul.mubr.msk.f32.vlgmr.msra.gmra.mrb[10].mxu0 %vm2998_vm8, %v10687_v15  ;;  %v13426_v15 = vpack.c.bf16 %v10766_v57, %v10765_v56  ;;  %v10841_v56 = vld [vmem:[%s19890_s4 + $0x1370] sm:$0xff]  ;;  %v10842_v57 = vld [vmem:[%s19890_s4 + $0x1378] sm:$0xff] }
 0xd1c   : > { %13340 = vmatpush1.bf16.msra.mxu0 %v13339_v60  ;;  %10717 = vmatprep.mubr.msk.f32.mxu0 %vm2816_vm7, %v16830_v28  ;;  %v10767_v60 = vld [vmem:[%s19890_s4 + $0x1190] sm:$0xff] }
 0xd1d   : > { %13341 = vmatprep.subr.bf16.mxu0 %v13948_v18  ;;  %v13429_v62 = vpack.c.bf16 %v10768_v63, %v10767_v60  ;;  %v10843_v60 = vld [vmem:[%s19890_s4 + $0x1380] sm:$0xf] }
 0xd1e   : > { %v10846_v63 = vld [vmem:[%s19891_s5 + $0x180] sm:$0xff] }
 0xd20   : > { %13343 = vmatpush1.bf16.msra.mxu0 %v13342_v1  ;;  %v10769_v1 = vld [vmem:[%s19890_s4 + $0x11a0] sm:$0xff] }
 0xd21   : > { %13344 = vmatprep.subr.bf16.mxu0 %v13948_v18  ;;  %v13432_v7 = vpack.c.bf16 %v10770_v5, %v10769_v1  ;;  %v7508_v1 = vld [vmem:[%s19893_s7] sm:$0xff]  ;;  %v7509_v5 = vld [vmem:[%s19893_s7 + $0x8] sm:$0xff] }
 0xd24   : > { %13346 = vmatpush1.bf16.msra.mxu0 %v13345_v46  ;;  %v10771_v46 = vld [vmem:[%s19890_s4 + $0x11b0] sm:$0xff] }
 0xd25   : > { %13347 = vmatprep.subr.bf16.mxu0 %v13948_v18  ;;  %v13435_v10 = vpack.c.bf16 %v10772_v8, %v10771_v46  ;;  %v7511_v46 = vld [vmem:[%s19893_s7 + $0x18] sm:$0xff] }
 0xd28   : > { %13349 = vmatpush1.bf16.msra.mxu0 %v13348_v45  ;;  %v10773_v45 = vld [vmem:[%s19890_s4 + $0x11c0] sm:$0xff] }
 0xd29   : > { %13350 = vmatprep.subr.bf16.mxu0 %v13948_v18  ;;  %v13438_v13 = vpack.c.bf16 %v10774_v11, %v10773_v45  ;;  %v7513_v45 = vld [vmem:[%s19893_s7 + $0x28] sm:$0xff] }
 0xd2c   : > { %13352 = vmatpush1.bf16.msra.mxu0 %v13351_v51  ;;  %v10775_v51 = vld [vmem:[%s19890_s4 + $0x11d0] sm:$0xff] }
 0xd2d   : > { %13353 = vmatprep.subr.bf16.mxu0 %v13948_v18  ;;  %v13441_v55 = vpack.c.bf16 %v10776_v16, %v10775_v51  ;;  %v7515_v51 = vld [vmem:[%s19893_s7 + $0x38] sm:$0xff] }
 0xd30   : > { %13355 = vmatpush1.bf16.msra.mxu0 %v13354_v32  ;;  %v10777_v32 = vld [vmem:[%s19890_s4 + $0x11e0] sm:$0xff] }
 0xd31   : > { %13356 = vmatprep.subr.bf16.mxu0 %v13948_v18  ;;  %v13444_v17 = vpack.c.bf16 %v10778_v59, %v10777_v32  ;;  %v7517_v32 = vld [vmem:[%s19893_s7 + $0x48] sm:$0xff] }
 0xd34   : > { %13358 = vmatpush1.bf16.msra.mxu0 %v13357_v19  ;;  %v10779_v19 = vld [vmem:[%s19890_s4 + $0x11f0] sm:$0xf] }
 0xd35   : > { %13359 = vmatprep.subr.bf16.mxu0 %v13948_v18 }
 0xd38   : > { %13361 = vmatpush1.bf16.msra.mxu0 %v13360_v25  ;;  %v10783_v25 = vld [vmem:[%s19891_s5 + $0x168] sm:$0xff] }
 0xd39   : > { %13362 = vmatprep.subr.bf16.mxu0 %v13948_v18 }
 0xd3c   : > { %13364 = vmatpush1.bf16.msra.mxu0 %v13363_v23  ;;  %v10819_v23 = vld [vmem:[%s19890_s4 + $0x12c0] sm:$0xff] }
 0xd3d   : > { %13365 = vmatprep.subr.bf16.mxu0 %v13948_v18 }
 0xd40   : > { %13367 = vmatpush1.bf16.msra.mxu0 %v13366_v30  ;;  %v13483_v30 = vpack.c.bf16 %v10820_v27, %v10819_v23 }
 0xd41   : > { %13368 = vmatprep.subr.bf16.mxu0 %v13948_v18 }
 0xd44   : > { %13370 = vmatpush1.bf16.msra.mxu0 %v13369_v58  ;;  %v10823_v58 = vld [vmem:[%s19890_s4 + $0x12e0] sm:$0xff] }
 0xd45   : > { %13371 = vmatprep.subr.bf16.mxu0 %v13948_v18  ;;  %v13489_v37 = vpack.c.bf16 %v10824_v36, %v10823_v58  ;;  %v10878_v36 = vld [vmem:[%s19893_s7 + $0x110] sm:$0xff] }
 0xd48   : > { %13373 = vmatpush1.bf16.msra.mxu0 %v13372_v6  ;;  %v10825_v6 = vld [vmem:[%s19890_s4 + $0x12f0] sm:$0xff] }
 0xd49   : > { %6629 = vmatprep.subr.mxu0 %v13945_v0 }
 0xd4c   : > { %10716 = vmatpush1.msk.msra.mxu0 %vm2820_vm6, %v10715_v38 }
 0xd4d   : > { %6646 = vmatmul.mubr.f32.vlgmr.msra.gmra.mrb[28].mxu0 %v16828_v40 }
 0xd4e   : > { %11379 = vmatprep.mubr.msk.f32.mxu0 %vm2998_vm8, %v10718_v12  ;;  %v10827_v12 = vld [vmem:[%s19890_s4 + $0x1300] sm:$0xff] }
 0xe20   : > { %v6647_v39 = vpop.f32.mrb[28].mxu0 }
 0xe21   : > { %v6649_v42 = vpop.f32.mrb[29].mxu0  ;;  %11377 = vmatprep.subr.msk.mxu0 %vm3005_vm9, %v6647_v39 }
 0xe22   : > { %11378 = vmatpush3.msk.msra.mxu0 %vm3005_vm9, %v6647_v39  ;;  %v10828_v39 = vld [vmem:[%s19890_s4 + $0x1308] sm:$0xff]  ;;  %v10829_v42 = vld [vmem:[%s19890_s4 + $0x1310] sm:$0xff] }
 0xe23   : > { %11380 = vmatmul.mubr.msk.f32.vlgmr.msra.gmra.mrb[10].mxu0 %vm2998_vm8, %v10719_v41  ;;  %11382 = vmatprep.subr.msk.mxu0 %vm3005_vm9, %v18193_v4  ;;  %v13495_v41 = vpack.c.bf16 %v10828_v39, %v10827_v12  ;;  %v10880_v39 = vld [vmem:[%s19893_s7 + $0x120] sm:$0xff] }
 0xe24   : > { %11383 = vmatpush3.msk.msra.mxu0 %vm3005_vm9, %v18193_v4  ;;  %11384 = vmatprep.mubr.msk.f32.mxu0 %vm2998_vm8, %v10750_v2  ;;  %v10757_v4 = vld [vmem:[%s19890_s4 + $0x1140] sm:$0xff]  ;;  %v10830_v2 = vld [vmem:[%s19890_s4 + $0x1318] sm:$0xff] }
 0xe25   : > { %13410 = vmatprep.subr.bf16.mxu0 %v13948_v18  ;;  %v13414_v48 = vpack.c.bf16 %v10758_v47, %v10757_v4  ;;  %v13498_v31 = vpack.c.bf16 %v10830_v2, %v10829_v42  ;;  %v10833_v4 = vld [vmem:[%s19890_s4 + $0x1330] sm:$0xff]  ;;  %v10834_v47 = vld [vmem:[%s19890_s4 + $0x1338] sm:$0xff]  ;;  %v7520_v2 = vld [vmem:[%s19893_s7 + $0x60] sm:$0xf] }
 0xe2b   : > { %11385 = vmatmul.mubr.msk.f32.vlgmr.msra.gmra.mrb[10].mxu0 %vm2998_vm8, %v10751_v44  ;;  %v10832_v44 = vld [vmem:[%s19890_s4 + $0x1328] sm:$0xff] }
 0xe2c   : > { %13412 = vmatpush1.bf16.msra.mxu0 %v13411_v14  ;;  %10781 = vmatprep.mubr.msk.f32.mxu0 %vm2816_vm7, %v16830_v28  ;;  %v13501_v14 = vpack.c.bf16 %v10832_v44, %v10831_v43  ;;  %v10855_v43 = vld [vmem:[%s19893_s7 + $0x70] sm:$0xff] }
 0xe2d   : > { %13413 = vmatprep.subr.bf16.mxu0 %v13948_v18  ;;  %v10882_v44 = vld [vmem:[%s19893_s7 + $0x130] sm:$0xf] }
 0xe30   : > { %13415 = vmatpush1.bf16.msra.mxu0 %v13414_v48  ;;  %v13504_v48 = vpack.c.bf16 %v10834_v47, %v10833_v4 }
 0xe31   : > { %13416 = vmatprep.subr.bf16.mxu0 %v13948_v18 }
 0xe34   : > { %13418 = vmatpush1.bf16.msra.mxu0 %v13417_v3  ;;  %v13507_v3 = vpack.c.bf16 %v10836_v61, %v10835_v49 }
 0xe35   : > { %13419 = vmatprep.subr.bf16.mxu0 %v13948_v18 }
 0xe38   : > { %13421 = vmatpush1.bf16.msra.mxu0 %v13420_v53  ;;  %v13510_v53 = vpack.c.bf16 %v10838_v52, %v10837_v50  ;;  %v10856_v50 = vld [vmem:[%s19893_s7 + $0x78] sm:$0xff]  ;;  %v10857_v52 = vld [vmem:[%s19893_s7 + $0x80] sm:$0xff] }
 0xe39   : > { %13422 = vmatprep.subr.bf16.mxu0 %v13948_v18 }
 0xe3c   : > { %13424 = vmatpush1.bf16.msra.mxu0 %v13423_v54  ;;  %v13513_v54 = vpack.c.bf16 %v10840_v24, %v10839_v35  ;;  %v13546_v24 = vpack.c.bf16 %v10857_v52, %v10856_v50 }
 0xe3d   : > { %13425 = vmatprep.subr.bf16.mxu0 %v13948_v18 }
 0xe40   : > { %13427 = vmatpush1.bf16.msra.mxu0 %v13426_v15  ;;  %v13516_v15 = vpack.c.bf16 %v10842_v57, %v10841_v56  ;;  %v10859_v56 = vld [vmem:[%s19893_s7 + $0x90] sm:$0xff] }
 0xe41   : > { %13428 = vmatprep.subr.bf16.mxu0 %v13948_v18 }
 0xe44   : > { %13430 = vmatpush1.bf16.msra.mxu0 %v13429_v62  ;;  %v7493_v62 = vld [vmem:[%s19892_s6 + $0x8] sm:$0xff] }
 0xe45   : > { %13431 = vmatprep.subr.bf16.mxu0 %v13948_v18  ;;  %7501 = vperm.xlu1 %13880, %v7493_v62   ;;  %v10862_v62 = vld [vmem:[%s19893_s7 + $0xa8] sm:$0xff] }
 0xe48   : > { %13433 = vmatpush1.bf16.msra.mxu0 %v13432_v7  ;;  %v7510_v7 = vld [vmem:[%s19893_s7 + $0x10] sm:$0xff] }
 0xe49   : > { %13434 = vmatprep.subr.bf16.mxu0 %v13948_v18  ;;  %v13522_v8 = vpack.c.bf16 %v7511_v46, %v7510_v7  ;;  %v10865_v7 = vld [vmem:[%s19893_s7 + $0xc0] sm:$0xff] }
 0xe4c   : > { %13436 = vmatpush1.bf16.msra.mxu0 %v13435_v10  ;;  %v7512_v10 = vld [vmem:[%s19893_s7 + $0x20] sm:$0xff] }
 0xe4d   : > { %13437 = vmatprep.subr.bf16.mxu0 %v13948_v18  ;;  %v13526_v11 = vpack.c.bf16 %v7513_v45, %v7512_v10  ;;  %v10886_v10 = vld [vmem:[%s19893_s7 + $0x138] sm:$0xff]  ;;  %v10887_v45 = vld [vmem:[%s19893_s7 + $0x140] sm:$0xff] }
 0xe50   : > { %13439 = vmatpush1.bf16.msra.mxu0 %v13438_v13  ;;  %v7514_v13 = vld [vmem:[%s19893_s7 + $0x30] sm:$0xff] }
 0xe51   : > { %13440 = vmatprep.subr.bf16.mxu0 %v13948_v18  ;;  %v13530_v16 = vpack.c.bf16 %v7515_v51, %v7514_v13  ;;  %v10889_v13 = vld [vmem:[%s19893_s7 + $0x150] sm:$0xff]  ;;  %v13590_v51 = vpack.c.bf16 %v10887_v45, %v10886_v10  ;;  %v10928_v10 = vld [vmem:[%s19894_s8 + $0xa0] sm:$0xff]  ;;  %v10929_v45 = vld [vmem:[%s19894_s8 + $0xa8] sm:$0xff] }
 0xe54   : > { %13442 = vmatpush1.bf16.msra.mxu0 %v13441_v55  ;;  %v7516_v55 = vld [vmem:[%s19893_s7 + $0x40] sm:$0xff] }
 0xe55   : > { %13443 = vmatprep.subr.bf16.mxu0 %v13948_v18  ;;  %v13534_v59 = vpack.c.bf16 %v7517_v32, %v7516_v55  ;;  %v10890_v55 = vld [vmem:[%s19893_s7 + $0x158] sm:$0xff]  ;;  %v10891_v32 = vld [vmem:[%s19893_s7 + $0x160] sm:$0xff] }
 0xe58   : > { %13445 = vmatpush1.bf16.msra.mxu0 %v13444_v17  ;;  %v10870_v17 = vld [vmem:[%s19893_s7 + $0xd0] sm:$0xff] }
 0xe59   : > { %7005 = vmatprep.subr.mxu0 %v13945_v0 }
 0xe5c   : > { %10780 = vmatpush1.msk.msra.mxu0 %vm2820_vm6, %v10779_v19  ;;  %v10871_v19 = vld [vmem:[%s19893_s7 + $0xd8] sm:$0xff] }
 0xe5d   : > { %7022 = vmatmul.mubr.f32.vlgmr.msra.gmra.mrb[30].mxu0 %v16828_v40 }
 0xe5e   : > { %11389 = vmatprep.mubr.msk.f32.mxu0 %vm2998_vm8, %v10782_v20  ;;  %v10872_v20 = vld [vmem:[%s19893_s7 + $0xe0] sm:$0xff] }
 0xec4   : > { %v7502_v4 = vpop.permute.xlu1 %7501 }
 0xf30   : > { %v7023_v22 = vpop.f32.mrb[30].mxu0 }
 0xf31   : > { %v7025_v33 = vpop.f32.mrb[31].mxu0  ;;  %11387 = vmatprep.subr.msk.mxu0 %vm3005_vm9, %v7023_v22 }
 0xf32   : > { %11388 = vmatpush3.msk.msra.mxu0 %vm3005_vm9, %v7023_v22  ;;  %v10873_v22 = vld [vmem:[%s19893_s7 + $0xe8] sm:$0xff] }
 0xf33   : > { %11390 = vmatmul.mubr.msk.f32.vlgmr.msra.gmra.mrb[10].mxu0 %vm2998_vm8, %v10783_v25  ;;  %11392 = vmatprep.subr.msk.mxu0 %vm3005_vm9, %v18235_v21  ;;  %v13566_v25 = vpack.c.bf16 %v10871_v19, %v10870_v17  ;;  %v13570_v27 = vpack.c.bf16 %v10873_v22, %v10872_v20  ;;  %v10892_v17 = vld [vmem:[%s19893_s7 + $0x168] sm:$0xff]  ;;  %v10893_v19 = vld [vmem:[%s19893_s7 + $0x170] sm:$0xff]  ;;  %v10894_v22 = vld [vmem:[%s19893_s7 + $0x178] sm:$0xff] }
 0xf34   : > { %11393 = vmatpush3.msk.msra.mxu0 %vm3005_vm9, %v18235_v21  ;;  %11394 = vmatprep.mubr.msk.f32.mxu0 %vm2998_vm8, %v10814_v9  ;;  %v10821_v21 = vld [vmem:[%s19890_s4 + $0x12d0] sm:$0xff]  ;;  %v10847_v9 = vld [vmem:[%s19891_s5 + $0x188] sm:$0xff]  ;;  %v13602_v20 = vpack.c.bf16 %v10893_v19, %v10892_v17 }
 0xf35   : > { %13482 = vmatprep.subr.bf16.mxu0 %v13948_v18  ;;  %v13486_v34 = vpack.c.bf16 %v10822_v26, %v10821_v21  ;;  %v10876_v26 = vld [vmem:[%s19893_s7 + $0x100] sm:$0xff] }
 0xf3b   : > { %11395 = vmatmul.mubr.msk.f32.vlgmr.msra.gmra.mrb[10].mxu0 %vm2998_vm8, %v10815_v29  ;;  %v10874_v29 = vld [vmem:[%s19893_s7 + $0xf0] sm:$0xff] }
 0xf3c   : > { %13484 = vmatpush1.bf16.msra.mxu0 %v13483_v30  ;;  %10845 = vmatprep.mubr.msk.f32.mxu0 %vm2816_vm7, %v16830_v28  ;;  %v10826_v28 = vld [vmem:[%s19890_s4 + $0x12f8] sm:$0xff] }
 0xf3d   : > { %13485 = vmatprep.subr.bf16.mxu0 %v13948_v18  ;;  %v13492_v38 = vpack.c.bf16 %v10826_v28, %v10825_v6  ;;  %v10875_v30 = vld [vmem:[%s19893_s7 + $0xf8] sm:$0xff]  ;;  %v7518_v28 = vld [vmem:[%s19893_s7 + $0x50] sm:$0xff] }
 0xf3e   : > { %v13574_v21 = vpack.c.bf16 %v10875_v30, %v10874_v29  ;;  %v10898_v29 = vld [vmem:[%s19893_s7 + $0x198] sm:$0xf]  ;;  %v10902_v30 = vld [vmem:[%s19894_s8 + $0x20] sm:$0xff] }
 0xf40   : > { %13487 = vmatpush1.bf16.msra.mxu0 %v13486_v34  ;;  %v10877_v34 = vld [vmem:[%s19893_s7 + $0x108] sm:$0xff] }
 0xf41   : > { %13488 = vmatprep.subr.bf16.mxu0 %v13948_v18  ;;  %v13578_v58 = vpack.c.bf16 %v10877_v34, %v10876_v26  ;;  %v7892_v26 = vld [vmem:[%s19894_s8] sm:$0xff] }
 0xf44   : > { %13490 = vmatpush1.bf16.msra.mxu0 %v13489_v37  ;;  %v10879_v37 = vld [vmem:[%s19893_s7 + $0x118] sm:$0xff] }
 0xf45   : > { %13491 = vmatprep.subr.bf16.mxu0 %v13948_v18  ;;  %v13582_v6 = vpack.c.bf16 %v10879_v37, %v10878_v36  ;;  %v10904_v37 = vld [vmem:[%s19894_s8 + $0x30] sm:$0xff] }
 0xf48   : > { %13493 = vmatpush1.bf16.msra.mxu0 %v13492_v38  ;;  %v7519_v38 = vld [vmem:[%s19893_s7 + $0x58] sm:$0xff] }
 0xf49   : > { %13494 = vmatprep.subr.bf16.mxu0 %v13948_v18  ;;  %v13538_v12 = vpack.c.bf16 %v7519_v38, %v7518_v28  ;;  %v7894_v28 = vld [vmem:[%s19894_s8 + $0x10] sm:$0xff]  ;;  %v9220_v38 = vld [vmem:[%s19896_s10] sm:$0xff] }
 0xf4c   : > { %13496 = vmatpush1.bf16.msra.mxu0 %v13495_v41  ;;  %v10881_v41 = vld [vmem:[%s19893_s7 + $0x128] sm:$0xff] }
 0xf4d   : > { %13497 = vmatprep.subr.bf16.mxu0 %v13948_v18  ;;  %v13586_v42 = vpack.c.bf16 %v10881_v41, %v10880_v39  ;;  %v7895_v39 = vld [vmem:[%s19894_s8 + $0x18] sm:$0x1] }
 0xf4e   : > { %v13625_v41 = vpack.c.bf16 %v7895_v39, %v7894_v28  ;;  %v10947_v28 = vld [vmem:[%s19894_s8 + $0x108] sm:$0xff] }
 0xf4f   : > { %v10953_v39 = vld [vmem:[%s19894_s8 + $0x128] sm:$0xff] }
 0xf50   : > { %13499 = vmatpush1.bf16.msra.mxu0 %v13498_v31  ;;  %v10854_v31 = vld [vmem:[%s19893_s7 + $0x68] sm:$0xff] }
 0xf51   : > { %13500 = vmatprep.subr.bf16.mxu0 %v13948_v18 }
 0xf54   : > { %13502 = vmatpush1.bf16.msra.mxu0 %v13501_v14  ;;  %v13542_v14 = vpack.c.bf16 %v10855_v43, %v10854_v31 }
 0xf55   : > { %13503 = vmatprep.subr.bf16.mxu0 %v13948_v18 }
 0xf58   : > { %13505 = vmatpush1.bf16.msra.mxu0 %v13504_v48  ;;  %v7497_v48 = vpop.permute.xlu0 %7496 }
 0xf59   : > { %13506 = vmatprep.subr.bf16.mxu0 %v13948_v18 }
 0xf5c   : > { %13508 = vmatpush1.bf16.msra.mxu0 %v13507_v3 }
 0xf5d   : > { %13509 = vmatprep.subr.bf16.mxu0 %v13948_v18 }
 0xf60   : > { %13511 = vmatpush1.bf16.msra.mxu0 %v13510_v53 }
 0xf61   : > { %13512 = vmatprep.subr.bf16.mxu0 %v13948_v18 }
 0xf64   : > { %13514 = vmatpush1.bf16.msra.mxu0 %v13513_v54  ;;  %v10858_v54 = vld [vmem:[%s19893_s7 + $0x88] sm:$0xff] }
 0xf65   : > { %13515 = vmatprep.subr.bf16.mxu0 %v13948_v18  ;;  %v13550_v57 = vpack.c.bf16 %v10859_v56, %v10858_v54  ;;  %v10917_v54 = vld [vmem:[%s19894_s8 + $0x68] sm:$0xff] }
 0xf68   : > { %13517 = vmatpush1.bf16.msra.mxu0 %v13516_v15  ;;  %v10860_v15 = vld [vmem:[%s19893_s7 + $0x98] sm:$0xff] }
 0xf69   : > { %7381 = vmatprep.subr.mxu0 %v13945_v0 }
 0xf6c   : > { %10844 = vmatpush1.msk.msra.mxu0 %vm2820_vm6, %v10843_v60  ;;  %v10861_v60 = vld [vmem:[%s19893_s7 + $0xa0] sm:$0xff] }
 0xf6d   : > { %7398 = vmatmul.mubr.f32.vlgmr.msra.gmra.mrb[32].mxu0 %v16828_v40  ;;  %v13518_v40 = vpack.c.bf16 %v7509_v5, %v7508_v1  ;;  %v10863_v1 = vld [vmem:[%s19893_s7 + $0xb0] sm:$0xff] }
 0xf6e   : > { %11399 = vmatprep.mubr.msk.f32.mxu0 %vm2998_vm8, %v10846_v63  ;;  %v13554_v63 = vpack.c.bf16 %v10861_v60, %v10860_v15  ;;  %v13558_v5 = vpack.c.bf16 %v10863_v1, %v10862_v62  ;;  %v10912_v15 = vld [vmem:[%s19894_s8 + $0x50] sm:$0xff]  ;;  %v10913_v60 = vld [vmem:[%s19894_s8 + $0x58] sm:$0x1] }
 0xf6f   : > { %13519 = vmatprep.subr.bf16.mxu1 %v13518_v40  ;;  %v10919_v62 = vld [vmem:[%s19894_s8 + $0x78] sm:$0x1] }
 0xf70   : > { %13521 = vmatpush3.bf16.msra.mxu1 %v13518_v40  ;;  %v10864_v40 = vld [vmem:[%s19893_s7 + $0xb8] sm:$0xff] }
 0xf71   : > { %13523 = vmatprep.subr.bf16.mxu1 %v13522_v8  ;;  %v13562_v46 = vpack.c.bf16 %v10865_v7, %v10864_v40  ;;  %v13632_v40 = vpack.c.bf16 %v10913_v60, %v10912_v15 }
 0xf74   : > { %13525 = vmatpush3.bf16.msra.mxu1 %v13522_v8  ;;  %v10866_v8 = vld [vmem:[%s19893_s7 + $0xc8] sm:$0xf] }
 0xf75   : > { %13527 = vmatprep.subr.bf16.mxu1 %v13526_v11 }
 0xf78   : > { %13529 = vmatpush3.bf16.msra.mxu1 %v13526_v11  ;;  %v10888_v11 = vld [vmem:[%s19893_s7 + $0x148] sm:$0xff] }
 0xf79   : > { %13531 = vmatprep.subr.bf16.mxu1 %v13530_v16 }
 0xf7c   : > { %13533 = vmatpush3.bf16.msra.mxu1 %v13530_v16  ;;  %v13594_v16 = vpack.c.bf16 %v10889_v13, %v10888_v11  ;;  %v13650_v13 = vpack.c.bf16 %v10929_v45, %v10928_v10  ;;  %v10973_v10 = vld [vmem:[%s19894_s8 + $0x198] sm:$0x1]  ;;  %v10978_v45 = vld [vmem:[%s19894_s8 + $0x1b0] sm:$0xff] }
 0xf7d   : > { %13535 = vmatprep.subr.bf16.mxu1 %v13534_v59 }
 0xf80   : > { %13537 = vmatpush3.bf16.msra.mxu1 %v13534_v59  ;;  %v13598_v59 = vpack.c.bf16 %v10891_v32, %v10890_v55  ;;  %v10930_v55 = vld [vmem:[%s19894_s8 + $0xb0] sm:$0xff]  ;;  %v10931_v32 = vld [vmem:[%s19894_s8 + $0xb8] sm:$0x1] }
 0xf81   : > { %13539 = vmatprep.subr.bf16.mxu1 %v13538_v12 }
 0xf84   : > { %13541 = vmatpush3.bf16.msra.mxu1 %v13538_v12 }
 0xf85   : > { %11426 = vmatprep.subr.msk.mxu1 %vm2820_vm6, %v7520_v2 }
 0xf88   : > { %11427 = vmatpush3.msk.msra.mxu1 %vm2820_vm6, %v7520_v2 }
 0xf89   : > { %13543 = vmatprep.subr.bf16.mxu1 %v13542_v14 }
0x1040   : > { %v7399_v33 = vpop.f32.mrb[32].mxu0 }
0x1041   : > { %v7401_v23 = vpop.f32.mrb[33].mxu0  ;;  %11397 = vmatprep.subr.msk.mxu0 %vm3005_vm9, %v7399_v33 }
0x1042   : > { %11398 = vmatpush3.msk.msra.mxu0 %vm3005_vm9, %v7399_v33  ;;  %v10897_v23 = vld [vmem:[%s19893_s7 + $0x190] sm:$0xff] }
0x1043   : > { %11400 = vmatmul.mubr.msk.f32.vlgmr.msra.gmra.mrb[10].mxu0 %vm2998_vm8, %v10847_v9  ;;  %13567 = vmatprep.subr.bf16.mxu0 %v13566_v25  ;;  %v10896_v9 = vld [vmem:[%s19893_s7 + $0x188] sm:$0xff] }
0x1044   : > { %13569 = vmatpush3.bf16.msra.mxu0 %v13566_v25  ;;  %v10895_v25 = vld [vmem:[%s19893_s7 + $0x180] sm:$0xff] }
0x1045   : > { %13571 = vmatprep.subr.bf16.mxu0 %v13570_v27  ;;  %v13606_v33 = vpack.c.bf16 %v10895_v25, %v10894_v22  ;;  %v10934_v22 = vld [vmem:[%s19894_s8 + $0xc0] sm:$0xff]  ;;  %v10935_v25 = vld [vmem:[%s19894_s8 + $0xc8] sm:$0xff] }
0x1048   : > { %13573 = vmatpush3.bf16.msra.mxu0 %v13570_v27  ;;  %v13610_v27 = vpack.c.bf16 %v10897_v23, %v10896_v9  ;;  %v10941_v9 = vld [vmem:[%s19894_s8 + $0xe8] sm:$0xff]  ;;  %v13657_v23 = vpack.c.bf16 %v10935_v25, %v10934_v22  ;;  %v10984_v25 = vld [vmem:[%s19894_s8 + $0x1d0] sm:$0xff] }
0x1049   : > { %13575 = vmatprep.subr.bf16.mxu0 %v13574_v21 }
0x104c   : > { %13577 = vmatpush3.bf16.msra.mxu0 %v13574_v21  ;;  %v10903_v21 = vld [vmem:[%s19894_s8 + $0x28] sm:$0xff] }
0x104d   : > { %13579 = vmatprep.subr.bf16.mxu0 %v13578_v58  ;;  %v13615_v34 = vpack.c.bf16 %v10903_v21, %v10902_v30  ;;  %v10937_v30 = vld [vmem:[%s19894_s8 + $0xd8] sm:$0x1]  ;;  %v10942_v21 = vld [vmem:[%s19894_s8 + $0xf0] sm:$0xff] }
0x1050   : > { %13581 = vmatpush3.bf16.msra.mxu0 %v13578_v58  ;;  %v7893_v58 = vld [vmem:[%s19894_s8 + $0x8] sm:$0xff] }
0x1051   : > { %13583 = vmatprep.subr.bf16.mxu0 %v13582_v6  ;;  %v13622_v36 = vpack.c.bf16 %v7893_v58, %v7892_v26  ;;  %v10943_v26 = vld [vmem:[%s19894_s8 + $0xf8] sm:$0x1] }
0x1054   : > { %13585 = vmatpush3.bf16.msra.mxu0 %v13582_v6  ;;  %v10905_v6 = vld [vmem:[%s19894_s8 + $0x38] sm:$0x1] }
0x1055   : > { %13587 = vmatprep.subr.bf16.mxu0 %v13586_v42  ;;  %v13618_v12 = vpack.c.bf16 %v10905_v6, %v10904_v37  ;;  %v13667_v37 = vpack.c.bf16 %v10943_v26, %v10942_v21  ;;  %v10946_v6 = vld [vmem:[%s19894_s8 + $0x100] sm:$0xff] }
0x1058   : > { %13589 = vmatpush3.bf16.msra.mxu0 %v13586_v42 }
0x1059   : > { %11484 = vmatprep.subr.msk.mxu0 %vm2820_vm6, %v10882_v44 }
0x105c   : > { %11485 = vmatpush3.msk.msra.mxu0 %vm2820_vm6, %v10882_v44 }
0x105d   : > { %13614 = vmatprep.subr.bf16.mxu0 %v13948_v18 }
0x1116   : > { %v11401_v47 = vpop.f32.mrb[10].mxu0 }
0x1117   : > { %v7505_v49 = vadd.f32 %v11401_v47, %v7502_v4  ;;  %v7481_v61 = vpop.f32.mrb[11].mxu0 }
0x1118   : > { %v7504_v3 = vadd.f32 %v7497_v48, %v7481_v61 }
0x1119   : > { %v19339_v35 = vmax.f32 %v7505_v49, 0.0 }
0x111a   : > { %v7506_v53 = vmax.f32 %v7504_v3, 0.0 }
0x111c   : > { %11428 = vmatprep.mubr.msk.f32.mxu1 %vm7521_vm10, %v7506_v53  ;;  %11486 = vmatprep.mubr.msk.f32.mxu0 %vm7521_vm10, %v7506_v53 }
0x111d   : > { %11429 = vmatmul.mubr.msk.f32.vlgmr.msra.gmra.mrb[36].mxu1 %vm7521_vm10, %v19339_v35  ;;  %11487 = vmatmul.mubr.msk.f32.vlgmr.msra.gmra.mrb[34].mxu0 %vm7521_vm10, %v19339_v35 }
0x111e   : > { %13545 = vmatpush3.bf16.msra.mxu1 %v13542_v14  ;;  %11457 = vmatprep.mubr.msk.f32.mxu1 %vm7521_vm10, %v7506_v53 }
0x111f   : > { %13547 = vmatprep.subr.bf16.mxu1 %v13546_v24  ;;  %11526 = vmatprep.mubr.msk.f32.mxu0 %vm13949_vm4, %v13945_v0 }
0x1120   : > { %13616 = vmatpush3.bf16.msra.mxu0 %v13615_v34 }
0x1121   : > { %13617 = vmatprep.subr.bf16.mxu0 %v13948_v18 }
0x1122   : > { %13549 = vmatpush3.bf16.msra.mxu1 %v13546_v24  ;;  %v10916_v24 = vld [vmem:[%s19894_s8 + $0x60] sm:$0xff] }
0x1123   : > { %13551 = vmatprep.subr.bf16.mxu1 %v13550_v57 }
0x1124   : > { %13620 = vmatpush3.bf16.msk.msra.mxu0 %vm19450_vm12, %v13618_v12  ;;  %v10952_v12 = vld [vmem:[%s19894_s8 + $0x120] sm:$0xff] }
0x1125   : > { %13628 = vmatprep.subr.bf16.mxu0 %v13948_v18 }
0x1126   : > { %13553 = vmatpush3.bf16.msra.mxu1 %v13550_v57  ;;  %v13636_v57 = vpack.c.bf16 %v10917_v54, %v10916_v24  ;;  %v10961_v24 = vld [vmem:[%s19894_s8 + $0x158] sm:$0x1]  ;;  %v10966_v54 = vld [vmem:[%s19894_s8 + $0x170] sm:$0xff] }
0x1127   : > { %13555 = vmatprep.subr.bf16.mxu1 %v13554_v63 }
0x112a   : > { %13557 = vmatpush3.bf16.msra.mxu1 %v13554_v63  ;;  %v10918_v63 = vld [vmem:[%s19894_s8 + $0x70] sm:$0xff] }
0x112b   : > { %13559 = vmatprep.subr.bf16.mxu1 %v13558_v5  ;;  %v13639_v7 = vpack.c.bf16 %v10919_v62, %v10918_v63  ;;  %v10970_v62 = vld [vmem:[%s19894_s8 + $0x180] sm:$0xff] }
0x112e   : > { %13561 = vmatpush3.bf16.msra.mxu1 %v13558_v5 }
0x112f   : > { %13563 = vmatprep.subr.bf16.mxu1 %v13562_v46 }
0x1132   : > { %13565 = vmatpush3.bf16.msra.mxu1 %v13562_v46  ;;  %v10922_v46 = vld [vmem:[%s19894_s8 + $0x80] sm:$0xff] }
0x1133   : > { %11455 = vmatprep.subr.msk.mxu1 %vm2820_vm6, %v10866_v8 }
0x1136   : > { %11456 = vmatpush3.msk.msra.mxu1 %vm2820_vm6, %v10866_v8  ;;  %v10923_v8 = vld [vmem:[%s19894_s8 + $0x88] sm:$0xff] }
0x1137   : > { %11458 = vmatmul.mubr.msk.f32.vlgmr.msra.gmra.mrb[38].mxu1 %vm7521_vm10, %v19339_v35  ;;  %13591 = vmatprep.subr.bf16.mxu1 %v13590_v51  ;;  %v13643_v11 = vpack.c.bf16 %v10923_v8, %v10922_v46  ;;  %v10972_v8 = vld [vmem:[%s19894_s8 + $0x190] sm:$0xff] }
0x1138   : > { %13593 = vmatpush3.bf16.msra.mxu1 %v13590_v51  ;;  %11515 = vmatprep.mubr.msk.f32.mxu1 %vm7521_vm10, %v7506_v53  ;;  %v10910_v53 = vld [vmem:[%s19894_s8 + $0x40] sm:$0xff]  ;;  %v10924_v51 = vld [vmem:[%s19894_s8 + $0x90] sm:$0xff] }
0x1139   : > { %13595 = vmatprep.subr.bf16.mxu1 %v13594_v16 }
0x113c   : > { %13597 = vmatpush3.bf16.msra.mxu1 %v13594_v16  ;;  %v10925_v16 = vld [vmem:[%s19894_s8 + $0x98] sm:$0x1] }
0x113d   : > { %13599 = vmatprep.subr.bf16.mxu1 %v13598_v59  ;;  %v13646_v19 = vpack.c.bf16 %v10925_v16, %v10924_v51  ;;  %v13702_v16 = vpack.c.bf16 %v10973_v10, %v10972_v8 }
0x1140   : > { %13601 = vmatpush3.bf16.msra.mxu1 %v13598_v59 }
0x1141   : > { %13603 = vmatprep.subr.bf16.mxu1 %v13602_v20 }
0x1144   : > { %13605 = vmatpush3.bf16.msra.mxu1 %v13602_v20  ;;  %v13653_v20 = vpack.c.bf16 %v10931_v32, %v10930_v55  ;;  %v10982_v32 = vld [vmem:[%s19894_s8 + $0x1c0] sm:$0xff] }
0x1145   : > { %13607 = vmatprep.subr.bf16.mxu1 %v13606_v33 }
0x1148   : > { %13609 = vmatpush3.bf16.msra.mxu1 %v13606_v33  ;;  %v10940_v33 = vld [vmem:[%s19894_s8 + $0xe0] sm:$0xff] }
0x1149   : > { %13611 = vmatprep.subr.bf16.mxu1 %v13610_v27 }
0x114c   : > { %13613 = vmatpush3.bf16.msra.mxu1 %v13610_v27  ;;  %v13664_v27 = vpack.c.bf16 %v10941_v9, %v10940_v33  ;;  %v10985_v33 = vld [vmem:[%s19894_s8 + $0x1d8] sm:$0x1]  ;;  %v10990_v9 = vld [vmem:[%s19894_s8 + $0x1f0] sm:$0xff] }
0x114d   : > { %11513 = vmatprep.subr.msk.mxu1 %vm2820_vm6, %v10898_v29 }
0x1150   : > { %11514 = vmatpush3.msk.msra.mxu1 %vm2820_vm6, %v10898_v29  ;;  %v10936_v29 = vld [vmem:[%s19894_s8 + $0xd0] sm:$0xff] }
0x1151   : > { %11516 = vmatmul.mubr.msk.f32.vlgmr.msra.gmra.mrb[40].mxu1 %vm7521_vm10, %v19339_v35  ;;  %13621 = vmatprep.subr.bf16.mxu1 %v13948_v18  ;;  %v10911_v35 = vld [vmem:[%s19894_s8 + $0x48] sm:$0xff] }
0x1152   : > { %11537 = vmatprep.mubr.msk.f32.mxu1 %vm13949_vm4, %v13945_v0  ;;  %13623 = vmatpush3.bf16.msra.mxu1 %v13622_v36  ;;  %v13629_v56 = vpack.c.bf16 %v10911_v35, %v10910_v53  ;;  %v13660_v36 = vpack.c.bf16 %v10937_v30, %v10936_v29  ;;  %v10960_v35 = vld [vmem:[%s19894_s8 + $0x150] sm:$0xff]  ;;  %v13716_v30 = vpack.c.bf16 %v10985_v33, %v10984_v25 }
0x1153   : > { %13624 = vmatprep.subr.bf16.mxu1 %v13948_v18  ;;  %v13688_v60 = vpack.c.bf16 %v10961_v24, %v10960_v35  ;;  %v9313_v35 = vld [vmem:[%s19898_s12 + $0x10] sm:$0xff] }
0x1156   : > { %13627 = vmatpush3.bf16.msk.msra.mxu1 %vm19450_vm12, %v13625_v41  ;;  %v13671_v41 = vpack.c.bf16 %v10947_v28, %v10946_v6  ;;  %v9223_v6 = vld [vmem:[%s19896_s10 + $0x18] sm:$0xff] }
0x1157   : > { %13635 = vmatprep.subr.bf16.mxu1 %v13948_v18 }
0x11f0   : > { %v11430_v42 = vpop.f32.mrb[36].mxu1  ;;  %v11488_v2 = vpop.f32.mrb[34].mxu0 }
0x11f1   : > { %v7597_v31 = vpop.f32.mrb[37].mxu1  ;;  %v7783_v43 = vpop.f32.mrb[35].mxu0 }
0x120a   : > { %v11459_v44 = vpop.f32.mrb[38].mxu1 }
0x120b   : > { %v7699_v14 = vmax.f32 %v11430_v42, %v11459_v44  ;;  %v7689_v4 = vpop.f32.mrb[39].mxu1  ;;  %v13678_v42 = vpack.c.bf16 %v10953_v39, %v10952_v12  ;;  %v10955_v44 = vld [vmem:[%s19894_s8 + $0x138] sm:$0x1]  ;;  %v9224_v12 = vld [vmem:[%s19896_s10 + $0x20] sm:$0xff]  ;;  %v9225_v39 = vld [vmem:[%s19896_s10 + $0x28] sm:$0xff] }
0x120c   : > { %v7698_v47 = vmax.f32 %v7597_v31, %v7689_v4  ;;  %v10949_v31 = vld [vmem:[%s19894_s8 + $0x118] sm:$0x1] }
0x120d   : > { %v7793_v48 = vmax.f32 %v7699_v14, %v11488_v2  ;;  %v10948_v2 = vld [vmem:[%s19894_s8 + $0x110] sm:$0xff] }
0x120e   : > { %v7792_v49 = vmax.f32 %v7698_v47, %v7783_v43  ;;  %v10954_v43 = vld [vmem:[%s19894_s8 + $0x130] sm:$0xff]  ;;  %v13674_v47 = vpack.c.bf16 %v10949_v31, %v10948_v2  ;;  %v9227_v2 = vld [vmem:[%s19896_s10 + $0x38] sm:$0xff] }
0x1224   : > { %v11517_v61 = vpop.f32.mrb[40].mxu1 }
0x1225   : > { %v7887_v3 = vmax.f32 %v7793_v48, %v11517_v61  ;;  %v7877_v50 = vpop.f32.mrb[41].mxu1  ;;  %v13681_v48 = vpack.c.bf16 %v10955_v44, %v10954_v43  ;;  %v10959_v61 = vld [vmem:[%s19894_s8 + $0x148] sm:$0xff]  ;;  %v9228_v43 = vld [vmem:[%s19896_s10 + $0x40] sm:$0xff] }
0x1226   : > { %v7886_v52 = vmax.f32 %v7792_v49, %v7877_v50  ;;  %v10958_v49 = vld [vmem:[%s19894_s8 + $0x140] sm:$0xff]  ;;  %v10965_v50 = vld [vmem:[%s19894_s8 + $0x168] sm:$0xff] }
0x1227   : > { %7890 = vst.msk [vmem:[#allocation2 + $0x8] sm:$0xff] %vm7888_vm13, %v7887_v3  ;;  %v10964_v3 = vld [vmem:[%s19894_s8 + $0x160] sm:$0xff]  ;;  %v9229_v44 = vld [vmem:[%s19896_s10 + $0x48] sm:$0xff] }
0x1228   : > { %7889 = vst.msk [vmem:[#allocation2] sm:$0xff] %vm7888_vm13, %v7886_v52  ;;  %v13685_v52 = vpack.c.bf16 %v10959_v61, %v10958_v49  ;;  %v13692_v53 = vpack.c.bf16 %v10965_v50, %v10964_v3  ;;  %v9232_v49 = vld [vmem:[%s19896_s10 + $0x60] sm:$0xff]  ;;  %v9233_v61 = vld [vmem:[%s19896_s10 + $0x68] sm:$0xff]  ;;  %v9234_v50 = vld [vmem:[%s19896_s10 + $0x70] sm:$0xff] }
0x1229   : > { %v13745_v3 = vpack.c.bf16 %v9233_v61, %v9232_v49 }
0x122e   : > { %v8636_v15 = vld [vmem:[#allocation2 + $0x9] sm:$0x1]  ;;  %v8802_v51 = vld [vmem:[#allocation2 + $0xb] sm:$0x1]  ;;  %v8968_v29 = vld [vmem:[#allocation2 + $0xd] sm:$0x1] }
0x122f   : > { %v7896_v1 = vld [vmem:[#allocation2 + $0x1] sm:$0x1]  ;;  %v7891_v5 = vld [vmem:[#allocation2] sm:$0x1]  ;;  %v8055_v59 = vld [vmem:[#allocation2 + $0x2] sm:$0x1] }
0x1230   : > { %11527 = vmatmul.mubr.msk.f32.vlgmr.msra.gmra.mrb[36].mxu0 %vm7888_vm13, %v7896_v1  ;;  %11538 = vmatmul.mubr.msk.f32.vlgmr.msra.gmra.mrb[42].mxu1 %vm7888_vm13, %v7891_v5  ;;  %v8138_v17 = vld [vmem:[#allocation2 + $0x3] sm:$0x1]  ;;  %v8221_v34 = vld [vmem:[#allocation2 + $0x4] sm:$0x1]  ;;  %v8304_v58 = vld [vmem:[#allocation2 + $0x5] sm:$0x1] }
0x1231   : > { %13630 = vmatpush3.bf16.msra.mxu0 %v13629_v56  ;;  %13637 = vmatpush3.bf16.msra.mxu1 %v13636_v57  ;;  %v8387_v14 = vld [vmem:[#allocation2 + $0x6] sm:$0x1]  ;;  %v8470_v4 = vld [vmem:[#allocation2 + $0x7] sm:$0x1]  ;;  %v10967_v56 = vld [vmem:[%s19894_s8 + $0x178] sm:$0x1] }
0x1232   : > { %13631 = vmatprep.subr.bf16.mxu0 %v13948_v18  ;;  %13638 = vmatprep.subr.bf16.mxu1 %v13948_v18  ;;  %v8553_v57 = vld [vmem:[#allocation2 + $0x8] sm:$0x1]  ;;  %v13695_v63 = vpack.c.bf16 %v10967_v56, %v10966_v54  ;;  %v10976_v5 = vld [vmem:[%s19894_s8 + $0x1a0] sm:$0xff]  ;;  %v9051_v26 = vld [vmem:[#allocation2 + $0xe] sm:$0x1] }
0x1233   : > { %11548 = vmatprep.mubr.msk.f32.mxu0 %vm13949_vm4, %v13945_v0  ;;  %11559 = vmatprep.mubr.msk.f32.mxu1 %vm13949_vm4, %v13945_v0  ;;  %v10971_v1 = vld [vmem:[%s19894_s8 + $0x188] sm:$0xff]  ;;  %v9314_v54 = vld [vmem:[%s19898_s12 + $0x18] sm:$0xff] }
0x1234   : > { %v13751_v56 = vpack.c.bf16 %v9314_v54, %v9313_v35  ;;  %v9321_v35 = vld [vmem:[%s19898_s12 + $0x50] sm:$0xf] }
0x1235   : > { %13634 = vmatpush3.bf16.msk.msra.mxu0 %vm19450_vm12, %v13632_v40  ;;  %13641 = vmatpush3.bf16.msk.msra.mxu1 %vm19450_vm12, %v13639_v7  ;;  %v10977_v40 = vld [vmem:[%s19894_s8 + $0x1a8] sm:$0xff]  ;;  %v13699_v7 = vpack.c.bf16 %v10971_v1, %v10970_v62  ;;  %v9318_v62 = vld [vmem:[%s19898_s12 + $0x38] sm:$0xff] }
0x1236   : > { %13642 = vmatprep.subr.bf16.mxu0 %v13948_v18  ;;  %13649 = vmatprep.subr.bf16.mxu1 %v13948_v18  ;;  %v13706_v46 = vpack.c.bf16 %v10977_v40, %v10976_v5 }
0x1238   : > { %11549 = vmatmul.mubr.msk.f32.vlgmr.msra.gmra.mrb[38].mxu0 %vm7888_vm13, %v8055_v59  ;;  %11560 = vmatmul.mubr.msk.f32.vlgmr.msra.gmra.mrb[44].mxu1 %vm7888_vm13, %v8138_v17  ;;  %v10983_v59 = vld [vmem:[%s19894_s8 + $0x1c8] sm:$0xff]  ;;  %v10988_v17 = vld [vmem:[%s19894_s8 + $0x1e0] sm:$0xff] }
0x1239   : > { %13644 = vmatpush3.bf16.msra.mxu0 %v13643_v11  ;;  %13651 = vmatpush3.bf16.msra.mxu1 %v13650_v13  ;;  %v10979_v11 = vld [vmem:[%s19894_s8 + $0x1b8] sm:$0x1]  ;;  %v8719_v13 = vld [vmem:[#allocation2 + $0xa] sm:$0x1] }
0x123a   : > { %13645 = vmatprep.subr.bf16.mxu0 %v13948_v18  ;;  %13652 = vmatprep.subr.bf16.mxu1 %v13948_v18  ;;  %v13709_v55 = vpack.c.bf16 %v10979_v11, %v10978_v45 }
0x123b   : > { %11570 = vmatprep.mubr.msk.f32.mxu0 %vm13949_vm4, %v13945_v0  ;;  %11581 = vmatprep.mubr.msk.f32.mxu1 %vm13949_vm4, %v13945_v0 }
0x123d   : > { %13648 = vmatpush3.bf16.msk.msra.mxu0 %vm19450_vm12, %v13646_v19  ;;  %13655 = vmatpush3.bf16.msk.msra.mxu1 %vm19450_vm12, %v13653_v20  ;;  %v10989_v19 = vld [vmem:[%s19894_s8 + $0x1e8] sm:$0xff]  ;;  %v13713_v20 = vpack.c.bf16 %v10983_v59, %v10982_v32 }
0x123e   : > { %13656 = vmatprep.subr.bf16.mxu0 %v13948_v18  ;;  %13663 = vmatprep.subr.bf16.mxu1 %v13948_v18  ;;  %v13720_v22 = vpack.c.bf16 %v10989_v19, %v10988_v17 }
0x1240   : > { %11571 = vmatmul.mubr.msk.f32.vlgmr.msra.gmra.mrb[40].mxu0 %vm7888_vm13, %v8221_v34  ;;  %11582 = vmatmul.mubr.msk.f32.vlgmr.msra.gmra.mrb[46].mxu1 %vm7888_vm13, %v8304_v58  ;;  %v9134_v34 = vld [vmem:[#allocation2 + $0xf] sm:$0x1] }
0x1241   : > { %13658 = vmatpush3.bf16.msra.mxu0 %v13657_v23  ;;  %13665 = vmatpush3.bf16.msra.mxu1 %v13664_v27  ;;  %v10991_v23 = vld [vmem:[%s19894_s8 + $0x1f8] sm:$0x1]  ;;  %v8885_v27 = vld [vmem:[#allocation2 + $0xc] sm:$0x1] }
0x1242   : > { %13659 = vmatprep.subr.bf16.mxu0 %v13948_v18  ;;  %13666 = vmatprep.subr.bf16.mxu1 %v13948_v18  ;;  %v13723_v21 = vpack.c.bf16 %v10991_v23, %v10990_v9  ;;  %v9221_v58 = vld [vmem:[%s19896_s10 + $0x8] sm:$0xff] }
0x1243   : > { %11592 = vmatprep.mubr.msk.f32.mxu0 %vm13949_vm4, %v13945_v0  ;;  %11603 = vmatprep.mubr.msk.f32.mxu1 %vm13949_vm4, %v13945_v0 }
0x1245   : > { %13662 = vmatpush3.bf16.msk.msra.mxu0 %vm19450_vm12, %v13660_v36  ;;  %13669 = vmatpush3.bf16.msk.msra.mxu1 %vm19450_vm12, %v13667_v37  ;;  %v13727_v36 = vpack.c.bf16 %v9221_v58, %v9220_v38  ;;  %v9222_v37 = vld [vmem:[%s19896_s10 + $0x10] sm:$0xff] }
0x1246   : > { %13670 = vmatprep.subr.bf16.mxu0 %v13948_v18  ;;  %13677 = vmatprep.subr.bf16.mxu1 %v13948_v18  ;;  %v13730_v28 = vpack.c.bf16 %v9223_v6, %v9222_v37 }
0x1248   : > { %11593 = vmatmul.mubr.msk.f32.vlgmr.msra.gmra.mrb[42].mxu0 %vm7888_vm13, %v8387_v14  ;;  %11604 = vmatmul.mubr.msk.f32.vlgmr.msra.gmra.mrb[48].mxu1 %vm7888_vm13, %v8470_v4  ;;  %v13739_v14 = vpack.c.bf16 %v9229_v44, %v9228_v43  ;;  %v9230_v4 = vld [vmem:[%s19896_s10 + $0x50] sm:$0xff] }
0x1249   : > { %13672 = vmatpush3.bf16.msra.mxu0 %v13671_v41  ;;  %13679 = vmatpush3.bf16.msra.mxu1 %v13678_v42  ;;  %v13733_v41 = vpack.c.bf16 %v9225_v39, %v9224_v12  ;;  %v9226_v42 = vld [vmem:[%s19896_s10 + $0x30] sm:$0xff] }
0x124a   : > { %13673 = vmatprep.subr.bf16.mxu0 %v13948_v18  ;;  %13680 = vmatprep.subr.bf16.mxu1 %v13948_v18  ;;  %v13736_v31 = vpack.c.bf16 %v9227_v2, %v9226_v42 }
0x124b   : > { %11614 = vmatprep.mubr.msk.f32.mxu0 %vm13949_vm4, %v13945_v0  ;;  %11625 = vmatprep.mubr.msk.f32.mxu1 %vm13949_vm4, %v13945_v0 }
0x124d   : > { %13676 = vmatpush3.bf16.msk.msra.mxu0 %vm19450_vm12, %v13674_v47  ;;  %13683 = vmatpush3.bf16.msk.msra.mxu1 %vm19450_vm12, %v13681_v48  ;;  %v9231_v47 = vld [vmem:[%s19896_s10 + $0x58] sm:$0xff] }
0x124e   : > { %13684 = vmatprep.subr.bf16.mxu0 %v13948_v18  ;;  %13691 = vmatprep.subr.bf16.mxu1 %v13948_v18  ;;  %v13742_v48 = vpack.c.bf16 %v9231_v47, %v9230_v4 }
0x1250   : > { %11615 = vmatmul.mubr.msk.f32.vlgmr.msra.gmra.mrb[44].mxu0 %vm7888_vm13, %v8553_v57  ;;  %11626 = vmatmul.mubr.msk.f32.vlgmr.msra.gmra.mrb[50].mxu1 %vm7888_vm13, %v8636_v15  ;;  %v9315_v57 = vld [vmem:[%s19898_s12 + $0x20] sm:$0xff]  ;;  %v9316_v15 = vld [vmem:[%s19898_s12 + $0x28] sm:$0xff] }
0x1251   : > { %13686 = vmatpush3.bf16.msra.mxu0 %v13685_v52  ;;  %13693 = vmatpush3.bf16.msra.mxu1 %v13692_v53  ;;  %v9311_v52 = vld [vmem:[%s19898_s12] sm:$0xff]  ;;  %v9312_v53 = vld [vmem:[%s19898_s12 + $0x8] sm:$0xff] }
0x1252   : > { %13687 = vmatprep.subr.bf16.mxu0 %v13948_v18  ;;  %13694 = vmatprep.subr.bf16.mxu1 %v13948_v18  ;;  %v13748_v24 = vpack.c.bf16 %v9312_v53, %v9311_v52  ;;  %v9320_v52 = vld [vmem:[%s19898_s12 + $0x48] sm:$0xff] }
0x1253   : > { %11636 = vmatprep.mubr.msk.f32.mxu0 %vm13949_vm4, %v13945_v0  ;;  %11647 = vmatprep.mubr.msk.f32.mxu1 %vm13949_vm4, %v13945_v0 }
0x1255   : > { %13690 = vmatpush3.bf16.msk.msra.mxu0 %vm19450_vm12, %v13688_v60  ;;  %13697 = vmatpush3.bf16.msk.msra.mxu1 %vm19450_vm12, %v13695_v63  ;;  %v13754_v60 = vpack.c.bf16 %v9316_v15, %v9315_v57  ;;  %v9317_v63 = vld [vmem:[%s19898_s12 + $0x30] sm:$0xff] }
0x1256   : > { %13698 = vmatprep.subr.bf16.mxu0 %v13948_v18  ;;  %13705 = vmatprep.subr.bf16.mxu1 %v13948_v18  ;;  %v13757_v1 = vpack.c.bf16 %v9318_v62, %v9317_v63 }
0x1258   : > { %11637 = vmatmul.mubr.msk.f32.vlgmr.msra.gmra.mrb[46].mxu0 %vm7888_vm13, %v8719_v13  ;;  %11648 = vmatmul.mubr.msk.f32.vlgmr.msra.gmra.mrb[52].mxu1 %vm7888_vm13, %v8802_v51 }
0x1259   : > { %13700 = vmatpush3.bf16.msra.mxu0 %v13699_v7  ;;  %13707 = vmatpush3.bf16.msra.mxu1 %v13706_v46 }
0x125a   : > { %13701 = vmatprep.subr.bf16.mxu0 %v13948_v18  ;;  %13708 = vmatprep.subr.bf16.mxu1 %v13948_v18 }
0x125b   : > { %11658 = vmatprep.mubr.msk.f32.mxu0 %vm13949_vm4, %v13945_v0  ;;  %11669 = vmatprep.mubr.msk.f32.mxu1 %vm13949_vm4, %v13945_v0 }
0x125d   : > { %13704 = vmatpush3.bf16.msk.msra.mxu0 %vm19450_vm12, %v13702_v16  ;;  %13711 = vmatpush3.bf16.msk.msra.mxu1 %vm19450_vm12, %v13709_v55 }
0x125e   : > { %13712 = vmatprep.subr.bf16.mxu0 %v13948_v18  ;;  %13719 = vmatprep.subr.bf16.mxu1 %v13948_v18 }
0x1260   : > { %11659 = vmatmul.mubr.msk.f32.vlgmr.msra.gmra.mrb[48].mxu0 %vm7888_vm13, %v8885_v27  ;;  %11670 = vmatmul.mubr.msk.f32.vlgmr.msra.gmra.mrb[54].mxu1 %vm7888_vm13, %v8968_v29 }
0x1261   : > { %13714 = vmatpush3.bf16.msra.mxu0 %v13713_v20  ;;  %13721 = vmatpush3.bf16.msra.mxu1 %v13720_v22 }
0x1262   : > { %13715 = vmatprep.subr.bf16.mxu0 %v13948_v18  ;;  %13722 = vmatprep.subr.bf16.mxu1 %v13948_v18 }
0x1263   : > { %11680 = vmatprep.mubr.msk.f32.mxu0 %vm13949_vm4, %v13945_v0  ;;  %11691 = vmatprep.mubr.msk.f32.mxu1 %vm13949_vm4, %v13945_v0 }
0x1265   : > { %13718 = vmatpush3.bf16.msk.msra.mxu0 %vm19450_vm12, %v13716_v30  ;;  %13725 = vmatpush3.bf16.msk.msra.mxu1 %vm19450_vm12, %v13723_v21 }
0x1266   : > { %13726 = vmatprep.subr.bf16.mxu0 %v13948_v18  ;;  %13747 = vmatprep.subr.bf16.mxu1 %v13948_v18 }
0x1268   : > { %11681 = vmatmul.mubr.msk.f32.vlgmr.msra.gmra.mrb[50].mxu0 %vm7888_vm13, %v9051_v26  ;;  %11692 = vmatmul.mubr.msk.f32.vlgmr.msra.gmra.mrb[56].mxu1 %vm7888_vm13, %v9134_v34 }
0x1269   : > { %11724 = vmatprep.mubr.msk.f32.mxu0 %vm13949_vm4, %v13945_v0  ;;  %11749 = vmatprep.mubr.msk.f32.mxu1 %vm13949_vm4, %v13945_v0 }
0x126a   : > { %13728 = vmatpush3.bf16.msra.mxu0 %v13727_v36  ;;  %13749 = vmatpush3.bf16.msra.mxu1 %v13748_v24  ;;  %v9235_v24 = vld [vmem:[%s19897_s11] sm:$0x1] }
0x126b   : > { %13729 = vmatprep.subr.bf16.mxu0 %v13948_v18  ;;  %13750 = vmatprep.subr.bf16.mxu1 %v13948_v18 }
0x126e   : > { %13731 = vmatpush3.bf16.msra.mxu0 %v13730_v28  ;;  %13752 = vmatpush3.bf16.msra.mxu1 %v13751_v56 }
0x126f   : > { %13732 = vmatprep.subr.bf16.mxu0 %v13948_v18  ;;  %13753 = vmatprep.subr.bf16.mxu1 %v13948_v18 }
0x1272   : > { %13734 = vmatpush3.bf16.msra.mxu0 %v13733_v41  ;;  %13755 = vmatpush3.bf16.msra.mxu1 %v13754_v60 }
0x1273   : > { %13735 = vmatprep.subr.bf16.mxu0 %v13948_v18  ;;  %13756 = vmatprep.subr.bf16.mxu1 %v13948_v18 }
0x1276   : > { %13737 = vmatpush3.bf16.msra.mxu0 %v13736_v31  ;;  %13758 = vmatpush3.bf16.msra.mxu1 %v13757_v1 }
0x1277   : > { %13738 = vmatprep.subr.bf16.mxu0 %v13948_v18  ;;  %13759 = vmatprep.subr.bf16.mxu1 %v13948_v18 }
0x127a   : > { %13740 = vmatpush3.bf16.msra.mxu0 %v13739_v14 }
0x127b   : > { %13741 = vmatprep.subr.bf16.mxu0 %v13948_v18 }
0x127e   : > { %13743 = vmatpush3.bf16.msra.mxu0 %v13742_v48  ;;  %v9217_v48 = vld [vmem:[%s19895_s9] sm:$0x1] }
0x127f   : > { %13744 = vmatprep.subr.bf16.mxu0 %v13948_v18 }
0x1282   : > { %13746 = vmatpush3.bf16.msra.mxu0 %v13745_v3 }
0x1283   : > { %11722 = vmatprep.subr.mxu0 %v13945_v0 }
0x1286   : > { %11723 = vmatpush3.msra.mxu0 %v9234_v50  ;;  %v9319_v50 = vld [vmem:[%s19898_s12 + $0x40] sm:$0xff] }
0x1287   : > { %v13760_v53 = vpack.c.bf16 %v9320_v52, %v9319_v50 }
0x1289   : > { %13761 = vmatpush3.bf16.msra.mxu1 %v13760_v53 }
0x128a   : > { %11747 = vmatprep.subr.mxu1 %v13945_v0  ;;  %v9322_v0 = vld [vmem:[%s19899_s13] sm:$0x1] }
0x128d   : > { %11748 = vmatpush3.msk.msra.mxu1 %vm2820_vm6, %v9321_v35 }
0x1303   : > { %v7975_v5 = vpop.f32.mrb[36].mxu0  ;;  %v8051_v40 = vpop.f32.mrb[42].mxu1 }
0x1304   : > { %v8052_v7 = vadd.f32 %v8051_v40, %v7975_v5  ;;  %v11528_v46 = vpop.f32.mrb[37].mxu0  ;;  %v11539_v8 = vpop.f32.mrb[43].mxu1 }
0x130b   : > { %v8133_v10 = vpop.f32.mrb[38].mxu0  ;;  %v8216_v45 = vpop.f32.mrb[44].mxu1 }
0x130c   : > { %v8137_v11 = vadd.f32 %v8133_v10, %v8052_v7  ;;  %v11550_v13 = vpop.f32.mrb[39].mxu0  ;;  %v11561_v51 = vpop.f32.mrb[45].mxu1 }
0x130e   : > { %v8220_v16 = vadd.f32 %v8216_v45, %v8137_v11 }
0x1313   : > { %v8299_v55 = vpop.f32.mrb[40].mxu0  ;;  %v8382_v32 = vpop.f32.mrb[46].mxu1 }
0x1314   : > { %v8303_v59 = vadd.f32 %v8299_v55, %v8220_v16  ;;  %v11572_v17 = vpop.f32.mrb[41].mxu0  ;;  %v11583_v19 = vpop.f32.mrb[47].mxu1 }
0x1316   : > { %v8386_v20 = vadd.f32 %v8382_v32, %v8303_v59 }
0x131b   : > { %v8465_v22 = vpop.f32.mrb[42].mxu0  ;;  %v8548_v25 = vpop.f32.mrb[48].mxu1 }
0x131c   : > { %v8469_v18 = vadd.f32 %v8465_v22, %v8386_v20  ;;  %v11594_v33 = vpop.f32.mrb[43].mxu0  ;;  %v11605_v9 = vpop.f32.mrb[49].mxu1 }
0x131e   : > { %v8552_v23 = vadd.f32 %v8548_v25, %v8469_v18 }
0x1323   : > { %v8631_v27 = vpop.f32.mrb[44].mxu0  ;;  %v8714_v29 = vpop.f32.mrb[50].mxu1 }
0x1324   : > { %v8635_v30 = vadd.f32 %v8631_v27, %v8552_v23  ;;  %v11616_v21 = vpop.f32.mrb[45].mxu0  ;;  %v11627_v26 = vpop.f32.mrb[51].mxu1 }
0x1326   : > { %v8718_v34 = vadd.f32 %v8714_v29, %v8635_v30 }
0x132b   : > { %v8797_v38 = vpop.f32.mrb[46].mxu0  ;;  %v8880_v58 = vpop.f32.mrb[52].mxu1 }
0x132c   : > { %v8801_v36 = vadd.f32 %v8797_v38, %v8718_v34  ;;  %v11638_v37 = vpop.f32.mrb[47].mxu0  ;;  %v11649_v6 = vpop.f32.mrb[53].mxu1 }
0x132e   : > { %v8884_v28 = vadd.f32 %v8880_v58, %v8801_v36 }
0x1333   : > { %v8963_v12 = vpop.f32.mrb[48].mxu0  ;;  %v9046_v39 = vpop.f32.mrb[54].mxu1 }
0x1334   : > { %v8967_v41 = vadd.f32 %v8963_v12, %v8884_v28  ;;  %v11660_v42 = vpop.f32.mrb[49].mxu0  ;;  %v11671_v2 = vpop.f32.mrb[55].mxu1 }
0x1336   : > { %v9050_v31 = vadd.f32 %v9046_v39, %v8967_v41 }
0x133b   : > { %v9129_v43 = vpop.f32.mrb[50].mxu0  ;;  %v9212_v44 = vpop.f32.mrb[56].mxu1 }
0x133c   : > { %v9133_v14 = vadd.f32 %v9129_v43, %v9050_v31  ;;  %v11682_v4 = vpop.f32.mrb[51].mxu0  ;;  %v11693_v47 = vpop.f32.mrb[57].mxu1 }
0x133e   : > { %v9216_v49 = vadd.f32 %v9212_v44, %v9133_v14 }
0x1340   : > { %v9218_v61 = vadd.f32 %v9217_v48, %v9216_v49 }
0x1342   : > { %v9219_v3 = vmax.f32 %v9218_v61, 0.0 }
0x1344   : > { %11725 = vmatmul.mubr.msk.f32.vlgmr.msra.gmra.mrb[52].mxu0 %vm9236_vm14, %v9219_v3 }
0x1417   : > { %v9306_v54 = vpop.f32.mrb[52].mxu0 }
0x1418   : > { %v9307_v56 = vadd.f32 %v9306_v54, %v9235_v24  ;;  %v11726_v57 = vpop.f32.mrb[53].mxu0 }
0x141a   : > { %v9310_v15 = vmax.f32 %v9307_v56, 0.0 }
0x141c   : > { %11750 = vmatmul.mubr.msk.f32.vlgmr.msra.gmra.mrb[58].mxu1 %vm9323_vm15, %v9310_v15 }
0x14ef   : > { %v9396_v60 = vpop.f32.mrb[58].mxu1 }
0x14f0   : > { %v9397_v63 = vadd.f32 %v9396_v60, %v9322_v0  ;;  %v11751_v62 = vpop.f32.mrb[59].mxu1 }
0x14f2   : > { %9401 = vst.msk [vmem:[%s459_s18] sm:$0x1] %vm9400_vm0, %v9397_v63 }
0x14f3   : > { %13894 = shalt.err (!%p13891_p3)
}
0x14f4   : > { %s13895_s15 = scalar_lea.hbm %s19844_s22, 16  ;;  %s13899_s18 = scalar_lea.hbm %s19900_s14, 32 }
0x14f5   : > { %p13896_p4 = scmp.ne.s32.totalorder %s19844_s22, %s13895_s15  ;;  %p13900_p9 = scmp.lt.u32.totalorder %s19844_s22, %s19900_s14 }
0x14f6   : > { %p13901_p10 = scmp.lt.u32.totalorder %s13899_s18, %s13895_s15  ;;  %p13903_p12 = scmp.lt.u32.totalorder %s13895_s15, %s19844_s22 }
0x14f7   : > { %p13897_p7 = pnand %p13896_p4, %p14064_p5 }
0x14f8   : > { %p13902_p11 = por %p13901_p10, %p13900_p9 }
0x14f9   : > { %p13898_p8 = pneg %p13897_p7 }
0x14fa   : > { %p13904_p13 = por %p13903_p12, %p13902_p11 }
0x14fc   : > { %p13905_p0 = pnand %p13904_p13, %p13898_p8 }
0x14fe   : > { %13908 = shalt.err (!%p13905_p0)
}
0x14ff   : > { %13835 = dma.vmem_to_hbm [thread:$0]  (%p14064_p5), %s19846_s20, 16, %s19844_s22, %s9403_s25  }
0x1500 PF: > { %p13841_p1 = scmp.ge.s32.totalorder %s13943_s16, 2  ;;  %s9427_s1 = sand.u32 1, %s13931_s29  }
0x1501   : > { %s9428_s17 = scalar_lea.sflag [#allocation4], %s9427_s1 }
0x1502   : > { %p13838_p2 = pnand %p13841_p1, %p14068_p6 }
0x1504   : > { %13926 = dma.done.wait (!%p13838_p2), %s9428_s17, 16  }
0x1505   : > { %13928 = vsyncadd (!%p13838_p2), %s9428_s17, 4294967280  ;;  %s19916_s2 = sld [smem:[#allocation6_spill]]  ;;  %s19917_s15 = sld [smem:[#allocation7_spill]] }
0x1506   : > { %p24_p3 = scmp.ge.s32.totalorder %s14051_s19, 4   ;;  %s19918_s29 = smov %s13935_s30 }
0x1507   : > { %s19920_s16 = smov %s14051_s19 }
0x1508   :  { %26 = sbr.rel (!%p24_p3) target bundleno = 7 (0x7), region = 180 }
0x150b   : > { %s19919_s30 = smov %s19916_s2 }
0x150f   :  { %9432 = vsyncpa [#allocation4], 1 }
0x1510   :  { %9434 = vsyncpa [#allocation4 + $0x1], 1 }

</bundles_post_ra>
